<compile_context>
chip_gen: v7x
topology: tpu7x:2x2x1
jax: 0.10.0
libtpu: 0.0.40
codegen_flags: <defaults>
</compile_context>

<pallas_src>
import functools
import math

import jax
import jax.numpy as jnp
from jax.experimental import pallas as pl
from jax.experimental.pallas import tpu as pltpu


# --------------------------------------------------------------------------
# tiling helpers
# --------------------------------------------------------------------------

def _pick_row_tile(m):
    # mem-bound row-tiled kernels: biggest tile that amortizes per-step overhead.
    return m if m <= 512 else 512


def _pick_channel_tile(c):
    for t in (256, 128):
        if c % t == 0:
            return t
    return c


def _pick_scan_chunk(l):
    sub = 8
    lchunk = 64 if l >= 64 else -(-l // sub) * sub
    return lchunk, sub


def _round_up(x, m):
    return -(-x // m) * m


# --------------------------------------------------------------------------
# Kernel 1: LayerNorm (ln_1) + in_proj matmul (two lane-dense outputs)
# --------------------------------------------------------------------------

def _ln_inproj_kernel(x_ref, g_ref, b_ref, wx_ref, wz_ref, ox_ref, oz_ref, *, eps):
    x = x_ref[...]
    mu = jnp.mean(x, axis=-1, keepdims=True)
    xc = x - mu
    var = jnp.mean(xc * xc, axis=-1, keepdims=True)
    xn = (xc * jax.lax.rsqrt(var + eps) * g_ref[...] + b_ref[...]).astype(jnp.bfloat16)
    ox_ref[...] = jnp.dot(xn, wx_ref[...], preferred_element_type=jnp.float32)
    oz_ref[...] = jnp.dot(xn, wz_ref[...], preferred_element_type=jnp.float32)


def ln_inproj(x, gamma, beta, wx_t, wz_t, eps, tm):
    M, C = x.shape
    Dn = wx_t.shape[1]
    return pl.pallas_call(
        functools.partial(_ln_inproj_kernel, eps=eps),
        out_shape=(jax.ShapeDtypeStruct((M, Dn), jnp.float32),
                   jax.ShapeDtypeStruct((M, Dn), jnp.float32)),
        grid=(pl.cdiv(M, tm),),
        in_specs=[
            pl.BlockSpec((tm, C), lambda m: (m, 0)),
            pl.BlockSpec((1, C), lambda m: (0, 0)),
            pl.BlockSpec((1, C), lambda m: (0, 0)),
            pl.BlockSpec((C, Dn), lambda m: (0, 0)),
            pl.BlockSpec((C, Dn), lambda m: (0, 0)),
        ],
        out_specs=(pl.BlockSpec((tm, Dn), lambda m: (m, 0)),
                   pl.BlockSpec((tm, Dn), lambda m: (m, 0))),
        compiler_params=pltpu.CompilerParams(dimension_semantics=("parallel",)),
    )(x.astype(jnp.float32), gamma.reshape(1, C).astype(jnp.float32),
      beta.reshape(1, C).astype(jnp.float32), wx_t, wz_t)


# --------------------------------------------------------------------------
# Kernel 2: depthwise 3x3 conv + SiLU (batch x channel-tile grid)
# --------------------------------------------------------------------------

def _dwconv_silu_kernel(xp_ref, w_ref, b_ref, o_ref):
    H, W, TC = o_ref.shape
    kh, kw = w_ref.shape[0], w_ref.shape[1]
    x = xp_ref[...]                          # (Hp, Wp, tc)
    w = w_ref[...]
    acc = jnp.zeros((H, W, TC), jnp.float32)
    for j in range(kw):                      # one sublane-offset slice per kw tap
        xj = x[:, j:j + W, :]                # (Hp, W, tc)
        for i in range(kh):                  # dim-0 slices are free
            acc = acc + xj[i:i + H, :, :] * w[i:i + 1, j:j + 1, :]
    acc = acc + b_ref[...]
    o_ref[...] = acc * jax.nn.sigmoid(acc)   # SiLU fused


def dwconv_silu(xpad, w, b, H, W, tc):
    Bsz, Hp, Wp, C = xpad.shape
    kh, kw, _ = w.shape
    return pl.pallas_call(
        _dwconv_silu_kernel,
        out_shape=jax.ShapeDtypeStruct((Bsz, H, W, C), jnp.float32),
        grid=(Bsz, C // tc),
        in_specs=[
            pl.BlockSpec((None, Hp, Wp, tc), lambda bb, cc: (bb, 0, 0, cc)),
            pl.BlockSpec((kh, kw, tc), lambda bb, cc: (0, 0, cc)),
            pl.BlockSpec((1, 1, tc), lambda bb, cc: (0, 0, cc)),
        ],
        out_specs=pl.BlockSpec((None, H, W, tc), lambda bb, cc: (bb, 0, 0, cc)),
        compiler_params=pltpu.CompilerParams(
            dimension_semantics=("parallel", "parallel")),
    )(xpad.astype(jnp.float32), w.astype(jnp.float32),
      b.reshape(1, 1, C).astype(jnp.float32))


# --------------------------------------------------------------------------
# Kernel 3: merged 4-direction projection (x_proj with dt_proj folded in)
# --------------------------------------------------------------------------

def _dirproj_kernel(x_ref, w_ref, o_ref):
    o_ref[...] = jnp.dot(x_ref[...].astype(jnp.bfloat16), w_ref[...],
                         preferred_element_type=jnp.float32)


def dir_proj(x, w_t, tm):
    # x: (M, Dn) f32; w_t: (Dn, Wpad) bf16 (zero-padded to a multiple of 128)
    M, Dn = x.shape
    Wpad = w_t.shape[1]
    return pl.pallas_call(
        _dirproj_kernel,
        out_shape=jax.ShapeDtypeStruct((M, Wpad), jnp.float32),
        grid=(pl.cdiv(M, tm),),
        in_specs=[
            pl.BlockSpec((tm, Dn), lambda m: (m, 0)),
            pl.BlockSpec((Dn, Wpad), lambda m: (0, 0)),
        ],
        out_specs=pl.BlockSpec((tm, Wpad), lambda m: (m, 0)),
        compiler_params=pltpu.CompilerParams(dimension_semantics=("parallel",)),
    )(x, w_t)


# --------------------------------------------------------------------------
# Kernel 4: selective scan, lanes = (b, k, d_inner); compact B/C, in-VMEM expand
# --------------------------------------------------------------------------

def _scan_kernel(u_ref, dt_ref, bc_ref, cc_ref, a_ref, d_ref, bias_ref, e_ref,
                 y_ref, h_ref, *, sub):
    # u/dt/y : (lchunk, Ng)   ; bc/cc : (lchunk, S, BK) compact
    # a      : (S, Ng)        ; d/bias: (1, Ng)
    # e      : (BK, Ng)  0/1 expansion matrix selecting this lane group's columns
    # h scratch (S, Ng) persists across L-chunks (inner "arbitrary" grid axis).
    @pl.when(pl.program_id(1) == 0)
    def _():
        h_ref[...] = jnp.zeros(h_ref.shape, h_ref.dtype)

    A = a_ref[...]
    D = d_ref[...]
    bias = bias_ref[...]
    E = e_ref[...]
    lchunk = u_ref.shape[0]
    S = A.shape[0]
    BK = E.shape[0]
    Ng = A.shape[1]

    def body(c, h):
        base = pl.multiple_of(c * sub, sub)
        u_c = u_ref[pl.ds(base, sub), :]                               # (sub, Ng)
        delta_c = jax.nn.softplus(dt_ref[pl.ds(base, sub), :] + bias)  # (sub, Ng)
        du_c = delta_c * u_c
        # ---- h-independent prework, off the serial chain ----
        dA_all = jnp.exp(delta_c[:, None, :] * A[None, :, :])          # (sub, S, Ng)
        bx = jnp.dot(bc_ref[pl.ds(base, sub)].reshape(sub * S, BK), E,
                     preferred_element_type=jnp.float32).reshape(sub, S, Ng)
        cx = jnp.dot(cc_ref[pl.ds(base, sub)].reshape(sub * S, BK), E,
                     preferred_element_type=jnp.float32).reshape(sub, S, Ng)
        bu_all = bx * du_c[:, None, :]                                 # (sub, S, Ng)
        # ---- serial recurrence: one VPU FMA + one sublane reduce per step ----
        rows = []
        for t in range(sub):                                           # unrolled
            h = dA_all[t] * h + bu_all[t]
            rows.append(jnp.sum(cx[t] * h, axis=0, keepdims=True))
        # one sublane-aligned slab store per `sub` timesteps
        y_ref[pl.ds(base, sub), :] = jnp.concatenate(rows, axis=0) + D * u_c
        return h

    h_ref[...] = jax.lax.fori_loop(0, lchunk // sub, body, h_ref[...])


def selective_scan(u, dt, bc, cc, a_full, d_full, bias_full, e_groups,
                   lchunk, sub, G):
    L_pad, N = u.shape
    S = bc.shape[1]
    BK = bc.shape[2]
    Ng = N // G
    return pl.pallas_call(
        functools.partial(_scan_kernel, sub=sub),
        out_shape=jax.ShapeDtypeStruct((L_pad, N), jnp.float32),
        grid=(G, L_pad // lchunk),
        in_specs=[
            pl.BlockSpec((lchunk, Ng), lambda g, c: (c, g)),
            pl.BlockSpec((lchunk, Ng), lambda g, c: (c, g)),
            pl.BlockSpec((lchunk, S, BK), lambda g, c: (c, 0, 0)),
            pl.BlockSpec((lchunk, S, BK), lambda g, c: (c, 0, 0)),
            pl.BlockSpec((S, Ng), lambda g, c: (0, g)),
            pl.BlockSpec((1, Ng), lambda g, c: (0, g)),
            pl.BlockSpec((1, Ng), lambda g, c: (0, g)),
            pl.BlockSpec((None, BK, Ng), lambda g, c: (g, 0, 0)),
        ],
        out_specs=pl.BlockSpec((lchunk, Ng), lambda g, c: (c, g)),
        scratch_shapes=[pltpu.VMEM((S, Ng), jnp.float32)],
        compiler_params=pltpu.CompilerParams(
            dimension_semantics=("parallel", "arbitrary")),
    )(u, dt, bc, cc, a_full, d_full, bias_full, e_groups)


# --------------------------------------------------------------------------
# Kernel 5: out_norm * SiLU(z) gate + out_proj + residual add
# --------------------------------------------------------------------------

def _gate_outproj_kernel(y_ref, z_ref, r_ref, g_ref, b_ref, w_ref, o_ref, *, eps):
    y = y_ref[...]
    mu = jnp.mean(y, axis=-1, keepdims=True)
    yc = y - mu
    var = jnp.mean(yc * yc, axis=-1, keepdims=True)
    yn = yc * jax.lax.rsqrt(var + eps) * g_ref[...] + b_ref[...]
    z = z_ref[...]
    gated = (yn * (z * jax.nn.sigmoid(z))).astype(jnp.bfloat16)
    o_ref[...] = r_ref[...] + jnp.dot(gated, w_ref[...],
                                      preferred_element_type=jnp.float32)


def gate_outproj(y, z, resid, gamma, beta, w_t, eps, tm):
    # TODO(synk): pad the out_proj output width to a multiple of 128 (needs padded residual + final
    # slice); left unpadded since it is the single final (M, d_model) store.
    M, Dn = y.shape
    C = w_t.shape[1]
    return pl.pallas_call(
        functools.partial(_gate_outproj_kernel, eps=eps),
        out_shape=jax.ShapeDtypeStruct((M, C), jnp.float32),
        grid=(pl.cdiv(M, tm),),
        in_specs=[
            pl.BlockSpec((tm, Dn), lambda m: (m, 0)),
            pl.BlockSpec((tm, Dn), lambda m: (m, 0)),
            pl.BlockSpec((tm, C), lambda m: (m, 0)),
            pl.BlockSpec((1, Dn), lambda m: (0, 0)),
            pl.BlockSpec((1, Dn), lambda m: (0, 0)),
            pl.BlockSpec((Dn, C), lambda m: (0, 0)),
        ],
        out_specs=pl.BlockSpec((tm, C), lambda m: (m, 0)),
        compiler_params=pltpu.CompilerParams(dimension_semantics=("parallel",)),
    )(y.astype(jnp.float32), z.astype(jnp.float32), resid.astype(jnp.float32),
      gamma.reshape(1, Dn).astype(jnp.float32),
      beta.reshape(1, Dn).astype(jnp.float32), w_t)


# --------------------------------------------------------------------------
# Parameter init (deterministic, synthetic) and forward pass
# --------------------------------------------------------------------------

def init_params(key, d_model, d_state=16, d_conv=3, expand=2):
    d_inner = int(expand * d_model)
    dt_rank = math.ceil(d_model / 16)
    K = 4
    keys = jax.random.split(key, 8)

    def uni(k, shape, scale):
        return jax.random.uniform(k, shape, jnp.float32, -scale, scale)

    p = {}
    p['ln1_w'] = jnp.ones((d_model,), jnp.float32)
    p['ln1_b'] = jnp.zeros((d_model,), jnp.float32)
    p['in_proj_w'] = uni(keys[0], (2 * d_inner, d_model), 1.0 / math.sqrt(d_model))
    p['conv_w'] = uni(keys[1], (d_conv, d_conv, d_inner), 1.0 / math.sqrt(d_conv * d_conv))
    p['conv_b'] = uni(keys[2], (d_inner,), 1.0 / math.sqrt(d_conv * d_conv))
    p['x_proj_w'] = uni(keys[3], (K, dt_rank + 2 * d_state, d_inner), 1.0 / math.sqrt(d_inner))
    p['dt_w'] = uni(keys[4], (K, d_inner, dt_rank), dt_rank ** -0.5)
    dt = jnp.exp(jax.random.uniform(keys[5], (K, d_inner), jnp.float32)
                 * (math.log(0.1) - math.log(0.001)) + math.log(0.001))
    dt = jnp.maximum(dt, 1e-4)
    p['dt_b'] = dt + jnp.log(-jnp.expm1(-dt))                           # softplus inverse
    A_row = jnp.log(jnp.arange(1, d_state + 1, dtype=jnp.float32))
    p['A_logs'] = jnp.tile(A_row[None, None, :], (K, d_inner, 1)).reshape(K * d_inner, d_state)
    p['Ds'] = jnp.ones((K * d_inner,), jnp.float32)
    p['out_norm_w'] = jnp.ones((d_inner,), jnp.float32)
    p['out_norm_b'] = jnp.zeros((d_inner,), jnp.float32)
    p['out_proj_w'] = uni(keys[6], (d_model, d_inner), 1.0 / math.sqrt(d_inner))
    return p


def vss_block_no_cbam_forward(x_nchw, p):
    Bsz, C, H, W = x_nchw.shape
    Dn = p['conv_b'].shape[0]            # d_inner
    S = p['A_logs'].shape[-1]            # d_state
    dt_rank = p['dt_w'].shape[-1]
    K = 4
    L = H * W
    M = Bsz * L
    BK = Bsz * K
    N = BK * Dn                          # scan lane width

    tm = _pick_row_tile(M)
    lchunk, sub = _pick_scan_chunk(L)

    x_nhwc = jnp.transpose(x_nchw, (0, 2, 3, 1)).astype(jnp.float32)     # (B,H,W,C)
    x_flat = x_nhwc.reshape(M, C)

    # ---- 1) ln_1 (eps=1e-6) fused with in_proj (no bias); two lane-dense outputs ----
    wx_t = p['in_proj_w'][:Dn].T.astype(jnp.bfloat16)                    # (C, Dn)
    wz_t = p['in_proj_w'][Dn:].T.astype(jnp.bfloat16)                    # (C, Dn)
    x_in, z = ln_inproj(x_flat, p['ln1_w'], p['ln1_b'], wx_t, wz_t, 1e-6, tm)

    # ---- 2) depthwise conv2d(3x3, pad 1, bias) + SiLU ----
    xpad = jnp.pad(x_in.reshape(Bsz, H, W, Dn), ((0, 0), (1, 1), (1, 1), (0, 0)))
    tc = _pick_channel_tile(Dn)
    xa = dwconv_silu(xpad, p['conv_w'], p['conv_b'], H, W, tc)           # (B,H,W,Dn)

    # ---- 3) merged 4-direction projection on UN-permuted tokens (dt_proj folded in) ----
    xp_t = jnp.transpose(p['x_proj_w'], (0, 2, 1))                       # (K, Dn, dt_rank+2S)
    wdt_t = jnp.einsum('kdr,krn->kdn', xp_t[:, :, :dt_rank],
                       jnp.transpose(p['dt_w'], (0, 2, 1)))              # (K, Dn, Dn)
    w_b = xp_t[:, :, dt_rank:dt_rank + S]                                # (K, Dn, S)
    w_c = xp_t[:, :, dt_rank + S:]                                       # (K, Dn, S)
    w_dirs = jnp.concatenate(
        [wdt_t.transpose(1, 0, 2).reshape(Dn, K * Dn),
         w_b.transpose(1, 0, 2).reshape(Dn, K * S),
         w_c.transpose(1, 0, 2).reshape(Dn, K * S)], axis=1)             # (Dn, Wtot)
    Wtot = K * Dn + 2 * K * S
    Wpad = max(128, _round_up(Wtot, 128))
    w_dirs = jnp.pad(w_dirs, ((0, 0), (0, Wpad - Wtot)))                 # lane-dense output

    proj = dir_proj(xa.reshape(M, Dn), w_dirs.astype(jnp.bfloat16), tm)  # (M, Wpad)
    dt_all = proj[:, :K * Dn].reshape(Bsz, L, K, Dn)
    b_all = proj[:, K * Dn:K * Dn + K * S].reshape(Bsz, L, K, S)
    c_all = proj[:, K * Dn + K * S:K * Dn + 2 * K * S].reshape(Bsz, L, K, S)

    # ---- direction-permuted sequences (pure data movement; fused by XLA) ----
    xa_seq0 = xa.reshape(Bsz, L, Dn)                                     # h-major
    xa_seq1 = xa.transpose(0, 2, 1, 3).reshape(Bsz, L, Dn)               # w-major
    u_dirs = jnp.stack([xa_seq0, xa_seq1, xa_seq0[:, ::-1], xa_seq1[:, ::-1]],
                       axis=1)                                           # (B,K,L,Dn)

    def perm_dirs(t):     # t: (B, L, K, X) per-token values -> (B, K, L, X) direction sequences
        X = t.shape[-1]
        t0 = t[:, :, 0]
        t1 = t[:, :, 1].reshape(Bsz, H, W, X).transpose(0, 2, 1, 3).reshape(Bsz, L, X)
        t2 = t[:, :, 2][:, ::-1]
        t3 = t[:, :, 3].reshape(Bsz, H, W, X).transpose(0, 2, 1, 3).reshape(Bsz, L, X)[:, ::-1]
        return jnp.stack([t0, t1, t2, t3], axis=1)

    dt_dirs = perm_dirs(dt_all)                                          # (B,K,L,Dn)
    b_dirs = perm_dirs(b_all)                                            # (B,K,L,S)
    c_dirs = perm_dirs(c_all)                                            # (B,K,L,S)

    # scan layouts: lanes = (b*K + k)*Dn + d; B/C stay COMPACT over (b,k)
    u_scan = u_dirs.transpose(2, 0, 1, 3).reshape(L, N)
    dt_scan = dt_dirs.transpose(2, 0, 1, 3).reshape(L, N)
    b_c = b_dirs.transpose(2, 3, 0, 1).reshape(L, S, BK)
    c_c = c_dirs.transpose(2, 3, 0, 1).reshape(L, S, BK)

    # pad L so the scan always uses full chunks / slab stores (padded steps come after all
    # real steps in every direction, so they cannot affect real outputs)
    L_pad = _round_up(L, lchunk)
    if L_pad != L:
        pr = L_pad - L
        u_scan = jnp.pad(u_scan, ((0, pr), (0, 0)))
        dt_scan = jnp.pad(dt_scan, ((0, pr), (0, 0)))
        b_c = jnp.pad(b_c, ((0, pr), (0, 0), (0, 0)))
        c_c = jnp.pad(c_c, ((0, pr), (0, 0), (0, 0)))

    A = -jnp.exp(p['A_logs'].astype(jnp.float32)).reshape(K, Dn, S)
    a_full = jnp.broadcast_to(jnp.transpose(A, (2, 0, 1))[:, None],
                              (S, Bsz, K, Dn)).reshape(S, N)
    d_full = jnp.broadcast_to(p['Ds'].reshape(1, K, Dn), (Bsz, K, Dn)).reshape(1, N)
    bias_full = jnp.broadcast_to(p['dt_b'].reshape(1, K, Dn), (Bsz, K, Dn)).reshape(1, N)

    # optional 2-way lane-group split (v7x megacore); only when both halves stay lane-dense
    G = 2 if (BK % 2 == 0 and N % 2 == 0 and (N // 2) % 128 == 0) else 1
    e_full = jnp.repeat(jnp.eye(BK, dtype=jnp.float32), Dn, axis=1)      # (BK, N)
    e_groups = e_full.reshape(BK, G, N // G).transpose(1, 0, 2)          # (G, BK, N/G)

    y_scan = selective_scan(u_scan, dt_scan, b_c, c_c, a_full, d_full, bias_full,
                            e_groups, lchunk, sub, G)[:L]                # (L, N)
    out_y = jnp.transpose(y_scan.reshape(L, Bsz, K, Dn), (2, 1, 0, 3))   # (K,B,L,Dn)

    def wh_to_hw(t):   # reorder a w-major sequence back to h-major
        return jnp.transpose(t.reshape(Bsz, W, H, Dn), (0, 2, 1, 3)).reshape(Bsz, L, Dn)

    # 4-way recombination stays in XLA: the permuted reads + add fuse into one single-pass gather
    # over y_scan, which is cheaper than materializing 4 permuted arrays for a Pallas add.
    y1 = out_y[0]
    y2 = out_y[2][:, ::-1]
    y3 = wh_to_hw(out_y[1])
    y4 = wh_to_hw(out_y[3][:, ::-1])
    y_sum = (y1 + y2 + y3 + y4).reshape(M, Dn)

    # ---- 5) out_norm (eps=1e-5) * SiLU(z) gate + out_proj (no bias) + residual add ----
    out_flat = gate_outproj(y_sum, z, x_flat, p['out_norm_w'], p['out_norm_b'],
                            p['out_proj_w'].T.astype(jnp.bfloat16), 1e-5, tm)

    # drop_path(0) / dropout(0) are identity
    return jnp.transpose(out_flat.reshape(Bsz, H, W, C), (0, 3, 1, 2))   # back to NCHW


# --------------------------------------------------------------------------

if __name__ == "__main__":
    key = jax.random.PRNGKey(0)
    kx, kp = jax.random.split(key)
    B, C, H, W = 2, 4, 16, 16              # hidden_dim=4 -> d_inner=8, dt_rank=1, d_state=16
    x = jax.random.normal(kx, (B, C, H, W), jnp.float32)
    params = init_params(kp, d_model=C)

    fwd = jax.jit(vss_block_no_cbam_forward)
    out = fwd(x, params)
    out = jax.block_until_ready(out)

    assert out.shape == (B, C, H, W)
    assert bool(jnp.all(jnp.isfinite(out)))
    print("KERNEL_OK")
</pallas_src>

<mosaic_0001>
module attributes {stable_mosaic.version = 11 : i64} {
  func.func @_ln_inproj_kernel(%arg0: i32, %arg1: memref<512x4xf32, #tpu.memory_space<vmem>>, %arg2: memref<1x4xf32, #tpu.memory_space<vmem>>, %arg3: memref<1x4xf32, #tpu.memory_space<vmem>>, %arg4: memref<4x8xbf16, #tpu.memory_space<vmem>>, %arg5: memref<4x8xbf16, #tpu.memory_space<vmem>>, %arg6: memref<512x8xf32, #tpu.memory_space<vmem>>, %arg7: memref<512x8xf32, #tpu.memory_space<vmem>>) attributes {dimension_semantics = [#tpu.dimension_semantics<parallel>], iteration_bounds = array<i64: 1>, scalar_prefetch = 0 : i64, scratch_operands = 0 : i64, tpu.core_type = #tpu.core_type<tc>, window_params = [{transform_indices = @transform_0, window_bounds = array<i64: 512, 4>}, {pipeline_mode = #tpu.pipeline_mode<synchronous>, transform_indices = @transform_1, window_bounds = array<i64: 1, 4>}, {pipeline_mode = #tpu.pipeline_mode<synchronous>, transform_indices = @transform_2, window_bounds = array<i64: 1, 4>}, {pipeline_mode = #tpu.pipeline_mode<synchronous>, transform_indices = @transform_3, window_bounds = array<i64: 4, 8>}, {pipeline_mode = #tpu.pipeline_mode<synchronous>, transform_indices = @transform_4, window_bounds = array<i64: 4, 8>}, {transform_indices = @transform_5, window_bounds = array<i64: 512, 8>}, {transform_indices = @transform_6, window_bounds = array<i64: 512, 8>}]} {
    %c0 = arith.constant 0 : index
    %c0_0 = arith.constant 0 : index
    %0 = vector.load %arg1[%c0, %c0_0] : memref<512x4xf32, #tpu.memory_space<vmem>>, vector<512x4xf32>
    %cst = arith.constant dense<0.000000e+00> : vector<512xf32>
    %1 = vector.multi_reduction <add>, %0, %cst [1] : vector<512x4xf32> to vector<512xf32>
    %2 = vector.shape_cast %1 : vector<512xf32> to vector<512x1xf32>
    %cst_1 = arith.constant 4.000000e+00 : f32
    %3 = vector.broadcast %cst_1 : f32 to vector<512x1xf32>
    %4 = arith.divf %2, %3 : vector<512x1xf32>
    %5 = vector.broadcast %4 : vector<512x1xf32> to vector<512x4xf32>
    %6 = arith.subf %0, %5 : vector<512x4xf32>
    %7 = arith.mulf %6, %6 : vector<512x4xf32>
    %cst_2 = arith.constant dense<0.000000e+00> : vector<512xf32>
    %8 = vector.multi_reduction <add>, %7, %cst_2 [1] : vector<512x4xf32> to vector<512xf32>
    %9 = vector.shape_cast %8 : vector<512xf32> to vector<512x1xf32>
    %cst_3 = arith.constant 4.000000e+00 : f32
    %10 = vector.broadcast %cst_3 : f32 to vector<512x1xf32>
    %11 = arith.divf %9, %10 : vector<512x1xf32>
    %cst_4 = arith.constant 9.99999997E-7 : f32
    %12 = vector.broadcast %cst_4 : f32 to vector<512x1xf32>
    %13 = arith.addf %11, %12 : vector<512x1xf32>
    %14 = math.rsqrt %13 : vector<512x1xf32>
    %15 = vector.broadcast %14 : vector<512x1xf32> to vector<512x4xf32>
    %16 = arith.mulf %6, %15 : vector<512x4xf32>
    %c0_5 = arith.constant 0 : index
    %c0_6 = arith.constant 0 : index
    %17 = vector.load %arg2[%c0_5, %c0_6] : memref<1x4xf32, #tpu.memory_space<vmem>>, vector<1x4xf32>
    %18 = vector.broadcast %17 : vector<1x4xf32> to vector<512x4xf32>
    %19 = arith.mulf %16, %18 : vector<512x4xf32>
    %c0_7 = arith.constant 0 : index
    %c0_8 = arith.constant 0 : index
    %20 = vector.load %arg3[%c0_7, %c0_8] : memref<1x4xf32, #tpu.memory_space<vmem>>, vector<1x4xf32>
    %21 = vector.broadcast %20 : vector<1x4xf32> to vector<512x4xf32>
    %22 = arith.addf %19, %21 : vector<512x4xf32>
    %23 = arith.truncf %22 : vector<512x4xf32> to vector<512x4xbf16>
    %c0_9 = arith.constant 0 : index
    %c0_10 = arith.constant 0 : index
    %24 = vector.load %arg4[%c0_9, %c0_10] : memref<4x8xbf16, #tpu.memory_space<vmem>>, vector<4x8xbf16>
    %cst_11 = arith.constant dense<0.000000e+00> : vector<512x8xf32>
    %25 = tpu.matmul %23, %24, %cst_11 {dimension_numbers = #tpu.dot_dimension_numbers<[1], [0], [0], [1], [0, 0, 1, 1], [], []>} : vector<512x4xbf16>, vector<4x8xbf16>, vector<512x8xf32> -> vector<512x8xf32>
    %c0_12 = arith.constant 0 : index
    %c0_13 = arith.constant 0 : index
    %26 = vector.load %arg6[%c0_12, %c0_13] : memref<512x8xf32, #tpu.memory_space<vmem>>, vector<512x8xf32>
    tpu.vector_store %arg6[%c0_12, %c0_13], %25 {strides = array<i32>} : memref<512x8xf32, #tpu.memory_space<vmem>>, vector<512x8xf32>,
    %c0_14 = arith.constant 0 : index
    %c0_15 = arith.constant 0 : index
    %27 = vector.load %arg5[%c0_14, %c0_15] : memref<4x8xbf16, #tpu.memory_space<vmem>>, vector<4x8xbf16>
    %cst_16 = arith.constant dense<0.000000e+00> : vector<512x8xf32>
    %28 = tpu.matmul %23, %27, %cst_16 {dimension_numbers = #tpu.dot_dimension_numbers<[1], [0], [0], [1], [0, 0, 1, 1], [], []>} : vector<512x4xbf16>, vector<4x8xbf16>, vector<512x8xf32> -> vector<512x8xf32>
    %c0_17 = arith.constant 0 : index
    %c0_18 = arith.constant 0 : index
    %29 = vector.load %arg7[%c0_17, %c0_18] : memref<512x8xf32, #tpu.memory_space<vmem>>, vector<512x8xf32>
    tpu.vector_store %arg7[%c0_17, %c0_18], %28 {strides = array<i32>} : memref<512x8xf32, #tpu.memory_space<vmem>>, vector<512x8xf32>,
    return
  }
  func.func @transform_0(%arg0: i32) -> (i32, i32) {
    %c0_i32 = arith.constant 0 : i32
    %c0_i32_0 = arith.constant 0 : i32
    return %arg0, %c0_i32 : i32, i32
  }
  func.func @transform_1(%arg0: i32) -> (i32, i32) {
    %c0_i32 = arith.constant 0 : i32
    %c0_i32_0 = arith.constant 0 : i32
    %c0_i32_1 = arith.constant 0 : i32
    return %c0_i32, %c0_i32_0 : i32, i32
  }
  func.func @transform_2(%arg0: i32) -> (i32, i32) {
    %c0_i32 = arith.constant 0 : i32
    %c0_i32_0 = arith.constant 0 : i32
    %c0_i32_1 = arith.constant 0 : i32
    return %c0_i32, %c0_i32_0 : i32, i32
  }
  func.func @transform_3(%arg0: i32) -> (i32, i32) {
    %c0_i32 = arith.constant 0 : i32
    %c0_i32_0 = arith.constant 0 : i32
    %c0_i32_1 = arith.constant 0 : i32
    return %c0_i32, %c0_i32_0 : i32, i32
  }
  func.func @transform_4(%arg0: i32) -> (i32, i32) {
    %c0_i32 = arith.constant 0 : i32
    %c0_i32_0 = arith.constant 0 : i32
    %c0_i32_1 = arith.constant 0 : i32
    return %c0_i32, %c0_i32_0 : i32, i32
  }
  func.func @transform_5(%arg0: i32) -> (i32, i32) {
    %c0_i32 = arith.constant 0 : i32
    %c0_i32_0 = arith.constant 0 : i32
    return %arg0, %c0_i32 : i32, i32
  }
  func.func @transform_6(%arg0: i32) -> (i32, i32) {
    %c0_i32 = arith.constant 0 : i32
    %c0_i32_0 = arith.constant 0 : i32
    return %arg0, %c0_i32 : i32, i32
  }
}

module attributes {stable_mosaic.version = 11 : i64} {
  func.func @_dwconv_silu_kernel(%arg0: i32, %arg1: i32, %arg2: memref<1x18x18x8xf32, #tpu.memory_space<vmem>>, %arg3: memref<3x3x8xf32, #tpu.memory_space<vmem>>, %arg4: memref<1x1x8xf32, #tpu.memory_space<vmem>>, %arg5: memref<1x16x16x8xf32, #tpu.memory_space<vmem>>) attributes {dimension_semantics = [#tpu.dimension_semantics<parallel>, #tpu.dimension_semantics<parallel>], iteration_bounds = array<i64: 2, 1>, scalar_prefetch = 0 : i64, scratch_operands = 0 : i64, tpu.core_type = #tpu.core_type<tc>, window_params = [{transform_indices = @transform_0, window_bounds = array<i64: 1, 18, 18, 8>}, {transform_indices = @transform_1, window_bounds = array<i64: 3, 3, 8>}, {transform_indices = @transform_2, window_bounds = array<i64: 1, 1, 8>}, {transform_indices = @transform_3, window_bounds = array<i64: 1, 16, 16, 8>}]} {
    %c0 = arith.constant 0 : index
    %c0_0 = arith.constant 0 : index
    %c0_1 = arith.constant 0 : index
    %c0_2 = arith.constant 0 : index
    %0 = vector.load %arg2[%c0, %c0_0, %c0_1, %c0_2] : memref<1x18x18x8xf32, #tpu.memory_space<vmem>>, vector<1x18x18x8xf32>
    %1 = vector.shape_cast %0 : vector<1x18x18x8xf32> to vector<18x18x8xf32>
    %c0_3 = arith.constant 0 : index
    %c0_4 = arith.constant 0 : index
    %c0_5 = arith.constant 0 : index
    %2 = vector.load %arg3[%c0_3, %c0_4, %c0_5] : memref<3x3x8xf32, #tpu.memory_space<vmem>>, vector<3x3x8xf32>
    %cst = arith.constant 0.000000e+00 : f32
    %3 = vector.broadcast %cst : f32 to vector<16x16x8xf32>
    %4 = vector.extract_strided_slice %1 {offsets = [0, 0, 0], sizes = [18, 16, 8], strides = [1, 1, 1]} : vector<18x18x8xf32> to vector<18x16x8xf32>
    %5 = vector.extract_strided_slice %4 {offsets = [0, 0, 0], sizes = [16, 16, 8], strides = [1, 1, 1]} : vector<18x16x8xf32> to vector<16x16x8xf32>
    %6 = vector.extract_strided_slice %2 {offsets = [0, 0, 0], sizes = [1, 1, 8], strides = [1, 1, 1]} : vector<3x3x8xf32> to vector<1x1x8xf32>
    %7 = vector.broadcast %6 : vector<1x1x8xf32> to vector<16x16x8xf32>
    %8 = arith.mulf %5, %7 : vector<16x16x8xf32>
    %9 = arith.addf %3, %8 : vector<16x16x8xf32>
    %10 = vector.extract_strided_slice %4 {offsets = [1, 0, 0], sizes = [16, 16, 8], strides = [1, 1, 1]} : vector<18x16x8xf32> to vector<16x16x8xf32>
    %11 = vector.extract_strided_slice %2 {offsets = [1, 0, 0], sizes = [1, 1, 8], strides = [1, 1, 1]} : vector<3x3x8xf32> to vector<1x1x8xf32>
    %12 = vector.broadcast %11 : vector<1x1x8xf32> to vector<16x16x8xf32>
    %13 = arith.mulf %10, %12 : vector<16x16x8xf32>
    %14 = arith.addf %9, %13 : vector<16x16x8xf32>
    %15 = vector.extract_strided_slice %4 {offsets = [2, 0, 0], sizes = [16, 16, 8], strides = [1, 1, 1]} : vector<18x16x8xf32> to vector<16x16x8xf32>
    %16 = vector.extract_strided_slice %2 {offsets = [2, 0, 0], sizes = [1, 1, 8], strides = [1, 1, 1]} : vector<3x3x8xf32> to vector<1x1x8xf32>
    %17 = vector.broadcast %16 : vector<1x1x8xf32> to vector<16x16x8xf32>
    %18 = arith.mulf %15, %17 : vector<16x16x8xf32>
    %19 = arith.addf %14, %18 : vector<16x16x8xf32>
    %20 = vector.extract_strided_slice %1 {offsets = [0, 1, 0], sizes = [18, 16, 8], strides = [1, 1, 1]} : vector<18x18x8xf32> to vector<18x16x8xf32>
    %21 = vector.extract_strided_slice %20 {offsets = [0, 0, 0], sizes = [16, 16, 8], strides = [1, 1, 1]} : vector<18x16x8xf32> to vector<16x16x8xf32>
    %22 = vector.extract_strided_slice %2 {offsets = [0, 1, 0], sizes = [1, 1, 8], strides = [1, 1, 1]} : vector<3x3x8xf32> to vector<1x1x8xf32>
    %23 = vector.broadcast %22 : vector<1x1x8xf32> to vector<16x16x8xf32>
    %24 = arith.mulf %21, %23 : vector<16x16x8xf32>
    %25 = arith.addf %19, %24 : vector<16x16x8xf32>
    %26 = vector.extract_strided_slice %20 {offsets = [1, 0, 0], sizes = [16, 16, 8], strides = [1, 1, 1]} : vector<18x16x8xf32> to vector<16x16x8xf32>
    %27 = vector.extract_strided_slice %2 {offsets = [1, 1, 0], sizes = [1, 1, 8], strides = [1, 1, 1]} : vector<3x3x8xf32> to vector<1x1x8xf32>
    %28 = vector.broadcast %27 : vector<1x1x8xf32> to vector<16x16x8xf32>
    %29 = arith.mulf %26, %28 : vector<16x16x8xf32>
    %30 = arith.addf %25, %29 : vector<16x16x8xf32>
    %31 = vector.extract_strided_slice %20 {offsets = [2, 0, 0], sizes = [16, 16, 8], strides = [1, 1, 1]} : vector<18x16x8xf32> to vector<16x16x8xf32>
    %32 = vector.extract_strided_slice %2 {offsets = [2, 1, 0], sizes = [1, 1, 8], strides = [1, 1, 1]} : vector<3x3x8xf32> to vector<1x1x8xf32>
    %33 = vector.broadcast %32 : vector<1x1x8xf32> to vector<16x16x8xf32>
    %34 = arith.mulf %31, %33 : vector<16x16x8xf32>
    %35 = arith.addf %30, %34 : vector<16x16x8xf32>
    %36 = vector.extract_strided_slice %1 {offsets = [0, 2, 0], sizes = [18, 16, 8], strides = [1, 1, 1]} : vector<18x18x8xf32> to vector<18x16x8xf32>
    %37 = vector.extract_strided_slice %36 {offsets = [0, 0, 0], sizes = [16, 16, 8], strides = [1, 1, 1]} : vector<18x16x8xf32> to vector<16x16x8xf32>
    %38 = vector.extract_strided_slice %2 {offsets = [0, 2, 0], sizes = [1, 1, 8], strides = [1, 1, 1]} : vector<3x3x8xf32> to vector<1x1x8xf32>
    %39 = vector.broadcast %38 : vector<1x1x8xf32> to vector<16x16x8xf32>
    %40 = arith.mulf %37, %39 : vector<16x16x8xf32>
    %41 = arith.addf %35, %40 : vector<16x16x8xf32>
    %42 = vector.extract_strided_slice %36 {offsets = [1, 0, 0], sizes = [16, 16, 8], strides = [1, 1, 1]} : vector<18x16x8xf32> to vector<16x16x8xf32>
    %43 = vector.extract_strided_slice %2 {offsets = [1, 2, 0], sizes = [1, 1, 8], strides = [1, 1, 1]} : vector<3x3x8xf32> to vector<1x1x8xf32>
    %44 = vector.broadcast %43 : vector<1x1x8xf32> to vector<16x16x8xf32>
    %45 = arith.mulf %42, %44 : vector<16x16x8xf32>
    %46 = arith.addf %41, %45 : vector<16x16x8xf32>
    %47 = vector.extract_strided_slice %36 {offsets = [2, 0, 0], sizes = [16, 16, 8], strides = [1, 1, 1]} : vector<18x16x8xf32> to vector<16x16x8xf32>
    %48 = vector.extract_strided_slice %2 {offsets = [2, 2, 0], sizes = [1, 1, 8], strides = [1, 1, 1]} : vector<3x3x8xf32> to vector<1x1x8xf32>
    %49 = vector.broadcast %48 : vector<1x1x8xf32> to vector<16x16x8xf32>
    %50 = arith.mulf %47, %49 : vector<16x16x8xf32>
    %51 = arith.addf %46, %50 : vector<16x16x8xf32>
    %c0_6 = arith.constant 0 : index
    %c0_7 = arith.constant 0 : index
    %c0_8 = arith.constant 0 : index
    %52 = vector.load %arg4[%c0_6, %c0_7, %c0_8] : memref<1x1x8xf32, #tpu.memory_space<vmem>>, vector<1x1x8xf32>
    %53 = vector.broadcast %52 : vector<1x1x8xf32> to vector<16x16x8xf32>
    %54 = arith.addf %51, %53 : vector<16x16x8xf32>
    %55 = arith.negf %54 : vector<16x16x8xf32>
    %56 = math.exp %55 : vector<16x16x8xf32>
    %cst_9 = arith.constant 1.000000e+00 : f32
    %57 = vector.broadcast %cst_9 : f32 to vector<16x16x8xf32>
    %58 = arith.addf %57, %56 : vector<16x16x8xf32>
    %59 = arith.divf %57, %58 : vector<16x16x8xf32>
    %60 = arith.mulf %54, %59 : vector<16x16x8xf32>
    %c0_10 = arith.constant 0 : index
    %c0_11 = arith.constant 0 : index
    %c0_12 = arith.constant 0 : index
    %c0_13 = arith.constant 0 : index
    %61 = vector.load %arg5[%c0_10, %c0_11, %c0_12, %c0_13] : memref<1x16x16x8xf32, #tpu.memory_space<vmem>>, vector<1x16x16x8xf32>
    %62 = vector.shape_cast %61 : vector<1x16x16x8xf32> to vector<16x16x8xf32>
    %63 = vector.shape_cast %60 : vector<16x16x8xf32> to vector<1x16x16x8xf32>
    tpu.vector_store %arg5[%c0_10, %c0_11, %c0_12, %c0_13], %63 {strides = array<i32>} : memref<1x16x16x8xf32, #tpu.memory_space<vmem>>, vector<1x16x16x8xf32>,
    return
  }
  func.func @transform_0(%arg0: i32, %arg1: i32) -> (i32, i32, i32, i32) {
    %c0_i32 = arith.constant 0 : i32
    %c0_i32_0 = arith.constant 0 : i32
    %c0_i32_1 = arith.constant 0 : i32
    return %arg0, %c0_i32, %c0_i32_0, %arg1 : i32, i32, i32, i32
  }
  func.func @transform_1(%arg0: i32, %arg1: i32) -> (i32, i32, i32) {
    %c0_i32 = arith.constant 0 : i32
    %c0_i32_0 = arith.constant 0 : i32
    %c0_i32_1 = arith.constant 0 : i32
    return %c0_i32, %c0_i32_0, %arg1 : i32, i32, i32
  }
  func.func @transform_2(%arg0: i32, %arg1: i32) -> (i32, i32, i32) {
    %c0_i32 = arith.constant 0 : i32
    %c0_i32_0 = arith.constant 0 : i32
    %c0_i32_1 = arith.constant 0 : i32
    return %c0_i32, %c0_i32_0, %arg1 : i32, i32, i32
  }
  func.func @transform_3(%arg0: i32, %arg1: i32) -> (i32, i32, i32, i32) {
    %c0_i32 = arith.constant 0 : i32
    %c0_i32_0 = arith.constant 0 : i32
    %c0_i32_1 = arith.constant 0 : i32
    return %arg0, %c0_i32, %c0_i32_0, %arg1 : i32, i32, i32, i32
  }
}

module attributes {stable_mosaic.version = 11 : i64} {
  func.func @_dirproj_kernel(%arg0: i32, %arg1: memref<512x8xf32, #tpu.memory_space<vmem>>, %arg2: memref<8x256xbf16, #tpu.memory_space<vmem>>, %arg3: memref<512x256xf32, #tpu.memory_space<vmem>>) attributes {dimension_semantics = [#tpu.dimension_semantics<parallel>], iteration_bounds = array<i64: 1>, scalar_prefetch = 0 : i64, scratch_operands = 0 : i64, tpu.core_type = #tpu.core_type<tc>, window_params = [{transform_indices = @transform_0, window_bounds = array<i64: 512, 8>}, {pipeline_mode = #tpu.pipeline_mode<synchronous>, transform_indices = @transform_1, window_bounds = array<i64: 8, 256>}, {transform_indices = @transform_2, window_bounds = array<i64: 512, 256>}]} {
    %c0 = arith.constant 0 : index
    %c0_0 = arith.constant 0 : index
    %0 = vector.load %arg1[%c0, %c0_0] : memref<512x8xf32, #tpu.memory_space<vmem>>, vector<512x8xf32>
    %1 = arith.truncf %0 : vector<512x8xf32> to vector<512x8xbf16>
    %c0_1 = arith.constant 0 : index
    %c0_2 = arith.constant 0 : index
    %2 = vector.load %arg2[%c0_1, %c0_2] : memref<8x256xbf16, #tpu.memory_space<vmem>>, vector<8x256xbf16>
    %cst = arith.constant dense<0.000000e+00> : vector<512x256xf32>
    %3 = tpu.matmul %1, %2, %cst {dimension_numbers = #tpu.dot_dimension_numbers<[1], [0], [0], [1], [0, 0, 1, 1], [], []>} : vector<512x8xbf16>, vector<8x256xbf16>, vector<512x256xf32> -> vector<512x256xf32>
    %c0_3 = arith.constant 0 : index
    %c0_4 = arith.constant 0 : index
    %4 = vector.load %arg3[%c0_3, %c0_4] : memref<512x256xf32, #tpu.memory_space<vmem>>, vector<512x256xf32>
    tpu.vector_store %arg3[%c0_3, %c0_4], %3 {strides = array<i32>} : memref<512x256xf32, #tpu.memory_space<vmem>>, vector<512x256xf32>,
    return
  }
  func.func @transform_0(%arg0: i32) -> (i32, i32) {
    %c0_i32 = arith.constant 0 : i32
    %c0_i32_0 = arith.constant 0 : i32
    return %arg0, %c0_i32 : i32, i32
  }
  func.func @transform_1(%arg0: i32) -> (i32, i32) {
    %c0_i32 = arith.constant 0 : i32
    %c0_i32_0 = arith.constant 0 : i32
    %c0_i32_1 = arith.constant 0 : i32
    return %c0_i32, %c0_i32_0 : i32, i32
  }
  func.func @transform_2(%arg0: i32) -> (i32, i32) {
    %c0_i32 = arith.constant 0 : i32
    %c0_i32_0 = arith.constant 0 : i32
    return %arg0, %c0_i32 : i32, i32
  }
}

module attributes {stable_mosaic.version = 11 : i64} {
  func.func @_scan_kernel(%arg0: i32, %arg1: i32, %arg2: memref<64x64xf32, #tpu.memory_space<vmem>>, %arg3: memref<64x64xf32, #tpu.memory_space<vmem>>, %arg4: memref<64x16x8xf32, #tpu.memory_space<vmem>>, %arg5: memref<64x16x8xf32, #tpu.memory_space<vmem>>, %arg6: memref<16x64xf32, #tpu.memory_space<vmem>>, %arg7: memref<1x64xf32, #tpu.memory_space<vmem>>, %arg8: memref<1x64xf32, #tpu.memory_space<vmem>>, %arg9: memref<1x8x64xf32, #tpu.memory_space<vmem>>, %arg10: memref<64x64xf32, #tpu.memory_space<vmem>>, %arg11: memref<16x64xf32, #tpu.memory_space<vmem>>) attributes {dimension_semantics = [#tpu.dimension_semantics<parallel>, #tpu.dimension_semantics<arbitrary>], iteration_bounds = array<i64: 1, 4>, scalar_prefetch = 0 : i64, scratch_operands = 1 : i64, tpu.core_type = #tpu.core_type<tc>, window_params = [{transform_indices = @transform_0, window_bounds = array<i64: 64, 64>}, {transform_indices = @transform_1, window_bounds = array<i64: 64, 64>}, {transform_indices = @transform_2, window_bounds = array<i64: 64, 16, 8>}, {transform_indices = @transform_3, window_bounds = array<i64: 64, 16, 8>}, {transform_indices = @transform_4, window_bounds = array<i64: 16, 64>}, {transform_indices = @transform_5, window_bounds = array<i64: 1, 64>}, {transform_indices = @transform_6, window_bounds = array<i64: 1, 64>}, {transform_indices = @transform_7, window_bounds = array<i64: 1, 8, 64>}, {transform_indices = @transform_8, window_bounds = array<i64: 64, 64>}]} {
    %c0_i32 = arith.constant 0 : i32
    %0 = arith.cmpi eq, %arg1, %c0_i32 : i32
    %1 = arith.extui %0 : i1 to i32
    %c0_i32_0 = arith.constant 0 : i32
    %2 = arith.cmpi ne, %1, %c0_i32_0 : i32
    scf.if %2 {
      %cst = arith.constant 0.000000e+00 : f32
      %12 = vector.broadcast %cst : f32 to vector<16x64xf32>
      %c0_15 = arith.constant 0 : index
      %c0_16 = arith.constant 0 : index
      %13 = vector.load %arg11[%c0_15, %c0_16] : memref<16x64xf32, #tpu.memory_space<vmem>>, vector<16x64xf32>
      tpu.vector_store %arg11[%c0_15, %c0_16], %12 {strides = array<i32>} : memref<16x64xf32, #tpu.memory_space<vmem>>, vector<16x64xf32>,
    } else {
    }
    %c0 = arith.constant 0 : index
    %c0_1 = arith.constant 0 : index
    %3 = vector.load %arg6[%c0, %c0_1] : memref<16x64xf32, #tpu.memory_space<vmem>>, vector<16x64xf32>
    %c0_2 = arith.constant 0 : index
    %c0_3 = arith.constant 0 : index
    %4 = vector.load %arg7[%c0_2, %c0_3] : memref<1x64xf32, #tpu.memory_space<vmem>>, vector<1x64xf32>
    %c0_4 = arith.constant 0 : index
    %c0_5 = arith.constant 0 : index
    %5 = vector.load %arg8[%c0_4, %c0_5] : memref<1x64xf32, #tpu.memory_space<vmem>>, vector<1x64xf32>
    %c0_6 = arith.constant 0 : index
    %c0_7 = arith.constant 0 : index
    %c0_8 = arith.constant 0 : index
    %6 = vector.load %arg9[%c0_6, %c0_7, %c0_8] : memref<1x8x64xf32, #tpu.memory_space<vmem>>, vector<1x8x64xf32>
    %7 = vector.shape_cast %6 : vector<1x8x64xf32> to vector<8x64xf32>
    %c0_9 = arith.constant 0 : index
    %c0_10 = arith.constant 0 : index
    %8 = vector.load %arg11[%c0_9, %c0_10] : memref<16x64xf32, #tpu.memory_space<vmem>>, vector<16x64xf32>
    %c0_i32_11 = arith.constant 0 : i32
    %c8_i32 = arith.constant 8 : i32
    %9 = arith.addi %c0_i32_11, %c8_i32 : i32
    %c1_i32 = arith.constant 1 : i32
    %10 = scf.for %arg12 = %c0_i32_11 to %9 step %c1_i32 iter_args(%arg13 = %8) -> (vector<16x64xf32>)  : i32 {
      %c8_i32_15 = arith.constant 8 : i32
      %12 = arith.muli %arg12, %c8_i32_15 : i32
      %13 = tpu.assume_multiple %12, 8 : i32
      %14 = arith.index_cast %13 : i32 to index
      %c0_16 = arith.constant 0 : index
      %15 = vector.load %arg2[%14, %c0_16] : memref<64x64xf32, #tpu.memory_space<vmem>>, vector<8x64xf32>
      %16 = arith.index_cast %13 : i32 to index
      %c0_17 = arith.constant 0 : index
      %17 = vector.load %arg3[%16, %c0_17] : memref<64x64xf32, #tpu.memory_space<vmem>>, vector<8x64xf32>
      %18 = vector.broadcast %5 : vector<1x64xf32> to vector<8x64xf32>
      %19 = arith.addf %17, %18 : vector<8x64xf32>
      %cst = arith.constant 0.000000e+00 : f32
      %20 = vector.broadcast %cst : f32 to vector<8x64xf32>
      %21 = arith.maximumf %19, %20 : vector<8x64xf32>
      %22 = vector.broadcast %cst : f32 to vector<8x64xf32>
      %23 = arith.subf %19, %22 : vector<8x64xf32>
      %24 = arith.cmpf one, %23, %23 : vector<8x64xf32>
      %25 = vector.broadcast %cst : f32 to vector<8x64xf32>
      %26 = arith.addf %19, %25 : vector<8x64xf32>
      %27 = math.absf %23 : vector<8x64xf32>
      %cst_18 = arith.constant 0.000000e+00 : f32
      %28 = vector.broadcast %cst_18 : f32 to vector<8x64xf32>
      %29 = arith.subf %28, %27 : vector<8x64xf32>
      %30 = math.exp %29 : vector<8x64xf32>
      %31 = math.log1p %30 : vector<8x64xf32>
      %32 = arith.addf %21, %31 : vector<8x64xf32>
      %33 = arith.select %24, %26, %32 : vector<8x64xi1>, vector<8x64xf32>
      %34 = arith.mulf %33, %15 : vector<8x64xf32>
      %35 = vector.shape_cast %33 : vector<8x64xf32> to vector<8x1x64xf32>
      %36 = vector.shape_cast %3 : vector<16x64xf32> to vector<1x16x64xf32>
      %37 = vector.broadcast %35 : vector<8x1x64xf32> to vector<8x16x64xf32>
      %38 = vector.broadcast %36 : vector<1x16x64xf32> to vector<8x16x64xf32>
      %39 = arith.mulf %37, %38 : vector<8x16x64xf32>
      %40 = math.exp %39 : vector<8x16x64xf32>
      %41 = arith.index_cast %13 : i32 to index
      %c0_19 = arith.constant 0 : index
      %c0_20 = arith.constant 0 : index
      %42 = vector.load %arg4[%41, %c0_19, %c0_20] : memref<64x16x8xf32, #tpu.memory_space<vmem>>, vector<8x16x8xf32>
      %43 = vector.shape_cast %42 : vector<8x16x8xf32> to vector<128x8xf32>
      %cst_21 = arith.constant dense<0.000000e+00> : vector<128x64xf32>
      %44 = tpu.matmul %43, %7, %cst_21 {dimension_numbers = #tpu.dot_dimension_numbers<[1], [0], [0], [1], [0, 0, 1, 1], [], []>} : vector<128x8xf32>, vector<8x64xf32>, vector<128x64xf32> -> vector<128x64xf32>
      %45 = vector.shape_cast %44 : vector<128x64xf32> to vector<8x16x64xf32>
      %46 = arith.index_cast %13 : i32 to index
      %c0_22 = arith.constant 0 : index
      %c0_23 = arith.constant 0 : index
      %47 = vector.load %arg5[%46, %c0_22, %c0_23] : memref<64x16x8xf32, #tpu.memory_space<vmem>>, vector<8x16x8xf32>
      %48 = vector.shape_cast %47 : vector<8x16x8xf32> to vector<128x8xf32>
      %cst_24 = arith.constant dense<0.000000e+00> : vector<128x64xf32>
      %49 = tpu.matmul %48, %7, %cst_24 {dimension_numbers = #tpu.dot_dimension_numbers<[1], [0], [0], [1], [0, 0, 1, 1], [], []>} : vector<128x8xf32>, vector<8x64xf32>, vector<128x64xf32> -> vector<128x64xf32>
      %50 = vector.shape_cast %49 : vector<128x64xf32> to vector<8x16x64xf32>
      %51 = vector.shape_cast %34 : vector<8x64xf32> to vector<8x1x64xf32>
      %52 = vector.broadcast %51 : vector<8x1x64xf32> to vector<8x16x64xf32>
      %53 = arith.mulf %45, %52 : vector<8x16x64xf32>
      %54 = vector.extract_strided_slice %40 {offsets = [0, 0, 0], sizes = [1, 16, 64], strides = [1, 1, 1]} : vector<8x16x64xf32> to vector<1x16x64xf32>
      %55 = vector.shape_cast %54 : vector<1x16x64xf32> to vector<16x64xf32>
      %56 = arith.mulf %55, %arg13 : vector<16x64xf32>
      %57 = vector.extract_strided_slice %53 {offsets = [0, 0, 0], sizes = [1, 16, 64], strides = [1, 1, 1]} : vector<8x16x64xf32> to vector<1x16x64xf32>
      %58 = vector.shape_cast %57 : vector<1x16x64xf32> to vector<16x64xf32>
      %59 = arith.addf %56, %58 : vector<16x64xf32>
      %60 = vector.extract_strided_slice %50 {offsets = [0, 0, 0], sizes = [1, 16, 64], strides = [1, 1, 1]} : vector<8x16x64xf32> to vector<1x16x64xf32>
      %61 = vector.shape_cast %60 : vector<1x16x64xf32> to vector<16x64xf32>
      %62 = arith.mulf %61, %59 : vector<16x64xf32>
      %cst_25 = arith.constant dense<0.000000e+00> : vector<64xf32>
      %63 = vector.multi_reduction <add>, %62, %cst_25 [0] : vector<16x64xf32> to vector<64xf32>
      %64 = vector.shape_cast %63 : vector<64xf32> to vector<1x64xf32>
      %65 = vector.extract_strided_slice %40 {offsets = [1, 0, 0], sizes = [1, 16, 64], strides = [1, 1, 1]} : vector<8x16x64xf32> to vector<1x16x64xf32>
      %66 = vector.shape_cast %65 : vector<1x16x64xf32> to vector<16x64xf32>
      %67 = arith.mulf %66, %59 : vector<16x64xf32>
      %68 = vector.extract_strided_slice %53 {offsets = [1, 0, 0], sizes = [1, 16, 64], strides = [1, 1, 1]} : vector<8x16x64xf32> to vector<1x16x64xf32>
      %69 = vector.shape_cast %68 : vector<1x16x64xf32> to vector<16x64xf32>
      %70 = arith.addf %67, %69 : vector<16x64xf32>
      %71 = vector.extract_strided_slice %50 {offsets = [1, 0, 0], sizes = [1, 16, 64], strides = [1, 1, 1]} : vector<8x16x64xf32> to vector<1x16x64xf32>
      %72 = vector.shape_cast %71 : vector<1x16x64xf32> to vector<16x64xf32>
      %73 = arith.mulf %72, %70 : vector<16x64xf32>
      %cst_26 = arith.constant dense<0.000000e+00> : vector<64xf32>
      %74 = vector.multi_reduction <add>, %73, %cst_26 [0] : vector<16x64xf32> to vector<64xf32>
      %75 = vector.shape_cast %74 : vector<64xf32> to vector<1x64xf32>
      %76 = vector.extract_strided_slice %40 {offsets = [2, 0, 0], sizes = [1, 16, 64], strides = [1, 1, 1]} : vector<8x16x64xf32> to vector<1x16x64xf32>
      %77 = vector.shape_cast %76 : vector<1x16x64xf32> to vector<16x64xf32>
      %78 = arith.mulf %77, %70 : vector<16x64xf32>
      %79 = vector.extract_strided_slice %53 {offsets = [2, 0, 0], sizes = [1, 16, 64], strides = [1, 1, 1]} : vector<8x16x64xf32> to vector<1x16x64xf32>
      %80 = vector.shape_cast %79 : vector<1x16x64xf32> to vector<16x64xf32>
      %81 = arith.addf %78, %80 : vector<16x64xf32>
      %82 = vector.extract_strided_slice %50 {offsets = [2, 0, 0], sizes = [1, 16, 64], strides = [1, 1, 1]} : vector<8x16x64xf32> to vector<1x16x64xf32>
      %83 = vector.shape_cast %82 : vector<1x16x64xf32> to vector<16x64xf32>
      %84 = arith.mulf %83, %81 : vector<16x64xf32>
      %cst_27 = arith.constant dense<0.000000e+00> : vector<64xf32>
      %85 = vector.multi_reduction <add>, %84, %cst_27 [0] : vector<16x64xf32> to vector<64xf32>
      %86 = vector.shape_cast %85 : vector<64xf32> to vector<1x64xf32>
      %87 = vector.extract_strided_slice %40 {offsets = [3, 0, 0], sizes = [1, 16, 64], strides = [1, 1, 1]} : vector<8x16x64xf32> to vector<1x16x64xf32>
      %88 = vector.shape_cast %87 : vector<1x16x64xf32> to vector<16x64xf32>
      %89 = arith.mulf %88, %81 : vector<16x64xf32>
      %90 = vector.extract_strided_slice %53 {offsets = [3, 0, 0], sizes = [1, 16, 64], strides = [1, 1, 1]} : vector<8x16x64xf32> to vector<1x16x64xf32>
      %91 = vector.shape_cast %90 : vector<1x16x64xf32> to vector<16x64xf32>
      %92 = arith.addf %89, %91 : vector<16x64xf32>
      %93 = vector.extract_strided_slice %50 {offsets = [3, 0, 0], sizes = [1, 16, 64], strides = [1, 1, 1]} : vector<8x16x64xf32> to vector<1x16x64xf32>
      %94 = vector.shape_cast %93 : vector<1x16x64xf32> to vector<16x64xf32>
      %95 = arith.mulf %94, %92 : vector<16x64xf32>
      %cst_28 = arith.constant dense<0.000000e+00> : vector<64xf32>
      %96 = vector.multi_reduction <add>, %95, %cst_28 [0] : vector<16x64xf32> to vector<64xf32>
      %97 = vector.shape_cast %96 : vector<64xf32> to vector<1x64xf32>
      %98 = vector.extract_strided_slice %40 {offsets = [4, 0, 0], sizes = [1, 16, 64], strides = [1, 1, 1]} : vector<8x16x64xf32> to vector<1x16x64xf32>
      %99 = vector.shape_cast %98 : vector<1x16x64xf32> to vector<16x64xf32>
      %100 = arith.mulf %99, %92 : vector<16x64xf32>
      %101 = vector.extract_strided_slice %53 {offsets = [4, 0, 0], sizes = [1, 16, 64], strides = [1, 1, 1]} : vector<8x16x64xf32> to vector<1x16x64xf32>
      %102 = vector.shape_cast %101 : vector<1x16x64xf32> to vector<16x64xf32>
      %103 = arith.addf %100, %102 : vector<16x64xf32>
      %104 = vector.extract_strided_slice %50 {offsets = [4, 0, 0], sizes = [1, 16, 64], strides = [1, 1, 1]} : vector<8x16x64xf32> to vector<1x16x64xf32>
      %105 = vector.shape_cast %104 : vector<1x16x64xf32> to vector<16x64xf32>
      %106 = arith.mulf %105, %103 : vector<16x64xf32>
      %cst_29 = arith.constant dense<0.000000e+00> : vector<64xf32>
      %107 = vector.multi_reduction <add>, %106, %cst_29 [0] : vector<16x64xf32> to vector<64xf32>
      %108 = vector.shape_cast %107 : vector<64xf32> to vector<1x64xf32>
      %109 = vector.extract_strided_slice %40 {offsets = [5, 0, 0], sizes = [1, 16, 64], strides = [1, 1, 1]} : vector<8x16x64xf32> to vector<1x16x64xf32>
      %110 = vector.shape_cast %109 : vector<1x16x64xf32> to vector<16x64xf32>
      %111 = arith.mulf %110, %103 : vector<16x64xf32>
      %112 = vector.extract_strided_slice %53 {offsets = [5, 0, 0], sizes = [1, 16, 64], strides = [1, 1, 1]} : vector<8x16x64xf32> to vector<1x16x64xf32>
      %113 = vector.shape_cast %112 : vector<1x16x64xf32> to vector<16x64xf32>
      %114 = arith.addf %111, %113 : vector<16x64xf32>
      %115 = vector.extract_strided_slice %50 {offsets = [5, 0, 0], sizes = [1, 16, 64], strides = [1, 1, 1]} : vector<8x16x64xf32> to vector<1x16x64xf32>
      %116 = vector.shape_cast %115 : vector<1x16x64xf32> to vector<16x64xf32>
      %117 = arith.mulf %116, %114 : vector<16x64xf32>
      %cst_30 = arith.constant dense<0.000000e+00> : vector<64xf32>
      %118 = vector.multi_reduction <add>, %117, %cst_30 [0] : vector<16x64xf32> to vector<64xf32>
      %119 = vector.shape_cast %118 : vector<64xf32> to vector<1x64xf32>
      %120 = vector.extract_strided_slice %40 {offsets = [6, 0, 0], sizes = [1, 16, 64], strides = [1, 1, 1]} : vector<8x16x64xf32> to vector<1x16x64xf32>
      %121 = vector.shape_cast %120 : vector<1x16x64xf32> to vector<16x64xf32>
      %122 = arith.mulf %121, %114 : vector<16x64xf32>
      %123 = vector.extract_strided_slice %53 {offsets = [6, 0, 0], sizes = [1, 16, 64], strides = [1, 1, 1]} : vector<8x16x64xf32> to vector<1x16x64xf32>
      %124 = vector.shape_cast %123 : vector<1x16x64xf32> to vector<16x64xf32>
      %125 = arith.addf %122, %124 : vector<16x64xf32>
      %126 = vector.extract_strided_slice %50 {offsets = [6, 0, 0], sizes = [1, 16, 64], strides = [1, 1, 1]} : vector<8x16x64xf32> to vector<1x16x64xf32>
      %127 = vector.shape_cast %126 : vector<1x16x64xf32> to vector<16x64xf32>
      %128 = arith.mulf %127, %125 : vector<16x64xf32>
      %cst_31 = arith.constant dense<0.000000e+00> : vector<64xf32>
      %129 = vector.multi_reduction <add>, %128, %cst_31 [0] : vector<16x64xf32> to vector<64xf32>
      %130 = vector.shape_cast %129 : vector<64xf32> to vector<1x64xf32>
      %131 = vector.extract_strided_slice %40 {offsets = [7, 0, 0], sizes = [1, 16, 64], strides = [1, 1, 1]} : vector<8x16x64xf32> to vector<1x16x64xf32>
      %132 = vector.shape_cast %131 : vector<1x16x64xf32> to vector<16x64xf32>
      %133 = arith.mulf %132, %125 : vector<16x64xf32>
      %134 = vector.extract_strided_slice %53 {offsets = [7, 0, 0], sizes = [1, 16, 64], strides = [1, 1, 1]} : vector<8x16x64xf32> to vector<1x16x64xf32>
      %135 = vector.shape_cast %134 : vector<1x16x64xf32> to vector<16x64xf32>
      %136 = arith.addf %133, %135 : vector<16x64xf32>
      %137 = vector.extract_strided_slice %50 {offsets = [7, 0, 0], sizes = [1, 16, 64], strides = [1, 1, 1]} : vector<8x16x64xf32> to vector<1x16x64xf32>
      %138 = vector.shape_cast %137 : vector<1x16x64xf32> to vector<16x64xf32>
      %139 = arith.mulf %138, %136 : vector<16x64xf32>
      %cst_32 = arith.constant dense<0.000000e+00> : vector<64xf32>
      %140 = vector.multi_reduction <add>, %139, %cst_32 [0] : vector<16x64xf32> to vector<64xf32>
      %141 = vector.shape_cast %140 : vector<64xf32> to vector<1x64xf32>
      %142 = tpu.concatenate %64, %75, %86, %97, %108, %119, %130, %141 in 0 : vector<1x64xf32>, vector<1x64xf32>, vector<1x64xf32>, vector<1x64xf32>, vector<1x64xf32>, vector<1x64xf32>, vector<1x64xf32>, vector<1x64xf32> -> vector<8x64xf32>
      %143 = vector.broadcast %4 : vector<1x64xf32> to vector<8x64xf32>
      %144 = arith.mulf %143, %15 : vector<8x64xf32>
      %145 = arith.addf %142, %144 : vector<8x64xf32>
      %146 = arith.index_cast %13 : i32 to index
      %c0_33 = arith.constant 0 : index
      %147 = vector.load %arg10[%146, %c0_33] : memref<64x64xf32, #tpu.memory_space<vmem>>, vector<8x64xf32>
      tpu.vector_store %arg10[%146, %c0_33], %145 {strides = array<i32>} : memref<64x64xf32, #tpu.memory_space<vmem>>, vector<8x64xf32>,
      scf.yield %136 : vector<16x64xf32>
    }
    %c8_i32_12 = arith.constant 8 : i32
    %c0_13 = arith.constant 0 : index
    %c0_14 = arith.constant 0 : index
    %11 = vector.load %arg11[%c0_13, %c0_14] : memref<16x64xf32, #tpu.memory_space<vmem>>, vector<16x64xf32>
    tpu.vector_store %arg11[%c0_13, %c0_14], %10 {strides = array<i32>} : memref<16x64xf32, #tpu.memory_space<vmem>>, vector<16x64xf32>,
    return
  }
  func.func @transform_0(%arg0: i32, %arg1: i32) -> (i32, i32) {
    %c0_i32 = arith.constant 0 : i32
    return %arg1, %arg0 : i32, i32
  }
  func.func @transform_1(%arg0: i32, %arg1: i32) -> (i32, i32) {
    %c0_i32 = arith.constant 0 : i32
    return %arg1, %arg0 : i32, i32
  }
  func.func @transform_2(%arg0: i32, %arg1: i32) -> (i32, i32, i32) {
    %c0_i32 = arith.constant 0 : i32
    %c0_i32_0 = arith.constant 0 : i32
    %c0_i32_1 = arith.constant 0 : i32
    return %arg1, %c0_i32, %c0_i32_0 : i32, i32, i32
  }
  func.func @transform_3(%arg0: i32, %arg1: i32) -> (i32, i32, i32) {
    %c0_i32 = arith.constant 0 : i32
    %c0_i32_0 = arith.constant 0 : i32
    %c0_i32_1 = arith.constant 0 : i32
    return %arg1, %c0_i32, %c0_i32_0 : i32, i32, i32
  }
  func.func @transform_4(%arg0: i32, %arg1: i32) -> (i32, i32) {
    %c0_i32 = arith.constant 0 : i32
    %c0_i32_0 = arith.constant 0 : i32
    return %c0_i32, %arg0 : i32, i32
  }
  func.func @transform_5(%arg0: i32, %arg1: i32) -> (i32, i32) {
    %c0_i32 = arith.constant 0 : i32
    %c0_i32_0 = arith.constant 0 : i32
    return %c0_i32, %arg0 : i32, i32
  }
  func.func @transform_6(%arg0: i32, %arg1: i32) -> (i32, i32) {
    %c0_i32 = arith.constant 0 : i32
    %c0_i32_0 = arith.constant 0 : i32
    return %c0_i32, %arg0 : i32, i32
  }
  func.func @transform_7(%arg0: i32, %arg1: i32) -> (i32, i32, i32) {
    %c0_i32 = arith.constant 0 : i32
    %c0_i32_0 = arith.constant 0 : i32
    %c0_i32_1 = arith.constant 0 : i32
    return %arg0, %c0_i32, %c0_i32_0 : i32, i32, i32
  }
  func.func @transform_8(%arg0: i32, %arg1: i32) -> (i32, i32) {
    %c0_i32 = arith.constant 0 : i32
    return %arg1, %arg0 : i32, i32
  }
}

module attributes {stable_mosaic.version = 11 : i64} {
  func.func @_gate_outproj_kernel(%arg0: i32, %arg1: memref<512x8xf32, #tpu.memory_space<vmem>>, %arg2: memref<512x8xf32, #tpu.memory_space<vmem>>, %arg3: memref<512x4xf32, #tpu.memory_space<vmem>>, %arg4: memref<1x8xf32, #tpu.memory_space<vmem>>, %arg5: memref<1x8xf32, #tpu.memory_space<vmem>>, %arg6: memref<8x4xbf16, #tpu.memory_space<vmem>>, %arg7: memref<512x4xf32, #tpu.memory_space<vmem>>) attributes {dimension_semantics = [#tpu.dimension_semantics<parallel>], iteration_bounds = array<i64: 1>, scalar_prefetch = 0 : i64, scratch_operands = 0 : i64, tpu.core_type = #tpu.core_type<tc>, window_params = [{transform_indices = @transform_0, window_bounds = array<i64: 512, 8>}, {transform_indices = @transform_1, window_bounds = array<i64: 512, 8>}, {transform_indices = @transform_2, window_bounds = array<i64: 512, 4>}, {pipeline_mode = #tpu.pipeline_mode<synchronous>, transform_indices = @transform_3, window_bounds = array<i64: 1, 8>}, {pipeline_mode = #tpu.pipeline_mode<synchronous>, transform_indices = @transform_4, window_bounds = array<i64: 1, 8>}, {pipeline_mode = #tpu.pipeline_mode<synchronous>, transform_indices = @transform_5, window_bounds = array<i64: 8, 4>}, {transform_indices = @transform_6, window_bounds = array<i64: 512, 4>}]} {
    %c0 = arith.constant 0 : index
    %c0_0 = arith.constant 0 : index
    %0 = vector.load %arg1[%c0, %c0_0] : memref<512x8xf32, #tpu.memory_space<vmem>>, vector<512x8xf32>
    %cst = arith.constant dense<0.000000e+00> : vector<512xf32>
    %1 = vector.multi_reduction <add>, %0, %cst [1] : vector<512x8xf32> to vector<512xf32>
    %2 = vector.shape_cast %1 : vector<512xf32> to vector<512x1xf32>
    %cst_1 = arith.constant 8.000000e+00 : f32
    %3 = vector.broadcast %cst_1 : f32 to vector<512x1xf32>
    %4 = arith.divf %2, %3 : vector<512x1xf32>
    %5 = vector.broadcast %4 : vector<512x1xf32> to vector<512x8xf32>
    %6 = arith.subf %0, %5 : vector<512x8xf32>
    %7 = arith.mulf %6, %6 : vector<512x8xf32>
    %cst_2 = arith.constant dense<0.000000e+00> : vector<512xf32>
    %8 = vector.multi_reduction <add>, %7, %cst_2 [1] : vector<512x8xf32> to vector<512xf32>
    %9 = vector.shape_cast %8 : vector<512xf32> to vector<512x1xf32>
    %cst_3 = arith.constant 8.000000e+00 : f32
    %10 = vector.broadcast %cst_3 : f32 to vector<512x1xf32>
    %11 = arith.divf %9, %10 : vector<512x1xf32>
    %cst_4 = arith.constant 9.99999974E-6 : f32
    %12 = vector.broadcast %cst_4 : f32 to vector<512x1xf32>
    %13 = arith.addf %11, %12 : vector<512x1xf32>
    %14 = math.rsqrt %13 : vector<512x1xf32>
    %15 = vector.broadcast %14 : vector<512x1xf32> to vector<512x8xf32>
    %16 = arith.mulf %6, %15 : vector<512x8xf32>
    %c0_5 = arith.constant 0 : index
    %c0_6 = arith.constant 0 : index
    %17 = vector.load %arg4[%c0_5, %c0_6] : memref<1x8xf32, #tpu.memory_space<vmem>>, vector<1x8xf32>
    %18 = vector.broadcast %17 : vector<1x8xf32> to vector<512x8xf32>
    %19 = arith.mulf %16, %18 : vector<512x8xf32>
    %c0_7 = arith.constant 0 : index
    %c0_8 = arith.constant 0 : index
    %20 = vector.load %arg5[%c0_7, %c0_8] : memref<1x8xf32, #tpu.memory_space<vmem>>, vector<1x8xf32>
    %21 = vector.broadcast %20 : vector<1x8xf32> to vector<512x8xf32>
    %22 = arith.addf %19, %21 : vector<512x8xf32>
    %c0_9 = arith.constant 0 : index
    %c0_10 = arith.constant 0 : index
    %23 = vector.load %arg2[%c0_9, %c0_10] : memref<512x8xf32, #tpu.memory_space<vmem>>, vector<512x8xf32>
    %24 = arith.negf %23 : vector<512x8xf32>
    %25 = math.exp %24 : vector<512x8xf32>
    %cst_11 = arith.constant 1.000000e+00 : f32
    %26 = vector.broadcast %cst_11 : f32 to vector<512x8xf32>
    %27 = arith.addf %26, %25 : vector<512x8xf32>
    %28 = arith.divf %26, %27 : vector<512x8xf32>
    %29 = arith.mulf %23, %28 : vector<512x8xf32>
    %30 = arith.mulf %22, %29 : vector<512x8xf32>
    %31 = arith.truncf %30 : vector<512x8xf32> to vector<512x8xbf16>
    %c0_12 = arith.constant 0 : index
    %c0_13 = arith.constant 0 : index
    %32 = vector.load %arg3[%c0_12, %c0_13] : memref<512x4xf32, #tpu.memory_space<vmem>>, vector<512x4xf32>
    %c0_14 = arith.constant 0 : index
    %c0_15 = arith.constant 0 : index
    %33 = vector.load %arg6[%c0_14, %c0_15] : memref<8x4xbf16, #tpu.memory_space<vmem>>, vector<8x4xbf16>
    %cst_16 = arith.constant dense<0.000000e+00> : vector<512x4xf32>
    %34 = tpu.matmul %31, %33, %cst_16 {dimension_numbers = #tpu.dot_dimension_numbers<[1], [0], [0], [1], [0, 0, 1, 1], [], []>} : vector<512x8xbf16>, vector<8x4xbf16>, vector<512x4xf32> -> vector<512x4xf32>
    %35 = arith.addf %32, %34 : vector<512x4xf32>
    %c0_17 = arith.constant 0 : index
    %c0_18 = arith.constant 0 : index
    %36 = vector.load %arg7[%c0_17, %c0_18] : memref<512x4xf32, #tpu.memory_space<vmem>>, vector<512x4xf32>
    tpu.vector_store %arg7[%c0_17, %c0_18], %35 {strides = array<i32>} : memref<512x4xf32, #tpu.memory_space<vmem>>, vector<512x4xf32>,
    return
  }
  func.func @transform_0(%arg0: i32) -> (i32, i32) {
    %c0_i32 = arith.constant 0 : i32
    %c0_i32_0 = arith.constant 0 : i32
    return %arg0, %c0_i32 : i32, i32
  }
  func.func @transform_1(%arg0: i32) -> (i32, i32) {
    %c0_i32 = arith.constant 0 : i32
    %c0_i32_0 = arith.constant 0 : i32
    return %arg0, %c0_i32 : i32, i32
  }
  func.func @transform_2(%arg0: i32) -> (i32, i32) {
    %c0_i32 = arith.constant 0 : i32
    %c0_i32_0 = arith.constant 0 : i32
    return %arg0, %c0_i32 : i32, i32
  }
  func.func @transform_3(%arg0: i32) -> (i32, i32) {
    %c0_i32 = arith.constant 0 : i32
    %c0_i32_0 = arith.constant 0 : i32
    %c0_i32_1 = arith.constant 0 : i32
    return %c0_i32, %c0_i32_0 : i32, i32
  }
  func.func @transform_4(%arg0: i32) -> (i32, i32) {
    %c0_i32 = arith.constant 0 : i32
    %c0_i32_0 = arith.constant 0 : i32
    %c0_i32_1 = arith.constant 0 : i32
    return %c0_i32, %c0_i32_0 : i32, i32
  }
  func.func @transform_5(%arg0: i32) -> (i32, i32) {
    %c0_i32 = arith.constant 0 : i32
    %c0_i32_0 = arith.constant 0 : i32
    %c0_i32_1 = arith.constant 0 : i32
    return %c0_i32, %c0_i32_0 : i32, i32
  }
  func.func @transform_6(%arg0: i32) -> (i32, i32) {
    %c0_i32 = arith.constant 0 : i32
    %c0_i32_0 = arith.constant 0 : i32
    return %arg0, %c0_i32 : i32, i32
  }
}

</mosaic_0001>

<bundles_post_ra>
// kernel: vss_block_no_cbam_forward.5
= control target key start
LH: loop header
LB: loop body
LE: loop exit
PB: predicated region body
PF: predicated region fallthrough
CT: control target
= control target key end

     0   :  { %12 = vsyncpa [#allocation3], 0  ;;  %s4062_s0 = inlined_call_operand.vmem [shape: f32[512,4], index: 0, kind: input, shape index: {}]   ;;  %s4063_s1 = inlined_call_operand.hbm [shape: f32[1,4], index: 1, kind: input, shape index: {}]   ;;  %s4064_s2 = inlined_call_operand.hbm [shape: f32[1,4], index: 2, kind: input, shape index: {}]   ;;  %s4065_s3 = inlined_call_operand.vmem [shape: bf16[4,8], index: 3, kind: input, shape index: {}]   ;;  %s4066_s4 = inlined_call_operand.vmem [shape: bf16[4,8], index: 4, kind: input, shape index: {}]   ;;  %s4067_s5 = inlined_call_operand.vmem [shape: f32[512,8], index: 5, kind: output, shape index: {0}]   ;;  %s4068_s6 = inlined_call_operand.vmem [shape: f32[512,8], index: 6, kind: output, shape index: {1}]  }
   0x1   :  { %13 = vsyncpa [#allocation5], 0  ;;  %s2387_s21 = smov [#allocation2]   ;;  %s2388_s23 = smov [#allocation4]  }
   0x2   :  { %s22_s22 = sshll.u32 %s2387_s21, 4  ;;  %s32_s24 = sshll.u32 %s2388_s23, 4  ;;  %s23_s22 = int_to_ptr.vmem [resolvable:$true] %s22_s22  ;;  %s33_s24 = int_to_ptr.vmem [resolvable:$true] %s32_s24 }
   0x3   :  { %s2339_s27 = scalar_lea.hbm %s4063_s1, 16 }
   0x4   :  { %p2340_p0 = scmp.ne.s32.totalorder %s4063_s1, %s2339_s27  ;;  %p2343_p1 = scmp.lt.u32.totalorder %s2339_s27, %s4063_s1 }
   0x6   :  { %p2345_p2 = pnand %p2343_p1, %p2340_p0 }
   0x8   :  { %2348 = shalt.err (!%p2345_p2)
}
   0x9   :  { %s2349_s8 = scalar_lea.vmem %s23_s22, 16  ;;  %s2353_s9 = scalar_lea.vmem %s23_s22, 32 }
   0xa   :  { %p2350_p3 = scmp.ne.s32.totalorder %s23_s22, %s2349_s8  ;;  %p2354_p4 = scmp.lt.s32.totalorder %s23_s22, %s23_s22 }
   0xb   :  { %p2355_p5 = scmp.lt.s32.totalorder %s2353_s9, %s2349_s8 }
   0xd   :  { %p2356_p6 = por %p2355_p5, %p2354_p4 }
   0xf   :  { %p2357_p7 = pnand %p2356_p6, %p2350_p3 }
  0x11   :  { %2360 = shalt.err (!%p2357_p7)
}
  0x12   :  { %25 = dma.hbm_to_vmem [thread:$0]  %s4063_s1, 16, %s23_s22, [#allocation3]  }
  0x13   :  { %s2361_s14 = scalar_lea.hbm %s4064_s2, 16 }
  0x14   :  { %p2362_p8 = scmp.ne.s32.totalorder %s4064_s2, %s2361_s14  ;;  %p2365_p9 = scmp.lt.u32.totalorder %s2361_s14, %s4064_s2 }
  0x16   :  { %p2367_p10 = pnand %p2365_p9, %p2362_p8 }
  0x18   :  { %2370 = shalt.err (!%p2367_p10)
}
  0x19   :  { %s2371_s19 = scalar_lea.vmem %s33_s24, 16  ;;  %s2375_s20 = scalar_lea.vmem %s33_s24, 32 }
  0x1a   :  { %p2372_p11 = scmp.ne.s32.totalorder %s33_s24, %s2371_s19  ;;  %p2376_p12 = scmp.lt.s32.totalorder %s33_s24, %s33_s24 }
  0x1b   :  { %p2377_p13 = scmp.lt.s32.totalorder %s2375_s20, %s2371_s19 }
  0x1d   :  { %p2378_p0 = por %p2377_p13, %p2376_p12 }
  0x1f   :  { %p2379_p1 = pnand %p2378_p0, %p2372_p11 }
  0x21   :  { %2382 = shalt.err (!%p2379_p1)
}
  0x22   :  { %35 = dma.hbm_to_vmem [thread:$0]  %s4064_s2, 16, %s33_s24, [#allocation5]  }
  0x23   :  { %2383 = dma.done.wait [#allocation3], 16  }
  0x24   :  { %2384 = vsyncadd [#allocation3], 4294967280 }
  0x25   :  { %2385 = dma.done.wait [#allocation5], 16  }
  0x26   :  { %2386 = vsyncadd [#allocation5], 4294967280  ;;  %vm111_vm0 = vcmask 31744   ;;  %v2451_v0 = vld [vmem:[%s4062_s0] sm:$0xff]  ;;  %v2456_v1 = vld [vmem:[%s4062_s0 + $0x10] sm:$0xff]  ;;  %vm1216_vm1 = vcmask 1041408  }
  0x27   :  { %v2461_v2 = vld [vmem:[%s4062_s0 + $0x8] sm:$0xff]  ;;  %v112_v3 = vsel %vm111_vm0, %v2451_v0, 0.0  ;;  %v118_v4 = vsel %vm111_vm0, %v2456_v1, 0.0  ;;  %v2470_v5 = vld [vmem:[%s4062_s0 + $0x18] sm:$0xff]  ;;  %v2479_v8 = vld [vmem:[%s4062_s0 + $0x20] sm:$0xff]  ;;  %vm1509_vm2 = vcmask 64512  }
  0x28   :  { %113 = vadd.xlane.f32.xlu0 %v112_v3  ;;  %119 = vadd.xlane.f32.xlu1 %v118_v4  ;;  %v115_v6 = vsel %vm111_vm0, %v2461_v2, 0.0  ;;  %v121_v7 = vsel %vm111_vm0, %v2470_v5, 0.0  ;;  %v2484_v9 = vld [vmem:[%s4062_s0 + $0x28] sm:$0xff]  ;;  %v124_v10 = vsel %vm111_vm0, %v2479_v8, 0.0  ;;  %v2493_v12 = vld [vmem:[%s4062_s0 + $0x30] sm:$0xff]  ;;  %v2498_v13 = vld [vmem:[%s4062_s0 + $0x38] sm:$0xff] }
  0x29   :  { %v127_v11 = vsel %vm111_vm0, %v2484_v9, 0.0  ;;  %v130_v14 = vsel %vm111_vm0, %v2493_v12, 0.0  ;;  %v133_v15 = vsel %vm111_vm0, %v2498_v13, 0.0  ;;  %v2507_v16 = vld [vmem:[%s4062_s0 + $0x40] sm:$0xff]  ;;  %v2512_v17 = vld [vmem:[%s4062_s0 + $0x48] sm:$0xff]  ;;  %v2521_v20 = vld [vmem:[%s4062_s0 + $0x50] sm:$0xff] }
  0x2a   :  { %v136_v18 = vsel %vm111_vm0, %v2507_v16, 0.0  ;;  %v139_v19 = vsel %vm111_vm0, %v2512_v17, 0.0  ;;  %v2526_v21 = vld [vmem:[%s4062_s0 + $0x58] sm:$0xff]  ;;  %v142_v22 = vsel %vm111_vm0, %v2521_v20, 0.0  ;;  %v2535_v24 = vld [vmem:[%s4062_s0 + $0x60] sm:$0xff]  ;;  %v2540_v25 = vld [vmem:[%s4062_s0 + $0x68] sm:$0xff] }
  0x2b   :  { %v145_v23 = vsel %vm111_vm0, %v2526_v21, 0.0  ;;  %v148_v26 = vsel %vm111_vm0, %v2535_v24, 0.0  ;;  %v151_v27 = vsel %vm111_vm0, %v2540_v25, 0.0  ;;  %v2549_v28 = vld [vmem:[%s4062_s0 + $0x70] sm:$0xff]  ;;  %v2554_v29 = vld [vmem:[%s4062_s0 + $0x78] sm:$0xff]  ;;  %v2563_v32 = vld [vmem:[%s4062_s0 + $0x80] sm:$0xff] }
  0x2c   :  { %116 = vadd.xlane.f32.xlu0 %v115_v6  ;;  %122 = vadd.xlane.f32.xlu1 %v121_v7  ;;  %v154_v30 = vsel %vm111_vm0, %v2549_v28, 0.0  ;;  %v157_v31 = vsel %vm111_vm0, %v2554_v29, 0.0  ;;  %v2568_v33 = vld [vmem:[%s4062_s0 + $0x88] sm:$0xff]  ;;  %v160_v34 = vsel %vm111_vm0, %v2563_v32, 0.0  ;;  %v2577_v36 = vld [vmem:[%s4062_s0 + $0x90] sm:$0xff]  ;;  %v2582_v37 = vld [vmem:[%s4062_s0 + $0x98] sm:$0xff] }
  0x2d   :  { %v163_v35 = vsel %vm111_vm0, %v2568_v33, 0.0  ;;  %v166_v38 = vsel %vm111_vm0, %v2577_v36, 0.0  ;;  %v169_v39 = vsel %vm111_vm0, %v2582_v37, 0.0  ;;  %v2591_v40 = vld [vmem:[%s4062_s0 + $0xa0] sm:$0xff]  ;;  %v2596_v41 = vld [vmem:[%s4062_s0 + $0xa8] sm:$0xff]  ;;  %v2605_v44 = vld [vmem:[%s4062_s0 + $0xb0] sm:$0xff] }
  0x2e   :  { %v172_v42 = vsel %vm111_vm0, %v2591_v40, 0.0  ;;  %v175_v43 = vsel %vm111_vm0, %v2596_v41, 0.0  ;;  %v2610_v45 = vld [vmem:[%s4062_s0 + $0xb8] sm:$0xff]  ;;  %v178_v46 = vsel %vm111_vm0, %v2605_v44, 0.0  ;;  %v2619_v48 = vld [vmem:[%s4062_s0 + $0xc0] sm:$0xff]  ;;  %v2624_v49 = vld [vmem:[%s4062_s0 + $0xc8] sm:$0xff] }
  0x2f   :  { %v181_v47 = vsel %vm111_vm0, %v2610_v45, 0.0  ;;  %v184_v50 = vsel %vm111_vm0, %v2619_v48, 0.0  ;;  %v187_v51 = vsel %vm111_vm0, %v2624_v49, 0.0  ;;  %v2633_v52 = vld [vmem:[%s4062_s0 + $0xd0] sm:$0xff]  ;;  %v2638_v53 = vld [vmem:[%s4062_s0 + $0xd8] sm:$0xff]  ;;  %v2647_v56 = vld [vmem:[%s4062_s0 + $0xe0] sm:$0xff] }
  0x30   :  { %125 = vadd.xlane.f32.xlu0 %v124_v10  ;;  %128 = vadd.xlane.f32.xlu1 %v127_v11  ;;  %v190_v54 = vsel %vm111_vm0, %v2633_v52, 0.0  ;;  %v193_v55 = vsel %vm111_vm0, %v2638_v53, 0.0  ;;  %v2652_v57 = vld [vmem:[%s4062_s0 + $0xe8] sm:$0xff]  ;;  %v196_v58 = vsel %vm111_vm0, %v2647_v56, 0.0  ;;  %v2661_v60 = vld [vmem:[%s4062_s0 + $0xf0] sm:$0xff]  ;;  %v2666_v61 = vld [vmem:[%s4062_s0 + $0xf8] sm:$0xff] }
  0x31   :  { %v199_v59 = vsel %vm111_vm0, %v2652_v57, 0.0  ;;  %v202_v62 = vsel %vm111_vm0, %v2661_v60, 0.0  ;;  %v205_v63 = vsel %vm111_vm0, %v2666_v61, 0.0  ;;  %v2675_v3 = vld [vmem:[%s4062_s0 + $0x100] sm:$0xff]  ;;  %v2680_v4 = vld [vmem:[%s4062_s0 + $0x108] sm:$0xff]  ;;  %v2689_v10 = vld [vmem:[%s4062_s0 + $0x110] sm:$0xff] }
  0x32   :  { %v208_v6 = vsel %vm111_vm0, %v2675_v3, 0.0  ;;  %v211_v7 = vsel %vm111_vm0, %v2680_v4, 0.0  ;;  %v2694_v11 = vld [vmem:[%s4062_s0 + $0x118] sm:$0xff] }
  0x34   :  { %131 = vadd.xlane.f32.xlu0 %v130_v14  ;;  %134 = vadd.xlane.f32.xlu1 %v133_v15  ;;  %v214_v14 = vsel %vm111_vm0, %v2689_v10, 0.0  ;;  %v217_v15 = vsel %vm111_vm0, %v2694_v11, 0.0 }
  0x38   :  { %137 = vadd.xlane.f32.xlu0 %v136_v18  ;;  %140 = vadd.xlane.f32.xlu1 %v139_v19  ;;  %v2703_v18 = vld [vmem:[%s4062_s0 + $0x120] sm:$0xff]  ;;  %v2708_v19 = vld [vmem:[%s4062_s0 + $0x128] sm:$0xff] }
  0x3c   :  { %143 = vadd.xlane.f32.xlu0 %v142_v22  ;;  %146 = vadd.xlane.f32.xlu1 %v145_v23  ;;  %v220_v22 = vsel %vm111_vm0, %v2703_v18, 0.0  ;;  %v223_v23 = vsel %vm111_vm0, %v2708_v19, 0.0 }
  0x40   :  { %149 = vadd.xlane.f32.xlu0 %v148_v26  ;;  %152 = vadd.xlane.f32.xlu1 %v151_v27  ;;  %v2717_v26 = vld [vmem:[%s4062_s0 + $0x130] sm:$0xff]  ;;  %v2722_v27 = vld [vmem:[%s4062_s0 + $0x138] sm:$0xff] }
  0x44   :  { %155 = vadd.xlane.f32.xlu0 %v154_v30  ;;  %158 = vadd.xlane.f32.xlu1 %v157_v31  ;;  %v226_v30 = vsel %vm111_vm0, %v2717_v26, 0.0  ;;  %v229_v31 = vsel %vm111_vm0, %v2722_v27, 0.0 }
  0x48   :  { %161 = vadd.xlane.f32.xlu0 %v160_v34  ;;  %164 = vadd.xlane.f32.xlu1 %v163_v35  ;;  %v2731_v34 = vld [vmem:[%s4062_s0 + $0x140] sm:$0xff]  ;;  %v2736_v35 = vld [vmem:[%s4062_s0 + $0x148] sm:$0xff] }
  0x4c   :  { %167 = vadd.xlane.f32.xlu0 %v166_v38  ;;  %170 = vadd.xlane.f32.xlu1 %v169_v39  ;;  %v232_v38 = vsel %vm111_vm0, %v2731_v34, 0.0  ;;  %v235_v39 = vsel %vm111_vm0, %v2736_v35, 0.0 }
  0x50   :  { %173 = vadd.xlane.f32.xlu0 %v172_v42  ;;  %176 = vadd.xlane.f32.xlu1 %v175_v43  ;;  %v2745_v42 = vld [vmem:[%s4062_s0 + $0x150] sm:$0xff]  ;;  %v2750_v43 = vld [vmem:[%s4062_s0 + $0x158] sm:$0xff] }
  0x54   :  { %179 = vadd.xlane.f32.xlu0 %v178_v46  ;;  %182 = vadd.xlane.f32.xlu1 %v181_v47  ;;  %v238_v46 = vsel %vm111_vm0, %v2745_v42, 0.0  ;;  %v241_v47 = vsel %vm111_vm0, %v2750_v43, 0.0 }
  0x58   :  { %185 = vadd.xlane.f32.xlu0 %v184_v50  ;;  %188 = vadd.xlane.f32.xlu1 %v187_v51  ;;  %v2759_v50 = vld [vmem:[%s4062_s0 + $0x160] sm:$0xff]  ;;  %v2764_v51 = vld [vmem:[%s4062_s0 + $0x168] sm:$0xff] }
  0x5c   :  { %191 = vadd.xlane.f32.xlu0 %v190_v54  ;;  %194 = vadd.xlane.f32.xlu1 %v193_v55  ;;  %v244_v54 = vsel %vm111_vm0, %v2759_v50, 0.0  ;;  %v247_v55 = vsel %vm111_vm0, %v2764_v51, 0.0 }
  0x60   :  { %197 = vadd.xlane.f32.xlu0 %v196_v58  ;;  %200 = vadd.xlane.f32.xlu1 %v199_v59  ;;  %v2773_v58 = vld [vmem:[%s4062_s0 + $0x170] sm:$0xff]  ;;  %v2778_v59 = vld [vmem:[%s4062_s0 + $0x178] sm:$0xff] }
  0x64   :  { %203 = vadd.xlane.f32.xlu0 %v202_v62  ;;  %206 = vadd.xlane.f32.xlu1 %v205_v63  ;;  %v250_v62 = vsel %vm111_vm0, %v2773_v58, 0.0  ;;  %v253_v63 = vsel %vm111_vm0, %v2778_v59, 0.0 }
  0x68   :  { %209 = vadd.xlane.f32.xlu0 %v208_v6  ;;  %212 = vadd.xlane.f32.xlu1 %v211_v7  ;;  %v2787_v6 = vld [vmem:[%s4062_s0 + $0x180] sm:$0xff]  ;;  %v2792_v7 = vld [vmem:[%s4062_s0 + $0x188] sm:$0xff] }
  0x6c   :  { %215 = vadd.xlane.f32.xlu0 %v214_v14  ;;  %218 = vadd.xlane.f32.xlu1 %v217_v15  ;;  %v256_v14 = vsel %vm111_vm0, %v2787_v6, 0.0  ;;  %v259_v15 = vsel %vm111_vm0, %v2792_v7, 0.0 }
  0x70   :  { %221 = vadd.xlane.f32.xlu0 %v220_v22  ;;  %224 = vadd.xlane.f32.xlu1 %v223_v23  ;;  %v2801_v22 = vld [vmem:[%s4062_s0 + $0x190] sm:$0xff]  ;;  %v2806_v23 = vld [vmem:[%s4062_s0 + $0x198] sm:$0xff] }
  0x71   :  { %4099 = vst [vmem:[#allocation8_spill] sm:$0xff] %v2801_v22  ;;  %4100 = vst [vmem:[#allocation9_spill] sm:$0xff] %v2806_v23 }
  0x74   :  { %227 = vadd.xlane.f32.xlu0 %v226_v30  ;;  %230 = vadd.xlane.f32.xlu1 %v229_v31  ;;  %v262_v30 = vsel %vm111_vm0, %v2801_v22, 0.0  ;;  %v265_v31 = vsel %vm111_vm0, %v2806_v23, 0.0 }
  0x78   :  { %233 = vadd.xlane.f32.xlu0 %v232_v38  ;;  %236 = vadd.xlane.f32.xlu1 %v235_v39  ;;  %v2815_v38 = vld [vmem:[%s4062_s0 + $0x1a0] sm:$0xff]  ;;  %v2820_v39 = vld [vmem:[%s4062_s0 + $0x1a8] sm:$0xff] }
  0x79   :  { %4101 = vst [vmem:[#allocation10_spill] sm:$0xff] %v2815_v38  ;;  %4102 = vst [vmem:[#allocation11_spill] sm:$0xff] %v2820_v39 }
  0x7c   :  { %239 = vadd.xlane.f32.xlu0 %v238_v46  ;;  %242 = vadd.xlane.f32.xlu1 %v241_v47  ;;  %v268_v46 = vsel %vm111_vm0, %v2815_v38, 0.0  ;;  %v271_v47 = vsel %vm111_vm0, %v2820_v39, 0.0 }
  0x80   :  { %245 = vadd.xlane.f32.xlu0 %v244_v54  ;;  %248 = vadd.xlane.f32.xlu1 %v247_v55  ;;  %v2829_v54 = vld [vmem:[%s4062_s0 + $0x1b0] sm:$0xff]  ;;  %v2834_v55 = vld [vmem:[%s4062_s0 + $0x1b8] sm:$0xff] }
  0x81   :  { %4103 = vst [vmem:[#allocation12_spill] sm:$0xff] %v2829_v54  ;;  %4104 = vst [vmem:[#allocation13_spill] sm:$0xff] %v2834_v55 }
  0x84   :  { %251 = vadd.xlane.f32.xlu0 %v250_v62  ;;  %254 = vadd.xlane.f32.xlu1 %v253_v63  ;;  %v274_v62 = vsel %vm111_vm0, %v2829_v54, 0.0  ;;  %v277_v63 = vsel %vm111_vm0, %v2834_v55, 0.0 }
  0x88   :  { %257 = vadd.xlane.f32.xlu0 %v256_v14  ;;  %260 = vadd.xlane.f32.xlu1 %v259_v15  ;;  %v2843_v14 = vld [vmem:[%s4062_s0 + $0x1c0] sm:$0xff]  ;;  %v2848_v15 = vld [vmem:[%s4062_s0 + $0x1c8] sm:$0xff] }
  0x89   :  { %4105 = vst [vmem:[#allocation14_spill] sm:$0xff] %v2843_v14  ;;  %4106 = vst [vmem:[#allocation15_spill] sm:$0xff] %v2848_v15 }
  0x8c   :  { %263 = vadd.xlane.f32.xlu0 %v262_v30  ;;  %266 = vadd.xlane.f32.xlu1 %v265_v31  ;;  %v280_v30 = vsel %vm111_vm0, %v2843_v14, 0.0  ;;  %v283_v31 = vsel %vm111_vm0, %v2848_v15, 0.0 }
  0x90   :  { %269 = vadd.xlane.f32.xlu0 %v268_v46  ;;  %272 = vadd.xlane.f32.xlu1 %v271_v47  ;;  %v2857_v46 = vld [vmem:[%s4062_s0 + $0x1d0] sm:$0xff]  ;;  %v2862_v47 = vld [vmem:[%s4062_s0 + $0x1d8] sm:$0xff] }
  0x91   :  { %4107 = vst [vmem:[#allocation16_spill] sm:$0xff] %v2857_v46 }
  0x94   :  { %275 = vadd.xlane.f32.xlu0 %v274_v62  ;;  %278 = vadd.xlane.f32.xlu1 %v277_v63  ;;  %v286_v62 = vsel %vm111_vm0, %v2857_v46, 0.0  ;;  %v289_v63 = vsel %vm111_vm0, %v2862_v47, 0.0 }
  0x98   :  { %281 = vadd.xlane.f32.xlu0 %v280_v30  ;;  %284 = vadd.xlane.f32.xlu1 %v283_v31 }
  0x9c   :  { %287 = vadd.xlane.f32.xlu0 %v286_v62  ;;  %290 = vadd.xlane.f32.xlu1 %v289_v63 }
  0xb5   :  { %v114_v15 = vpop.xlane.xlu0 %113  ;;  %v120_v14 = vpop.xlane.xlu1 %119 }
  0xb6   :  { %v305_v55 = vmul.f32 0.25, %v114_v15  ;;  %v307_v54 = vmul.f32 0.25, %v120_v14 }
  0xb8   :  { %v2869_v39 = vsub.f32 %v2451_v0, %v305_v55  ;;  %v2872_v38 = vsub.f32 %v2456_v1, %v307_v54 }
  0xb9   :  { %v117_v30 = vpop.xlane.xlu0 %116  ;;  %v123_v31 = vpop.xlane.xlu1 %122 }
  0xba   :  { %4108 = vst [vmem:[#allocation17_spill] sm:$0xff] %v2872_v38  ;;  %v306_v23 = vmul.f32 0.25, %v117_v30  ;;  %v308_v22 = vmul.f32 0.25, %v123_v31  ;;  %v433_v46 = vmul.f32 %v2869_v39, %v2869_v39  ;;  %v435_v62 = vmul.f32 %v2872_v38, %v2872_v38 }
  0xbc   :  { %v2879_v63 = vsub.f32 %v2461_v2, %v306_v23  ;;  %v2882_v14 = vsub.f32 %v2470_v5, %v308_v22  ;;  %v497_v0 = vsel %vm111_vm0, %v433_v46, 0.0  ;;  %v503_v55 = vsel %vm111_vm0, %v435_v62, 0.0 }
  0xbd   :  { %498 = vadd.xlane.f32.xlu0 %v497_v0  ;;  %v126_v1 = vpop.xlane.xlu0 %125  ;;  %v129_v54 = vpop.xlane.xlu1 %128 }
  0xbe   :  { %v309_v15 = vmul.f32 0.25, %v126_v1  ;;  %v310_v30 = vmul.f32 0.25, %v129_v54  ;;  %v434_v31 = vmul.f32 %v2879_v63, %v2879_v63  ;;  %v436_v38 = vmul.f32 %v2882_v14, %v2882_v14 }
  0xc0   :  { %v2891_v2 = vsub.f32 %v2479_v8, %v309_v15  ;;  %v2894_v5 = vsub.f32 %v2484_v9, %v310_v30  ;;  %v500_v22 = vsel %vm111_vm0, %v434_v31, 0.0  ;;  %v506_v62 = vsel %vm111_vm0, %v436_v38, 0.0 }
  0xc1   :  { %504 = vadd.xlane.f32.xlu0 %v503_v55  ;;  %501 = vadd.xlane.f32.xlu1 %v500_v22  ;;  %v132_v23 = vpop.xlane.xlu0 %131  ;;  %v135_v46 = vpop.xlane.xlu1 %134 }
  0xc2   :  { %v311_v0 = vmul.f32 0.25, %v132_v23  ;;  %v312_v1 = vmul.f32 0.25, %v135_v46  ;;  %v437_v54 = vmul.f32 %v2891_v2, %v2891_v2  ;;  %v438_v8 = vmul.f32 %v2894_v5, %v2894_v5 }
  0xc4   :  { %v2903_v15 = vsub.f32 %v2493_v12, %v311_v0  ;;  %v2906_v9 = vsub.f32 %v2498_v13, %v312_v1  ;;  %v509_v55 = vsel %vm111_vm0, %v437_v54, 0.0  ;;  %v512_v31 = vsel %vm111_vm0, %v438_v8, 0.0 }
  0xc5   :  { %507 = vadd.xlane.f32.xlu1 %v506_v62  ;;  %510 = vadd.xlane.f32.xlu0 %v509_v55  ;;  %v138_v30 = vpop.xlane.xlu0 %137  ;;  %v141_v38 = vpop.xlane.xlu1 %140 }
  0xc6   :  { %v313_v22 = vmul.f32 0.25, %v138_v30  ;;  %v314_v23 = vmul.f32 0.25, %v141_v38  ;;  %v439_v46 = vmul.f32 %v2903_v15, %v2903_v15  ;;  %v440_v12 = vmul.f32 %v2906_v9, %v2906_v9 }
  0xc8   :  { %v2915_v0 = vsub.f32 %v2507_v16, %v313_v22  ;;  %v2918_v13 = vsub.f32 %v2512_v17, %v314_v23  ;;  %v515_v62 = vsel %vm111_vm0, %v439_v46, 0.0  ;;  %v518_v8 = vsel %vm111_vm0, %v440_v12, 0.0 }
  0xc9   :  { %513 = vadd.xlane.f32.xlu1 %v512_v31  ;;  %516 = vadd.xlane.f32.xlu0 %v515_v62  ;;  %v144_v1 = vpop.xlane.xlu0 %143  ;;  %v147_v54 = vpop.xlane.xlu1 %146 }
  0xca   :  { %v315_v55 = vmul.f32 0.25, %v144_v1  ;;  %v316_v30 = vmul.f32 0.25, %v147_v54  ;;  %v441_v38 = vmul.f32 %v2915_v0, %v2915_v0  ;;  %v442_v16 = vmul.f32 %v2918_v13, %v2918_v13 }
  0xcc   :  { %v2927_v22 = vsub.f32 %v2521_v20, %v315_v55  ;;  %v2930_v17 = vsub.f32 %v2526_v21, %v316_v30  ;;  %v521_v31 = vsel %vm111_vm0, %v441_v38, 0.0  ;;  %v524_v12 = vsel %vm111_vm0, %v442_v16, 0.0 }
  0xcd   :  { %519 = vadd.xlane.f32.xlu1 %v518_v8  ;;  %522 = vadd.xlane.f32.xlu0 %v521_v31  ;;  %v150_v23 = vpop.xlane.xlu0 %149  ;;  %v153_v46 = vpop.xlane.xlu1 %152 }
  0xce   :  { %v317_v62 = vmul.f32 0.25, %v150_v23  ;;  %v318_v1 = vmul.f32 0.25, %v153_v46  ;;  %v443_v54 = vmul.f32 %v2927_v22, %v2927_v22  ;;  %v444_v20 = vmul.f32 %v2930_v17, %v2930_v17 }
  0xd0   :  { %v2939_v55 = vsub.f32 %v2535_v24, %v317_v62  ;;  %v2942_v21 = vsub.f32 %v2540_v25, %v318_v1  ;;  %v527_v8 = vsel %vm111_vm0, %v443_v54, 0.0  ;;  %v530_v16 = vsel %vm111_vm0, %v444_v20, 0.0 }
  0xd1   :  { %525 = vadd.xlane.f32.xlu1 %v524_v12  ;;  %528 = vadd.xlane.f32.xlu0 %v527_v8  ;;  %v156_v30 = vpop.xlane.xlu0 %155  ;;  %v159_v38 = vpop.xlane.xlu1 %158 }
  0xd2   :  { %v319_v31 = vmul.f32 0.25, %v156_v30  ;;  %v320_v23 = vmul.f32 0.25, %v159_v38  ;;  %v445_v46 = vmul.f32 %v2939_v55, %v2939_v55  ;;  %v446_v24 = vmul.f32 %v2942_v21, %v2942_v21 }
  0xd4   :  { %v2951_v62 = vsub.f32 %v2549_v28, %v319_v31  ;;  %v2954_v25 = vsub.f32 %v2554_v29, %v320_v23  ;;  %v533_v12 = vsel %vm111_vm0, %v445_v46, 0.0  ;;  %v536_v20 = vsel %vm111_vm0, %v446_v24, 0.0 }
  0xd5   :  { %531 = vadd.xlane.f32.xlu1 %v530_v16  ;;  %534 = vadd.xlane.f32.xlu0 %v533_v12  ;;  %v162_v1 = vpop.xlane.xlu0 %161  ;;  %v165_v54 = vpop.xlane.xlu1 %164 }
  0xd6   :  { %v321_v8 = vmul.f32 0.25, %v162_v1  ;;  %v322_v30 = vmul.f32 0.25, %v165_v54  ;;  %v447_v38 = vmul.f32 %v2951_v62, %v2951_v62  ;;  %v448_v28 = vmul.f32 %v2954_v25, %v2954_v25 }
  0xd8   :  { %v2963_v31 = vsub.f32 %v2563_v32, %v321_v8  ;;  %v2966_v29 = vsub.f32 %v2568_v33, %v322_v30  ;;  %v539_v16 = vsel %vm111_vm0, %v447_v38, 0.0  ;;  %v542_v24 = vsel %vm111_vm0, %v448_v28, 0.0 }
  0xd9   :  { %537 = vadd.xlane.f32.xlu1 %v536_v20  ;;  %540 = vadd.xlane.f32.xlu0 %v539_v16  ;;  %v168_v23 = vpop.xlane.xlu0 %167  ;;  %v171_v46 = vpop.xlane.xlu1 %170 }
  0xda   :  { %v323_v12 = vmul.f32 0.25, %v168_v23  ;;  %v324_v1 = vmul.f32 0.25, %v171_v46  ;;  %v449_v54 = vmul.f32 %v2963_v31, %v2963_v31  ;;  %v450_v32 = vmul.f32 %v2966_v29, %v2966_v29 }
  0xdc   :  { %v2975_v8 = vsub.f32 %v2577_v36, %v323_v12  ;;  %v2978_v33 = vsub.f32 %v2582_v37, %v324_v1  ;;  %v545_v20 = vsel %vm111_vm0, %v449_v54, 0.0  ;;  %v548_v28 = vsel %vm111_vm0, %v450_v32, 0.0 }
  0xdd   :  { %543 = vadd.xlane.f32.xlu1 %v542_v24  ;;  %546 = vadd.xlane.f32.xlu0 %v545_v20  ;;  %v174_v30 = vpop.xlane.xlu0 %173  ;;  %v177_v38 = vpop.xlane.xlu1 %176 }
  0xde   :  { %4109 = vst [vmem:[#allocation18_spill] sm:$0xff] %v2978_v33  ;;  %v325_v16 = vmul.f32 0.25, %v174_v30  ;;  %v326_v23 = vmul.f32 0.25, %v177_v38  ;;  %v451_v46 = vmul.f32 %v2975_v8, %v2975_v8  ;;  %v452_v36 = vmul.f32 %v2978_v33, %v2978_v33 }
  0xe0   :  { %v2987_v12 = vsub.f32 %v2591_v40, %v325_v16  ;;  %v2990_v37 = vsub.f32 %v2596_v41, %v326_v23  ;;  %v551_v24 = vsel %vm111_vm0, %v451_v46, 0.0  ;;  %v554_v1 = vsel %vm111_vm0, %v452_v36, 0.0  ;;  %v3001_v41 = vld [vmem:[%s4062_s0 + $0x1e0] sm:$0xff]  ;;  %v3012_v46 = vld [vmem:[%s4062_s0 + $0x1e8] sm:$0xff] }
  0xe1   :  { %549 = vadd.xlane.f32.xlu1 %v548_v28  ;;  %552 = vadd.xlane.f32.xlu0 %v551_v24  ;;  %v180_v54 = vpop.xlane.xlu0 %179  ;;  %v183_v32 = vpop.xlane.xlu1 %182  ;;  %v292_v23 = vsel %vm111_vm0, %v3001_v41, 0.0 }
  0xe2   :  { %4110 = vst [vmem:[#allocation19_spill] sm:$0xff] %v2987_v12  ;;  %4111 = vst [vmem:[#allocation20_spill] sm:$0xff] %v2990_v37  ;;  %v453_v20 = vmul.f32 %v2987_v12, %v2987_v12  ;;  %v327_v30 = vmul.f32 0.25, %v180_v54  ;;  %v328_v38 = vmul.f32 0.25, %v183_v32  ;;  %v454_v40 = vmul.f32 %v2990_v37, %v2990_v37 }
  0xe4   :  { %v557_v28 = vsel %vm111_vm0, %v453_v20, 0.0  ;;  %v3005_v16 = vsub.f32 %v2605_v44, %v327_v30  ;;  %v3015_v54 = vsub.f32 %v2610_v45, %v328_v38  ;;  %v560_v32 = vsel %vm111_vm0, %v454_v40, 0.0  ;;  %v1119_v20 = vld [vmem:[%s4065_s3] sm:$0x3] }
  0xe5   :  { %555 = vadd.xlane.f32.xlu1 %v554_v1  ;;  %558 = vadd.xlane.f32.xlu0 %v557_v28  ;;  %v186_v36 = vpop.xlane.xlu0 %185  ;;  %v189_v24 = vpop.xlane.xlu1 %188  ;;  %v1574_v30 = vld [vmem:[%s4066_s4] sm:$0x3]  ;;  %v295_v45 = vsel %vm111_vm0, %v3012_v46, 0.0 }
  0xe6   :  { %4112 = vst [vmem:[#allocation21_spill] sm:$0xff] %v3005_v16  ;;  %4113 = vst [vmem:[#allocation22_spill] sm:$0xff] %v3015_v54  ;;  %v455_v44 = vmul.f32 %v3005_v16, %v3005_v16  ;;  %v329_v1 = vmul.f32 0.25, %v186_v36  ;;  %2205 = vmatprep.subr.msk.bf16.mxu0 %vm1216_vm1, %v1119_v20  ;;  %2206 = vmatprep.subr.msk.bf16.mxu1 %vm1216_vm1, %v1574_v30  ;;  %v330_v38 = vmul.f32 0.25, %v189_v24  ;;  %v1218_v36 = vsel %vm1216_vm1, %v1119_v20, 0 }
  0xe7   :  { %v1576_v16 = vsel %vm1216_vm1, %v1574_v30, 0  ;;  %v456_v33 = vmul.f32 %v3015_v54, %v3015_v54  ;;  %2074 = vmatpush3.bf16.msra.mxu0 %v1218_v36 }
  0xe8   :  { %v563_v37 = vsel %vm111_vm0, %v455_v44, 0.0  ;;  %v3030_v12 = vsub.f32 %v2619_v48, %v329_v1  ;;  %2140 = vmatpush3.bf16.msra.mxu1 %v1576_v16  ;;  %v3040_v24 = vsub.f32 %v2624_v49, %v330_v38  ;;  %v3051_v16 = vld [vmem:[%s4062_s0 + $0x1f8] sm:$0xff] }
  0xe9   :  { %561 = vadd.xlane.f32.xlu1 %v560_v32  ;;  %293 = vadd.xlane.f32.xlu0 %v292_v23  ;;  %v192_v40 = vpop.xlane.xlu0 %191  ;;  %v195_v28 = vpop.xlane.xlu1 %194  ;;  %v3037_v23 = vld [vmem:[%s4062_s0 + $0x1f0] sm:$0xff]  ;;  %v566_v30 = vsel %vm111_vm0, %v456_v33, 0.0  ;;  %v301_v33 = vsel %vm111_vm0, %v3051_v16, 0.0 }
  0xea   :  { %v331_v32 = vmul.f32 0.25, %v192_v40  ;;  %4114 = vst [vmem:[#allocation23_spill] sm:$0xff] %v3040_v24  ;;  %v298_v48 = vsel %vm111_vm0, %v3037_v23, 0.0  ;;  %v332_v44 = vmul.f32 0.25, %v195_v28  ;;  %v457_v49 = vmul.f32 %v3030_v12, %v3030_v12 }
  0xec   :  { %v3046_v54 = vsub.f32 %v2633_v52, %v331_v32  ;;  %v458_v52 = vmul.f32 %v3040_v24, %v3040_v24  ;;  %v569_v36 = vsel %vm111_vm0, %v457_v49, 0.0 }
  0xed   :  { %296 = vadd.xlane.f32.xlu1 %v295_v45  ;;  %564 = vadd.xlane.f32.xlu0 %v563_v37  ;;  %v198_v1 = vpop.xlane.xlu0 %197  ;;  %v201_v20 = vpop.xlane.xlu1 %200  ;;  %v3056_v45 = vsub.f32 %v2638_v53, %v332_v44 }
  0xee   :  { %v333_v37 = vmul.f32 0.25, %v198_v1  ;;  %v334_v38 = vmul.f32 0.25, %v201_v20  ;;  %v572_v44 = vsel %vm111_vm0, %v458_v52, 0.0 }
  0xf0   :  { %v3064_v32 = vsub.f32 %v2647_v56, %v333_v37  ;;  %v3069_v53 = vsub.f32 %v2652_v57, %v334_v38 }
  0xf1   :  { %567 = vadd.xlane.f32.xlu1 %v566_v30  ;;  %299 = vadd.xlane.f32.xlu0 %v298_v48  ;;  %v204_v40 = vpop.xlane.xlu0 %203  ;;  %v207_v28 = vpop.xlane.xlu1 %206  ;;  %v459_v48 = vmul.f32 %v3046_v54, %v3046_v54  ;;  %v460_v30 = vmul.f32 %v3056_v45, %v3056_v45 }
  0xf2   :  { %v335_v1 = vmul.f32 0.25, %v204_v40  ;;  %v336_v20 = vmul.f32 0.25, %v207_v28  ;;  %v462_v28 = vmul.f32 %v3069_v53, %v3069_v53 }
  0xf3   :  { %v575_v56 = vsel %vm111_vm0, %v459_v48, 0.0  ;;  %v578_v38 = vsel %vm111_vm0, %v460_v30, 0.0 }
  0xf4   :  { %v3076_v37 = vsub.f32 %v2661_v60, %v335_v1  ;;  %v3081_v57 = vsub.f32 %v2666_v61, %v336_v20  ;;  %v584_v20 = vsel %vm111_vm0, %v462_v28, 0.0 }
  0xf5   :  { %302 = vadd.xlane.f32.xlu1 %v301_v33  ;;  %570 = vadd.xlane.f32.xlu0 %v569_v36  ;;  %v210_v24 = vpop.xlane.xlu0 %209  ;;  %v213_v49 = vpop.xlane.xlu1 %212  ;;  %v461_v33 = vmul.f32 %v3064_v32, %v3064_v32 }
  0xf6   :  { %v337_v40 = vmul.f32 0.25, %v210_v24  ;;  %v338_v52 = vmul.f32 0.25, %v213_v49  ;;  %v463_v24 = vmul.f32 %v3076_v37, %v3076_v37  ;;  %v464_v49 = vmul.f32 %v3081_v57, %v3081_v57 }
  0xf7   :  { %v581_v60 = vsel %vm111_vm0, %v461_v33, 0.0 }
  0xf8   :  { %v3088_v1 = vsub.f32 %v2675_v3, %v337_v40  ;;  %v3093_v61 = vsub.f32 %v2680_v4, %v338_v52  ;;  %v587_v3 = vsel %vm111_vm0, %v463_v24, 0.0  ;;  %v590_v52 = vsel %vm111_vm0, %v464_v49, 0.0 }
  0xf9   :  { %573 = vadd.xlane.f32.xlu1 %v572_v44  ;;  %576 = vadd.xlane.f32.xlu0 %v575_v56  ;;  %v216_v36 = vpop.xlane.xlu0 %215  ;;  %v219_v48 = vpop.xlane.xlu1 %218 }
  0xfa   :  { %v339_v44 = vmul.f32 0.25, %v216_v36  ;;  %v340_v30 = vmul.f32 0.25, %v219_v48  ;;  %v466_v48 = vmul.f32 %v3093_v61, %v3093_v61 }
  0xfc   :  { %v3100_v40 = vsub.f32 %v2689_v10, %v339_v44  ;;  %v3105_v4 = vsub.f32 %v2694_v11, %v340_v30  ;;  %v596_v30 = vsel %vm111_vm0, %v466_v48, 0.0 }
  0xfd   :  { %579 = vadd.xlane.f32.xlu1 %v578_v38  ;;  %582 = vadd.xlane.f32.xlu0 %v581_v60  ;;  %v222_v56 = vpop.xlane.xlu0 %221  ;;  %v225_v33 = vpop.xlane.xlu1 %224  ;;  %v465_v38 = vmul.f32 %v3088_v1, %v3088_v1 }
  0xfe   :  { %v341_v36 = vmul.f32 0.25, %v222_v56  ;;  %v342_v28 = vmul.f32 0.25, %v225_v33  ;;  %v468_v33 = vmul.f32 %v3105_v4, %v3105_v4 }
  0xff   :  { %v593_v10 = vsel %vm111_vm0, %v465_v38, 0.0 }
 0x100   :  { %v3112_v44 = vsub.f32 %v2703_v18, %v341_v36  ;;  %v3117_v11 = vsub.f32 %v2708_v19, %v342_v28  ;;  %v602_v28 = vsel %vm111_vm0, %v468_v33, 0.0 }
 0x101   :  { %585 = vadd.xlane.f32.xlu1 %v584_v20  ;;  %588 = vadd.xlane.f32.xlu0 %v587_v3  ;;  %v228_v60 = vpop.xlane.xlu0 %227  ;;  %v231_v24 = vpop.xlane.xlu1 %230  ;;  %v467_v20 = vmul.f32 %v3100_v40, %v3100_v40 }
 0x102   :  { %v343_v56 = vmul.f32 0.25, %v228_v60  ;;  %v344_v49 = vmul.f32 0.25, %v231_v24  ;;  %v470_v24 = vmul.f32 %v3117_v11, %v3117_v11 }
 0x103   :  { %v599_v18 = vsel %vm111_vm0, %v467_v20, 0.0 }
 0x104   :  { %v3124_v36 = vsub.f32 %v2717_v26, %v343_v56  ;;  %v3129_v19 = vsub.f32 %v2722_v27, %v344_v49  ;;  %v608_v49 = vsel %vm111_vm0, %v470_v24, 0.0 }
 0x105   :  { %591 = vadd.xlane.f32.xlu1 %v590_v52  ;;  %594 = vadd.xlane.f32.xlu0 %v593_v10  ;;  %v234_v3 = vpop.xlane.xlu0 %233  ;;  %v237_v38 = vpop.xlane.xlu1 %236  ;;  %v469_v52 = vmul.f32 %v3112_v44, %v3112_v44 }
 0x106   :  { %v345_v60 = vmul.f32 0.25, %v234_v3  ;;  %v346_v48 = vmul.f32 0.25, %v237_v38  ;;  %v472_v38 = vmul.f32 %v3129_v19, %v3129_v19 }
 0x107   :  { %v605_v26 = vsel %vm111_vm0, %v469_v52, 0.0 }
 0x108   :  { %v3136_v56 = vsub.f32 %v2731_v34, %v345_v60  ;;  %v3141_v27 = vsub.f32 %v2736_v35, %v346_v48  ;;  %v614_v48 = vsel %vm111_vm0, %v472_v38, 0.0 }
 0x109   :  { %597 = vadd.xlane.f32.xlu1 %v596_v30  ;;  %600 = vadd.xlane.f32.xlu0 %v599_v18  ;;  %v240_v10 = vpop.xlane.xlu0 %239  ;;  %v243_v20 = vpop.xlane.xlu1 %242  ;;  %v471_v30 = vmul.f32 %v3124_v36, %v3124_v36 }
 0x10a   :  { %v347_v3 = vmul.f32 0.25, %v240_v10  ;;  %v348_v33 = vmul.f32 0.25, %v243_v20  ;;  %v474_v20 = vmul.f32 %v3141_v27, %v3141_v27 }
 0x10b   :  { %v611_v34 = vsel %vm111_vm0, %v471_v30, 0.0 }
 0x10c   :  { %v3148_v60 = vsub.f32 %v2745_v42, %v347_v3  ;;  %v3153_v35 = vsub.f32 %v2750_v43, %v348_v33  ;;  %v620_v33 = vsel %vm111_vm0, %v474_v20, 0.0 }
 0x10d   :  { %603 = vadd.xlane.f32.xlu1 %v602_v28  ;;  %606 = vadd.xlane.f32.xlu0 %v605_v26  ;;  %v246_v18 = vpop.xlane.xlu0 %245  ;;  %v249_v52 = vpop.xlane.xlu1 %248  ;;  %v473_v28 = vmul.f32 %v3136_v56, %v3136_v56 }
 0x10e   :  { %v349_v10 = vmul.f32 0.25, %v246_v18  ;;  %v350_v24 = vmul.f32 0.25, %v249_v52  ;;  %v476_v52 = vmul.f32 %v3153_v35, %v3153_v35 }
 0x10f   :  { %v617_v42 = vsel %vm111_vm0, %v473_v28, 0.0 }
 0x110   :  { %v3160_v3 = vsub.f32 %v2759_v50, %v349_v10  ;;  %v3165_v43 = vsub.f32 %v2764_v51, %v350_v24  ;;  %v626_v24 = vsel %vm111_vm0, %v476_v52, 0.0 }
 0x111   :  { %609 = vadd.xlane.f32.xlu1 %v608_v49  ;;  %612 = vadd.xlane.f32.xlu0 %v611_v34  ;;  %v252_v26 = vpop.xlane.xlu0 %251  ;;  %v255_v30 = vpop.xlane.xlu1 %254  ;;  %v475_v49 = vmul.f32 %v3148_v60, %v3148_v60 }
 0x112   :  { %v351_v18 = vmul.f32 0.25, %v252_v26  ;;  %4115 = vst [vmem:[#allocation24_spill] sm:$0xff] %v3165_v43  ;;  %v352_v38 = vmul.f32 0.25, %v255_v30  ;;  %v478_v30 = vmul.f32 %v3165_v43, %v3165_v43 }
 0x113   :  { %v623_v50 = vsel %vm111_vm0, %v475_v49, 0.0 }
 0x114   :  { %v3172_v10 = vsub.f32 %v2773_v58, %v351_v18  ;;  %v3177_v51 = vsub.f32 %v2778_v59, %v352_v38  ;;  %v632_v38 = vsel %vm111_vm0, %v478_v30, 0.0 }
 0x115   :  { %615 = vadd.xlane.f32.xlu1 %v614_v48  ;;  %618 = vadd.xlane.f32.xlu0 %v617_v42  ;;  %v258_v34 = vpop.xlane.xlu0 %257  ;;  %v261_v28 = vpop.xlane.xlu1 %260  ;;  %v477_v48 = vmul.f32 %v3160_v3, %v3160_v3 }
 0x116   :  { %4116 = vst [vmem:[#allocation25_spill] sm:$0xff] %v3172_v10  ;;  %v353_v26 = vmul.f32 0.25, %v258_v34  ;;  %4117 = vst [vmem:[#allocation26_spill] sm:$0xff] %v3177_v51  ;;  %v354_v20 = vmul.f32 0.25, %v261_v28  ;;  %v480_v28 = vmul.f32 %v3177_v51, %v3177_v51 }
 0x117   :  { %v629_v58 = vsel %vm111_vm0, %v477_v48, 0.0 }
 0x118   :  { %v3184_v18 = vsub.f32 %v2787_v6, %v353_v26  ;;  %v3189_v59 = vsub.f32 %v2792_v7, %v354_v20  ;;  %v4120_v26 = vld [vmem:[#allocation8_spill] sm:$0xff]  ;;  %v4121_v7 = vld [vmem:[#allocation9_spill] sm:$0xff]  ;;  %v638_v30 = vsel %vm111_vm0, %v480_v28, 0.0 }
 0x119   :  { %621 = vadd.xlane.f32.xlu1 %v620_v33  ;;  %624 = vadd.xlane.f32.xlu0 %v623_v50  ;;  %v264_v42 = vpop.xlane.xlu0 %263  ;;  %v267_v49 = vpop.xlane.xlu1 %266  ;;  %v479_v33 = vmul.f32 %v3172_v10, %v3172_v10 }
 0x11a   :  { %4118 = vst [vmem:[#allocation27_spill] sm:$0xff] %v3184_v18  ;;  %v355_v34 = vmul.f32 0.25, %v264_v42  ;;  %4119 = vst [vmem:[#allocation28_spill] sm:$0xff] %v3189_v59  ;;  %v356_v52 = vmul.f32 0.25, %v267_v49 }
 0x11b   :  { %v635_v6 = vsel %vm111_vm0, %v479_v33, 0.0 }
 0x11c   :  { %v3196_v43 = vsub.f32 %v4120_v26, %v355_v34  ;;  %v3201_v20 = vsub.f32 %v4121_v7, %v356_v52  ;;  %v4123_v26 = vld [vmem:[#allocation10_spill] sm:$0xff]  ;;  %v4125_v52 = vld [vmem:[#allocation11_spill] sm:$0xff] }
 0x11d   :  { %627 = vadd.xlane.f32.xlu1 %v626_v24  ;;  %630 = vadd.xlane.f32.xlu0 %v629_v58  ;;  %v270_v50 = vpop.xlane.xlu0 %269  ;;  %v273_v48 = vpop.xlane.xlu1 %272  ;;  %v481_v24 = vmul.f32 %v3184_v18, %v3184_v18  ;;  %v482_v58 = vmul.f32 %v3189_v59, %v3189_v59 }
 0x11e   :  { %v357_v42 = vmul.f32 0.25, %v270_v50  ;;  %4122 = vst [vmem:[#allocation8_spill] sm:$0xff] %v3201_v20  ;;  %v358_v49 = vmul.f32 0.25, %v273_v48  ;;  %v484_v7 = vmul.f32 %v3201_v20, %v3201_v20 }
 0x11f   :  { %v641_v34 = vsel %vm111_vm0, %v481_v24, 0.0  ;;  %v644_v28 = vsel %vm111_vm0, %v482_v58, 0.0 }
 0x120   :  { %v3208_v10 = vsub.f32 %v4123_v26, %v357_v42  ;;  %v4127_v26 = vld [vmem:[#allocation12_spill] sm:$0xff]  ;;  %v650_v58 = vsel %vm111_vm0, %v484_v7, 0.0 }
 0x121   :  { %633 = vadd.xlane.f32.xlu1 %v632_v38  ;;  %636 = vadd.xlane.f32.xlu0 %v635_v6  ;;  %v276_v51 = vpop.xlane.xlu0 %275  ;;  %v279_v33 = vpop.xlane.xlu1 %278  ;;  %v483_v38 = vmul.f32 %v3196_v43, %v3196_v43  ;;  %v3213_v6 = vsub.f32 %v4125_v52, %v358_v49  ;;  %v4129_v49 = vld [vmem:[#allocation13_spill] sm:$0xff] }
 0x122   :  { %4124 = vst [vmem:[#allocation9_spill] sm:$0xff] %v3208_v10  ;;  %v359_v50 = vmul.f32 0.25, %v276_v51  ;;  %v360_v48 = vmul.f32 0.25, %v279_v33  ;;  %v485_v51 = vmul.f32 %v3208_v10, %v3208_v10 }
 0x123   :  { %4126 = vst [vmem:[#allocation10_spill] sm:$0xff] %v3213_v6  ;;  %v647_v42 = vsel %vm111_vm0, %v483_v38, 0.0  ;;  %v486_v52 = vmul.f32 %v3213_v6, %v3213_v6  ;;  %v4135_v6 = vld [vmem:[#allocation16_spill] sm:$0xff] }
 0x124   :  { %v3220_v18 = vsub.f32 %v4127_v26, %v359_v50  ;;  %v653_v38 = vsel %vm111_vm0, %v485_v51, 0.0  ;;  %v4131_v50 = vld [vmem:[#allocation14_spill] sm:$0xff] }
 0x125   :  { %639 = vadd.xlane.f32.xlu1 %v638_v30  ;;  %642 = vadd.xlane.f32.xlu0 %v641_v34  ;;  %v282_v59 = vpop.xlane.xlu0 %281  ;;  %v285_v24 = vpop.xlane.xlu1 %284  ;;  %v3225_v34 = vsub.f32 %v4129_v49, %v360_v48  ;;  %v4133_v48 = vld [vmem:[#allocation15_spill] sm:$0xff]  ;;  %v656_v7 = vsel %vm111_vm0, %v486_v52, 0.0 }
 0x126   :  { %4128 = vst [vmem:[#allocation11_spill] sm:$0xff] %v3220_v18  ;;  %v361_v30 = vmul.f32 0.25, %v282_v59  ;;  %v362_v33 = vmul.f32 0.25, %v285_v24  ;;  %v487_v59 = vmul.f32 %v3220_v18, %v3220_v18 }
 0x127   :  { %4130 = vst [vmem:[#allocation12_spill] sm:$0xff] %v3225_v34  ;;  %v488_v24 = vmul.f32 %v3225_v34, %v3225_v34 }
 0x128   :  { %v3232_v26 = vsub.f32 %v4131_v50, %v361_v30  ;;  %v3237_v49 = vsub.f32 %v4133_v48, %v362_v33  ;;  %v659_v51 = vsel %vm111_vm0, %v487_v59, 0.0 }
 0x129   :  { %645 = vadd.xlane.f32.xlu1 %v644_v28  ;;  %648 = vadd.xlane.f32.xlu0 %v647_v42  ;;  %v288_v20 = vpop.xlane.xlu0 %287  ;;  %v291_v42 = vpop.xlane.xlu1 %290 }
 0x12a   :  { %4132 = vst [vmem:[#allocation13_spill] sm:$0xff] %v3232_v26  ;;  %v363_v28 = vmul.f32 0.25, %v288_v20  ;;  %4134 = vst [vmem:[#allocation14_spill] sm:$0xff] %v3237_v49  ;;  %v364_v50 = vmul.f32 0.25, %v291_v42  ;;  %v489_v20 = vmul.f32 %v3232_v26, %v3232_v26 }
 0x12c   :  { %v3244_v30 = vsub.f32 %v4135_v6, %v363_v28  ;;  %v3250_v33 = vsub.f32 %v2862_v47, %v364_v50  ;;  %v665_v52 = vsel %vm111_vm0, %v489_v20, 0.0 }
 0x12d   :  { %651 = vadd.xlane.f32.xlu1 %v650_v58  ;;  %654 = vadd.xlane.f32.xlu0 %v653_v38  ;;  %v662_v58 = vsel %vm111_vm0, %v488_v24, 0.0  ;;  %v490_v38 = vmul.f32 %v3237_v49, %v3237_v49 }
 0x12e   :  { %4136 = vst [vmem:[#allocation15_spill] sm:$0xff] %v3244_v30  ;;  %4137 = vst [vmem:[#allocation16_spill] sm:$0xff] %v3250_v33  ;;  %v491_v6 = vmul.f32 %v3244_v30, %v3244_v30  ;;  %v492_v42 = vmul.f32 %v3250_v33, %v3250_v33 }
 0x12f   :  { %v668_v59 = vsel %vm111_vm0, %v490_v38, 0.0 }
 0x130   :  { %v671_v28 = vsel %vm111_vm0, %v491_v6, 0.0  ;;  %v674_v47 = vsel %vm111_vm0, %v492_v42, 0.0 }
 0x131   :  { %657 = vadd.xlane.f32.xlu1 %v656_v7  ;;  %660 = vadd.xlane.f32.xlu0 %v659_v51 }
 0x135   :  { %663 = vadd.xlane.f32.xlu1 %v662_v58  ;;  %666 = vadd.xlane.f32.xlu0 %v665_v52 }
 0x139   :  { %669 = vadd.xlane.f32.xlu1 %v668_v59  ;;  %672 = vadd.xlane.f32.xlu0 %v671_v28 }
 0x13d   :  { %675 = vadd.xlane.f32.xlu1 %v674_v47 }
 0x14a   :  { %v499_v48 = vpop.xlane.xlu0 %498 }
 0x14b   :  { %v689_v7 = vmul.f32 0.25, %v499_v48 }
 0x14d   :  { %v753_v24 = vadd.f32 1e-06, %v689_v7 }
 0x14e   :  { %v502_v51 = vpop.xlane.xlu1 %501  ;;  %v505_v50 = vpop.xlane.xlu0 %504 }
 0x14f   :  { %2209 = vrsqrt.f32 %v753_v24  ;;  %v690_v20 = vmul.f32 0.25, %v502_v51  ;;  %v691_v58 = vmul.f32 0.25, %v505_v50 }
 0x151   :  { %v754_v52 = vadd.f32 1e-06, %v690_v20  ;;  %v755_v38 = vadd.f32 1e-06, %v691_v58 }
 0x152   :  { %v508_v30 = vpop.xlane.xlu1 %507  ;;  %v511_v6 = vpop.xlane.xlu0 %510 }
 0x153   :  { %2211 = vrsqrt.f32 %v754_v52  ;;  %v692_v49 = vmul.f32 0.25, %v508_v30  ;;  %v693_v33 = vmul.f32 0.25, %v511_v6  ;;  %v3263_v6 = vld [vmem:[#allocation2] ss:$0 sm:$0xff] }
 0x154   :  { %2213 = vrsqrt.f32 %v755_v38 }
 0x155   :  { %v756_v59 = vadd.f32 1e-06, %v692_v49  ;;  %v757_v28 = vadd.f32 1e-06, %v693_v33 }
 0x156   :  { %v514_v42 = vpop.xlane.xlu1 %513  ;;  %v517_v47 = vpop.xlane.xlu0 %516 }
 0x157   :  { %2215 = vrsqrt.f32 %v756_v59  ;;  %v694_v48 = vmul.f32 0.25, %v514_v42  ;;  %v695_v7 = vmul.f32 0.25, %v517_v47 }
 0x158   :  { %2217 = vrsqrt.f32 %v757_v28 }
 0x159   :  { %v2210_v26 = vpop.eup %2209  ;;  %v758_v24 = vadd.f32 1e-06, %v694_v48  ;;  %v759_v51 = vadd.f32 1e-06, %v695_v7  ;;  %v4138_v7 = vld [vmem:[#allocation17_spill] sm:$0xff] }
 0x15a   :  { %v520_v50 = vpop.xlane.xlu1 %519  ;;  %v523_v20 = vpop.xlane.xlu0 %522  ;;  %v881_v58 = vmul.f32 %v2210_v26, %v2869_v39 }
 0x15b   :  { %2219 = vrsqrt.f32 %v758_v24  ;;  %v696_v52 = vmul.f32 0.25, %v520_v50  ;;  %v697_v30 = vmul.f32 0.25, %v523_v20  ;;  %v3268_v24 = vld [vmem:[#allocation4] ss:$0 sm:$0xff] }
 0x15c   :  { %2221 = vrsqrt.f32 %v759_v51  ;;  %v952_v48 = vmul.f32 %v3263_v6, %v881_v58 }
 0x15d   :  { %v2212_v49 = vpop.eup %2211  ;;  %v760_v33 = vadd.f32 1e-06, %v696_v52  ;;  %v761_v38 = vadd.f32 1e-06, %v697_v30 }
 0x15e   :  { %v2214_v59 = vpop.eup %2213  ;;  %v526_v42 = vpop.xlane.xlu1 %525  ;;  %v882_v28 = vmul.f32 %v2212_v49, %v2879_v63 }
 0x15f   :  { %v529_v47 = vpop.xlane.xlu0 %528  ;;  %v883_v34 = vmul.f32 %v2214_v59, %v4138_v7  ;;  %2223 = vrsqrt.f32 %v760_v33  ;;  %v698_v39 = vmul.f32 0.25, %v526_v42  ;;  %v1023_v59 = vadd.f32 %v3268_v24, %v952_v48 }
 0x160   :  { %v699_v26 = vmul.f32 0.25, %v529_v47  ;;  %2225 = vrsqrt.f32 %v761_v38  ;;  %v953_v51 = vmul.f32 %v3263_v6, %v882_v28 }
 0x161   :  { %v2216_v50 = vpop.eup %2215  ;;  %v762_v20 = vadd.f32 1e-06, %v698_v39  ;;  %v954_v30 = vmul.f32 %v3263_v6, %v883_v34 }
 0x162   :  { %v763_v52 = vadd.f32 1e-06, %v699_v26  ;;  %v2218_v18 = vpop.eup %2217  ;;  %v884_v63 = vmul.f32 %v2216_v50, %v2882_v14  ;;  %v532_v49 = vpop.xlane.xlu1 %531  ;;  %v1024_v33 = vadd.f32 %v3268_v24, %v953_v51 }
 0x163   :  { %v535_v58 = vpop.xlane.xlu0 %534  ;;  %v885_v42 = vmul.f32 %v2218_v18, %v2891_v2  ;;  %2227 = vrsqrt.f32 %v762_v20  ;;  %v700_v38 = vmul.f32 0.25, %v532_v49  ;;  %v1025_v14 = vadd.f32 %v3268_v24, %v954_v30 }
 0x164   :  { %v701_v47 = vmul.f32 0.25, %v535_v58  ;;  %2229 = vrsqrt.f32 %v763_v52  ;;  %v1087_v28 = vpack.c.bf16 %v1024_v33, %v1023_v59  ;;  %v955_v7 = vmul.f32 %v3263_v6, %v884_v63 }
 0x165   :  { %v2220_v39 = vpop.eup %2219  ;;  %v764_v34 = vadd.f32 1e-06, %v700_v38  ;;  %v956_v51 = vmul.f32 %v3263_v6, %v885_v42 }
 0x166   :  { %v765_v26 = vadd.f32 1e-06, %v701_v47  ;;  %v2222_v50 = vpop.eup %2221  ;;  %v886_v10 = vmul.f32 %v2220_v39, %v2894_v5  ;;  %v538_v48 = vpop.xlane.xlu1 %537  ;;  %2075 = vmatprep.mubr.msk.bf16.mxu0 %vm111_vm0, %v1087_v28  ;;  %2141 = vmatprep.mubr.msk.bf16.mxu1 %vm111_vm0, %v1087_v28  ;;  %v1026_v18 = vadd.f32 %v3268_v24, %v955_v7 }
 0x167   :  { %v541_v2 = vpop.xlane.xlu0 %540  ;;  %v887_v20 = vmul.f32 %v2222_v50, %v2903_v15  ;;  %2231 = vrsqrt.f32 %v764_v34  ;;  %v702_v52 = vmul.f32 0.25, %v538_v48  ;;  %v1027_v42 = vadd.f32 %v3268_v24, %v956_v51 }
 0x168   :  { %v703_v63 = vmul.f32 0.25, %v541_v2  ;;  %2233 = vrsqrt.f32 %v765_v26  ;;  %v1088_v30 = vpack.c.bf16 %v1026_v18, %v1025_v14  ;;  %v957_v49 = vmul.f32 %v3263_v6, %v886_v10 }
 0x169   :  { %v2224_v5 = vpop.eup %2223  ;;  %v766_v58 = vadd.f32 1e-06, %v702_v52  ;;  %v958_v33 = vmul.f32 %v3263_v6, %v887_v20 }
 0x16a   :  { %v767_v59 = vadd.f32 1e-06, %v703_v63  ;;  %v2226_v38 = vpop.eup %2225  ;;  %v888_v47 = vmul.f32 %v2224_v5, %v2906_v9  ;;  %v544_v28 = vpop.xlane.xlu1 %543  ;;  %2076 = vmatmul.mubr.msk.bf16.vlgmr.msra.gmra.mrb[0].mxu0 %vm111_vm0, %v1088_v30  ;;  %2142 = vmatmul.mubr.msk.bf16.vlgmr.msra.gmra.mrb[0].mxu1 %vm111_vm0, %v1088_v30  ;;  %v1028_v7 = vadd.f32 %v3268_v24, %v957_v49 }
 0x16b   :  { %v547_v15 = vpop.xlane.xlu0 %546  ;;  %v889_v10 = vmul.f32 %v2226_v38, %v2915_v0  ;;  %2235 = vrsqrt.f32 %v766_v58  ;;  %v704_v39 = vmul.f32 0.25, %v544_v28  ;;  %v1029_v2 = vadd.f32 %v3268_v24, %v958_v33 }
 0x16c   :  { %v705_v34 = vmul.f32 0.25, %v547_v15  ;;  %2237 = vrsqrt.f32 %v767_v59  ;;  %v1089_v26 = vpack.c.bf16 %v1028_v7, %v1027_v42  ;;  %v959_v14 = vmul.f32 %v3263_v6, %v888_v47 }
 0x16d   :  { %v2228_v9 = vpop.eup %2227  ;;  %v768_v50 = vadd.f32 1e-06, %v704_v39  ;;  %v960_v63 = vmul.f32 %v3263_v6, %v889_v10 }
 0x16e   :  { %v769_v48 = vadd.f32 1e-06, %v705_v34  ;;  %v2230_v18 = vpop.eup %2229  ;;  %v890_v20 = vmul.f32 %v2228_v9, %v2918_v13  ;;  %v550_v51 = vpop.xlane.xlu1 %549  ;;  %2079 = vmatprep.mubr.msk.bf16.mxu0 %vm111_vm0, %v1089_v26  ;;  %2145 = vmatprep.mubr.msk.bf16.mxu1 %vm111_vm0, %v1089_v26  ;;  %v1030_v52 = vadd.f32 %v3268_v24, %v959_v14 }
 0x16f   :  { %v553_v0 = vpop.xlane.xlu0 %552  ;;  %v891_v30 = vmul.f32 %v2230_v18, %v2927_v22  ;;  %2239 = vrsqrt.f32 %v768_v50  ;;  %v706_v49 = vmul.f32 0.25, %v550_v51  ;;  %v1031_v7 = vadd.f32 %v3268_v24, %v960_v63 }
 0x170   :  { %v707_v5 = vmul.f32 0.25, %v553_v0  ;;  %2241 = vrsqrt.f32 %v769_v48  ;;  %v1090_v58 = vpack.c.bf16 %v1030_v52, %v1029_v2  ;;  %v961_v59 = vmul.f32 %v3263_v6, %v890_v20 }
 0x171   :  { %v2232_v13 = vpop.eup %2231  ;;  %v770_v33 = vadd.f32 1e-06, %v706_v49  ;;  %v962_v47 = vmul.f32 %v3263_v6, %v891_v30 }
 0x172   :  { %v771_v38 = vadd.f32 1e-06, %v707_v5  ;;  %v2234_v28 = vpop.eup %2233  ;;  %v892_v15 = vmul.f32 %v2232_v13, %v2930_v17  ;;  %v556_v42 = vpop.xlane.xlu1 %555  ;;  %2080 = vmatmul.mubr.msk.bf16.gmra.mrb[4].mxu0 %vm111_vm0, %v1090_v58  ;;  %2146 = vmatmul.mubr.msk.bf16.gmra.mrb[4].mxu1 %vm111_vm0, %v1090_v58  ;;  %v1032_v10 = vadd.f32 %v3268_v24, %v961_v59 }
 0x173   :  { %v559_v22 = vpop.xlane.xlu0 %558  ;;  %v893_v39 = vmul.f32 %v2234_v28, %v2939_v55  ;;  %2243 = vrsqrt.f32 %v770_v33  ;;  %v708_v34 = vmul.f32 0.25, %v556_v42  ;;  %v1033_v2 = vadd.f32 %v3268_v24, %v962_v47 }
 0x174   :  { %v709_v26 = vmul.f32 0.25, %v559_v22  ;;  %2245 = vrsqrt.f32 %v771_v38  ;;  %v1091_v14 = vpack.c.bf16 %v1032_v10, %v1031_v7  ;;  %v963_v9 = vmul.f32 %v3263_v6, %v892_v15 }
 0x175   :  { %v2236_v17 = vpop.eup %2235  ;;  %v772_v50 = vadd.f32 1e-06, %v708_v34  ;;  %v964_v52 = vmul.f32 %v3263_v6, %v893_v39 }
 0x176   :  { %v773_v48 = vadd.f32 1e-06, %v709_v26  ;;  %v2238_v18 = vpop.eup %2237  ;;  %v894_v20 = vmul.f32 %v2236_v17, %v2942_v21  ;;  %v562_v51 = vpop.xlane.xlu1 %561  ;;  %2083 = vmatprep.mubr.msk.bf16.mxu0 %vm111_vm0, %v1091_v14  ;;  %2149 = vmatprep.mubr.msk.bf16.mxu1 %vm111_vm0, %v1091_v14  ;;  %v1034_v0 = vadd.f32 %v3268_v24, %v963_v9 }
 0x177   :  { %v294_v55 = vpop.xlane.xlu0 %293  ;;  %v895_v63 = vmul.f32 %v2238_v18, %v2951_v62  ;;  %2247 = vrsqrt.f32 %v772_v50  ;;  %v710_v30 = vmul.f32 0.25, %v562_v51  ;;  %v1035_v15 = vadd.f32 %v3268_v24, %v964_v52 }
 0x178   :  { %v365_v49 = vmul.f32 0.25, %v294_v55  ;;  %2249 = vrsqrt.f32 %v773_v48  ;;  %v1092_v5 = vpack.c.bf16 %v1034_v0, %v1033_v2  ;;  %v965_v58 = vmul.f32 %v3263_v6, %v894_v20 }
 0x179   :  { %v2240_v21 = vpop.eup %2239  ;;  %v774_v59 = vadd.f32 1e-06, %v710_v30  ;;  %v966_v33 = vmul.f32 %v3263_v6, %v895_v63 }
 0x17a   :  { %v3318_v13 = vsub.f32 %v3001_v41, %v365_v49  ;;  %v2242_v38 = vpop.eup %2241  ;;  %v896_v47 = vmul.f32 %v2240_v21, %v2954_v25  ;;  %v297_v28 = vpop.xlane.xlu1 %296  ;;  %2084 = vmatmul.mubr.msk.bf16.gmra.mrb[8].mxu0 %vm111_vm0, %v1092_v5  ;;  %2150 = vmatmul.mubr.msk.bf16.gmra.mrb[8].mxu1 %vm111_vm0, %v1092_v5  ;;  %v1036_v42 = vadd.f32 %v3268_v24, %v965_v58  ;;  %v4139_v21 = vld [vmem:[#allocation18_spill] sm:$0xff] }
 0x17b   :  { %v565_v62 = vpop.xlane.xlu0 %564  ;;  %v897_v22 = vmul.f32 %v2242_v38, %v2963_v31  ;;  %2251 = vrsqrt.f32 %v774_v59  ;;  %v366_v41 = vmul.f32 0.25, %v297_v28  ;;  %v1037_v9 = vadd.f32 %v3268_v24, %v966_v33 }
 0x17c   :  { %v711_v7 = vmul.f32 0.25, %v565_v62  ;;  %v1093_v10 = vpack.c.bf16 %v1036_v42, %v1035_v15  ;;  %v493_v39 = vmul.f32 %v3318_v13, %v3318_v13  ;;  %v967_v25 = vmul.f32 %v3263_v6, %v896_v47  ;;  %v4140_v62 = vld [vmem:[#allocation19_spill] sm:$0xff] }
 0x17d   :  { %v2244_v34 = vpop.eup %2243  ;;  %v3331_v26 = vsub.f32 %v3012_v46, %v366_v41  ;;  %v968_v20 = vmul.f32 %v3263_v6, %v897_v22 }
 0x17e   :  { %v775_v14 = vadd.f32 1e-06, %v711_v7  ;;  %v2246_v17 = vpop.eup %2245  ;;  %v898_v50 = vmul.f32 %v2244_v34, %v2966_v29  ;;  %v568_v31 = vpop.xlane.xlu1 %567  ;;  %2087 = vmatprep.mubr.msk.bf16.mxu0 %vm111_vm0, %v1093_v10  ;;  %2153 = vmatprep.mubr.msk.bf16.mxu1 %vm111_vm0, %v1093_v10  ;;  %v677_v48 = vsel %vm111_vm0, %v493_v39, 0.0  ;;  %v1038_v18 = vadd.f32 %v3268_v24, %v967_v25 }
 0x17f   :  { %v300_v2 = vpop.xlane.xlu0 %299  ;;  %v899_v46 = vmul.f32 %v2246_v17, %v2975_v8  ;;  %v712_v51 = vmul.f32 0.25, %v568_v31  ;;  %678 = vadd.xlane.f32.xlu0 %v677_v48  ;;  %v494_v29 = vmul.f32 %v3331_v26, %v3331_v26  ;;  %v1039_v47 = vadd.f32 %v3268_v24, %v968_v20 }
 0x180   :  { %2253 = vrsqrt.f32 %v775_v14  ;;  %v367_v55 = vmul.f32 0.25, %v300_v2  ;;  %v1094_v0 = vpack.c.bf16 %v1038_v18, %v1037_v9  ;;  %v969_v52 = vmul.f32 %v3263_v6, %v898_v50  ;;  %v4141_v14 = vld [vmem:[#allocation20_spill] sm:$0xff] }
 0x181   :  { %v2248_v63 = vpop.eup %2247  ;;  %v776_v30 = vadd.f32 1e-06, %v712_v51  ;;  %v970_v5 = vmul.f32 %v3263_v6, %v899_v46  ;;  %v680_v59 = vsel %vm111_vm0, %v494_v29, 0.0 }
 0x182   :  { %v3345_v49 = vsub.f32 %v3037_v23, %v367_v55  ;;  %v2250_v58 = vpop.eup %2249  ;;  %v900_v8 = vmul.f32 %v2248_v63, %v4139_v21  ;;  %v303_v33 = vpop.xlane.xlu1 %302  ;;  %2088 = vmatmul.mubr.msk.bf16.gmra.mrb[12].mxu0 %vm111_vm0, %v1094_v0  ;;  %2154 = vmatmul.mubr.msk.bf16.gmra.mrb[12].mxu1 %vm111_vm0, %v1094_v0  ;;  %v1040_v28 = vadd.f32 %v3268_v24, %v969_v52  ;;  %v4142_v63 = vld [vmem:[#allocation21_spill] sm:$0xff] }
 0x183   :  { %v571_v38 = vpop.xlane.xlu0 %570  ;;  %v901_v23 = vmul.f32 %v2250_v58, %v4140_v62  ;;  %2255 = vrsqrt.f32 %v776_v30  ;;  %681 = vadd.xlane.f32.xlu1 %v680_v59  ;;  %v368_v15 = vmul.f32 0.25, %v303_v33  ;;  %v1041_v34 = vadd.f32 %v3268_v24, %v970_v5 }
 0x184   :  { %v713_v42 = vmul.f32 0.25, %v571_v38  ;;  %v1095_v22 = vpack.c.bf16 %v1040_v28, %v1039_v47  ;;  %v495_v41 = vmul.f32 %v3345_v49, %v3345_v49  ;;  %v971_v7 = vmul.f32 %v3263_v6, %v900_v8 }
 0x185   :  { %v2252_v10 = vpop.eup %2251  ;;  %v3359_v39 = vsub.f32 %v3051_v16, %v368_v15  ;;  %v972_v2 = vmul.f32 %v3263_v6, %v901_v23  ;;  %v4143_v23 = vld [vmem:[#allocation22_spill] sm:$0xff] }
 0x186   :  { %v777_v25 = vadd.f32 1e-06, %v713_v42  ;;  %v902_v9 = vmul.f32 %v2252_v10, %v4141_v14  ;;  %v574_v17 = vpop.xlane.xlu1 %573  ;;  %2091 = vmatprep.mubr.msk.bf16.mxu0 %vm111_vm0, %v1095_v22  ;;  %2157 = vmatprep.mubr.msk.bf16.mxu1 %vm111_vm0, %v1095_v22  ;;  %v683_v50 = vsel %vm111_vm0, %v495_v41, 0.0  ;;  %v1042_v48 = vadd.f32 %v3268_v24, %v971_v7 }
 0x187   :  { %v577_v31 = vpop.xlane.xlu0 %576  ;;  %v714_v16 = vmul.f32 0.25, %v574_v17  ;;  %684 = vadd.xlane.f32.xlu0 %v683_v50  ;;  %v496_v20 = vmul.f32 %v3359_v39, %v3359_v39  ;;  %v1043_v21 = vadd.f32 %v3268_v24, %v972_v2 }
 0x188   :  { %2257 = vrsqrt.f32 %v777_v25  ;;  %v715_v18 = vmul.f32 0.25, %v577_v31  ;;  %v1096_v46 = vpack.c.bf16 %v1042_v48, %v1041_v34  ;;  %v973_v51 = vmul.f32 %v3263_v6, %v902_v9 }
 0x189   :  { %v778_v29 = vadd.f32 1e-06, %v714_v16  ;;  %v686_v52 = vsel %vm111_vm0, %v496_v20, 0.0 }
 0x18a   :  { %v2254_v55 = vpop.eup %2253  ;;  %v779_v0 = vadd.f32 1e-06, %v715_v18  ;;  %687 = vadd.xlane.f32.xlu1 %v686_v52  ;;  %v580_v5 = vpop.xlane.xlu1 %579  ;;  %2092 = vmatmul.mubr.msk.bf16.gmra.mrb[16].mxu0 %vm111_vm0, %v1096_v46  ;;  %v1044_v8 = vadd.f32 %v3268_v24, %v973_v51 }
 0x18b   :  { %v903_v30 = vmul.f32 %v2254_v55, %v4142_v63  ;;  %v583_v58 = vpop.xlane.xlu0 %582  ;;  %2259 = vrsqrt.f32 %v778_v29  ;;  %v716_v59 = vmul.f32 0.25, %v580_v5  ;;  %2158 = vmatmul.mubr.msk.bf16.gmra.mrb[16].mxu1 %vm111_vm0, %v1096_v46 }
 0x18c   :  { %v717_v33 = vmul.f32 0.25, %v583_v58  ;;  %2261 = vrsqrt.f32 %v779_v0  ;;  %v1097_v38 = vpack.c.bf16 %v1044_v8, %v1043_v21  ;;  %v4144_v0 = vld [vmem:[#allocation23_spill] sm:$0xff] }
 0x18d   :  { %v2256_v47 = vpop.eup %2255  ;;  %v780_v28 = vadd.f32 1e-06, %v716_v59  ;;  %v974_v41 = vmul.f32 %v3263_v6, %v903_v30 }
 0x18e   :  { %v781_v62 = vadd.f32 1e-06, %v717_v33  ;;  %v904_v15 = vmul.f32 %v2256_v47, %v4143_v23  ;;  %v586_v42 = vpop.xlane.xlu1 %585  ;;  %2095 = vmatprep.mubr.msk.bf16.mxu0 %vm111_vm0, %v1097_v38  ;;  %2161 = vmatprep.mubr.msk.bf16.mxu1 %vm111_vm0, %v1097_v38 }
 0x18f   :  { %v589_v22 = vpop.xlane.xlu0 %588  ;;  %2263 = vrsqrt.f32 %v780_v28  ;;  %v718_v7 = vmul.f32 0.25, %v586_v42  ;;  %v1045_v48 = vadd.f32 %v3268_v24, %v974_v41 }
 0x190   :  { %v719_v10 = vmul.f32 0.25, %v589_v22  ;;  %2265 = vrsqrt.f32 %v781_v62  ;;  %v975_v25 = vmul.f32 %v3263_v6, %v904_v15 }
 0x191   :  { %v782_v14 = vadd.f32 1e-06, %v718_v7 }
 0x192   :  { %v2258_v34 = vpop.eup %2257  ;;  %v783_v9 = vadd.f32 1e-06, %v719_v10  ;;  %v592_v50 = vpop.xlane.xlu1 %591  ;;  %v1046_v2 = vadd.f32 %v3268_v24, %v975_v25 }
 0x193   :  { %v905_v17 = vmul.f32 %v2258_v34, %v3030_v12  ;;  %v595_v31 = vpop.xlane.xlu0 %594  ;;  %2267 = vrsqrt.f32 %v782_v14  ;;  %v720_v16 = vmul.f32 0.25, %v592_v50 }
 0x194   :  { %v721_v18 = vmul.f32 0.25, %v595_v31  ;;  %2269 = vrsqrt.f32 %v783_v9  ;;  %v1098_v20 = vpack.c.bf16 %v1046_v2, %v1045_v48 }
 0x195   :  { %v2260_v46 = vpop.eup %2259  ;;  %v784_v51 = vadd.f32 1e-06, %v720_v16  ;;  %v976_v30 = vmul.f32 %v3263_v6, %v905_v17 }
 0x196   :  { %v785_v55 = vadd.f32 1e-06, %v721_v18  ;;  %v2262_v29 = vpop.eup %2261  ;;  %v906_v52 = vmul.f32 %v2260_v46, %v4144_v0  ;;  %v598_v63 = vpop.xlane.xlu1 %597  ;;  %2096 = vmatmul.mubr.msk.bf16.gmra.mrb[20].mxu0 %vm111_vm0, %v1098_v20  ;;  %2162 = vmatmul.mubr.msk.bf16.gmra.mrb[20].mxu1 %vm111_vm0, %v1098_v20 }
 0x197   :  { %v601_v12 = vpop.xlane.xlu0 %600  ;;  %v907_v5 = vmul.f32 %v2262_v29, %v3046_v54  ;;  %2271 = vrsqrt.f32 %v784_v51  ;;  %v722_v58 = vmul.f32 0.25, %v598_v63  ;;  %v1047_v15 = vadd.f32 %v3268_v24, %v976_v30 }
 0x198   :  { %v723_v21 = vmul.f32 0.25, %v601_v12  ;;  %2273 = vrsqrt.f32 %v785_v55  ;;  %v977_v8 = vmul.f32 %v3263_v6, %v906_v52 }
 0x199   :  { %v2264_v59 = vpop.eup %2263  ;;  %v786_v33 = vadd.f32 1e-06, %v722_v58  ;;  %v978_v54 = vmul.f32 %v3263_v6, %v907_v5 }
 0x19a   :  { %v787_v38 = vadd.f32 1e-06, %v723_v21  ;;  %v2266_v47 = vpop.eup %2265  ;;  %v908_v28 = vmul.f32 %v2264_v59, %v3056_v45  ;;  %v604_v62 = vpop.xlane.xlu1 %603  ;;  %v1048_v42 = vadd.f32 %v3268_v24, %v977_v8 }
 0x19b   :  { %v607_v23 = vpop.xlane.xlu0 %606  ;;  %v909_v22 = vmul.f32 %v2266_v47, %v3064_v32  ;;  %2275 = vrsqrt.f32 %v786_v33  ;;  %v724_v41 = vmul.f32 0.25, %v604_v62  ;;  %v1049_v48 = vadd.f32 %v3268_v24, %v978_v54 }
 0x19c   :  { %v725_v7 = vmul.f32 0.25, %v607_v23  ;;  %2277 = vrsqrt.f32 %v787_v38  ;;  %v1099_v10 = vpack.c.bf16 %v1048_v42, %v1047_v15  ;;  %v979_v25 = vmul.f32 %v3263_v6, %v908_v28 }
 0x19d   :  { %v2268_v34 = vpop.eup %2267  ;;  %v788_v14 = vadd.f32 1e-06, %v724_v41  ;;  %v980_v9 = vmul.f32 %v3263_v6, %v909_v22 }
 0x19e   :  { %v789_v45 = vadd.f32 1e-06, %v725_v7  ;;  %v2270_v17 = vpop.eup %2269  ;;  %v910_v50 = vmul.f32 %v2268_v34, %v3069_v53  ;;  %v610_v31 = vpop.xlane.xlu1 %609  ;;  %2099 = vmatprep.mubr.msk.bf16.mxu0 %vm111_vm0, %v1099_v10  ;;  %2165 = vmatprep.mubr.msk.bf16.mxu1 %vm111_vm0, %v1099_v10  ;;  %v1050_v2 = vadd.f32 %v3268_v24, %v979_v25 }
 0x19f   :  { %v613_v32 = vpop.xlane.xlu0 %612  ;;  %v911_v16 = vmul.f32 %v2270_v17, %v3076_v37  ;;  %2279 = vrsqrt.f32 %v788_v14  ;;  %v726_v18 = vmul.f32 0.25, %v610_v31  ;;  %v1051_v0 = vadd.f32 %v3268_v24, %v980_v9 }
 0x1a0   :  { %v727_v20 = vmul.f32 0.25, %v613_v32  ;;  %2281 = vrsqrt.f32 %v789_v45  ;;  %v1100_v46 = vpack.c.bf16 %v1050_v2, %v1049_v48  ;;  %v981_v51 = vmul.f32 %v3263_v6, %v910_v50 }
 0x1a1   :  { %v2272_v53 = vpop.eup %2271  ;;  %v790_v55 = vadd.f32 1e-06, %v726_v18  ;;  %v982_v5 = vmul.f32 %v3263_v6, %v911_v16 }
 0x1a2   :  { %v791_v29 = vadd.f32 1e-06, %v727_v20  ;;  %v2274_v52 = vpop.eup %2273  ;;  %v912_v63 = vmul.f32 %v2272_v53, %v3081_v57  ;;  %v616_v12 = vpop.xlane.xlu1 %615  ;;  %2100 = vmatmul.mubr.msk.bf16.gmra.mrb[24].mxu0 %vm111_vm0, %v1100_v46  ;;  %2166 = vmatmul.mubr.msk.bf16.gmra.mrb[24].mxu1 %vm111_vm0, %v1100_v46  ;;  %v1052_v30 = vadd.f32 %v3268_v24, %v981_v51 }
 0x1a3   :  { %v619_v37 = vpop.xlane.xlu0 %618  ;;  %v913_v58 = vmul.f32 %v2274_v52, %v3088_v1  ;;  %2283 = vrsqrt.f32 %v790_v55  ;;  %v728_v21 = vmul.f32 0.25, %v616_v12  ;;  %v1053_v42 = vadd.f32 %v3268_v24, %v982_v5 }
 0x1a4   :  { %v729_v8 = vmul.f32 0.25, %v619_v37  ;;  %2285 = vrsqrt.f32 %v791_v29  ;;  %v1101_v59 = vpack.c.bf16 %v1052_v30, %v1051_v0  ;;  %v983_v33 = vmul.f32 %v3263_v6, %v912_v63 }
 0x1a5   :  { %v2276_v57 = vpop.eup %2275  ;;  %v792_v38 = vadd.f32 1e-06, %v728_v21  ;;  %v984_v28 = vmul.f32 %v3263_v6, %v913_v58 }
 0x1a6   :  { %v793_v47 = vadd.f32 1e-06, %v729_v8  ;;  %v2278_v62 = vpop.eup %2277  ;;  %v914_v23 = vmul.f32 %v2276_v57, %v3093_v61  ;;  %v622_v15 = vpop.xlane.xlu1 %621  ;;  %2103 = vmatprep.mubr.msk.bf16.mxu0 %vm111_vm0, %v1101_v59  ;;  %2169 = vmatprep.mubr.msk.bf16.mxu1 %vm111_vm0, %v1101_v59  ;;  %v1054_v54 = vadd.f32 %v3268_v24, %v983_v33 }
 0x1a7   :  { %v625_v1 = vpop.xlane.xlu0 %624  ;;  %v915_v22 = vmul.f32 %v2278_v62, %v3100_v40  ;;  %2287 = vrsqrt.f32 %v792_v38  ;;  %v730_v41 = vmul.f32 0.25, %v622_v15  ;;  %v1055_v45 = vadd.f32 %v3268_v24, %v984_v28 }
 0x1a8   :  { %v731_v7 = vmul.f32 0.25, %v625_v1  ;;  %2289 = vrsqrt.f32 %v793_v47  ;;  %v1102_v10 = vpack.c.bf16 %v1054_v54, %v1053_v42  ;;  %v985_v25 = vmul.f32 %v3263_v6, %v914_v23 }
 0x1a9   :  { %v2280_v61 = vpop.eup %2279  ;;  %v794_v34 = vadd.f32 1e-06, %v730_v41  ;;  %v986_v32 = vmul.f32 %v3263_v6, %v915_v22 }
 0x1aa   :  { %v795_v14 = vadd.f32 1e-06, %v731_v7  ;;  %v2282_v9 = vpop.eup %2281  ;;  %v916_v17 = vmul.f32 %v2280_v61, %v3105_v4  ;;  %v628_v50 = vpop.xlane.xlu1 %627  ;;  %2104 = vmatmul.mubr.msk.bf16.gmra.mrb[28].mxu0 %vm111_vm0, %v1102_v10  ;;  %2170 = vmatmul.mubr.msk.bf16.gmra.mrb[28].mxu1 %vm111_vm0, %v1102_v10  ;;  %v1056_v31 = vadd.f32 %v3268_v24, %v985_v25 }
 0x1ab   :  { %v631_v40 = vpop.xlane.xlu0 %630  ;;  %v917_v48 = vmul.f32 %v2282_v9, %v3112_v44  ;;  %2291 = vrsqrt.f32 %v794_v34  ;;  %v732_v2 = vmul.f32 0.25, %v628_v50  ;;  %v1057_v52 = vadd.f32 %v3268_v24, %v986_v32 }
 0x1ac   :  { %v733_v16 = vmul.f32 0.25, %v631_v40  ;;  %2293 = vrsqrt.f32 %v795_v14  ;;  %v1103_v18 = vpack.c.bf16 %v1056_v31, %v1055_v45  ;;  %v987_v20 = vmul.f32 %v3263_v6, %v916_v17 }
 0x1ad   :  { %v2284_v4 = vpop.eup %2283  ;;  %v796_v46 = vadd.f32 1e-06, %v732_v2  ;;  %v988_v53 = vmul.f32 %v3263_v6, %v917_v48 }
 0x1ae   :  { %v797_v51 = vadd.f32 1e-06, %v733_v16  ;;  %v2286_v55 = vpop.eup %2285  ;;  %v918_v29 = vmul.f32 %v2284_v4, %v3117_v11  ;;  %v634_v0 = vpop.xlane.xlu1 %633  ;;  %2107 = vmatprep.mubr.msk.bf16.mxu0 %vm111_vm0, %v1103_v18  ;;  %2173 = vmatprep.mubr.msk.bf16.mxu1 %vm111_vm0, %v1103_v18  ;;  %v1058_v63 = vadd.f32 %v3268_v24, %v987_v20 }
 0x1af   :  { %v637_v44 = vpop.xlane.xlu0 %636  ;;  %v919_v12 = vmul.f32 %v2286_v55, %v3124_v36  ;;  %2295 = vrsqrt.f32 %v796_v46  ;;  %v734_v37 = vmul.f32 0.25, %v634_v0  ;;  %v1059_v59 = vadd.f32 %v3268_v24, %v988_v53 }
 0x1b0   :  { %v735_v30 = vmul.f32 0.25, %v637_v44  ;;  %2297 = vrsqrt.f32 %v797_v51  ;;  %v1104_v5 = vpack.c.bf16 %v1058_v63, %v1057_v52  ;;  %v989_v58 = vmul.f32 %v3263_v6, %v918_v29  ;;  %v4145_v63 = vld [vmem:[#allocation24_spill] sm:$0xff] }
 0x1b1   :  { %v2288_v11 = vpop.eup %2287  ;;  %v798_v21 = vadd.f32 1e-06, %v734_v37  ;;  %v990_v28 = vmul.f32 %v3263_v6, %v919_v12 }
 0x1b2   :  { %v799_v8 = vadd.f32 1e-06, %v735_v30  ;;  %v2290_v33 = vpop.eup %2289  ;;  %v920_v57 = vmul.f32 %v2288_v11, %v3129_v19  ;;  %v640_v38 = vpop.xlane.xlu1 %639  ;;  %2108 = vmatmul.mubr.msk.bf16.gmra.mrb[32].mxu0 %vm111_vm0, %v1104_v5  ;;  %2174 = vmatmul.mubr.msk.bf16.gmra.mrb[32].mxu1 %vm111_vm0, %v1104_v5  ;;  %v1060_v47 = vadd.f32 %v3268_v24, %v989_v58  ;;  %v4146_v58 = vld [vmem:[#allocation25_spill] sm:$0xff] }
 0x1b3   :  { %v643_v36 = vpop.xlane.xlu0 %642  ;;  %v921_v62 = vmul.f32 %v2290_v33, %v3136_v56  ;;  %2299 = vrsqrt.f32 %v798_v21  ;;  %v736_v23 = vmul.f32 0.25, %v640_v38  ;;  %v1061_v61 = vadd.f32 %v3268_v24, %v990_v28 }
 0x1b4   :  { %v737_v15 = vmul.f32 0.25, %v643_v36  ;;  %2301 = vrsqrt.f32 %v799_v8  ;;  %v1105_v1 = vpack.c.bf16 %v1060_v47, %v1059_v59  ;;  %v991_v42 = vmul.f32 %v3263_v6, %v920_v57 }
 0x1b5   :  { %v2292_v19 = vpop.eup %2291  ;;  %v800_v54 = vadd.f32 1e-06, %v736_v23  ;;  %v992_v41 = vmul.f32 %v3263_v6, %v921_v62  ;;  %v4147_v62 = vld [vmem:[#allocation26_spill] sm:$0xff] }
 0x1b6   :  { %v801_v22 = vadd.f32 1e-06, %v737_v15  ;;  %v2294_v7 = vpop.eup %2293  ;;  %v922_v10 = vmul.f32 %v2292_v19, %v3141_v27  ;;  %v646_v25 = vpop.xlane.xlu1 %645  ;;  %2111 = vmatprep.mubr.msk.bf16.mxu0 %vm111_vm0, %v1105_v1  ;;  %2177 = vmatprep.mubr.msk.bf16.mxu1 %vm111_vm0, %v1105_v1  ;;  %v1062_v34 = vadd.f32 %v3268_v24, %v991_v42 }
 0x1b7   :  { %v649_v56 = vpop.xlane.xlu0 %648  ;;  %v923_v14 = vmul.f32 %v2294_v7, %v3148_v60  ;;  %2303 = vrsqrt.f32 %v800_v54  ;;  %v738_v45 = vmul.f32 0.25, %v646_v25  ;;  %v1063_v32 = vadd.f32 %v3268_v24, %v992_v41  ;;  %v4148_v54 = vld [vmem:[#allocation27_spill] sm:$0xff] }
 0x1b8   :  { %v739_v9 = vmul.f32 0.25, %v649_v56  ;;  %2305 = vrsqrt.f32 %v801_v22  ;;  %v1106_v17 = vpack.c.bf16 %v1062_v34, %v1061_v61  ;;  %v993_v50 = vmul.f32 %v3263_v6, %v922_v10 }
 0x1b9   :  { %v2296_v27 = vpop.eup %2295  ;;  %v802_v40 = vadd.f32 1e-06, %v738_v45  ;;  %v994_v20 = vmul.f32 %v3263_v6, %v923_v14 }
 0x1ba   :  { %v803_v31 = vadd.f32 1e-06, %v739_v9  ;;  %v2298_v48 = vpop.eup %2297  ;;  %v924_v2 = vmul.f32 %v2296_v27, %v3153_v35  ;;  %v652_v16 = vpop.xlane.xlu1 %651  ;;  %2112 = vmatmul.mubr.msk.bf16.gmra.mrb[36].mxu0 %vm111_vm0, %v1106_v17  ;;  %2178 = vmatmul.mubr.msk.bf16.gmra.mrb[36].mxu1 %vm111_vm0, %v1106_v17  ;;  %v1064_v18 = vadd.f32 %v3268_v24, %v993_v50  ;;  %v4149_v9 = vld [vmem:[#allocation28_spill] sm:$0xff] }
 0x1bb   :  { %v655_v60 = vpop.xlane.xlu0 %654  ;;  %v925_v4 = vmul.f32 %v2298_v48, %v3160_v3  ;;  %2307 = vrsqrt.f32 %v802_v40  ;;  %v740_v46 = vmul.f32 0.25, %v652_v16  ;;  %v1065_v30 = vadd.f32 %v3268_v24, %v994_v20 }
 0x1bc   :  { %v741_v51 = vmul.f32 0.25, %v655_v60  ;;  %2309 = vrsqrt.f32 %v803_v31  ;;  %v1107_v53 = vpack.c.bf16 %v1064_v18, %v1063_v32  ;;  %v995_v55 = vmul.f32 %v3263_v6, %v924_v2 }
 0x1bd   :  { %v2300_v35 = vpop.eup %2299  ;;  %v804_v29 = vadd.f32 1e-06, %v740_v46  ;;  %v996_v44 = vmul.f32 %v3263_v6, %v925_v4 }
 0x1be   :  { %v805_v0 = vadd.f32 1e-06, %v741_v51  ;;  %v2302_v52 = vpop.eup %2301  ;;  %v926_v12 = vmul.f32 %v2300_v35, %v4145_v63  ;;  %v658_v37 = vpop.xlane.xlu1 %657  ;;  %2115 = vmatprep.mubr.msk.bf16.mxu0 %vm111_vm0, %v1107_v53  ;;  %2181 = vmatprep.mubr.msk.bf16.mxu1 %vm111_vm0, %v1107_v53  ;;  %v1066_v5 = vadd.f32 %v3268_v24, %v995_v55  ;;  %v4150_v53 = vld [vmem:[#allocation8_spill] sm:$0xff] }
 0x1bf   :  { %v661_v3 = vpop.xlane.xlu0 %660  ;;  %v927_v11 = vmul.f32 %v2302_v52, %v4146_v58  ;;  %2311 = vrsqrt.f32 %v804_v29  ;;  %v742_v21 = vmul.f32 0.25, %v658_v37  ;;  %v1067_v47 = vadd.f32 %v3268_v24, %v996_v44 }
 0x1c0   :  { %v743_v8 = vmul.f32 0.25, %v661_v3  ;;  %2313 = vrsqrt.f32 %v805_v0  ;;  %v1108_v59 = vpack.c.bf16 %v1066_v5, %v1065_v30  ;;  %v997_v33 = vmul.f32 %v3263_v6, %v926_v12  ;;  %v4151_v0 = vld [vmem:[#allocation9_spill] sm:$0xff]  ;;  %v3493_v30 = vld [vmem:[#allocation2] ss:$0 sm:$0xff] }
 0x1c1   :  { %v2304_v57 = vpop.eup %2303  ;;  %v806_v38 = vadd.f32 1e-06, %v742_v21  ;;  %v998_v19 = vmul.f32 %v3263_v6, %v927_v11  ;;  %v4152_v11 = vld [vmem:[#allocation10_spill] sm:$0xff] }
 0x1c2   :  { %v807_v36 = vadd.f32 1e-06, %v743_v8  ;;  %v2306_v28 = vpop.eup %2305  ;;  %v928_v23 = vmul.f32 %v2304_v57, %v4147_v62  ;;  %v664_v15 = vpop.xlane.xlu1 %663  ;;  %2116 = vmatmul.mubr.msk.bf16.gmra.mrb[40].mxu0 %vm111_vm0, %v1108_v59  ;;  %2182 = vmatmul.mubr.msk.bf16.gmra.mrb[40].mxu1 %vm111_vm0, %v1108_v59  ;;  %v1068_v42 = vadd.f32 %v3268_v24, %v997_v33  ;;  %v4153_v33 = vld [vmem:[#allocation11_spill] sm:$0xff] }
 0x1c3   :  { %v667_v1 = vpop.xlane.xlu0 %666  ;;  %v929_v22 = vmul.f32 %v2306_v28, %v4148_v54  ;;  %2315 = vrsqrt.f32 %v806_v38  ;;  %v744_v41 = vmul.f32 0.25, %v664_v15  ;;  %v1069_v40 = vadd.f32 %v3268_v24, %v998_v19 }
 0x1c4   :  { %v745_v7 = vmul.f32 0.25, %v667_v1  ;;  %2317 = vrsqrt.f32 %v807_v36  ;;  %v1109_v10 = vpack.c.bf16 %v1068_v42, %v1067_v47  ;;  %v999_v25 = vmul.f32 %v3263_v6, %v928_v23  ;;  %v3503_v47 = vld [vmem:[#allocation4] ss:$0 sm:$0xff]  ;;  %v4154_v23 = vld [vmem:[#allocation12_spill] sm:$0xff]  ;;  %v4155_v42 = vld [vmem:[#allocation13_spill] sm:$0xff] }
 0x1c5   :  { %v2308_v56 = vpop.eup %2307  ;;  %v808_v61 = vadd.f32 1e-06, %v744_v41  ;;  %v1000_v14 = vmul.f32 %v3263_v6, %v929_v22 }
 0x1c6   :  { %v809_v34 = vadd.f32 1e-06, %v745_v7  ;;  %v2310_v45 = vpop.eup %2309  ;;  %v930_v17 = vmul.f32 %v2308_v56, %v4149_v9  ;;  %v670_v50 = vpop.xlane.xlu1 %669  ;;  %2119 = vmatprep.mubr.msk.bf16.mxu0 %vm111_vm0, %v1109_v10  ;;  %2185 = vmatprep.mubr.msk.bf16.mxu1 %vm111_vm0, %v1109_v10  ;;  %v1070_v31 = vadd.f32 %v3268_v24, %v999_v25  ;;  %v4156_v25 = vld [vmem:[#allocation14_spill] sm:$0xff] }
 0x1c7   :  { %v673_v27 = vpop.xlane.xlu0 %672  ;;  %v931_v32 = vmul.f32 %v2310_v45, %v3196_v43  ;;  %2319 = vrsqrt.f32 %v808_v61  ;;  %v746_v48 = vmul.f32 0.25, %v670_v50  ;;  %v1071_v46 = vadd.f32 %v3268_v24, %v1000_v14  ;;  %v4157_v14 = vld [vmem:[#allocation15_spill] sm:$0xff] }
 0x1c8   :  { %v747_v2 = vmul.f32 0.25, %v673_v27  ;;  %2321 = vrsqrt.f32 %v809_v34  ;;  %v1110_v16 = vpack.c.bf16 %v1070_v31, %v1069_v40  ;;  %v1001_v60 = vmul.f32 %v3263_v6, %v930_v17  ;;  %v4158_v40 = vld [vmem:[#allocation16_spill] sm:$0xff] }
 0x1c9   :  { %v2312_v18 = vpop.eup %2311  ;;  %v810_v20 = vadd.f32 1e-06, %v746_v48  ;;  %v1002_v29 = vmul.f32 %v3263_v6, %v931_v32 }
 0x1ca   :  { %v811_v4 = vadd.f32 1e-06, %v747_v2  ;;  %v2314_v51 = vpop.eup %2313  ;;  %v932_v55 = vmul.f32 %v2312_v18, %v4150_v53  ;;  %v676_v35 = vpop.xlane.xlu1 %675  ;;  %2120 = vmatmul.mubr.msk.bf16.gmra.mrb[44].mxu0 %vm111_vm0, %v1110_v16  ;;  %2186 = vmatmul.mubr.msk.bf16.gmra.mrb[44].mxu1 %vm111_vm0, %v1110_v16  ;;  %v1072_v43 = vadd.f32 %v3268_v24, %v1001_v60 }
 0x1cb   :  { %v933_v44 = vmul.f32 %v2314_v51, %v4151_v0  ;;  %2323 = vrsqrt.f32 %v810_v20  ;;  %v748_v52 = vmul.f32 0.25, %v676_v35  ;;  %v1073_v8 = vadd.f32 %v3268_v24, %v1002_v29 }
 0x1cc   :  { %2325 = vrsqrt.f32 %v811_v4  ;;  %v1111_v63 = vpack.c.bf16 %v1072_v43, %v1071_v46  ;;  %v1003_v12 = vmul.f32 %v3263_v6, %v932_v55 }
 0x1cd   :  { %v2316_v37 = vpop.eup %2315  ;;  %v812_v3 = vadd.f32 1e-06, %v748_v52  ;;  %v1004_v5 = vmul.f32 %v3493_v30, %v933_v44 }
 0x1ce   :  { %v2318_v58 = vpop.eup %2317  ;;  %v934_v21 = vmul.f32 %v2316_v37, %v4152_v11  ;;  %2123 = vmatprep.mubr.msk.bf16.mxu0 %vm111_vm0, %v1111_v63  ;;  %2189 = vmatprep.mubr.msk.bf16.mxu1 %vm111_vm0, %v1111_v63  ;;  %v1074_v59 = vadd.f32 %v3268_v24, %v1003_v12 }
 0x1cf   :  { %v935_v57 = vmul.f32 %v2318_v58, %v4153_v33  ;;  %2327 = vrsqrt.f32 %v812_v3  ;;  %v1075_v28 = vadd.f32 %v3503_v47, %v1004_v5 }
 0x1d0   :  { %v1112_v6 = vpack.c.bf16 %v1074_v59, %v1073_v8  ;;  %v1005_v38 = vmul.f32 %v3493_v30, %v934_v21 }
 0x1d1   :  { %v2320_v36 = vpop.eup %2319  ;;  %v1006_v1 = vmul.f32 %v3493_v30, %v935_v57 }
 0x1d2   :  { %v2322_v62 = vpop.eup %2321  ;;  %v936_v15 = vmul.f32 %v2320_v36, %v4154_v23  ;;  %2124 = vmatmul.mubr.msk.bf16.gmra.mrb[48].mxu0 %vm111_vm0, %v1112_v6  ;;  %2190 = vmatmul.mubr.msk.bf16.gmra.mrb[48].mxu1 %vm111_vm0, %v1112_v6  ;;  %v1076_v24 = vadd.f32 %v3503_v47, %v1005_v38 }
 0x1d3   :  { %v937_v19 = vmul.f32 %v2322_v62, %v4155_v42  ;;  %v1077_v61 = vadd.f32 %v3503_v47, %v1006_v1 }
 0x1d4   :  { %v1113_v54 = vpack.c.bf16 %v1076_v24, %v1075_v28  ;;  %v1007_v22 = vmul.f32 %v3493_v30, %v936_v15 }
 0x1d5   :  { %v2324_v41 = vpop.eup %2323  ;;  %v1008_v7 = vmul.f32 %v3493_v30, %v937_v19 }
 0x1d6   :  { %v2326_v10 = vpop.eup %2325  ;;  %v938_v56 = vmul.f32 %v2324_v41, %v4156_v25  ;;  %2127 = vmatprep.mubr.msk.bf16.mxu0 %vm111_vm0, %v1113_v54  ;;  %2193 = vmatprep.mubr.msk.bf16.mxu1 %vm111_vm0, %v1113_v54  ;;  %v1078_v34 = vadd.f32 %v3503_v47, %v1007_v22 }
 0x1d7   :  { %v939_v45 = vmul.f32 %v2326_v10, %v4157_v14  ;;  %v1079_v27 = vadd.f32 %v3503_v47, %v1008_v7 }
 0x1d8   :  { %v1114_v9 = vpack.c.bf16 %v1078_v34, %v1077_v61  ;;  %v1009_v17 = vmul.f32 %v3493_v30, %v938_v56 }
 0x1d9   :  { %v2328_v50 = vpop.eup %2327  ;;  %v1010_v48 = vmul.f32 %v3493_v30, %v939_v45 }
 0x1da   :  { %v940_v31 = vmul.f32 %v2328_v50, %v4158_v40  ;;  %2128 = vmatmul.mubr.msk.bf16.gmra.mrb[52].mxu0 %vm111_vm0, %v1114_v9  ;;  %2194 = vmatmul.mubr.msk.bf16.gmra.mrb[52].mxu1 %vm111_vm0, %v1114_v9  ;;  %v1080_v32 = vadd.f32 %v3503_v47, %v1009_v17 }
 0x1db   :  { %v1081_v60 = vadd.f32 %v3503_v47, %v1010_v48 }
 0x1dc   :  { %v1115_v2 = vpack.c.bf16 %v1080_v32, %v1079_v27  ;;  %v1011_v16 = vmul.f32 %v3493_v30, %v940_v31 }
 0x1de   :  { %2131 = vmatprep.mubr.msk.bf16.mxu0 %vm111_vm0, %v1115_v2  ;;  %2197 = vmatprep.mubr.msk.bf16.mxu1 %vm111_vm0, %v1115_v2  ;;  %v1082_v18 = vadd.f32 %v3503_v47, %v1011_v16 }
 0x1e0   :  { %v1116_v20 = vpack.c.bf16 %v1082_v18, %v1081_v60 }
 0x1e2   :  { %2132 = vmatmul.mubr.msk.bf16.gmra.mrb[56].mxu0 %vm111_vm0, %v1116_v20  ;;  %2198 = vmatmul.mubr.msk.bf16.gmra.mrb[56].mxu1 %vm111_vm0, %v1116_v20 }
 0x20c   :  { %v679_v4 = vpop.xlane.xlu0 %678 }
 0x20d   :  { %v749_v46 = vmul.f32 0.25, %v679_v4 }
 0x20f   :  { %v813_v51 = vadd.f32 1e-06, %v749_v46 }
 0x210   :  { %v682_v53 = vpop.xlane.xlu1 %681 }
 0x211   :  { %2329 = vrsqrt.f32 %v813_v51  ;;  %v750_v55 = vmul.f32 0.25, %v682_v53 }
 0x213   :  { %v814_v35 = vadd.f32 1e-06, %v750_v55 }
 0x214   :  { %v685_v43 = vpop.xlane.xlu0 %684 }
 0x215   :  { %2331 = vrsqrt.f32 %v814_v35  ;;  %v751_v29 = vmul.f32 0.25, %v685_v43 }
 0x217   :  { %v815_v0 = vadd.f32 1e-06, %v751_v29  ;;  %v688_v44 = vpop.xlane.xlu1 %687 }
 0x218   :  { %v752_v52 = vmul.f32 0.25, %v688_v44 }
 0x219   :  { %2333 = vrsqrt.f32 %v815_v0 }
 0x21a   :  { %v816_v63 = vadd.f32 1e-06, %v752_v52 }
 0x21b   :  { %v2330_v12 = vpop.eup %2329 }
 0x21c   :  { %v941_v37 = vmul.f32 %v2330_v12, %v3318_v13  ;;  %2335 = vrsqrt.f32 %v816_v63 }
 0x21e   :  { %v1012_v58 = vmul.f32 %v3493_v30, %v941_v37 }
 0x21f   :  { %v2332_v3 = vpop.eup %2331 }
 0x220   :  { %v942_v5 = vmul.f32 %v2332_v3, %v3331_v26  ;;  %v1083_v59 = vadd.f32 %v3503_v47, %v1012_v58 }
 0x222   :  { %v1013_v11 = vmul.f32 %v3493_v30, %v942_v5 }
 0x223   :  { %v2334_v21 = vpop.eup %2333 }
 0x224   :  { %v943_v8 = vmul.f32 %v2334_v21, %v3345_v49  ;;  %v1084_v33 = vadd.f32 %v3503_v47, %v1013_v11 }
 0x226   :  { %v2336_v57 = vpop.eup %2335  ;;  %v1117_v6 = vpack.c.bf16 %v1084_v33, %v1083_v59  ;;  %v1014_v13 = vmul.f32 %v3493_v30, %v943_v8 }
 0x227   :  { %v944_v38 = vmul.f32 %v2336_v57, %v3359_v39 }
 0x228   :  { %2135 = vmatprep.mubr.msk.bf16.mxu0 %vm111_vm0, %v1117_v6  ;;  %2201 = vmatprep.mubr.msk.bf16.mxu1 %vm111_vm0, %v1117_v6  ;;  %v1085_v36 = vadd.f32 %v3503_v47, %v1014_v13 }
 0x229   :  { %v1015_v26 = vmul.f32 %v3493_v30, %v944_v38 }
 0x22b   :  { %v1086_v49 = vadd.f32 %v3503_v47, %v1015_v26 }
 0x22d   :  { %v1118_v28 = vpack.c.bf16 %v1086_v49, %v1085_v36 }
 0x22f   :  { %2136 = vmatmul.mubr.msk.bf16.gmra.mrb[60].mxu0 %vm111_vm0, %v1118_v28  ;;  %2202 = vmatmul.mubr.msk.bf16.gmra.mrb[60].mxu1 %vm111_vm0, %v1118_v28 }
 0x23d   :  { %v2077_v62 = vpop.f32.mrb[0].mxu0  ;;  %v2143_v39 = vpop.f32.mrb[0].mxu1 }
 0x23e   :  { %1512 = vst.msk [vmem:[%s4067_s5 + $0x10] sm:$0xff] %vm1509_vm2, %v2077_v62  ;;  %1869 = vst.msk [vmem:[%s4068_s6 + $0x10] sm:$0xff] %vm1509_vm2, %v2143_v39  ;;  %v1254_v30 = vpop.f32.mrb[1].mxu0  ;;  %v1612_v47 = vpop.f32.mrb[1].mxu1 }
 0x23f   :  { %1510 = vst.msk [vmem:[%s4067_s5] sm:$0xff] %vm1509_vm2, %v1254_v30  ;;  %1867 = vst.msk [vmem:[%s4068_s6] sm:$0xff] %vm1509_vm2, %v1612_v47  ;;  %v2078_v23 = vpop.f32.mrb[2].mxu0  ;;  %v2144_v15 = vpop.f32.mrb[2].mxu1 }
 0x240   :  { %1513 = vst.msk [vmem:[%s4067_s5 + $0x18] sm:$0xff] %vm1509_vm2, %v2078_v23  ;;  %1870 = vst.msk [vmem:[%s4068_s6 + $0x18] sm:$0xff] %vm1509_vm2, %v2144_v15  ;;  %v1257_v24 = vpop.f32.mrb[3].mxu0  ;;  %v1615_v1 = vpop.f32.mrb[3].mxu1 }
 0x241   :  { %1511 = vst.msk [vmem:[%s4067_s5 + $0x8] sm:$0xff] %vm1509_vm2, %v1257_v24  ;;  %1868 = vst.msk [vmem:[%s4068_s6 + $0x8] sm:$0xff] %vm1509_vm2, %v1615_v1 }
 0x245   :  { %v2081_v42 = vpop.f32.mrb[4].mxu0  ;;  %v2147_v19 = vpop.f32.mrb[4].mxu1 }
 0x246   :  { %1516 = vst.msk [vmem:[%s4067_s5 + $0x30] sm:$0xff] %vm1509_vm2, %v2081_v42  ;;  %1873 = vst.msk [vmem:[%s4068_s6 + $0x30] sm:$0xff] %vm1509_vm2, %v2147_v19  ;;  %v1270_v54 = vpop.f32.mrb[5].mxu0  ;;  %v1628_v22 = vpop.f32.mrb[5].mxu1 }
 0x247   :  { %1514 = vst.msk [vmem:[%s4067_s5 + $0x20] sm:$0xff] %vm1509_vm2, %v1270_v54  ;;  %1871 = vst.msk [vmem:[%s4068_s6 + $0x20] sm:$0xff] %vm1509_vm2, %v1628_v22  ;;  %v2082_v41 = vpop.f32.mrb[6].mxu0  ;;  %v2148_v7 = vpop.f32.mrb[6].mxu1 }
 0x248   :  { %1517 = vst.msk [vmem:[%s4067_s5 + $0x38] sm:$0xff] %vm1509_vm2, %v2082_v41  ;;  %1874 = vst.msk [vmem:[%s4068_s6 + $0x38] sm:$0xff] %vm1509_vm2, %v2148_v7  ;;  %v1273_v10 = vpop.f32.mrb[7].mxu0  ;;  %v1631_v25 = vpop.f32.mrb[7].mxu1 }
 0x249   :  { %1515 = vst.msk [vmem:[%s4067_s5 + $0x28] sm:$0xff] %vm1509_vm2, %v1273_v10  ;;  %1872 = vst.msk [vmem:[%s4068_s6 + $0x28] sm:$0xff] %vm1509_vm2, %v1631_v25 }
 0x24d   :  { %v2085_v56 = vpop.f32.mrb[8].mxu0  ;;  %v2151_v61 = vpop.f32.mrb[8].mxu1 }
 0x24e   :  { %1520 = vst.msk [vmem:[%s4067_s5 + $0x50] sm:$0xff] %vm1509_vm2, %v2085_v56  ;;  %1877 = vst.msk [vmem:[%s4068_s6 + $0x50] sm:$0xff] %vm1509_vm2, %v2151_v61  ;;  %v1286_v34 = vpop.f32.mrb[9].mxu0  ;;  %v1644_v14 = vpop.f32.mrb[9].mxu1 }
 0x24f   :  { %1518 = vst.msk [vmem:[%s4067_s5 + $0x40] sm:$0xff] %vm1509_vm2, %v1286_v34  ;;  %1875 = vst.msk [vmem:[%s4068_s6 + $0x40] sm:$0xff] %vm1509_vm2, %v1644_v14  ;;  %v2086_v45 = vpop.f32.mrb[10].mxu0  ;;  %v2152_v9 = vpop.f32.mrb[10].mxu1 }
 0x250   :  { %1521 = vst.msk [vmem:[%s4067_s5 + $0x58] sm:$0xff] %vm1509_vm2, %v2086_v45  ;;  %1878 = vst.msk [vmem:[%s4068_s6 + $0x58] sm:$0xff] %vm1509_vm2, %v2152_v9  ;;  %v1289_v17 = vpop.f32.mrb[11].mxu0  ;;  %v1647_v50 = vpop.f32.mrb[11].mxu1 }
 0x251   :  { %1519 = vst.msk [vmem:[%s4067_s5 + $0x48] sm:$0xff] %vm1509_vm2, %v1289_v17  ;;  %1876 = vst.msk [vmem:[%s4068_s6 + $0x48] sm:$0xff] %vm1509_vm2, %v1647_v50 }
 0x255   :  { %v2089_v27 = vpop.f32.mrb[12].mxu0  ;;  %v2155_v40 = vpop.f32.mrb[12].mxu1 }
 0x256   :  { %1524 = vst.msk [vmem:[%s4067_s5 + $0x70] sm:$0xff] %vm1509_vm2, %v2089_v27  ;;  %1881 = vst.msk [vmem:[%s4068_s6 + $0x70] sm:$0xff] %vm1509_vm2, %v2155_v40  ;;  %v1302_v31 = vpop.f32.mrb[13].mxu0  ;;  %v1660_v32 = vpop.f32.mrb[13].mxu1 }
 0x257   :  { %1522 = vst.msk [vmem:[%s4067_s5 + $0x60] sm:$0xff] %vm1509_vm2, %v1302_v31  ;;  %1879 = vst.msk [vmem:[%s4068_s6 + $0x60] sm:$0xff] %vm1509_vm2, %v1660_v32  ;;  %v2090_v48 = vpop.f32.mrb[14].mxu0  ;;  %v2156_v2 = vpop.f32.mrb[14].mxu1 }
 0x258   :  { %1525 = vst.msk [vmem:[%s4067_s5 + $0x78] sm:$0xff] %vm1509_vm2, %v2090_v48  ;;  %1882 = vst.msk [vmem:[%s4068_s6 + $0x78] sm:$0xff] %vm1509_vm2, %v2156_v2  ;;  %v1305_v16 = vpop.f32.mrb[15].mxu0  ;;  %v1663_v60 = vpop.f32.mrb[15].mxu1 }
 0x259   :  { %1523 = vst.msk [vmem:[%s4067_s5 + $0x68] sm:$0xff] %vm1509_vm2, %v1305_v16  ;;  %1880 = vst.msk [vmem:[%s4068_s6 + $0x68] sm:$0xff] %vm1509_vm2, %v1663_v60 }
 0x25d   :  { %v2093_v18 = vpop.f32.mrb[16].mxu0 }
 0x25e   :  { %1528 = vst.msk [vmem:[%s4067_s5 + $0x90] sm:$0xff] %vm1509_vm2, %v2093_v18  ;;  %v2159_v20 = vpop.f32.mrb[16].mxu1  ;;  %v1318_v4 = vpop.f32.mrb[17].mxu0 }
 0x25f   :  { %1885 = vst.msk [vmem:[%s4068_s6 + $0x90] sm:$0xff] %vm1509_vm2, %v2159_v20  ;;  %1526 = vst.msk [vmem:[%s4067_s5 + $0x80] sm:$0xff] %vm1509_vm2, %v1318_v4  ;;  %v1676_v46 = vpop.f32.mrb[17].mxu1  ;;  %v2094_v51 = vpop.f32.mrb[18].mxu0 }
 0x260   :  { %1883 = vst.msk [vmem:[%s4068_s6 + $0x80] sm:$0xff] %vm1509_vm2, %v1676_v46  ;;  %1529 = vst.msk [vmem:[%s4067_s5 + $0x98] sm:$0xff] %vm1509_vm2, %v2094_v51  ;;  %v2160_v53 = vpop.f32.mrb[18].mxu1  ;;  %v1321_v55 = vpop.f32.mrb[19].mxu0 }
 0x261   :  { %1886 = vst.msk [vmem:[%s4068_s6 + $0x98] sm:$0xff] %vm1509_vm2, %v2160_v53  ;;  %1527 = vst.msk [vmem:[%s4067_s5 + $0x88] sm:$0xff] %vm1509_vm2, %v1321_v55  ;;  %v1679_v35 = vpop.f32.mrb[19].mxu1 }
 0x262   :  { %1884 = vst.msk [vmem:[%s4068_s6 + $0x88] sm:$0xff] %vm1509_vm2, %v1679_v35 }
 0x269   :  { %v2097_v43 = vpop.f32.mrb[20].mxu0  ;;  %v2163_v29 = vpop.f32.mrb[20].mxu1 }
 0x26a   :  { %1532 = vst.msk [vmem:[%s4067_s5 + $0xb0] sm:$0xff] %vm1509_vm2, %v2097_v43  ;;  %1889 = vst.msk [vmem:[%s4068_s6 + $0xb0] sm:$0xff] %vm1509_vm2, %v2163_v29  ;;  %v1334_v0 = vpop.f32.mrb[21].mxu0  ;;  %v1692_v44 = vpop.f32.mrb[21].mxu1 }
 0x26b   :  { %1530 = vst.msk [vmem:[%s4067_s5 + $0xa0] sm:$0xff] %vm1509_vm2, %v1334_v0  ;;  %1887 = vst.msk [vmem:[%s4068_s6 + $0xa0] sm:$0xff] %vm1509_vm2, %v1692_v44  ;;  %v2098_v52 = vpop.f32.mrb[22].mxu0  ;;  %v2164_v63 = vpop.f32.mrb[22].mxu1 }
 0x26c   :  { %1533 = vst.msk [vmem:[%s4067_s5 + $0xb8] sm:$0xff] %vm1509_vm2, %v2098_v52  ;;  %1890 = vst.msk [vmem:[%s4068_s6 + $0xb8] sm:$0xff] %vm1509_vm2, %v2164_v63  ;;  %v1337_v12 = vpop.f32.mrb[23].mxu0  ;;  %v1695_v37 = vpop.f32.mrb[23].mxu1 }
 0x26d   :  { %1531 = vst.msk [vmem:[%s4067_s5 + $0xa8] sm:$0xff] %vm1509_vm2, %v1337_v12  ;;  %1888 = vst.msk [vmem:[%s4068_s6 + $0xa8] sm:$0xff] %vm1509_vm2, %v1695_v37 }
 0x275   :  { %v2101_v3 = vpop.f32.mrb[24].mxu0  ;;  %v2167_v5 = vpop.f32.mrb[24].mxu1 }
 0x276   :  { %1536 = vst.msk [vmem:[%s4067_s5 + $0xd0] sm:$0xff] %vm1509_vm2, %v2101_v3  ;;  %1893 = vst.msk [vmem:[%s4068_s6 + $0xd0] sm:$0xff] %vm1509_vm2, %v2167_v5  ;;  %v1350_v58 = vpop.f32.mrb[25].mxu0  ;;  %v1708_v11 = vpop.f32.mrb[25].mxu1 }
 0x277   :  { %1534 = vst.msk [vmem:[%s4067_s5 + $0xc0] sm:$0xff] %vm1509_vm2, %v1350_v58  ;;  %1891 = vst.msk [vmem:[%s4068_s6 + $0xc0] sm:$0xff] %vm1509_vm2, %v1708_v11  ;;  %v2102_v21 = vpop.f32.mrb[26].mxu0  ;;  %v2168_v8 = vpop.f32.mrb[26].mxu1 }
 0x278   :  { %1537 = vst.msk [vmem:[%s4067_s5 + $0xd8] sm:$0xff] %vm1509_vm2, %v2102_v21  ;;  %1894 = vst.msk [vmem:[%s4068_s6 + $0xd8] sm:$0xff] %vm1509_vm2, %v2168_v8  ;;  %v1353_v59 = vpop.f32.mrb[27].mxu0  ;;  %v1711_v33 = vpop.f32.mrb[27].mxu1 }
 0x279   :  { %1535 = vst.msk [vmem:[%s4067_s5 + $0xc8] sm:$0xff] %vm1509_vm2, %v1353_v59  ;;  %1892 = vst.msk [vmem:[%s4068_s6 + $0xc8] sm:$0xff] %vm1509_vm2, %v1711_v33 }
 0x27d   :  { %v2105_v57 = vpop.f32.mrb[28].mxu0  ;;  %v2171_v6 = vpop.f32.mrb[28].mxu1 }
 0x27e   :  { %1540 = vst.msk [vmem:[%s4067_s5 + $0xf0] sm:$0xff] %vm1509_vm2, %v2105_v57  ;;  %1897 = vst.msk [vmem:[%s4068_s6 + $0xf0] sm:$0xff] %vm1509_vm2, %v2171_v6  ;;  %v1366_v38 = vpop.f32.mrb[29].mxu0  ;;  %v1724_v13 = vpop.f32.mrb[29].mxu1 }
 0x27f   :  { %1538 = vst.msk [vmem:[%s4067_s5 + $0xe0] sm:$0xff] %vm1509_vm2, %v1366_v38  ;;  %1895 = vst.msk [vmem:[%s4068_s6 + $0xe0] sm:$0xff] %vm1509_vm2, %v1724_v13  ;;  %v2106_v26 = vpop.f32.mrb[30].mxu0  ;;  %v2172_v36 = vpop.f32.mrb[30].mxu1 }
 0x280   :  { %1541 = vst.msk [vmem:[%s4067_s5 + $0xf8] sm:$0xff] %vm1509_vm2, %v2106_v26  ;;  %1898 = vst.msk [vmem:[%s4068_s6 + $0xf8] sm:$0xff] %vm1509_vm2, %v2172_v36  ;;  %v1369_v49 = vpop.f32.mrb[31].mxu0  ;;  %v1727_v28 = vpop.f32.mrb[31].mxu1 }
 0x281   :  { %1539 = vst.msk [vmem:[%s4067_s5 + $0xe8] sm:$0xff] %vm1509_vm2, %v1369_v49  ;;  %1896 = vst.msk [vmem:[%s4068_s6 + $0xe8] sm:$0xff] %vm1509_vm2, %v1727_v28 }
 0x285   :  { %v2109_v62 = vpop.f32.mrb[32].mxu0  ;;  %v2175_v39 = vpop.f32.mrb[32].mxu1 }
 0x286   :  { %1544 = vst.msk [vmem:[%s4067_s5 + $0x110] sm:$0xff] %vm1509_vm2, %v2109_v62  ;;  %1901 = vst.msk [vmem:[%s4068_s6 + $0x110] sm:$0xff] %vm1509_vm2, %v2175_v39  ;;  %v1382_v30 = vpop.f32.mrb[33].mxu0  ;;  %v1740_v47 = vpop.f32.mrb[33].mxu1 }
 0x287   :  { %1542 = vst.msk [vmem:[%s4067_s5 + $0x100] sm:$0xff] %vm1509_vm2, %v1382_v30  ;;  %1899 = vst.msk [vmem:[%s4068_s6 + $0x100] sm:$0xff] %vm1509_vm2, %v1740_v47  ;;  %v2110_v23 = vpop.f32.mrb[34].mxu0  ;;  %v2176_v15 = vpop.f32.mrb[34].mxu1 }
 0x288   :  { %1545 = vst.msk [vmem:[%s4067_s5 + $0x118] sm:$0xff] %vm1509_vm2, %v2110_v23  ;;  %1902 = vst.msk [vmem:[%s4068_s6 + $0x118] sm:$0xff] %vm1509_vm2, %v2176_v15  ;;  %v1385_v24 = vpop.f32.mrb[35].mxu0  ;;  %v1743_v1 = vpop.f32.mrb[35].mxu1 }
 0x289   :  { %1543 = vst.msk [vmem:[%s4067_s5 + $0x108] sm:$0xff] %vm1509_vm2, %v1385_v24  ;;  %1900 = vst.msk [vmem:[%s4068_s6 + $0x108] sm:$0xff] %vm1509_vm2, %v1743_v1 }
 0x28d   :  { %v2113_v42 = vpop.f32.mrb[36].mxu0  ;;  %v2179_v19 = vpop.f32.mrb[36].mxu1 }
 0x28e   :  { %1548 = vst.msk [vmem:[%s4067_s5 + $0x130] sm:$0xff] %vm1509_vm2, %v2113_v42  ;;  %1905 = vst.msk [vmem:[%s4068_s6 + $0x130] sm:$0xff] %vm1509_vm2, %v2179_v19  ;;  %v1398_v54 = vpop.f32.mrb[37].mxu0  ;;  %v1756_v22 = vpop.f32.mrb[37].mxu1 }
 0x28f   :  { %1546 = vst.msk [vmem:[%s4067_s5 + $0x120] sm:$0xff] %vm1509_vm2, %v1398_v54  ;;  %1903 = vst.msk [vmem:[%s4068_s6 + $0x120] sm:$0xff] %vm1509_vm2, %v1756_v22  ;;  %v2114_v41 = vpop.f32.mrb[38].mxu0  ;;  %v2180_v7 = vpop.f32.mrb[38].mxu1 }
 0x290   :  { %1549 = vst.msk [vmem:[%s4067_s5 + $0x138] sm:$0xff] %vm1509_vm2, %v2114_v41  ;;  %1906 = vst.msk [vmem:[%s4068_s6 + $0x138] sm:$0xff] %vm1509_vm2, %v2180_v7  ;;  %v1401_v10 = vpop.f32.mrb[39].mxu0  ;;  %v1759_v25 = vpop.f32.mrb[39].mxu1 }
 0x291   :  { %1547 = vst.msk [vmem:[%s4067_s5 + $0x128] sm:$0xff] %vm1509_vm2, %v1401_v10  ;;  %1904 = vst.msk [vmem:[%s4068_s6 + $0x128] sm:$0xff] %vm1509_vm2, %v1759_v25 }
 0x295   :  { %v2117_v56 = vpop.f32.mrb[40].mxu0  ;;  %v2183_v61 = vpop.f32.mrb[40].mxu1 }
 0x296   :  { %1552 = vst.msk [vmem:[%s4067_s5 + $0x150] sm:$0xff] %vm1509_vm2, %v2117_v56  ;;  %1909 = vst.msk [vmem:[%s4068_s6 + $0x150] sm:$0xff] %vm1509_vm2, %v2183_v61  ;;  %v1414_v34 = vpop.f32.mrb[41].mxu0  ;;  %v1772_v14 = vpop.f32.mrb[41].mxu1 }
 0x297   :  { %1550 = vst.msk [vmem:[%s4067_s5 + $0x140] sm:$0xff] %vm1509_vm2, %v1414_v34  ;;  %1907 = vst.msk [vmem:[%s4068_s6 + $0x140] sm:$0xff] %vm1509_vm2, %v1772_v14  ;;  %v2118_v45 = vpop.f32.mrb[42].mxu0  ;;  %v2184_v9 = vpop.f32.mrb[42].mxu1 }
 0x298   :  { %1553 = vst.msk [vmem:[%s4067_s5 + $0x158] sm:$0xff] %vm1509_vm2, %v2118_v45  ;;  %1910 = vst.msk [vmem:[%s4068_s6 + $0x158] sm:$0xff] %vm1509_vm2, %v2184_v9  ;;  %v1417_v17 = vpop.f32.mrb[43].mxu0  ;;  %v1775_v50 = vpop.f32.mrb[43].mxu1 }
 0x299   :  { %1551 = vst.msk [vmem:[%s4067_s5 + $0x148] sm:$0xff] %vm1509_vm2, %v1417_v17  ;;  %1908 = vst.msk [vmem:[%s4068_s6 + $0x148] sm:$0xff] %vm1509_vm2, %v1775_v50 }
 0x29d   :  { %v2121_v27 = vpop.f32.mrb[44].mxu0  ;;  %v2187_v40 = vpop.f32.mrb[44].mxu1 }
 0x29e   :  { %1556 = vst.msk [vmem:[%s4067_s5 + $0x170] sm:$0xff] %vm1509_vm2, %v2121_v27  ;;  %1913 = vst.msk [vmem:[%s4068_s6 + $0x170] sm:$0xff] %vm1509_vm2, %v2187_v40  ;;  %v1430_v31 = vpop.f32.mrb[45].mxu0  ;;  %v1788_v32 = vpop.f32.mrb[45].mxu1 }
 0x29f   :  { %1554 = vst.msk [vmem:[%s4067_s5 + $0x160] sm:$0xff] %vm1509_vm2, %v1430_v31  ;;  %1911 = vst.msk [vmem:[%s4068_s6 + $0x160] sm:$0xff] %vm1509_vm2, %v1788_v32  ;;  %v2122_v48 = vpop.f32.mrb[46].mxu0  ;;  %v2188_v2 = vpop.f32.mrb[46].mxu1 }
 0x2a0   :  { %1557 = vst.msk [vmem:[%s4067_s5 + $0x178] sm:$0xff] %vm1509_vm2, %v2122_v48  ;;  %1914 = vst.msk [vmem:[%s4068_s6 + $0x178] sm:$0xff] %vm1509_vm2, %v2188_v2  ;;  %v1433_v16 = vpop.f32.mrb[47].mxu0  ;;  %v1791_v60 = vpop.f32.mrb[47].mxu1 }
 0x2a1   :  { %1555 = vst.msk [vmem:[%s4067_s5 + $0x168] sm:$0xff] %vm1509_vm2, %v1433_v16  ;;  %1912 = vst.msk [vmem:[%s4068_s6 + $0x168] sm:$0xff] %vm1509_vm2, %v1791_v60 }
 0x2a5   :  { %v2125_v18 = vpop.f32.mrb[48].mxu0  ;;  %v2191_v20 = vpop.f32.mrb[48].mxu1 }
 0x2a6   :  { %1560 = vst.msk [vmem:[%s4067_s5 + $0x190] sm:$0xff] %vm1509_vm2, %v2125_v18  ;;  %1917 = vst.msk [vmem:[%s4068_s6 + $0x190] sm:$0xff] %vm1509_vm2, %v2191_v20  ;;  %v1446_v4 = vpop.f32.mrb[49].mxu0  ;;  %v1804_v46 = vpop.f32.mrb[49].mxu1 }
 0x2a7   :  { %1558 = vst.msk [vmem:[%s4067_s5 + $0x180] sm:$0xff] %vm1509_vm2, %v1446_v4  ;;  %1915 = vst.msk [vmem:[%s4068_s6 + $0x180] sm:$0xff] %vm1509_vm2, %v1804_v46  ;;  %v2126_v51 = vpop.f32.mrb[50].mxu0  ;;  %v2192_v53 = vpop.f32.mrb[50].mxu1 }
 0x2a8   :  { %1561 = vst.msk [vmem:[%s4067_s5 + $0x198] sm:$0xff] %vm1509_vm2, %v2126_v51  ;;  %1918 = vst.msk [vmem:[%s4068_s6 + $0x198] sm:$0xff] %vm1509_vm2, %v2192_v53  ;;  %v1449_v55 = vpop.f32.mrb[51].mxu0  ;;  %v1807_v35 = vpop.f32.mrb[51].mxu1 }
 0x2a9   :  { %1559 = vst.msk [vmem:[%s4067_s5 + $0x188] sm:$0xff] %vm1509_vm2, %v1449_v55  ;;  %1916 = vst.msk [vmem:[%s4068_s6 + $0x188] sm:$0xff] %vm1509_vm2, %v1807_v35 }
 0x2ad   :  { %v2129_v43 = vpop.f32.mrb[52].mxu0  ;;  %v2195_v29 = vpop.f32.mrb[52].mxu1 }
 0x2ae   :  { %1564 = vst.msk [vmem:[%s4067_s5 + $0x1b0] sm:$0xff] %vm1509_vm2, %v2129_v43  ;;  %1921 = vst.msk [vmem:[%s4068_s6 + $0x1b0] sm:$0xff] %vm1509_vm2, %v2195_v29  ;;  %v1462_v0 = vpop.f32.mrb[53].mxu0  ;;  %v1820_v44 = vpop.f32.mrb[53].mxu1 }
 0x2af   :  { %1562 = vst.msk [vmem:[%s4067_s5 + $0x1a0] sm:$0xff] %vm1509_vm2, %v1462_v0  ;;  %1919 = vst.msk [vmem:[%s4068_s6 + $0x1a0] sm:$0xff] %vm1509_vm2, %v1820_v44  ;;  %v2130_v52 = vpop.f32.mrb[54].mxu0  ;;  %v2196_v63 = vpop.f32.mrb[54].mxu1 }
 0x2b0   :  { %1565 = vst.msk [vmem:[%s4067_s5 + $0x1b8] sm:$0xff] %vm1509_vm2, %v2130_v52  ;;  %1922 = vst.msk [vmem:[%s4068_s6 + $0x1b8] sm:$0xff] %vm1509_vm2, %v2196_v63  ;;  %v1465_v12 = vpop.f32.mrb[55].mxu0  ;;  %v1823_v37 = vpop.f32.mrb[55].mxu1 }
 0x2b1   :  { %1563 = vst.msk [vmem:[%s4067_s5 + $0x1a8] sm:$0xff] %vm1509_vm2, %v1465_v12  ;;  %1920 = vst.msk [vmem:[%s4068_s6 + $0x1a8] sm:$0xff] %vm1509_vm2, %v1823_v37 }
 0x2b5   :  { %v2133_v3 = vpop.f32.mrb[56].mxu0  ;;  %v2199_v5 = vpop.f32.mrb[56].mxu1 }
 0x2b6   :  { %1568 = vst.msk [vmem:[%s4067_s5 + $0x1d0] sm:$0xff] %vm1509_vm2, %v2133_v3  ;;  %1925 = vst.msk [vmem:[%s4068_s6 + $0x1d0] sm:$0xff] %vm1509_vm2, %v2199_v5  ;;  %v1478_v58 = vpop.f32.mrb[57].mxu0  ;;  %v1836_v11 = vpop.f32.mrb[57].mxu1 }
 0x2b7   :  { %1566 = vst.msk [vmem:[%s4067_s5 + $0x1c0] sm:$0xff] %vm1509_vm2, %v1478_v58  ;;  %1923 = vst.msk [vmem:[%s4068_s6 + $0x1c0] sm:$0xff] %vm1509_vm2, %v1836_v11  ;;  %v2134_v21 = vpop.f32.mrb[58].mxu0  ;;  %v2200_v8 = vpop.f32.mrb[58].mxu1 }
 0x2b8   :  { %1569 = vst.msk [vmem:[%s4067_s5 + $0x1d8] sm:$0xff] %vm1509_vm2, %v2134_v21  ;;  %1926 = vst.msk [vmem:[%s4068_s6 + $0x1d8] sm:$0xff] %vm1509_vm2, %v2200_v8  ;;  %v1481_v59 = vpop.f32.mrb[59].mxu0  ;;  %v1839_v33 = vpop.f32.mrb[59].mxu1 }
 0x2b9   :  { %1567 = vst.msk [vmem:[%s4067_s5 + $0x1c8] sm:$0xff] %vm1509_vm2, %v1481_v59  ;;  %1924 = vst.msk [vmem:[%s4068_s6 + $0x1c8] sm:$0xff] %vm1509_vm2, %v1839_v33 }
 0x302   :  { %v2137_v57 = vpop.f32.mrb[60].mxu0  ;;  %v2203_v6 = vpop.f32.mrb[60].mxu1 }
 0x303   :  { %1572 = vst.msk [vmem:[%s4067_s5 + $0x1f0] sm:$0xff] %vm1509_vm2, %v2137_v57  ;;  %1929 = vst.msk [vmem:[%s4068_s6 + $0x1f0] sm:$0xff] %vm1509_vm2, %v2203_v6  ;;  %v1494_v38 = vpop.f32.mrb[61].mxu0  ;;  %v1852_v13 = vpop.f32.mrb[61].mxu1 }
 0x304   :  { %1570 = vst.msk [vmem:[%s4067_s5 + $0x1e0] sm:$0xff] %vm1509_vm2, %v1494_v38  ;;  %1927 = vst.msk [vmem:[%s4068_s6 + $0x1e0] sm:$0xff] %vm1509_vm2, %v1852_v13  ;;  %v2138_v26 = vpop.f32.mrb[62].mxu0  ;;  %v2204_v36 = vpop.f32.mrb[62].mxu1 }
 0x305   :  { %1573 = vst.msk [vmem:[%s4067_s5 + $0x1f8] sm:$0xff] %vm1509_vm2, %v2138_v26  ;;  %1930 = vst.msk [vmem:[%s4068_s6 + $0x1f8] sm:$0xff] %vm1509_vm2, %v2204_v36  ;;  %v1497_v49 = vpop.f32.mrb[63].mxu0  ;;  %v1855_v28 = vpop.f32.mrb[63].mxu1 }
 0x306   :  { %1571 = vst.msk [vmem:[%s4067_s5 + $0x1e8] sm:$0xff] %vm1509_vm2, %v1497_v49  ;;  %1928 = vst.msk [vmem:[%s4068_s6 + $0x1e8] sm:$0xff] %vm1509_vm2, %v1855_v28 }
 0x307   :  { %1939 = vsyncpa [#allocation3], 1 }
 0x308   :  { %1940 = vsyncpa [#allocation5], 1 }

// kernel: vss_block_no_cbam_forward.6
= control target key start
LH: loop header
LB: loop body
LE: loop exit
PB: predicated region body
PF: predicated region fallthrough
CT: control target
= control target key end

     0   :  { %8 = vsyncpa [#allocation3], 0  ;;  %s4313_s0 = inlined_call_operand.vmem [shape: f32[2,18,18,8], index: 0, kind: input, shape index: {}]   ;;  %s4314_s1 = inlined_call_operand.hbm [shape: f32[3,3,8], index: 1, kind: input, shape index: {}]   ;;  %s4315_s2 = inlined_call_operand.hbm [shape: f32[1,1,8], index: 2, kind: input, shape index: {}]   ;;  %s4316_s3 = inlined_call_operand.vmem [shape: f32[2,16,16,8], index: 3, kind: output, shape index: {}]  }
   0x1   :  { %9 = vsyncpa [#allocation5], 0  ;;  %s2715_s12 = smov 0   ;;  %s2717_s13 = smov 0  }
   0x2   :  { %s2719_s14 = smov 0  }
   0x3 LB: > { %s2377_s15 = sadd.s32 4294967295, %s2689_s14   ;;  %s27_s16 = sadd.s32 1, %s2685_s13  ;;  %s2689_s14 = sphi %s2719_s14, %s15_s14   ;;  %s2685_s13 = sphi %s2717_s13, %s4326_s13   ;;  %s2681_s12 = sphi %s2715_s12, %s4325_s12  }
   0x4   : > { %p29_p0 = scmp.ge.s32.totalorder %s27_s16, 2  ;;  %p2379_p1 = scmp.ge.s32.totalorder %s2689_s14, 1 }
   0x5   : > { %p140_p2 = scmp.lt.s32.totalorder %s2689_s14, 3  ;;  %p2740_p4 = scmp.eq.s32.totalorder %s2377_s15, 0 }
   0x6   : > { %s4328_s16 = smov (%p29_p0, %s27_s16), 0  ;;  %s2691_s19 = smov [#allocation2]  }
   0x7   : > { %p2736_p3 = pnand %p2379_p1, %p140_p2  ;;  %s154_s20 = sshll.u32 %s2691_s19, 4  ;;  %s155_s20 = int_to_ptr.vmem [resolvable:$true] %s154_s20 }
   0x8   : > { %s4321_s18 = scalar_select %p2740_p4, 1, 0 }
   0x9   : > { %s4320_s17 = scalar_select %p2736_p3, 1, 0 }
   0xa   : > { %p2434_p5 = pneg %p2736_p3  ;;  %s2692_s22 = smov [#allocation4]  }
   0xb   : > { %s170_s23 = sshll.u32 %s2692_s22, 4  ;;  %s2603_s26 = scalar_lea.hbm %s4314_s1, 192  ;;  %s2752_s23 = int_to_ptr.vmem [resolvable:$true] %s170_s23 }
   0xc   : > { %p2748_p6 = pnand %p2740_p4, %p2434_p5  ;;  %p2604_p7 = scmp.ne.s32.totalorder %s4314_s1, %s2603_s26 }
   0xd   : > { %p2610_p11 = scmp.lt.u32.totalorder %s2603_s26, %s4314_s1 }
   0xe   : > { %p2605_p8 = pneg %p2748_p6 }
  0x10   : > { %p2606_p9 = pnand %p2605_p8, %p2604_p7 }
  0x12   : > { %p2607_p10 = pneg %p2606_p9 }
  0x14   : > { %p2612_p12 = pnand %p2610_p11, %p2607_p10 }
  0x16   : > { %2615 = shalt.err (!%p2612_p12)
}
  0x17   : > { %s2616_s4 = scalar_lea.vmem %s155_s20, 192  ;;  %p2624_p2 = scmp.lt.s32.totalorder %s155_s20, %s155_s20 }
  0x18   : > { %p2617_p13 = scmp.ne.s32.totalorder %s155_s20, %s2616_s4  ;;  %p2625_p5 = scmp.lt.s32.totalorder %s2616_s4, %s2616_s4 }
  0x1a   : > { %p2619_p0 = pnand %p2617_p13, %p2605_p8  ;;  %p2626_p4 = por %p2625_p5, %p2624_p2 }
  0x1c   : > { %p2620_p1 = pneg %p2619_p0 }
  0x1e   : > { %p2627_p3 = pnand %p2626_p4, %p2620_p1 }
  0x20   : > { %2630 = shalt.err (!%p2627_p3)
}
  0x21   : > { %s2693_s5 = smov 64   ;;  %s2694_s6 = smov 4  }
  0x22   : > { %2437 = dma.hbm_to_vmem [thread:$0]  (!%p2748_p6), %s4314_s1, 192, %s155_s20, [#allocation3], %s2693_s5, %s2693_s5, %s2694_s6  }
  0x23   : > { %s2631_s11 = scalar_lea.hbm %s4315_s2, 16 }
  0x24   : > { %p2632_p7 = scmp.ne.s32.totalorder %s4315_s2, %s2631_s11  ;;  %p2638_p9 = scmp.lt.u32.totalorder %s2631_s11, %s4315_s2 }
  0x26   : > { %p2634_p3 = pnand %p2632_p7, %p2605_p8 }
  0x28   : > { %p2635_p4 = pneg %p2634_p3 }
  0x2a   : > { %p2640_p10 = pnand %p2638_p9, %p2635_p4 }
  0x2c   : > { %2643 = shalt.err (!%p2640_p10)
}
  0x2d   : > { %s2644_s20 = scalar_lea.vmem %s2752_s23, 16  ;;  %s2651_s25 = scalar_lea.vmem %s2752_s23, 32 }
  0x2e   : > { %p2645_p11 = scmp.ne.s32.totalorder %s2752_s23, %s2644_s20  ;;  %p2652_p0 = scmp.lt.s32.totalorder %s2752_s23, %s2752_s23 }
  0x2f   : > { %p2653_p1 = scmp.lt.s32.totalorder %s2651_s25, %s2644_s20 }
  0x30   : > { %p2647_p12 = pnand %p2645_p11, %p2605_p8 }
  0x31   : > { %p2654_p2 = por %p2653_p1, %p2652_p0 }
  0x32   : > { %p2648_p13 = pneg %p2647_p12 }
  0x34   : > { %p2655_p5 = pnand %p2654_p2, %p2648_p13 }
  0x36   : > { %2658 = shalt.err (!%p2655_p5)
}
  0x37   : > { %2440 = dma.hbm_to_vmem [thread:$0]  (!%p2748_p6), %s4315_s2, 16, %s2752_s23, [#allocation5]  }
  0x38   : > { %p4323_p7 = scmp.ne.s32.totalorder %s4320_s17, 0 }
  0x39   : > { %p4324_p8 = scmp.ne.s32.totalorder (!%p4323_p7), %s4321_s18, 0 }
  0x3a   : > { %194 = sbr.rel (%p4323_p7) target bundleno = 440 (0x1b8), region = 32 }
  0x41   : > { %2672 = dma.done.wait (%p4324_p8), [#allocation3], 192  }
  0x42   : > { %2674 = vsyncadd (%p4324_p8), [#allocation3], 4294967104 }
  0x43   : > { %2676 = dma.done.wait (%p4324_p8), [#allocation5], 16  }
  0x44   : > { %2678 = vsyncadd (%p4324_p8), [#allocation5], 4294967280  ;;  %p228_p3 = scmp.lt.s32.totalorder %s2681_s12, 1  ;;  %v301_v0 = vlaneseq  ;;  %vm605_vm0 = vcmask 1046528   ;;  %v298_v8 = vld [vmem:[#allocation2] sm:$0x7] }
  0x45   : > { %v299_v9 = vld [vmem:[#allocation2 + $0x4] sm:$0x7]  ;;  %v300_v10 = vld [vmem:[#allocation2 + $0x8] sm:$0x7]  ;;  %vm1338_vm1 = vcmask 1045504   ;;  %vm2234_vm2 = vcmask 64512  }
  0x46   : > { %s4330_s12 = smov (!%p228_p3, %s2681_s12), 1  ;;  %v302_v1 = vshrl.u32 %v301_v0, 7 }
  0x47   : > { %s2425_s17 = smul.u32 432, %s4330_s12  ;;  %s2424_s18 = sshll.u32 %s4330_s12, 8 }
  0x48   : > { %v303_v2 = vsub.s32 0, %v302_v1  ;;  %v507_v3 = vsub.s32 1, %v302_v1  ;;  %v1240_v4 = vsub.s32 2, %v302_v1  ;;  %s3050_s30 = scalar_lea.vmem %s4316_s3, %s2424_s18 }
  0x49   : > { %s2820_s28 = scalar_lea.vmem %s4313_s0, %s2425_s17 }
  0x4a   : > { %v244_v5 = vld [vmem:[%s2820_s28] sm:$0xff]  ;;  %v245_v6 = vld [vmem:[%s2820_s28 + $0x8] sm:$0xff]  ;;  %v2825_v7 = vld [vmem:[%s2820_s28 + $0x18] sm:$0xff]  ;;  %v2827_v11 = vrot.slane %v298_v8, %v303_v2  ;;  %v2829_v12 = vrot.slane %v299_v9, %v303_v2  ;;  %v2831_v13 = vrot.slane %v300_v10, %v303_v2  ;;  %v2833_v14 = vrot.slane %v298_v8, %v507_v3 }
  0x4b   : > { %v2836_v15 = vld [vmem:[%s2820_s28 + $0x30] sm:$0xff]  ;;  %v2838_v16 = vrot.slane %v299_v9, %v507_v3  ;;  %v2840_v17 = vrot.slane %v300_v10, %v507_v3  ;;  %v2842_v18 = vrot.slane %v298_v8, %v1240_v4  ;;  %v2844_v19 = vrot.slane %v299_v9, %v1240_v4  ;;  %v2847_v20 = vld [vmem:[%s2820_s28 + $0x20] sm:$0xff]  ;;  %v2856_v25 = vld [vmem:[%s2820_s28 + $0x38] sm:$0xff] }
  0x4c   : > { %v305_v21 = vmul.f32 %v2827_v11, %v244_v5  ;;  %v306_v22 = vmul.f32 %v2827_v11, %v245_v6  ;;  %v373_v23 = vmul.f32 %v2829_v12, %v2825_v7  ;;  %v441_v24 = vmul.f32 %v2831_v13, %v2836_v15  ;;  %v246_v46 = vld [vmem:[%s2820_s28 + $0x10] sm:$0x3]  ;;  %v2886_v58 = vld [vmem:[%s2820_s28 + $0x28] sm:$0x3]  ;;  %v2894_v62 = vld [vmem:[%s2820_s28 + $0x40] sm:$0x3] }
  0x4d   : > { %v509_v26 = vmul.f32 %v2833_v14, %v244_v5  ;;  %v510_v27 = vmul.f32 %v2833_v14, %v245_v6  ;;  %v754_v28 = vmul.f32 %v2838_v16, %v2825_v7  ;;  %v755_v29 = vmul.f32 %v2838_v16, %v2847_v20 }
  0x4e   : > { %v405_v30 = vadd.f32 %v373_v23, %v305_v21  ;;  %v998_v31 = vmul.f32 %v2840_v17, %v2836_v15  ;;  %v999_v32 = vmul.f32 %v2840_v17, %v2856_v25  ;;  %v1242_v33 = vmul.f32 %v2842_v18, %v244_v5 }
  0x4f   : > { %v606_v34 = vrot.slane %v509_v26, 1  ;;  %v607_v35 = vrot.slane %v510_v27, 1  ;;  %v850_v36 = vrot.slane %v754_v28, 1  ;;  %v851_v37 = vrot.slane %v755_v29, 1 }
  0x50   : > { %v473_v38 = vadd.f32 %v441_v24, %v405_v30  ;;  %v1094_v39 = vrot.slane %v998_v31, 1  ;;  %v1095_v40 = vrot.slane %v999_v32, 1  ;;  %v1243_v41 = vmul.f32 %v2842_v18, %v245_v6 }
  0x51   : > { %v608_v42 = vsel %vm605_vm0, %v606_v34, %v607_v35  ;;  %v852_v43 = vsel %vm605_vm0, %v850_v36, %v851_v37  ;;  %v1339_v44 = vrot.slane %v1242_v33, 2  ;;  %v1487_v45 = vmul.f32 %v2844_v19, %v2825_v7  ;;  %v2910_v33 = vld [vmem:[#allocation4] ss:$0 sm:$0xff] }
  0x52   : > { %v718_v47 = vadd.f32 %v608_v42, %v473_v38  ;;  %v1096_v48 = vsel %vm605_vm0, %v1094_v39, %v1095_v40  ;;  %v1340_v49 = vrot.slane %v1243_v41, 2  ;;  %v1488_v50 = vmul.f32 %v2844_v19, %v2847_v20  ;;  %v2913_v36 = vld [vmem:[%s2820_s28 + $0x48] sm:$0xff] }
  0x53   : > { %v1583_v51 = vrot.slane %v1487_v45, 2  ;;  %v2878_v52 = vrot.slane %v300_v10, %v1240_v4  ;;  %v374_v53 = vmul.f32 %v2829_v12, %v2847_v20  ;;  %v442_v54 = vmul.f32 %v2831_v13, %v2856_v25 }
  0x54   : > { %v962_v55 = vadd.f32 %v852_v43, %v718_v47  ;;  %v1341_v56 = vsel %vm1338_vm1, %v1339_v44, %v1340_v49  ;;  %v1584_v57 = vrot.slane %v1488_v50, 2  ;;  %v511_v59 = vmul.f32 %v2833_v14, %v246_v46 }
  0x55   : > { %v1731_v60 = vmul.f32 %v2878_v52, %v2836_v15  ;;  %v1732_v61 = vmul.f32 %v2878_v52, %v2856_v25  ;;  %v406_v63 = vadd.f32 %v374_v53, %v306_v22  ;;  %v756_v0 = vmul.f32 %v2838_v16, %v2886_v58 }
  0x56   : > { %v1206_v1 = vadd.f32 %v1096_v48, %v962_v55  ;;  %v1585_v2 = vsel %vm1338_vm1, %v1583_v51, %v1584_v57  ;;  %v609_v3 = vrot.slane %v511_v59, 1  ;;  %v1000_v4 = vmul.f32 %v2840_v17, %v2894_v62 }
  0x57   : > { %v1827_v5 = vrot.slane %v1731_v60, 2  ;;  %v1828_v6 = vrot.slane %v1732_v61, 2  ;;  %v474_v8 = vadd.f32 %v442_v54, %v406_v63  ;;  %v853_v9 = vrot.slane %v756_v0, 1 }
  0x58   : > { %v1451_v10 = vadd.f32 %v1341_v56, %v1206_v1  ;;  %v610_v21 = vsel %vm605_vm0, %v607_v35, %v609_v3  ;;  %v1097_v23 = vrot.slane %v1000_v4, 1  ;;  %v1244_v22 = vmul.f32 %v2842_v18, %v246_v46 }
  0x59   : > { %v1829_v24 = vsel %vm1338_vm1, %v1827_v5, %v1828_v6  ;;  %v719_v26 = vadd.f32 %v610_v21, %v474_v8  ;;  %v854_v27 = vsel %vm605_vm0, %v851_v37, %v853_v9  ;;  %v1489_v28 = vmul.f32 %v2844_v19, %v2886_v58 }
  0x5a   : > { %v1695_v29 = vadd.f32 %v1585_v2, %v1451_v10  ;;  %v1098_v30 = vsel %vm605_vm0, %v1095_v40, %v1097_v23  ;;  %v1342_v31 = vrot.slane %v1244_v22, 2  ;;  %v1733_v32 = vmul.f32 %v2878_v52, %v2894_v62 }
  0x5b   : > { %v963_v34 = vadd.f32 %v854_v27, %v719_v26  ;;  %v1586_v35 = vrot.slane %v1489_v28, 2  ;;  %v307_v38 = vmul.f32 %v2827_v11, %v2825_v7  ;;  %v375_v37 = vmul.f32 %v2829_v12, %v2836_v15 }
  0x5c   : > { %v1939_v39 = vadd.f32 %v1829_v24, %v1695_v29  ;;  %v1343_v41 = vsel %vm1338_vm1, %v1340_v49, %v1342_v31  ;;  %v1830_v40 = vrot.slane %v1733_v32, 2  ;;  %v443_v42 = vmul.f32 %v2831_v13, %v2913_v36 }
  0x5d   : > { %v1207_v43 = vadd.f32 %v1098_v30, %v963_v34  ;;  %v1587_v44 = vsel %vm1338_vm1, %v1584_v57, %v1586_v35  ;;  %v407_v45 = vadd.f32 %v375_v37, %v307_v38  ;;  %v512_v46 = vmul.f32 %v2833_v14, %v2825_v7  ;;  %v2939_v57 = vld [vmem:[%s2820_s28 + $0x50] sm:$0xff] }
  0x5e   : > { %v2926_v47 = vadd.f32 %v2910_v33, %v1939_v39  ;;  %v1831_v48 = vsel %vm1338_vm1, %v1828_v6, %v1830_v40  ;;  %v2931_v49 = vmul.f32 %v2833_v14, %v2847_v20  ;;  %v757_v50 = vmul.f32 %v2838_v16, %v2836_v15 }
  0x5f   : > { %v1452_v51 = vadd.f32 %v1343_v41, %v1207_v43  ;;  %v475_v53 = vadd.f32 %v443_v42, %v407_v45  ;;  %v611_v54 = vrot.slane %v512_v46, 1  ;;  %v758_v55 = vmul.f32 %v2838_v16, %v2856_v25 }
  0x60   : > { %v2390_v56 = vmul.f32 -1.442695, %v2926_v47  ;;  %v612_v59 = vrot.slane %v2931_v49, 1  ;;  %v855_v60 = vrot.slane %v757_v50, 1  ;;  %v1001_v61 = vmul.f32 %v2840_v17, %v2913_v36 }
  0x61   : > { %v1696_v63 = vadd.f32 %v1587_v44, %v1452_v51  ;;  %v856_v0 = vrot.slane %v758_v55, 1  ;;  %v1002_v1 = vmul.f32 %v2840_v17, %v2939_v57  ;;  %v1245_v2 = vmul.f32 %v2842_v18, %v2825_v7  ;;  %v2974_v44 = vld [vmem:[%s2820_s28 + $0x58] sm:$0x3] }
  0x62   : > { %2473 = vpow2.f32 %v2390_v56  ;;  %v613_v3 = vsel %vm605_vm0, %v611_v54, %v612_v59  ;;  %v1099_v4 = vrot.slane %v1001_v61, 1  ;;  %v1246_v5 = vmul.f32 %v2842_v18, %v2847_v20 }
  0x63   : > { %v1940_v6 = vadd.f32 %v1831_v48, %v1696_v63  ;;  %v720_v8 = vadd.f32 %v613_v3, %v475_v53  ;;  %v857_v9 = vsel %vm605_vm0, %v855_v60, %v856_v0  ;;  %v1100_v10 = vrot.slane %v1002_v1, 1 }
  0x64   : > { %v1344_v21 = vrot.slane %v1245_v2, 2  ;;  %v1345_v23 = vrot.slane %v1246_v5, 2  ;;  %v1490_v22 = vmul.f32 %v2844_v19, %v2836_v15  ;;  %v1491_v7 = vmul.f32 %v2844_v19, %v2856_v25 }
  0x65   : > { %v2957_v24 = vadd.f32 %v2910_v33, %v1940_v6  ;;  %v964_v26 = vadd.f32 %v857_v9, %v720_v8  ;;  %v1101_v27 = vsel %vm605_vm0, %v1099_v4, %v1100_v10  ;;  %v1734_v28 = vmul.f32 %v2878_v52, %v2913_v36 }
  0x66   : > { %v1346_v29 = vsel %vm1338_vm1, %v1344_v21, %v1345_v23  ;;  %v1588_v30 = vrot.slane %v1490_v22, 2  ;;  %v1589_v31 = vrot.slane %v1491_v7, 2  ;;  %v1735_v32 = vmul.f32 %v2878_v52, %v2939_v57  ;;  %v2997_v7 = vld [vmem:[%s2820_s28 + $0x60] sm:$0xff] }
  0x67   : > { %v2391_v34 = vmul.f32 -1.442695, %v2957_v24  ;;  %v1208_v35 = vadd.f32 %v1101_v27, %v964_v26  ;;  %v1832_v38 = vrot.slane %v1734_v28, 2  ;;  %v308_v37 = vmul.f32 %v2827_v11, %v2847_v20 }
  0x68   : > { %v1590_v39 = vsel %vm1338_vm1, %v1588_v30, %v1589_v31  ;;  %v1833_v41 = vrot.slane %v1735_v32, 2  ;;  %v376_v40 = vmul.f32 %v2829_v12, %v2856_v25  ;;  %v444_v42 = vmul.f32 %v2831_v13, %v2939_v57 }
  0x69   : > { %2475 = vpow2.f32 %v2391_v34  ;;  %v1453_v43 = vadd.f32 %v1346_v29, %v1208_v35  ;;  %v514_v45 = vmul.f32 %v2833_v14, %v2886_v58  ;;  %v759_v46 = vmul.f32 %v2838_v16, %v2894_v62 }
  0x6a   : > { %v1834_v20 = vsel %vm1338_vm1, %v1832_v38, %v1833_v41  ;;  %v408_v48 = vadd.f32 %v376_v40, %v308_v37  ;;  %v1003_v49 = vmul.f32 %v2840_v17, %v2974_v44  ;;  %v1247_v50 = vmul.f32 %v2842_v18, %v2886_v58 }
  0x6b   : > { %v1697_v51 = vadd.f32 %v1590_v39, %v1453_v43  ;;  %v614_v53 = vrot.slane %v514_v45, 1  ;;  %v858_v54 = vrot.slane %v759_v46, 1  ;;  %v1492_v55 = vmul.f32 %v2844_v19, %v2894_v62  ;;  %v3024_v43 = vld [vmem:[%s2820_s28 + $0x68] sm:$0xff] }
  0x6c   : > { %v2474_v56 = vpop.eup %2473  ;;  %v476_v60 = vadd.f32 %v444_v42, %v408_v48  ;;  %v1102_v61 = vrot.slane %v1003_v49, 1  ;;  %v1347_v63 = vrot.slane %v1247_v50, 2  ;;  %v1736_v1 = vmul.f32 %v2878_v52, %v2974_v44 }
  0x6d   : > { %v2106_v2 = vadd.f32 1.0, %v2474_v56  ;;  %v1941_v3 = vadd.f32 %v1834_v20, %v1697_v51  ;;  %v615_v4 = vsel %vm605_vm0, %v612_v59, %v614_v53  ;;  %v859_v58 = vsel %vm605_vm0, %v856_v0, %v858_v54 }
  0x6e   : > { %v721_v5 = vadd.f32 %v615_v4, %v476_v60  ;;  %v1103_v6 = vsel %vm605_vm0, %v1100_v10, %v1102_v61  ;;  %v1348_v8 = vsel %vm1338_vm1, %v1345_v23, %v1347_v63  ;;  %v1591_v9 = vrot.slane %v1492_v55, 2 }
  0x6f   : > { %2477 = vrcp.f32 %v2106_v2  ;;  %v2994_v21 = vadd.f32 %v2910_v33, %v1941_v3  ;;  %v1835_v22 = vrot.slane %v1736_v1, 2  ;;  %v309_v26 = vmul.f32 %v2827_v11, %v2836_v15 }
  0x70   : > { %v965_v27 = vadd.f32 %v859_v58, %v721_v5  ;;  %v1592_v59 = vsel %vm1338_vm1, %v1589_v31, %v1591_v9  ;;  %v377_v0 = vmul.f32 %v2829_v12, %v2913_v36  ;;  %v445_v10 = vmul.f32 %v2831_v13, %v2997_v7 }
  0x71   : > { %v2392_v23 = vmul.f32 -1.442695, %v2994_v21  ;;  %v1836_v28 = vsel %vm1338_vm1, %v1833_v41, %v1835_v22  ;;  %v515_v29 = vmul.f32 %v2833_v14, %v2836_v15  ;;  %v3012_v30 = vmul.f32 %v2833_v14, %v2856_v25 }
  0x72   : > { %v1209_v31 = vadd.f32 %v1103_v6, %v965_v27  ;;  %v409_v32 = vadd.f32 %v377_v0, %v309_v26  ;;  %v760_v34 = vmul.f32 %v2838_v16, %v2913_v36  ;;  %v3018_v35 = vmul.f32 %v2838_v16, %v2939_v57 }
  0x73   : > { %v2476_v38 = vpop.eup %2475  ;;  %2479 = vpow2.f32 %v2392_v23  ;;  %v616_v37 = vrot.slane %v515_v29, 1  ;;  %v617_v39 = vrot.slane %v3012_v30, 1  ;;  %v1004_v41 = vmul.f32 %v2840_v17, %v2997_v7 }
  0x74   : > { %v2107_v40 = vadd.f32 1.0, %v2476_v38  ;;  %v1454_v42 = vadd.f32 %v1348_v8, %v1209_v31  ;;  %v477_v45 = vadd.f32 %v445_v10, %v409_v32  ;;  %v860_v46 = vrot.slane %v760_v34, 1 }
  0x75   : > { %v618_v20 = vsel %vm605_vm0, %v616_v37, %v617_v39  ;;  %v861_v48 = vrot.slane %v3018_v35, 1  ;;  %v3032_v49 = vmul.f32 %v2840_v17, %v3024_v43  ;;  %v1104_v50 = vrot.slane %v1004_v41, 1  ;;  %v3078_v41 = vld [vmem:[%s2820_s28 + $0x70] sm:$0x3] }
  0x76   : > { %2481 = vrcp.f32 %v2107_v40  ;;  %v1698_v51 = vadd.f32 %v1592_v59, %v1454_v42  ;;  %v722_v53 = vadd.f32 %v618_v20, %v477_v45  ;;  %v1248_v54 = vmul.f32 %v2842_v18, %v2836_v15 }
  0x77   : > { %v862_v55 = vsel %vm605_vm0, %v860_v46, %v861_v48  ;;  %v1105_v56 = vrot.slane %v3032_v49, 1  ;;  %v1249_v60 = vmul.f32 %v2842_v18, %v2856_v25  ;;  %v1493_v61 = vmul.f32 %v2844_v19, %v2913_v36 }
  0x78   : > { %v1942_v63 = vadd.f32 %v1836_v28, %v1698_v51  ;;  %v966_v1 = vadd.f32 %v862_v55, %v722_v53  ;;  %v1349_v2 = vrot.slane %v1248_v54, 2  ;;  %v3045_v3 = vmul.f32 %v2844_v19, %v2939_v57 }
  0x79   : > { %v2478_v4 = vpop.eup %2477  ;;  %v1106_v15 = vsel %vm605_vm0, %v1104_v50, %v1105_v56  ;;  %v1350_v58 = vrot.slane %v1249_v60, 2  ;;  %v1593_v5 = vrot.slane %v1493_v61, 2  ;;  %v1737_v6 = vmul.f32 %v2878_v52, %v2997_v7 }
  0x7a   : > { %v2202_v8 = vmul.f32 %v2478_v4, %v2926_v47  ;;  %v3057_v9 = vadd.f32 %v2910_v33, %v1942_v63  ;;  %v1210_v22 = vadd.f32 %v1106_v15, %v966_v1  ;;  %v1594_v26 = vrot.slane %v3045_v3, 2 }
  0x7b   : > { %v1351_v27 = vsel %vm1338_vm1, %v1349_v2, %v1350_v58  ;;  %v1738_v59 = vmul.f32 %v2878_v52, %v3024_v43  ;;  %v1837_v0 = vrot.slane %v1737_v6, 2  ;;  %v310_v10 = vmul.f32 %v2827_v11, %v2856_v25  ;;  %v3107_v6 = vld [vmem:[%s2820_s28 + $0x78] sm:$0xff] }
  0x7c   : > { %2235 = vst.msk [vmem:[%s3050_s30] sm:$0xff] %vm2234_vm2, %v2202_v8  ;;  %v2393_v47 = vmul.f32 -1.442695, %v3057_v9  ;;  %v1455_v23 = vadd.f32 %v1351_v27, %v1210_v22  ;;  %v1595_v28 = vsel %vm1338_vm1, %v1593_v5, %v1594_v26  ;;  %v378_v29 = vmul.f32 %v2829_v12, %v2939_v57 }
  0x7d   : > { %v2480_v31 = vpop.eup %2479  ;;  %v1838_v32 = vrot.slane %v1738_v59, 2  ;;  %v446_v34 = vmul.f32 %v2831_v13, %v3024_v43  ;;  %v517_v35 = vmul.f32 %v2833_v14, %v2894_v62  ;;  %v762_v25 = vmul.f32 %v2838_v16, %v2974_v44 }
  0x7e   : > { %v2108_v38 = vadd.f32 1.0, %v2480_v31  ;;  %2483 = vpow2.f32 %v2393_v47  ;;  %v1699_v37 = vadd.f32 %v1595_v28, %v1455_v23  ;;  %v410_v40 = vadd.f32 %v378_v29, %v310_v10 }
  0x7f   : > { %v1839_v42 = vsel %vm1338_vm1, %v1837_v0, %v1838_v32  ;;  %v619_v45 = vrot.slane %v517_v35, 1  ;;  %v863_v46 = vrot.slane %v762_v25, 1  ;;  %v1006_v20 = vmul.f32 %v2840_v17, %v3078_v41 }
  0x80   : > { %v2482_v49 = vpop.eup %2481  ;;  %2485 = vrcp.f32 %v2108_v38  ;;  %v1943_v50 = vadd.f32 %v1839_v42, %v1699_v37  ;;  %v478_v51 = vadd.f32 %v446_v34, %v410_v40  ;;  %v1250_v53 = vmul.f32 %v2842_v18, %v2894_v62  ;;  %v3122_v34 = vld [vmem:[%s2820_s28 + $0x80] sm:$0xff] }
  0x81   : > { %v2203_v54 = vmul.f32 %v2482_v49, %v2957_v24  ;;  %v620_v55 = vsel %vm605_vm0, %v617_v39, %v619_v45  ;;  %v864_v60 = vsel %vm605_vm0, %v861_v48, %v863_v46  ;;  %v1107_v61 = vrot.slane %v1006_v20, 1 }
  0x82   : > { %v3091_v63 = vadd.f32 %v2910_v33, %v1943_v50  ;;  %v723_v1 = vadd.f32 %v620_v55, %v478_v51  ;;  %v1352_v2 = vrot.slane %v1250_v53, 2  ;;  %v1495_v3 = vmul.f32 %v2844_v19, %v2974_v44 }
  0x83   : > { %2236 = vst.msk [vmem:[%s3050_s30 + $0x8] sm:$0xff] %vm2234_vm2, %v2203_v54  ;;  %v1108_v62 = vsel %vm605_vm0, %v1105_v56, %v1107_v61  ;;  %v1739_v24 = vmul.f32 %v2878_v52, %v3078_v41  ;;  %v311_v30 = vmul.f32 %v2827_v11, %v2913_v36  ;;  %v379_v39 = vmul.f32 %v2829_v12, %v2997_v7 }
  0x84   : > { %v2394_v48 = vmul.f32 -1.442695, %v3091_v63  ;;  %v967_v4 = vadd.f32 %v864_v60, %v723_v1  ;;  %v1353_v15 = vsel %vm1338_vm1, %v1350_v58, %v1352_v2  ;;  %v1596_v5 = vrot.slane %v1495_v3, 2 }
  0x85   : > { %v1840_v8 = vrot.slane %v1739_v24, 2  ;;  %v411_v56 = vadd.f32 %v379_v39, %v311_v30  ;;  %v447_v22 = vmul.f32 %v2831_v13, %v3107_v6  ;;  %v518_v27 = vmul.f32 %v2833_v14, %v2913_v36 }
  0x86   : > { %2487 = vpow2.f32 %v2394_v48  ;;  %v1211_v59 = vadd.f32 %v1108_v62, %v967_v4  ;;  %v1597_v0 = vsel %vm1338_vm1, %v1594_v26, %v1596_v5  ;;  %v3116_v10 = vmul.f32 %v2833_v14, %v2939_v57 }
  0x87   : > { %v1841_v58 = vsel %vm1338_vm1, %v1838_v32, %v1840_v8  ;;  %v479_v47 = vadd.f32 %v447_v22, %v411_v56  ;;  %v621_v23 = vrot.slane %v518_v27, 1  ;;  %v763_v28 = vmul.f32 %v2838_v16, %v2997_v7 }
  0x88   : > { %v2484_v29 = vpop.eup %2483  ;;  %v1456_v31 = vadd.f32 %v1353_v15, %v1211_v59  ;;  %v622_v35 = vrot.slane %v3116_v10, 1  ;;  %v3127_v26 = vmul.f32 %v2838_v16, %v3024_v43  ;;  %v1007_v25 = vmul.f32 %v2840_v17, %v3107_v6 }
  0x89   : > { %v2109_v38 = vadd.f32 1.0, %v2484_v29  ;;  %v865_v32 = vrot.slane %v763_v28, 1  ;;  %v3133_v37 = vmul.f32 %v2840_v17, %v3122_v34  ;;  %v1251_v40 = vmul.f32 %v2842_v18, %v2913_v36  ;;  %v3171_v29 = vld [vmem:[%s2820_s28 + $0x88] sm:$0x3] }
  0x8a   : > { %v2486_v42 = vpop.eup %2485  ;;  %v1700_v45 = vadd.f32 %v1597_v0, %v1456_v31  ;;  %v623_v46 = vsel %vm605_vm0, %v621_v23, %v622_v35  ;;  %v866_v20 = vrot.slane %v3127_v26, 1  ;;  %v1109_v49 = vrot.slane %v1007_v25, 1 }
  0x8b   : > { %v2204_v50 = vmul.f32 %v2486_v42, %v2994_v21  ;;  %2489 = vrcp.f32 %v2109_v38  ;;  %v724_v51 = vadd.f32 %v623_v46, %v479_v47  ;;  %v1110_v53 = vrot.slane %v3133_v37, 1 }
  0x8c   : > { %v1944_v54 = vadd.f32 %v1841_v58, %v1700_v45  ;;  %v867_v55 = vsel %vm605_vm0, %v865_v32, %v866_v20  ;;  %v1252_v60 = vmul.f32 %v2842_v18, %v2939_v57  ;;  %v1354_v36 = vrot.slane %v1251_v40, 2 }
  0x8d   : > { %2237 = vst.msk [vmem:[%s3050_s30 + $0x10] sm:$0xff] %vm2234_vm2, %v2204_v50  ;;  %v968_v61 = vadd.f32 %v867_v55, %v724_v51  ;;  %v1111_v1 = vsel %vm605_vm0, %v1109_v49, %v1110_v53  ;;  %v1496_v2 = vmul.f32 %v2844_v19, %v2997_v7  ;;  %v1497_v21 = vmul.f32 %v2844_v19, %v3024_v43 }
  0x8e   : > { %v3152_v3 = vadd.f32 %v2910_v33, %v1944_v54  ;;  %v1355_v62 = vrot.slane %v1252_v60, 2  ;;  %v1740_v24 = vmul.f32 %v2878_v52, %v3107_v6  ;;  %v1741_v30 = vmul.f32 %v2878_v52, %v3122_v34 }
  0x8f   : > { %v1212_v39 = vadd.f32 %v1111_v1, %v968_v61  ;;  %v1598_v48 = vrot.slane %v1496_v2, 2  ;;  %v1599_v4 = vrot.slane %v1497_v21, 2  ;;  %v312_v15 = vmul.f32 %v2827_v11, %v2939_v57 }
  0x90   : > { %v2488_v5 = vpop.eup %2487  ;;  %v2395_v8 = vmul.f32 -1.442695, %v3152_v3  ;;  %v1356_v56 = vsel %vm1338_vm1, %v1354_v36, %v1355_v62  ;;  %v1842_v22 = vrot.slane %v1740_v24, 2  ;;  %v1843_v27 = vrot.slane %v1741_v30, 2 }
  0x91   : > { %v2110_v59 = vadd.f32 1.0, %v2488_v5  ;;  %v1457_v0 = vadd.f32 %v1356_v56, %v1212_v39  ;;  %v1600_v10 = vsel %vm1338_vm1, %v1598_v48, %v1599_v4  ;;  %v380_v58 = vmul.f32 %v2829_v12, %v3024_v43  ;;  %v3198_v39 = vld [vmem:[%s2820_s28 + $0x90] sm:$0xff] }
  0x92   : > { %2491 = vpow2.f32 %v2395_v8  ;;  %v1844_v47 = vsel %vm1338_vm1, %v1842_v22, %v1843_v27  ;;  %v448_v57 = vmul.f32 %v2831_v13, %v3122_v34  ;;  %v520_v23 = vmul.f32 %v2833_v14, %v2974_v44 }
  0x93   : > { %2493 = vrcp.f32 %v2110_v59  ;;  %v1701_v28 = vadd.f32 %v1600_v10, %v1457_v0  ;;  %v412_v31 = vadd.f32 %v380_v58, %v312_v15  ;;  %v765_v26 = vmul.f32 %v2838_v16, %v3078_v41 }
  0x94   : > { %v624_v25 = vrot.slane %v520_v23, 1  ;;  %v1009_v38 = vmul.f32 %v2840_v17, %v3171_v29  ;;  %v1253_v32 = vmul.f32 %v2842_v18, %v2974_v44  ;;  %v1498_v37 = vmul.f32 %v2844_v19, %v3078_v41 }
  0x95   : > { %v2490_v40 = vpop.eup %2489  ;;  %v1945_v42 = vadd.f32 %v1844_v47, %v1701_v28  ;;  %v480_v45 = vadd.f32 %v448_v57, %v412_v31  ;;  %v868_v46 = vrot.slane %v765_v26, 1  ;;  %v1742_v49 = vmul.f32 %v2878_v52, %v3171_v29  ;;  %v3221_v57 = vld [vmem:[%s2820_s28 + $0x98] sm:$0xff] }
  0x96   : > { %v2205_v50 = vmul.f32 %v2490_v40, %v3057_v9  ;;  %v625_v51 = vsel %vm605_vm0, %v622_v35, %v624_v25  ;;  %v1112_v54 = vrot.slane %v1009_v38, 1  ;;  %v1357_v55 = vrot.slane %v1253_v32, 2 }
  0x97   : > { %v3186_v60 = vadd.f32 %v2910_v33, %v1945_v42  ;;  %v725_v44 = vadd.f32 %v625_v51, %v480_v45  ;;  %v869_v36 = vsel %vm605_vm0, %v866_v20, %v868_v46  ;;  %v1601_v61 = vrot.slane %v1498_v37, 2 }
  0x98   : > { %2238 = vst.msk [vmem:[%s3050_s30 + $0x18] sm:$0xff] %vm2234_vm2, %v2205_v50  ;;  %v1113_v1 = vsel %vm605_vm0, %v1110_v53, %v1112_v54  ;;  %v1358_v2 = vsel %vm1338_vm1, %v1355_v62, %v1357_v55  ;;  %v1845_v21 = vrot.slane %v1742_v49, 2  ;;  %v313_v9 = vmul.f32 %v2827_v11, %v2997_v7 }
  0x99   : > { %v2396_v35 = vmul.f32 -1.442695, %v3186_v60  ;;  %v969_v24 = vadd.f32 %v869_v36, %v725_v44  ;;  %v1602_v30 = vsel %vm1338_vm1, %v1599_v4, %v1601_v61  ;;  %v381_v20 = vmul.f32 %v2829_v12, %v3107_v6 }
  0x9a   : > { %v1846_v48 = vsel %vm1338_vm1, %v1843_v27, %v1845_v21  ;;  %v449_v53 = vmul.f32 %v2831_v13, %v3198_v39  ;;  %v521_v62 = vmul.f32 %v2833_v14, %v2997_v7  ;;  %v3209_v15 = vmul.f32 %v2833_v14, %v3024_v43 }
  0x9b   : > { %2495 = vpow2.f32 %v2396_v35  ;;  %v1213_v4 = vadd.f32 %v1113_v1, %v969_v24  ;;  %v413_v5 = vadd.f32 %v381_v20, %v313_v9  ;;  %v766_v8 = vmul.f32 %v2838_v16, %v3107_v6 }
  0x9c   : > { %v2492_v56 = vpop.eup %2491  ;;  %v626_v22 = vrot.slane %v521_v62, 1  ;;  %v627_v27 = vrot.slane %v3209_v15, 1  ;;  %v3216_v59 = vmul.f32 %v2838_v16, %v3122_v34  ;;  %v1010_v0 = vmul.f32 %v2840_v17, %v3198_v39 }
  0x9d   : > { %v2494_v10 = vpop.eup %2493  ;;  %v2111_v58 = vadd.f32 1.0, %v2492_v56  ;;  %v1458_v47 = vadd.f32 %v1358_v2, %v1213_v4  ;;  %v481_v23 = vadd.f32 %v449_v53, %v413_v5  ;;  %v870_v28 = vrot.slane %v766_v8, 1 }
  0x9e   : > { %v2206_v31 = vmul.f32 %v2494_v10, %v3091_v63  ;;  %v628_v26 = vsel %vm605_vm0, %v626_v22, %v627_v27  ;;  %v871_v25 = vrot.slane %v3216_v59, 1  ;;  %v1011_v38 = vmul.f32 %v2840_v17, %v3221_v57 }
  0x9f   : > { %2497 = vrcp.f32 %v2111_v58  ;;  %v1702_v32 = vadd.f32 %v1602_v30, %v1458_v47  ;;  %v726_v37 = vadd.f32 %v628_v26, %v481_v23  ;;  %v1114_v40 = vrot.slane %v1010_v0, 1 }
  0xa0   : > { %2239 = vst.msk [vmem:[%s3050_s30 + $0x20] sm:$0xff] %vm2234_vm2, %v2206_v31  ;;  %v872_v42 = vsel %vm605_vm0, %v870_v28, %v871_v25  ;;  %v1115_v45 = vrot.slane %v1011_v38, 1  ;;  %v1254_v63 = vmul.f32 %v2842_v18, %v2997_v7  ;;  %v1255_v46 = vmul.f32 %v2842_v18, %v3024_v43 }
  0xa1   : > { %v1946_v49 = vadd.f32 %v1846_v48, %v1702_v32  ;;  %v970_v50 = vadd.f32 %v872_v42, %v726_v37  ;;  %v1499_v51 = vmul.f32 %v2844_v19, %v3107_v6  ;;  %v1500_v54 = vmul.f32 %v2844_v19, %v3122_v34 }
  0xa2   : > { %v1116_v55 = vsel %vm605_vm0, %v1114_v40, %v1115_v45  ;;  %v1359_v44 = vrot.slane %v1254_v63, 2  ;;  %v1360_v36 = vrot.slane %v1255_v46, 2  ;;  %v1743_v61 = vmul.f32 %v2878_v52, %v3198_v39 }
  0xa3   : > { %v3245_v7 = vadd.f32 %v2910_v33, %v1946_v49  ;;  %v1214_v1 = vadd.f32 %v1116_v55, %v970_v50  ;;  %v1603_v2 = vrot.slane %v1499_v51, 2  ;;  %v1604_v21 = vrot.slane %v1500_v54, 2 }
  0xa4   : > { %v1361_v9 = vsel %vm1338_vm1, %v1359_v44, %v1360_v36  ;;  %v1744_v35 = vmul.f32 %v2878_v52, %v3221_v57  ;;  %v1847_v24 = vrot.slane %v1743_v61, 2  ;;  %v314_v30 = vmul.f32 %v2827_v11, %v3024_v43  ;;  %v3261_v43 = vld [vmem:[%s2820_s28 + $0xa0] sm:$0x3]  ;;  %v3290_v61 = vld [vmem:[%s2820_s28 + $0xa8] sm:$0xff] }
  0xa5   : > { %v2496_v20 = vpop.eup %2495  ;;  %v2397_v48 = vmul.f32 -1.442695, %v3245_v7  ;;  %v1459_v53 = vadd.f32 %v1361_v9, %v1214_v1  ;;  %v1605_v62 = vsel %vm1338_vm1, %v1603_v2, %v1604_v21  ;;  %v382_v4 = vmul.f32 %v2829_v12, %v3122_v34 }
  0xa6   : > { %v2112_v5 = vadd.f32 1.0, %v2496_v20  ;;  %v1848_v8 = vrot.slane %v1744_v35, 2  ;;  %v450_v56 = vmul.f32 %v2831_v13, %v3221_v57  ;;  %v523_v22 = vmul.f32 %v2833_v14, %v3078_v41 }
  0xa7   : > { %2499 = vpow2.f32 %v2397_v48  ;;  %v1703_v59 = vadd.f32 %v1605_v62, %v1459_v53  ;;  %v414_v0 = vadd.f32 %v382_v4, %v314_v30  ;;  %v768_v10 = vmul.f32 %v2838_v16, %v3171_v29  ;;  %v3311_v4 = vld [vmem:[%s2820_s28 + $0xb0] sm:$0xff] }
  0xa8   : > { %2501 = vrcp.f32 %v2112_v5  ;;  %v1849_v58 = vsel %vm1338_vm1, %v1847_v24, %v1848_v8  ;;  %v629_v47 = vrot.slane %v523_v22, 1  ;;  %v1012_v23 = vmul.f32 %v2840_v17, %v3261_v43 }
  0xa9   : > { %v2498_v28 = vpop.eup %2497  ;;  %v1947_v31 = vadd.f32 %v1849_v58, %v1703_v59  ;;  %v482_v26 = vadd.f32 %v450_v56, %v414_v0  ;;  %v873_v38 = vrot.slane %v768_v10, 1  ;;  %v1256_v32 = vmul.f32 %v2842_v18, %v3078_v41 }
  0xaa   : > { %v2207_v37 = vmul.f32 %v2498_v28, %v3152_v3  ;;  %v630_v40 = vsel %vm605_vm0, %v627_v27, %v629_v47  ;;  %v1117_v42 = vrot.slane %v1012_v23, 1  ;;  %v1501_v63 = vmul.f32 %v2844_v19, %v3171_v29 }
  0xab   : > { %v3277_v46 = vadd.f32 %v2910_v33, %v1947_v31  ;;  %v727_v49 = vadd.f32 %v630_v40, %v482_v26  ;;  %v874_v50 = vsel %vm605_vm0, %v871_v25, %v873_v38  ;;  %v1362_v51 = vrot.slane %v1256_v32, 2 }
  0xac   : > { %2240 = vst.msk [vmem:[%s3050_s30 + $0x28] sm:$0xff] %vm2234_vm2, %v2207_v37  ;;  %v1118_v41 = vsel %vm605_vm0, %v1115_v45, %v1117_v42  ;;  %v1606_v3 = vrot.slane %v1501_v63, 2  ;;  %v1745_v15 = vmul.f32 %v2878_v52, %v3261_v43  ;;  %v315_v27 = vmul.f32 %v2827_v11, %v3107_v6 }
  0xad   : > { %v2398_v54 = vmul.f32 -1.442695, %v3277_v46  ;;  %v971_v55 = vadd.f32 %v874_v50, %v727_v49  ;;  %v1363_v44 = vsel %vm1338_vm1, %v1360_v36, %v1362_v51  ;;  %v383_v25 = vmul.f32 %v2829_v12, %v3198_v39 }
  0xae   : > { %v1607_v45 = vsel %vm1338_vm1, %v1604_v21, %v1606_v3  ;;  %v1850_v1 = vrot.slane %v1745_v15, 2  ;;  %v451_v2 = vmul.f32 %v2831_v13, %v3290_v61  ;;  %v524_v9 = vmul.f32 %v2833_v14, %v3107_v6 }
  0xaf   : > { %2503 = vpow2.f32 %v2398_v54  ;;  %v1215_v35 = vadd.f32 %v1118_v41, %v971_v55  ;;  %v415_v24 = vadd.f32 %v383_v25, %v315_v27  ;;  %v3301_v36 = vmul.f32 %v2833_v14, %v3122_v34 }
  0xb0   : > { %v1851_v30 = vsel %vm1338_vm1, %v1848_v8, %v1850_v1  ;;  %v631_v20 = vrot.slane %v524_v9, 1  ;;  %v769_v21 = vmul.f32 %v2838_v16, %v3198_v39  ;;  %v3308_v48 = vmul.f32 %v2838_v16, %v3221_v57 }
  0xb1   : > { %v2500_v53 = vpop.eup %2499  ;;  %v1460_v62 = vadd.f32 %v1363_v44, %v1215_v35  ;;  %v483_v5 = vadd.f32 %v451_v2, %v415_v24  ;;  %v632_v56 = vrot.slane %v3301_v36, 1  ;;  %v1013_v22 = vmul.f32 %v2840_v17, %v3290_v61 }
  0xb2   : > { %v2502_v8 = vpop.eup %2501  ;;  %v2113_v59 = vadd.f32 1.0, %v2500_v53  ;;  %v875_v0 = vrot.slane %v769_v21, 1  ;;  %v876_v10 = vrot.slane %v3308_v48, 1  ;;  %v3319_v58 = vmul.f32 %v2840_v17, %v3311_v4 }
  0xb3   : > { %v2208_v47 = vmul.f32 %v2502_v8, %v3186_v60  ;;  %v1704_v23 = vadd.f32 %v1607_v45, %v1460_v62  ;;  %v633_v28 = vsel %vm605_vm0, %v631_v20, %v632_v56  ;;  %v1119_v31 = vrot.slane %v1013_v22, 1  ;;  %v3356_v62 = vld [vmem:[%s2820_s28 + $0xb8] sm:$0x3] }
  0xb4   : > { %2505 = vrcp.f32 %v2113_v59  ;;  %v728_v26 = vadd.f32 %v633_v28, %v483_v5  ;;  %v877_v38 = vsel %vm605_vm0, %v875_v0, %v876_v10  ;;  %v1120_v32 = vrot.slane %v3319_v58, 1 }
  0xb5   : > { %2241 = vst.msk [vmem:[%s3050_s30 + $0x30] sm:$0xff] %vm2234_vm2, %v2208_v47  ;;  %v1948_v37 = vadd.f32 %v1851_v30, %v1704_v23  ;;  %v1257_v40 = vmul.f32 %v2842_v18, %v3107_v6  ;;  %v1258_v42 = vmul.f32 %v2842_v18, %v3122_v34  ;;  %v1502_v60 = vmul.f32 %v2844_v19, %v3198_v39 }
  0xb6   : > { %v972_v63 = vadd.f32 %v877_v38, %v728_v26  ;;  %v1121_v49 = vsel %vm605_vm0, %v1119_v31, %v1120_v32  ;;  %v1503_v50 = vmul.f32 %v2844_v19, %v3221_v57  ;;  %v1746_v51 = vmul.f32 %v2878_v52, %v3290_v61 }
  0xb7   : > { %v3339_v41 = vadd.f32 %v2910_v33, %v1948_v37  ;;  %v1364_v3 = vrot.slane %v1257_v40, 2  ;;  %v1365_v6 = vrot.slane %v1258_v42, 2  ;;  %v1608_v15 = vrot.slane %v1502_v60, 2 }
  0xb8   : > { %v1216_v27 = vadd.f32 %v1121_v49, %v972_v63  ;;  %v1609_v54 = vrot.slane %v1503_v50, 2  ;;  %v1747_v55 = vmul.f32 %v2878_v52, %v3311_v4  ;;  %v1852_v44 = vrot.slane %v1746_v51, 2 }
  0xb9   : > { %v2504_v25 = vpop.eup %2503  ;;  %v2399_v45 = vmul.f32 -1.442695, %v3339_v41  ;;  %v1366_v1 = vsel %vm1338_vm1, %v1364_v3, %v1365_v6  ;;  %v316_v2 = vmul.f32 %v2827_v11, %v3122_v34  ;;  %v384_v9 = vmul.f32 %v2829_v12, %v3221_v57 }
  0xba   : > { %v2114_v35 = vadd.f32 1.0, %v2504_v25  ;;  %v1461_v24 = vadd.f32 %v1366_v1, %v1216_v27  ;;  %v1610_v36 = vsel %vm1338_vm1, %v1608_v15, %v1609_v54  ;;  %v1853_v30 = vrot.slane %v1747_v55, 2  ;;  %v3383_v27 = vld [vmem:[%s2820_s28 + $0xc0] sm:$0xff] }
  0xbb   : > { %2507 = vpow2.f32 %v2399_v45  ;;  %v416_v20 = vadd.f32 %v384_v9, %v316_v2  ;;  %v452_v21 = vmul.f32 %v2831_v13, %v3311_v4  ;;  %v526_v48 = vmul.f32 %v2833_v14, %v3171_v29 }
  0xbc   : > { %2509 = vrcp.f32 %v2114_v35  ;;  %v1705_v53 = vadd.f32 %v1610_v36, %v1461_v24  ;;  %v1854_v34 = vsel %vm1338_vm1, %v1852_v44, %v1853_v30  ;;  %v771_v5 = vmul.f32 %v2838_v16, %v3261_v43 }
  0xbd   : > { %v484_v22 = vadd.f32 %v452_v21, %v416_v20  ;;  %v634_v8 = vrot.slane %v526_v48, 1  ;;  %v1015_v59 = vmul.f32 %v2840_v17, %v3356_v62  ;;  %v1259_v0 = vmul.f32 %v2842_v18, %v3171_v29  ;;  %v3406_v21 = vld [vmem:[%s2820_s28 + $0xc8] sm:$0xff] }
  0xbe   : > { %v2506_v58 = vpop.eup %2505  ;;  %v1949_v47 = vadd.f32 %v1854_v34, %v1705_v53  ;;  %v878_v23 = vrot.slane %v771_v5, 1  ;;  %v1504_v28 = vmul.f32 %v2844_v19, %v3261_v43  ;;  %v1748_v31 = vmul.f32 %v2878_v52, %v3356_v62 }
  0xbf   : > { %v2209_v26 = vmul.f32 %v2506_v58, %v3245_v7  ;;  %v635_v38 = vsel %vm605_vm0, %v632_v56, %v634_v8  ;;  %v1122_v37 = vrot.slane %v1015_v59, 1  ;;  %v1367_v40 = vrot.slane %v1259_v0, 2 }
  0xc0   : > { %v3371_v42 = vadd.f32 %v2910_v33, %v1949_v47  ;;  %v729_v29 = vadd.f32 %v635_v38, %v484_v22  ;;  %v879_v60 = vsel %vm605_vm0, %v876_v10, %v878_v23  ;;  %v1611_v63 = vrot.slane %v1504_v28, 2 }
  0xc1   : > { %2242 = vst.msk [vmem:[%s3050_s30 + $0x38] sm:$0xff] %vm2234_vm2, %v2209_v26  ;;  %v1123_v49 = vsel %vm605_vm0, %v1120_v32, %v1122_v37  ;;  %v1368_v50 = vsel %vm1338_vm1, %v1365_v6, %v1367_v40  ;;  %v1855_v51 = vrot.slane %v1748_v31, 2  ;;  %v317_v7 = vmul.f32 %v2827_v11, %v3198_v39 }
  0xc2   : > { %v2400_v56 = vmul.f32 -1.442695, %v3371_v42  ;;  %v973_v3 = vadd.f32 %v879_v60, %v729_v29  ;;  %v1612_v15 = vsel %vm1338_vm1, %v1609_v54, %v1611_v63  ;;  %v385_v10 = vmul.f32 %v2829_v12, %v3290_v61 }
  0xc3   : > { %v1856_v55 = vsel %vm1338_vm1, %v1853_v30, %v1855_v51  ;;  %v453_v32 = vmul.f32 %v2831_v13, %v3383_v27  ;;  %v527_v6 = vmul.f32 %v2833_v14, %v3198_v39  ;;  %v3394_v44 = vmul.f32 %v2833_v14, %v3221_v57 }
  0xc4   : > { %2511 = vpow2.f32 %v2400_v56  ;;  %v1217_v54 = vadd.f32 %v1123_v49, %v973_v3  ;;  %v417_v25 = vadd.f32 %v385_v10, %v317_v7  ;;  %v772_v45 = vmul.f32 %v2838_v16, %v3290_v61 }
  0xc5   : > { %v2508_v1 = vpop.eup %2507  ;;  %v636_v2 = vrot.slane %v527_v6, 1  ;;  %v637_v9 = vrot.slane %v3394_v44, 1  ;;  %v3401_v35 = vmul.f32 %v2838_v16, %v3311_v4  ;;  %v1016_v24 = vmul.f32 %v2840_v17, %v3383_v27 }
  0xc6   : > { %v2510_v36 = vpop.eup %2509  ;;  %v2115_v30 = vadd.f32 1.0, %v2508_v1  ;;  %v1462_v20 = vadd.f32 %v1368_v50, %v1217_v54  ;;  %v485_v48 = vadd.f32 %v453_v32, %v417_v25  ;;  %v880_v53 = vrot.slane %v772_v45, 1 }
  0xc7   : > { %v2210_v34 = vmul.f32 %v2510_v36, %v3277_v46  ;;  %v638_v5 = vsel %vm605_vm0, %v636_v2, %v637_v9  ;;  %v881_v22 = vrot.slane %v3401_v35, 1  ;;  %v1017_v8 = vmul.f32 %v2840_v17, %v3406_v21 }
  0xc8   : > { %2513 = vrcp.f32 %v2115_v30  ;;  %v1706_v59 = vadd.f32 %v1612_v15, %v1462_v20  ;;  %v730_v0 = vadd.f32 %v638_v5, %v485_v48  ;;  %v1124_v58 = vrot.slane %v1016_v24, 1 }
  0xc9   : > { %2243 = vst.msk [vmem:[%s3050_s30 + $0x40] sm:$0xff] %vm2234_vm2, %v2210_v34  ;;  %v882_v47 = vsel %vm605_vm0, %v880_v53, %v881_v22  ;;  %v1125_v23 = vrot.slane %v1017_v8, 1  ;;  %v1260_v46 = vmul.f32 %v2842_v18, %v3198_v39  ;;  %v1261_v28 = vmul.f32 %v2842_v18, %v3221_v57 }
  0xca   : > { %v1950_v31 = vadd.f32 %v1856_v55, %v1706_v59  ;;  %v974_v26 = vadd.f32 %v882_v47, %v730_v0  ;;  %v1505_v38 = vmul.f32 %v2844_v19, %v3290_v61  ;;  %v1506_v37 = vmul.f32 %v2844_v19, %v3311_v4 }
  0xcb   : > { %v1126_v40 = vsel %vm605_vm0, %v1124_v58, %v1125_v23  ;;  %v1369_v29 = vrot.slane %v1260_v46, 2  ;;  %v1370_v60 = vrot.slane %v1261_v28, 2  ;;  %v1749_v63 = vmul.f32 %v2878_v52, %v3383_v27  ;;  %v3461_v46 = vld [vmem:[#allocation4] ss:$0 sm:$0xff] }
  0xcc   : > { %v3430_v39 = vadd.f32 %v2910_v33, %v1950_v31  ;;  %v1218_v49 = vadd.f32 %v1126_v40, %v974_v26  ;;  %v1613_v50 = vrot.slane %v1505_v38, 2  ;;  %v1614_v51 = vrot.slane %v1506_v37, 2 }
  0xcd   : > { %v1371_v7 = vsel %vm1338_vm1, %v1369_v29, %v1370_v60  ;;  %v1750_v56 = vmul.f32 %v2878_v52, %v3406_v21  ;;  %v1857_v3 = vrot.slane %v1749_v63, 2  ;;  %v318_v15 = vmul.f32 %v2827_v11, %v3221_v57  ;;  %v3446_v57 = vld [vmem:[%s2820_s28 + $0xd0] sm:$0x3]  ;;  %v3477_v63 = vld [vmem:[%s2820_s28 + $0xd8] sm:$0xff] }
  0xce   : > { %v2512_v10 = vpop.eup %2511  ;;  %v2401_v55 = vmul.f32 -1.442695, %v3430_v39  ;;  %v1463_v32 = vadd.f32 %v1371_v7, %v1218_v49  ;;  %v1615_v33 = vsel %vm1338_vm1, %v1613_v50, %v1614_v51  ;;  %v386_v6 = vmul.f32 %v2829_v12, %v3311_v4 }
  0xcf   : > { %v2116_v54 = vadd.f32 1.0, %v2512_v10  ;;  %v1858_v25 = vrot.slane %v1750_v56, 2  ;;  %v454_v45 = vmul.f32 %v2831_v13, %v3406_v21  ;;  %v529_v1 = vmul.f32 %v2833_v14, %v3261_v43 }
  0xd0   : > { %2515 = vpow2.f32 %v2401_v55  ;;  %v1707_v2 = vadd.f32 %v1615_v33, %v1463_v32  ;;  %v418_v35 = vadd.f32 %v386_v6, %v318_v15  ;;  %v774_v24 = vmul.f32 %v2838_v16, %v3356_v62  ;;  %v3498_v6 = vld [vmem:[%s2820_s28 + $0xe0] sm:$0xff] }
  0xd1   : > { %2517 = vrcp.f32 %v2116_v54  ;;  %v1859_v36 = vsel %vm1338_vm1, %v1857_v3, %v1858_v25  ;;  %v639_v30 = vrot.slane %v529_v1, 1  ;;  %v1018_v20 = vmul.f32 %v2840_v17, %v3446_v57 }
  0xd2   : > { %v2514_v48 = vpop.eup %2513  ;;  %v1951_v53 = vadd.f32 %v1859_v36, %v1707_v2  ;;  %v486_v34 = vadd.f32 %v454_v45, %v418_v35  ;;  %v883_v5 = vrot.slane %v774_v24, 1  ;;  %v1262_v8 = vmul.f32 %v2842_v18, %v3261_v43 }
  0xd3   : > { %v2211_v59 = vmul.f32 %v2514_v48, %v3339_v41  ;;  %v640_v0 = vsel %vm605_vm0, %v637_v9, %v639_v30  ;;  %v1127_v58 = vrot.slane %v1018_v20, 1  ;;  %v1507_v47 = vmul.f32 %v2844_v19, %v3356_v62 }
  0xd4   : > { %v3464_v28 = vadd.f32 %v3461_v46, %v1951_v53  ;;  %v731_v31 = vadd.f32 %v640_v0, %v486_v34  ;;  %v884_v26 = vsel %vm605_vm0, %v881_v22, %v883_v5  ;;  %v1372_v43 = vrot.slane %v1262_v8, 2 }
  0xd5   : > { %2244 = vst.msk [vmem:[%s3050_s30 + $0x48] sm:$0xff] %vm2234_vm2, %v2211_v59  ;;  %v1128_v41 = vsel %vm605_vm0, %v1125_v23, %v1127_v58  ;;  %v1616_v44 = vrot.slane %v1507_v47, 2  ;;  %v1751_v9 = vmul.f32 %v2878_v52, %v3446_v57  ;;  %v319_v38 = vmul.f32 %v2827_v11, %v3290_v61 }
  0xd6   : > { %v2402_v37 = vmul.f32 -1.442695, %v3464_v28  ;;  %v975_v40 = vadd.f32 %v884_v26, %v731_v31  ;;  %v1373_v29 = vsel %vm1338_vm1, %v1370_v60, %v1372_v43  ;;  %v387_v22 = vmul.f32 %v2829_v12, %v3383_v27 }
  0xd7   : > { %v1617_v23 = vsel %vm1338_vm1, %v1614_v51, %v1616_v44  ;;  %v1860_v49 = vrot.slane %v1751_v9, 2  ;;  %v455_v50 = vmul.f32 %v2831_v13, %v3477_v63  ;;  %v530_v7 = vmul.f32 %v2833_v14, %v3290_v61 }
  0xd8   : > { %2519 = vpow2.f32 %v2402_v37  ;;  %v1219_v56 = vadd.f32 %v1128_v41, %v975_v40  ;;  %v419_v3 = vadd.f32 %v387_v22, %v319_v38  ;;  %v3488_v60 = vmul.f32 %v2833_v14, %v3311_v4 }
  0xd9   : > { %v1861_v15 = vsel %vm1338_vm1, %v1858_v25, %v1860_v49  ;;  %v641_v10 = vrot.slane %v530_v7, 1  ;;  %v775_v51 = vmul.f32 %v2838_v16, %v3383_v27  ;;  %v3495_v55 = vmul.f32 %v2838_v16, %v3406_v21 }
  0xda   : > { %v2516_v32 = vpop.eup %2515  ;;  %v1464_v33 = vadd.f32 %v1373_v29, %v1219_v56  ;;  %v487_v54 = vadd.f32 %v455_v50, %v419_v3  ;;  %v642_v45 = vrot.slane %v3488_v60, 1  ;;  %v1019_v1 = vmul.f32 %v2840_v17, %v3477_v63 }
  0xdb   : > { %v2518_v25 = vpop.eup %2517  ;;  %v2117_v2 = vadd.f32 1.0, %v2516_v32  ;;  %v885_v35 = vrot.slane %v775_v51, 1  ;;  %v886_v24 = vrot.slane %v3495_v55, 1  ;;  %v3506_v36 = vmul.f32 %v2840_v17, %v3498_v6 }
  0xdc   : > { %v2212_v30 = vmul.f32 %v2518_v25, %v3371_v42  ;;  %v1708_v20 = vadd.f32 %v1617_v23, %v1464_v33  ;;  %v643_v48 = vsel %vm605_vm0, %v641_v10, %v642_v45  ;;  %v1129_v53 = vrot.slane %v1019_v1, 1  ;;  %v3543_v33 = vld [vmem:[%s2820_s28 + $0xe8] sm:$0x3] }
  0xdd   : > { %2521 = vrcp.f32 %v2117_v2  ;;  %v732_v34 = vadd.f32 %v643_v48, %v487_v54  ;;  %v887_v5 = vsel %vm605_vm0, %v885_v35, %v886_v24  ;;  %v1130_v8 = vrot.slane %v3506_v36, 1 }
  0xde   : > { %2245 = vst.msk [vmem:[%s3050_s30 + $0x50] sm:$0xff] %vm2234_vm2, %v2212_v30  ;;  %v1952_v59 = vadd.f32 %v1861_v15, %v1708_v20  ;;  %v1263_v0 = vmul.f32 %v2842_v18, %v3290_v61  ;;  %v1264_v58 = vmul.f32 %v2842_v18, %v3311_v4  ;;  %v1508_v42 = vmul.f32 %v2844_v19, %v3383_v27 }
  0xdf   : > { %v976_v47 = vadd.f32 %v887_v5, %v732_v34  ;;  %v1131_v31 = vsel %vm605_vm0, %v1129_v53, %v1130_v8  ;;  %v1509_v26 = vmul.f32 %v2844_v19, %v3406_v21  ;;  %v1752_v43 = vmul.f32 %v2878_v52, %v3477_v63 }
  0xe0   : > { %v3526_v41 = vadd.f32 %v3461_v46, %v1952_v59  ;;  %v1374_v44 = vrot.slane %v1263_v0, 2  ;;  %v1375_v61 = vrot.slane %v1264_v58, 2  ;;  %v1618_v9 = vrot.slane %v1508_v42, 2 }
  0xe1   : > { %v1220_v38 = vadd.f32 %v1131_v31, %v976_v47  ;;  %v1619_v37 = vrot.slane %v1509_v26, 2  ;;  %v1753_v40 = vmul.f32 %v2878_v52, %v3498_v6  ;;  %v1862_v29 = vrot.slane %v1752_v43, 2 }
  0xe2   : > { %v2520_v22 = vpop.eup %2519  ;;  %v2403_v23 = vmul.f32 -1.442695, %v3526_v41  ;;  %v1376_v49 = vsel %vm1338_vm1, %v1374_v44, %v1375_v61  ;;  %v320_v50 = vmul.f32 %v2827_v11, %v3311_v4  ;;  %v388_v7 = vmul.f32 %v2829_v12, %v3406_v21 }
  0xe3   : > { %v2118_v56 = vadd.f32 1.0, %v2520_v22  ;;  %v1465_v3 = vadd.f32 %v1376_v49, %v1220_v38  ;;  %v1620_v60 = vsel %vm1338_vm1, %v1618_v9, %v1619_v37  ;;  %v1863_v15 = vrot.slane %v1753_v40, 2  ;;  %v3570_v38 = vld [vmem:[%s2820_s28 + $0xf0] sm:$0xff] }
  0xe4   : > { %2523 = vpow2.f32 %v2403_v23  ;;  %v420_v10 = vadd.f32 %v388_v7, %v320_v50  ;;  %v456_v51 = vmul.f32 %v2831_v13, %v3498_v6  ;;  %v532_v55 = vmul.f32 %v2833_v14, %v3356_v62 }
  0xe5   : > { %2525 = vrcp.f32 %v2118_v56  ;;  %v1709_v32 = vadd.f32 %v1620_v60, %v1465_v3  ;;  %v1864_v4 = vsel %vm1338_vm1, %v1862_v29, %v1863_v15  ;;  %v777_v54 = vmul.f32 %v2838_v16, %v3446_v57 }
  0xe6   : > { %v488_v1 = vadd.f32 %v456_v51, %v420_v10  ;;  %v644_v25 = vrot.slane %v532_v55, 1  ;;  %v1021_v2 = vmul.f32 %v2840_v17, %v3543_v33  ;;  %v1265_v35 = vmul.f32 %v2842_v18, %v3356_v62  ;;  %v3593_v51 = vld [vmem:[%s2820_s28 + $0xf8] sm:$0xff] }
  0xe7   : > { %v2522_v36 = vpop.eup %2521  ;;  %v1953_v30 = vadd.f32 %v1864_v4, %v1709_v32  ;;  %v888_v20 = vrot.slane %v777_v54, 1  ;;  %v1510_v48 = vmul.f32 %v2844_v19, %v3446_v57  ;;  %v1754_v53 = vmul.f32 %v2878_v52, %v3543_v33 }
  0xe8   : > { %v2213_v34 = vmul.f32 %v2522_v36, %v3430_v39  ;;  %v645_v5 = vsel %vm605_vm0, %v642_v45, %v644_v25  ;;  %v1132_v59 = vrot.slane %v1021_v2, 1  ;;  %v1377_v0 = vrot.slane %v1265_v35, 2 }
  0xe9   : > { %v3558_v58 = vadd.f32 %v3461_v46, %v1953_v30  ;;  %v733_v62 = vadd.f32 %v645_v5, %v488_v1  ;;  %v889_v42 = vsel %vm605_vm0, %v886_v24, %v888_v20  ;;  %v1621_v47 = vrot.slane %v1510_v48, 2 }
  0xea   : > { %2246 = vst.msk [vmem:[%s3050_s30 + $0x58] sm:$0xff] %vm2234_vm2, %v2213_v34  ;;  %v1133_v31 = vsel %vm605_vm0, %v1130_v8, %v1132_v59  ;;  %v1378_v26 = vsel %vm1338_vm1, %v1375_v61, %v1377_v0  ;;  %v1865_v43 = vrot.slane %v1754_v53, 2  ;;  %v321_v39 = vmul.f32 %v2827_v11, %v3383_v27 }
  0xeb   : > { %v2404_v45 = vmul.f32 -1.442695, %v3558_v58  ;;  %v977_v44 = vadd.f32 %v889_v42, %v733_v62  ;;  %v1622_v9 = vsel %vm1338_vm1, %v1619_v37, %v1621_v47  ;;  %v389_v24 = vmul.f32 %v2829_v12, %v3477_v63 }
  0xec   : > { %v1866_v40 = vsel %vm1338_vm1, %v1863_v15, %v1865_v43  ;;  %v457_v8 = vmul.f32 %v2831_v13, %v3570_v38  ;;  %v533_v61 = vmul.f32 %v2833_v14, %v3383_v27  ;;  %v3581_v29 = vmul.f32 %v2833_v14, %v3406_v21 }
  0xed   : > { %2527 = vpow2.f32 %v2404_v45  ;;  %v1221_v37 = vadd.f32 %v1133_v31, %v977_v44  ;;  %v421_v22 = vadd.f32 %v389_v24, %v321_v39  ;;  %v778_v23 = vmul.f32 %v2838_v16, %v3477_v63 }
  0xee   : > { %v2524_v49 = vpop.eup %2523  ;;  %v646_v50 = vrot.slane %v533_v61, 1  ;;  %v647_v7 = vrot.slane %v3581_v29, 1  ;;  %v3588_v56 = vmul.f32 %v2838_v16, %v3498_v6  ;;  %v1022_v3 = vmul.f32 %v2840_v17, %v3570_v38 }
  0xef   : > { %v2526_v60 = vpop.eup %2525  ;;  %v2119_v15 = vadd.f32 1.0, %v2524_v49  ;;  %v1466_v10 = vadd.f32 %v1378_v26, %v1221_v37  ;;  %v489_v55 = vadd.f32 %v457_v8, %v421_v22  ;;  %v890_v32 = vrot.slane %v778_v23, 1 }
  0xf0   : > { %v2214_v4 = vmul.f32 %v2526_v60, %v3464_v28  ;;  %v648_v54 = vsel %vm605_vm0, %v646_v50, %v647_v7  ;;  %v891_v1 = vrot.slane %v3588_v56, 1  ;;  %v1023_v25 = vmul.f32 %v2840_v17, %v3593_v51 }
  0xf1   : > { %2529 = vrcp.f32 %v2119_v15  ;;  %v1710_v2 = vadd.f32 %v1622_v9, %v1466_v10  ;;  %v734_v35 = vadd.f32 %v648_v54, %v489_v55  ;;  %v1134_v36 = vrot.slane %v1022_v3, 1 }
  0xf2   : > { %2247 = vst.msk [vmem:[%s3050_s30 + $0x60] sm:$0xff] %vm2234_vm2, %v2214_v4  ;;  %v892_v30 = vsel %vm605_vm0, %v890_v32, %v891_v1  ;;  %v1135_v20 = vrot.slane %v1023_v25, 1  ;;  %v1266_v28 = vmul.f32 %v2842_v18, %v3383_v27  ;;  %v1267_v48 = vmul.f32 %v2842_v18, %v3406_v21 }
  0xf3   : > { %v1954_v53 = vadd.f32 %v1866_v40, %v1710_v2  ;;  %v978_v34 = vadd.f32 %v892_v30, %v734_v35  ;;  %v1511_v5 = vmul.f32 %v2844_v19, %v3477_v63  ;;  %v1512_v59 = vmul.f32 %v2844_v19, %v3498_v6 }
  0xf4   : > { %v1136_v0 = vsel %vm605_vm0, %v1134_v36, %v1135_v20  ;;  %v1379_v62 = vrot.slane %v1266_v28, 2  ;;  %v1380_v42 = vrot.slane %v1267_v48, 2  ;;  %v1755_v47 = vmul.f32 %v2878_v52, %v3570_v38 }
  0xf5   : > { %v3617_v27 = vadd.f32 %v3461_v46, %v1954_v53  ;;  %v1222_v31 = vadd.f32 %v1136_v0, %v978_v34  ;;  %v1623_v26 = vrot.slane %v1511_v5, 2  ;;  %v1624_v43 = vrot.slane %v1512_v59, 2 }
  0xf6   : > { %v1381_v39 = vsel %vm1338_vm1, %v1379_v62, %v1380_v42  ;;  %v1756_v45 = vmul.f32 %v2878_v52, %v3593_v51  ;;  %v1867_v44 = vrot.slane %v1755_v47, 2  ;;  %v322_v9 = vmul.f32 %v2827_v11, %v3406_v21  ;;  %v3633_v21 = vld [vmem:[%s2820_s28 + $0x100] sm:$0x3]  ;;  %v3662_v47 = vld [vmem:[%s2820_s28 + $0x108] sm:$0xff] }
  0xf7   : > { %v2528_v24 = vpop.eup %2527  ;;  %v2405_v40 = vmul.f32 -1.442695, %v3617_v27  ;;  %v1467_v8 = vadd.f32 %v1381_v39, %v1222_v31  ;;  %v1625_v61 = vsel %vm1338_vm1, %v1623_v26, %v1624_v43  ;;  %v390_v37 = vmul.f32 %v2829_v12, %v3498_v6 }
  0xf8   : > { %v2120_v22 = vadd.f32 1.0, %v2528_v24  ;;  %v1868_v23 = vrot.slane %v1756_v45, 2  ;;  %v458_v49 = vmul.f32 %v2831_v13, %v3593_v51  ;;  %v535_v50 = vmul.f32 %v2833_v14, %v3446_v57 }
  0xf9   : > { %2531 = vpow2.f32 %v2405_v40  ;;  %v1711_v56 = vadd.f32 %v1625_v61, %v1467_v8  ;;  %v422_v3 = vadd.f32 %v390_v37, %v322_v9  ;;  %v780_v60 = vmul.f32 %v2838_v16, %v3543_v33  ;;  %v3683_v37 = vld [vmem:[%s2820_s28 + $0x110] sm:$0xff] }
  0xfa   : > { %2533 = vrcp.f32 %v2120_v22  ;;  %v1869_v15 = vsel %vm1338_vm1, %v1867_v44, %v1868_v23  ;;  %v649_v10 = vrot.slane %v535_v50, 1  ;;  %v1024_v55 = vmul.f32 %v2840_v17, %v3633_v21 }
  0xfb   : > { %v2530_v32 = vpop.eup %2529  ;;  %v1955_v4 = vadd.f32 %v1869_v15, %v1711_v56  ;;  %v490_v54 = vadd.f32 %v458_v49, %v422_v3  ;;  %v893_v25 = vrot.slane %v780_v60, 1  ;;  %v1268_v2 = vmul.f32 %v2842_v18, %v3446_v57 }
  0xfc   : > { %v2215_v35 = vmul.f32 %v2530_v32, %v3526_v41  ;;  %v650_v36 = vsel %vm605_vm0, %v647_v7, %v649_v10  ;;  %v1137_v30 = vrot.slane %v1024_v55, 1  ;;  %v1513_v28 = vmul.f32 %v2844_v19, %v3543_v33 }
  0xfd   : > { %v3649_v48 = vadd.f32 %v3461_v46, %v1955_v4  ;;  %v735_v53 = vadd.f32 %v650_v36, %v490_v54  ;;  %v894_v34 = vsel %vm605_vm0, %v891_v1, %v893_v25  ;;  %v1382_v5 = vrot.slane %v1268_v2, 2 }
  0xfe   : > { %2248 = vst.msk [vmem:[%s3050_s30 + $0x68] sm:$0xff] %vm2234_vm2, %v2215_v35  ;;  %v1138_v57 = vsel %vm605_vm0, %v1135_v20, %v1137_v30  ;;  %v1626_v41 = vrot.slane %v1513_v28, 2  ;;  %v1757_v29 = vmul.f32 %v2878_v52, %v3633_v21  ;;  %v323_v7 = vmul.f32 %v2827_v11, %v3477_v63 }
  0xff   : > { %v2406_v59 = vmul.f32 -1.442695, %v3649_v48  ;;  %v979_v0 = vadd.f32 %v894_v34, %v735_v53  ;;  %v1383_v62 = vsel %vm1338_vm1, %v1380_v42, %v1382_v5  ;;  %v391_v1 = vmul.f32 %v2829_v12, %v3570_v38 }
 0x100   : > { %v1627_v20 = vsel %vm1338_vm1, %v1624_v43, %v1626_v41  ;;  %v1870_v31 = vrot.slane %v1757_v29, 2  ;;  %v459_v26 = vmul.f32 %v2831_v13, %v3662_v47  ;;  %v536_v39 = vmul.f32 %v2833_v14, %v3477_v63 }
 0x101   : > { %2535 = vpow2.f32 %v2406_v59  ;;  %v1223_v45 = vadd.f32 %v1138_v57, %v979_v0  ;;  %v423_v44 = vadd.f32 %v391_v1, %v323_v7  ;;  %v3673_v42 = vmul.f32 %v2833_v14, %v3498_v6 }
 0x102   : > { %v1871_v9 = vsel %vm1338_vm1, %v1868_v23, %v1870_v31  ;;  %v651_v24 = vrot.slane %v536_v39, 1  ;;  %v781_v43 = vmul.f32 %v2838_v16, %v3570_v38  ;;  %v3680_v40 = vmul.f32 %v2838_v16, %v3593_v51 }
 0x103   : > { %v2532_v8 = vpop.eup %2531  ;;  %v1468_v61 = vadd.f32 %v1383_v62, %v1223_v45  ;;  %v491_v22 = vadd.f32 %v459_v26, %v423_v44  ;;  %v652_v49 = vrot.slane %v3673_v42, 1  ;;  %v1025_v50 = vmul.f32 %v2840_v17, %v3662_v47 }
 0x104   : > { %v2534_v23 = vpop.eup %2533  ;;  %v2121_v56 = vadd.f32 1.0, %v2532_v8  ;;  %v895_v3 = vrot.slane %v781_v43, 1  ;;  %v896_v60 = vrot.slane %v3680_v40, 1  ;;  %v3691_v15 = vmul.f32 %v2840_v17, %v3683_v37 }
 0x105   : > { %v2216_v10 = vmul.f32 %v2534_v23, %v3558_v58  ;;  %v1712_v55 = vadd.f32 %v1627_v20, %v1468_v61  ;;  %v653_v32 = vsel %vm605_vm0, %v651_v24, %v652_v49  ;;  %v1139_v4 = vrot.slane %v1025_v50, 1  ;;  %v3728_v61 = vld [vmem:[%s2820_s28 + $0x118] sm:$0x3] }
 0x106   : > { %2537 = vrcp.f32 %v2121_v56  ;;  %v736_v54 = vadd.f32 %v653_v32, %v491_v22  ;;  %v897_v25 = vsel %vm605_vm0, %v895_v3, %v896_v60  ;;  %v1140_v2 = vrot.slane %v3691_v15, 1 }
 0x107   : > { %2249 = vst.msk [vmem:[%s3050_s30 + $0x70] sm:$0xff] %vm2234_vm2, %v2216_v10  ;;  %v1956_v35 = vadd.f32 %v1871_v9, %v1712_v55  ;;  %v1269_v36 = vmul.f32 %v2842_v18, %v3477_v63  ;;  %v1270_v30 = vmul.f32 %v2842_v18, %v3498_v6  ;;  %v1514_v58 = vmul.f32 %v2844_v19, %v3570_v38 }
 0x108   : > { %v980_v28 = vadd.f32 %v897_v25, %v736_v54  ;;  %v1141_v53 = vsel %vm605_vm0, %v1139_v4, %v1140_v2  ;;  %v1515_v34 = vmul.f32 %v2844_v19, %v3593_v51  ;;  %v1758_v5 = vmul.f32 %v2878_v52, %v3662_v47 }
 0x109   : > { %v3711_v57 = vadd.f32 %v3461_v46, %v1956_v35  ;;  %v1384_v41 = vrot.slane %v1269_v36, 2  ;;  %v1385_v63 = vrot.slane %v1270_v30, 2  ;;  %v1628_v29 = vrot.slane %v1514_v58, 2 }
 0x10a   : > { %v1224_v7 = vadd.f32 %v1141_v53, %v980_v28  ;;  %v1629_v59 = vrot.slane %v1515_v34, 2  ;;  %v1759_v0 = vmul.f32 %v2878_v52, %v3683_v37  ;;  %v1872_v62 = vrot.slane %v1758_v5, 2 }
 0x10b   : > { %v2536_v1 = vpop.eup %2535  ;;  %v2407_v20 = vmul.f32 -1.442695, %v3711_v57  ;;  %v1386_v31 = vsel %vm1338_vm1, %v1384_v41, %v1385_v63  ;;  %v324_v26 = vmul.f32 %v2827_v11, %v3498_v6  ;;  %v392_v39 = vmul.f32 %v2829_v12, %v3593_v51 }
 0x10c   : > { %v2122_v45 = vadd.f32 1.0, %v2536_v1  ;;  %v1469_v44 = vadd.f32 %v1386_v31, %v1224_v7  ;;  %v1630_v42 = vsel %vm1338_vm1, %v1628_v29, %v1629_v59  ;;  %v1873_v9 = vrot.slane %v1759_v0, 2  ;;  %v3755_v7 = vld [vmem:[%s2820_s28 + $0x120] sm:$0xff] }
 0x10d   : > { %2539 = vpow2.f32 %v2407_v20  ;;  %v424_v24 = vadd.f32 %v392_v39, %v324_v26  ;;  %v460_v43 = vmul.f32 %v2831_v13, %v3683_v37  ;;  %v538_v40 = vmul.f32 %v2833_v14, %v3543_v33 }
 0x10e   : > { %2541 = vrcp.f32 %v2122_v45  ;;  %v1713_v8 = vadd.f32 %v1630_v42, %v1469_v44  ;;  %v1874_v6 = vsel %vm1338_vm1, %v1872_v62, %v1873_v9  ;;  %v783_v22 = vmul.f32 %v2838_v16, %v3633_v21 }
 0x10f   : > { %v492_v50 = vadd.f32 %v460_v43, %v424_v24  ;;  %v654_v23 = vrot.slane %v538_v40, 1  ;;  %v1027_v56 = vmul.f32 %v2840_v17, %v3728_v61  ;;  %v1271_v3 = vmul.f32 %v2842_v18, %v3543_v33  ;;  %v3778_v43 = vld [vmem:[%s2820_s28 + $0x128] sm:$0xff] }
 0x110   : > { %v2538_v15 = vpop.eup %2537  ;;  %v1957_v10 = vadd.f32 %v1874_v6, %v1713_v8  ;;  %v898_v55 = vrot.slane %v783_v22, 1  ;;  %v1516_v32 = vmul.f32 %v2844_v19, %v3633_v21  ;;  %v1760_v4 = vmul.f32 %v2878_v52, %v3728_v61 }
 0x111   : > { %v2217_v54 = vmul.f32 %v2538_v15, %v3617_v27  ;;  %v655_v25 = vsel %vm605_vm0, %v652_v49, %v654_v23  ;;  %v1142_v35 = vrot.slane %v1027_v56, 1  ;;  %v1387_v36 = vrot.slane %v1271_v3, 2 }
 0x112   : > { %v3743_v30 = vadd.f32 %v3461_v46, %v1957_v10  ;;  %v737_v33 = vadd.f32 %v655_v25, %v492_v50  ;;  %v899_v58 = vsel %vm605_vm0, %v896_v60, %v898_v55  ;;  %v1631_v28 = vrot.slane %v1516_v32, 2 }
 0x113   : > { %2250 = vst.msk [vmem:[%s3050_s30 + $0x78] sm:$0xff] %vm2234_vm2, %v2217_v54  ;;  %v1143_v53 = vsel %vm605_vm0, %v1140_v2, %v1142_v35  ;;  %v1388_v34 = vsel %vm1338_vm1, %v1385_v63, %v1387_v36  ;;  %v1875_v5 = vrot.slane %v1760_v4, 2  ;;  %v325_v27 = vmul.f32 %v2827_v11, %v3570_v38 }
 0x114   : > { %v2408_v49 = vmul.f32 -1.442695, %v3743_v30  ;;  %v981_v41 = vadd.f32 %v899_v58, %v737_v33  ;;  %v1632_v29 = vsel %vm1338_vm1, %v1629_v59, %v1631_v28  ;;  %v393_v60 = vmul.f32 %v2829_v12, %v3662_v47 }
 0x115   : > { %v1876_v0 = vsel %vm1338_vm1, %v1873_v9, %v1875_v5  ;;  %v461_v2 = vmul.f32 %v2831_v13, %v3755_v7  ;;  %v539_v63 = vmul.f32 %v2833_v14, %v3570_v38  ;;  %v3766_v62 = vmul.f32 %v2833_v14, %v3593_v51 }
 0x116   : > { %2543 = vpow2.f32 %v2408_v49  ;;  %v1225_v59 = vadd.f32 %v1143_v53, %v981_v41  ;;  %v425_v1 = vadd.f32 %v393_v60, %v325_v27  ;;  %v784_v20 = vmul.f32 %v2838_v16, %v3662_v47 }
 0x117   : > { %v2540_v31 = vpop.eup %2539  ;;  %v656_v26 = vrot.slane %v539_v63, 1  ;;  %v657_v39 = vrot.slane %v3766_v62, 1  ;;  %v3773_v45 = vmul.f32 %v2838_v16, %v3683_v37  ;;  %v1028_v44 = vmul.f32 %v2840_v17, %v3755_v7 }
 0x118   : > { %v2542_v42 = vpop.eup %2541  ;;  %v2123_v9 = vadd.f32 1.0, %v2540_v31  ;;  %v1470_v24 = vadd.f32 %v1388_v34, %v1225_v59  ;;  %v493_v40 = vadd.f32 %v461_v2, %v425_v1  ;;  %v900_v8 = vrot.slane %v784_v20, 1 }
 0x119   : > { %v2218_v6 = vmul.f32 %v2542_v42, %v3649_v48  ;;  %v658_v22 = vsel %vm605_vm0, %v656_v26, %v657_v39  ;;  %v901_v50 = vrot.slane %v3773_v45, 1  ;;  %v1029_v23 = vmul.f32 %v2840_v17, %v3778_v43 }
 0x11a   : > { %2545 = vrcp.f32 %v2123_v9  ;;  %v1714_v56 = vadd.f32 %v1632_v29, %v1470_v24  ;;  %v738_v3 = vadd.f32 %v658_v22, %v493_v40  ;;  %v1144_v15 = vrot.slane %v1028_v44, 1 }
 0x11b   : > { %2251 = vst.msk [vmem:[%s3050_s30 + $0x80] sm:$0xff] %vm2234_vm2, %v2218_v6  ;;  %v902_v10 = vsel %vm605_vm0, %v900_v8, %v901_v50  ;;  %v1145_v55 = vrot.slane %v1029_v23, 1  ;;  %v1272_v48 = vmul.f32 %v2842_v18, %v3570_v38  ;;  %v1273_v32 = vmul.f32 %v2842_v18, %v3593_v51 }
 0x11c   : > { %v1958_v4 = vadd.f32 %v1876_v0, %v1714_v56  ;;  %v982_v54 = vadd.f32 %v902_v10, %v738_v3  ;;  %v1517_v25 = vmul.f32 %v2844_v19, %v3662_v47  ;;  %v1518_v35 = vmul.f32 %v2844_v19, %v3683_v37 }
 0x11d   : > { %v1146_v36 = vsel %vm605_vm0, %v1144_v15, %v1145_v55  ;;  %v1389_v33 = vrot.slane %v1272_v48, 2  ;;  %v1390_v58 = vrot.slane %v1273_v32, 2  ;;  %v1761_v28 = vmul.f32 %v2878_v52, %v3755_v7 }
 0x11e   : > { %v3802_v38 = vadd.f32 %v3461_v46, %v1958_v4  ;;  %v1226_v53 = vadd.f32 %v1146_v36, %v982_v54  ;;  %v1633_v34 = vrot.slane %v1517_v25, 2  ;;  %v1634_v5 = vrot.slane %v1518_v35, 2 }
 0x11f   : > { %v1391_v27 = vsel %vm1338_vm1, %v1389_v33, %v1390_v58  ;;  %v1762_v49 = vmul.f32 %v2878_v52, %v3778_v43  ;;  %v1877_v41 = vrot.slane %v1761_v28, 2  ;;  %v326_v29 = vmul.f32 %v2827_v11, %v3593_v51  ;;  %v3818_v51 = vld [vmem:[%s2820_s28 + $0x130] sm:$0x3]  ;;  %v3847_v28 = vld [vmem:[%s2820_s28 + $0x138] sm:$0xff] }
 0x120   : > { %v2544_v60 = vpop.eup %2543  ;;  %v2409_v0 = vmul.f32 -1.442695, %v3802_v38  ;;  %v1471_v2 = vadd.f32 %v1391_v27, %v1226_v53  ;;  %v1635_v63 = vsel %vm1338_vm1, %v1633_v34, %v1634_v5  ;;  %v394_v59 = vmul.f32 %v2829_v12, %v3683_v37 }
 0x121   : > { %v2124_v1 = vadd.f32 1.0, %v2544_v60  ;;  %v1878_v20 = vrot.slane %v1762_v49, 2  ;;  %v462_v31 = vmul.f32 %v2831_v13, %v3778_v43  ;;  %v541_v26 = vmul.f32 %v2833_v14, %v3633_v21 }
 0x122   : > { %2547 = vpow2.f32 %v2409_v0  ;;  %v1715_v45 = vadd.f32 %v1635_v63, %v1471_v2  ;;  %v426_v44 = vadd.f32 %v394_v59, %v326_v29  ;;  %v786_v42 = vmul.f32 %v2838_v16, %v3728_v61  ;;  %v3868_v59 = vld [vmem:[%s2820_s28 + $0x140] sm:$0xff] }
 0x123   : > { %2549 = vrcp.f32 %v2124_v1  ;;  %v1879_v9 = vsel %vm1338_vm1, %v1877_v41, %v1878_v20  ;;  %v659_v24 = vrot.slane %v541_v26, 1  ;;  %v1030_v40 = vmul.f32 %v2840_v17, %v3818_v51 }
 0x124   : > { %v2546_v8 = vpop.eup %2545  ;;  %v1959_v6 = vadd.f32 %v1879_v9, %v1715_v45  ;;  %v494_v22 = vadd.f32 %v462_v31, %v426_v44  ;;  %v903_v23 = vrot.slane %v786_v42, 1  ;;  %v1274_v56 = vmul.f32 %v2842_v18, %v3633_v21 }
 0x125   : > { %v2219_v3 = vmul.f32 %v2546_v8, %v3711_v57  ;;  %v660_v15 = vsel %vm605_vm0, %v657_v39, %v659_v24  ;;  %v1147_v10 = vrot.slane %v1030_v40, 1  ;;  %v1519_v48 = vmul.f32 %v2844_v19, %v3728_v61 }
 0x126   : > { %v3834_v32 = vadd.f32 %v3461_v46, %v1959_v6  ;;  %v739_v4 = vadd.f32 %v660_v15, %v494_v22  ;;  %v904_v54 = vsel %vm605_vm0, %v901_v50, %v903_v23  ;;  %v1392_v25 = vrot.slane %v1274_v56, 2 }
 0x127   : > { %2252 = vst.msk [vmem:[%s3050_s30 + $0x88] sm:$0xff] %vm2234_vm2, %v2219_v3  ;;  %v1148_v21 = vsel %vm605_vm0, %v1145_v55, %v1147_v10  ;;  %v1636_v57 = vrot.slane %v1519_v48, 2  ;;  %v1763_v62 = vmul.f32 %v2878_v52, %v3818_v51  ;;  %v327_v39 = vmul.f32 %v2827_v11, %v3662_v47 }
 0x128   : > { %v2410_v35 = vmul.f32 -1.442695, %v3834_v32  ;;  %v983_v36 = vadd.f32 %v904_v54, %v739_v4  ;;  %v1393_v33 = vsel %vm1338_vm1, %v1390_v58, %v1392_v25  ;;  %v395_v50 = vmul.f32 %v2829_v12, %v3755_v7 }
 0x129   : > { %v1637_v55 = vsel %vm1338_vm1, %v1634_v5, %v1636_v57  ;;  %v1880_v53 = vrot.slane %v1763_v62, 2  ;;  %v463_v34 = vmul.f32 %v2831_v13, %v3847_v28  ;;  %v542_v27 = vmul.f32 %v2833_v14, %v3662_v47 }
 0x12a   : > { %2551 = vpow2.f32 %v2410_v35  ;;  %v1227_v49 = vadd.f32 %v1148_v21, %v983_v36  ;;  %v427_v41 = vadd.f32 %v395_v50, %v327_v39  ;;  %v3858_v58 = vmul.f32 %v2833_v14, %v3683_v37 }
 0x12b   : > { %v1881_v29 = vsel %vm1338_vm1, %v1878_v20, %v1880_v53  ;;  %v661_v60 = vrot.slane %v542_v27, 1  ;;  %v787_v5 = vmul.f32 %v2838_v16, %v3755_v7  ;;  %v3865_v0 = vmul.f32 %v2838_v16, %v3778_v43 }
 0x12c   : > { %v2548_v2 = vpop.eup %2547  ;;  %v1472_v63 = vadd.f32 %v1393_v33, %v1227_v49  ;;  %v495_v1 = vadd.f32 %v463_v34, %v427_v41  ;;  %v662_v31 = vrot.slane %v3858_v58, 1  ;;  %v1031_v26 = vmul.f32 %v2840_v17, %v3847_v28 }
 0x12d   : > { %v2550_v20 = vpop.eup %2549  ;;  %v2125_v45 = vadd.f32 1.0, %v2548_v2  ;;  %v905_v44 = vrot.slane %v787_v5, 1  ;;  %v906_v42 = vrot.slane %v3865_v0, 1  ;;  %v3876_v9 = vmul.f32 %v2840_v17, %v3868_v59 }
 0x12e   : > { %v2220_v24 = vmul.f32 %v2550_v20, %v3743_v30  ;;  %v1716_v40 = vadd.f32 %v1637_v55, %v1472_v63  ;;  %v663_v8 = vsel %vm605_vm0, %v661_v60, %v662_v31  ;;  %v1149_v6 = vrot.slane %v1031_v26, 1  ;;  %v3913_v63 = vld [vmem:[%s2820_s28 + $0x148] sm:$0x3] }
 0x12f   : > { %2553 = vrcp.f32 %v2125_v45  ;;  %v740_v22 = vadd.f32 %v663_v8, %v495_v1  ;;  %v907_v23 = vsel %vm605_vm0, %v905_v44, %v906_v42  ;;  %v1150_v56 = vrot.slane %v3876_v9, 1 }
 0x130   : > { %2253 = vst.msk [vmem:[%s3050_s30 + $0x90] sm:$0xff] %vm2234_vm2, %v2220_v24  ;;  %v1960_v3 = vadd.f32 %v1881_v29, %v1716_v40  ;;  %v1275_v15 = vmul.f32 %v2842_v18, %v3662_v47  ;;  %v1276_v10 = vmul.f32 %v2842_v18, %v3683_v37  ;;  %v1520_v30 = vmul.f32 %v2844_v19, %v3755_v7 }
 0x131   : > { %v984_v48 = vadd.f32 %v907_v23, %v740_v22  ;;  %v1151_v4 = vsel %vm605_vm0, %v1149_v6, %v1150_v56  ;;  %v1521_v54 = vmul.f32 %v2844_v19, %v3778_v43  ;;  %v1764_v25 = vmul.f32 %v2878_v52, %v3847_v28 }
 0x132   : > { %v3896_v21 = vadd.f32 %v3461_v46, %v1960_v3  ;;  %v1394_v57 = vrot.slane %v1275_v15, 2  ;;  %v1395_v47 = vrot.slane %v1276_v10, 2  ;;  %v1638_v62 = vrot.slane %v1520_v30, 2 }
 0x133   : > { %v1228_v39 = vadd.f32 %v1151_v4, %v984_v48  ;;  %v1639_v35 = vrot.slane %v1521_v54, 2  ;;  %v1765_v36 = vmul.f32 %v2878_v52, %v3868_v59  ;;  %v1882_v33 = vrot.slane %v1764_v25, 2 }
 0x134   : > { %v2552_v50 = vpop.eup %2551  ;;  %v2411_v55 = vmul.f32 -1.442695, %v3896_v21  ;;  %v1396_v53 = vsel %vm1338_vm1, %v1394_v57, %v1395_v47  ;;  %v328_v34 = vmul.f32 %v2827_v11, %v3683_v37  ;;  %v396_v27 = vmul.f32 %v2829_v12, %v3778_v43 }
 0x135   : > { %v2126_v49 = vadd.f32 1.0, %v2552_v50  ;;  %v1473_v41 = vadd.f32 %v1396_v53, %v1228_v39  ;;  %v1640_v58 = vsel %vm1338_vm1, %v1638_v62, %v1639_v35  ;;  %v1883_v29 = vrot.slane %v1765_v36, 2  ;;  %v3940_v39 = vld [vmem:[%s2820_s28 + $0x150] sm:$0xff] }
 0x136   : > { %2555 = vpow2.f32 %v2411_v55  ;;  %v428_v60 = vadd.f32 %v396_v27, %v328_v34  ;;  %v464_v5 = vmul.f32 %v2831_v13, %v3868_v59  ;;  %v544_v0 = vmul.f32 %v2833_v14, %v3728_v61 }
 0x137   : > { %2557 = vrcp.f32 %v2126_v49  ;;  %v1717_v2 = vadd.f32 %v1640_v58, %v1473_v41  ;;  %v1884_v37 = vsel %vm1338_vm1, %v1882_v33, %v1883_v29  ;;  %v789_v1 = vmul.f32 %v2838_v16, %v3818_v51 }
 0x138   : > { %v496_v26 = vadd.f32 %v464_v5, %v428_v60  ;;  %v664_v20 = vrot.slane %v544_v0, 1  ;;  %v1033_v45 = vmul.f32 %v2840_v17, %v3913_v63  ;;  %v1277_v44 = vmul.f32 %v2842_v18, %v3728_v61  ;;  %v3963_v5 = vld [vmem:[%s2820_s28 + $0x158] sm:$0xff] }
 0x139   : > { %v2554_v9 = vpop.eup %2553  ;;  %v1961_v24 = vadd.f32 %v1884_v37, %v1717_v2  ;;  %v908_v40 = vrot.slane %v789_v1, 1  ;;  %v1522_v8 = vmul.f32 %v2844_v19, %v3818_v51  ;;  %v1766_v6 = vmul.f32 %v2878_v52, %v3913_v63 }
 0x13a   : > { %v2221_v22 = vmul.f32 %v2554_v9, %v3802_v38  ;;  %v665_v23 = vsel %vm605_vm0, %v662_v31, %v664_v20  ;;  %v1152_v3 = vrot.slane %v1033_v45, 1  ;;  %v1397_v15 = vrot.slane %v1277_v44, 2 }
 0x13b   : > { %v3928_v10 = vadd.f32 %v3461_v46, %v1961_v24  ;;  %v741_v61 = vadd.f32 %v665_v23, %v496_v26  ;;  %v909_v30 = vsel %vm605_vm0, %v906_v42, %v908_v40  ;;  %v1641_v48 = vrot.slane %v1522_v8, 2 }
 0x13c   : > { %2254 = vst.msk [vmem:[%s3050_s30 + $0x98] sm:$0xff] %vm2234_vm2, %v2221_v22  ;;  %v1153_v4 = vsel %vm605_vm0, %v1150_v56, %v1152_v3  ;;  %v1398_v54 = vsel %vm1338_vm1, %v1395_v47, %v1397_v15  ;;  %v1885_v25 = vrot.slane %v1766_v6, 2  ;;  %v329_v38 = vmul.f32 %v2827_v11, %v3755_v7 }
 0x13d   : > { %v2412_v31 = vmul.f32 -1.442695, %v3928_v10  ;;  %v985_v57 = vadd.f32 %v909_v30, %v741_v61  ;;  %v1642_v62 = vsel %vm1338_vm1, %v1639_v35, %v1641_v48  ;;  %v397_v42 = vmul.f32 %v2829_v12, %v3847_v28 }
 0x13e   : > { %v1886_v36 = vsel %vm1338_vm1, %v1883_v29, %v1885_v25  ;;  %v465_v56 = vmul.f32 %v2831_v13, %v3940_v39  ;;  %v545_v47 = vmul.f32 %v2833_v14, %v3755_v7  ;;  %v3951_v33 = vmul.f32 %v2833_v14, %v3778_v43 }
 0x13f   : > { %2559 = vpow2.f32 %v2412_v31  ;;  %v1229_v35 = vadd.f32 %v1153_v4, %v985_v57  ;;  %v429_v50 = vadd.f32 %v397_v42, %v329_v38  ;;  %v790_v55 = vmul.f32 %v2838_v16, %v3847_v28 }
 0x140   : > { %v2556_v53 = vpop.eup %2555  ;;  %v666_v34 = vrot.slane %v545_v47, 1  ;;  %v667_v27 = vrot.slane %v3951_v33, 1  ;;  %v3958_v49 = vmul.f32 %v2838_v16, %v3868_v59  ;;  %v1034_v41 = vmul.f32 %v2840_v17, %v3940_v39 }
 0x141   : > { %v2558_v58 = vpop.eup %2557  ;;  %v2127_v29 = vadd.f32 1.0, %v2556_v53  ;;  %v1474_v60 = vadd.f32 %v1398_v54, %v1229_v35  ;;  %v497_v0 = vadd.f32 %v465_v56, %v429_v50  ;;  %v910_v2 = vrot.slane %v790_v55, 1 }
 0x142   : > { %v2222_v37 = vmul.f32 %v2558_v58, %v3834_v32  ;;  %v668_v1 = vsel %vm605_vm0, %v666_v34, %v667_v27  ;;  %v911_v26 = vrot.slane %v3958_v49, 1  ;;  %v1035_v20 = vmul.f32 %v2840_v17, %v3963_v5 }
 0x143   : > { %2561 = vrcp.f32 %v2127_v29  ;;  %v1718_v45 = vadd.f32 %v1642_v62, %v1474_v60  ;;  %v742_v44 = vadd.f32 %v668_v1, %v497_v0  ;;  %v1154_v9 = vrot.slane %v1034_v41, 1 }
 0x144   : > { %2255 = vst.msk [vmem:[%s3050_s30 + $0xa0] sm:$0xff] %vm2234_vm2, %v2222_v37  ;;  %v912_v24 = vsel %vm605_vm0, %v910_v2, %v911_v26  ;;  %v1155_v40 = vrot.slane %v1035_v20, 1  ;;  %v1278_v32 = vmul.f32 %v2842_v18, %v3755_v7  ;;  %v1279_v8 = vmul.f32 %v2842_v18, %v3778_v43 }
 0x145   : > { %v1962_v6 = vadd.f32 %v1886_v36, %v1718_v45  ;;  %v986_v22 = vadd.f32 %v912_v24, %v742_v44  ;;  %v1523_v23 = vmul.f32 %v2844_v19, %v3847_v28  ;;  %v1524_v3 = vmul.f32 %v2844_v19, %v3868_v59 }
 0x146   : > { %v1156_v15 = vsel %vm605_vm0, %v1154_v9, %v1155_v40  ;;  %v1399_v61 = vrot.slane %v1278_v32, 2  ;;  %v1400_v30 = vrot.slane %v1279_v8, 2  ;;  %v1767_v48 = vmul.f32 %v2878_v52, %v3940_v39  ;;  %v4018_v32 = vld [vmem:[#allocation4] ss:$0 sm:$0xff] }
 0x147   : > { %v3987_v7 = vadd.f32 %v3461_v46, %v1962_v6  ;;  %v1230_v4 = vadd.f32 %v1156_v15, %v986_v22  ;;  %v1643_v54 = vrot.slane %v1523_v23, 2  ;;  %v1644_v25 = vrot.slane %v1524_v3, 2 }
 0x148   : > { %v1401_v38 = vsel %vm1338_vm1, %v1399_v61, %v1400_v30  ;;  %v1768_v31 = vmul.f32 %v2878_v52, %v3963_v5  ;;  %v1887_v57 = vrot.slane %v1767_v48, 2  ;;  %v330_v62 = vmul.f32 %v2827_v11, %v3778_v43  ;;  %v4003_v43 = vld [vmem:[%s2820_s28 + $0x160] sm:$0x3]  ;;  %v4034_v48 = vld [vmem:[%s2820_s28 + $0x168] sm:$0xff] }
 0x149   : > { %v2560_v42 = vpop.eup %2559  ;;  %v2413_v36 = vmul.f32 -1.442695, %v3987_v7  ;;  %v1475_v56 = vadd.f32 %v1401_v38, %v1230_v4  ;;  %v1645_v46 = vsel %vm1338_vm1, %v1643_v54, %v1644_v25  ;;  %v398_v47 = vmul.f32 %v2829_v12, %v3868_v59 }
 0x14a   : > { %v2128_v35 = vadd.f32 1.0, %v2560_v42  ;;  %v1888_v50 = vrot.slane %v1768_v31, 2  ;;  %v466_v55 = vmul.f32 %v2831_v13, %v3963_v5  ;;  %v547_v53 = vmul.f32 %v2833_v14, %v3818_v51 }
 0x14b   : > { %2563 = vpow2.f32 %v2413_v36  ;;  %v1719_v34 = vadd.f32 %v1645_v46, %v1475_v56  ;;  %v430_v49 = vadd.f32 %v398_v47, %v330_v62  ;;  %v792_v41 = vmul.f32 %v2838_v16, %v3913_v63  ;;  %v4055_v47 = vld [vmem:[%s2820_s28 + $0x170] sm:$0xff] }
 0x14c   : > { %2565 = vrcp.f32 %v2128_v35  ;;  %v1889_v58 = vsel %vm1338_vm1, %v1887_v57, %v1888_v50  ;;  %v669_v29 = vrot.slane %v547_v53, 1  ;;  %v1036_v60 = vmul.f32 %v2840_v17, %v4003_v43 }
 0x14d   : > { %v2562_v0 = vpop.eup %2561  ;;  %v1963_v2 = vadd.f32 %v1889_v58, %v1719_v34  ;;  %v498_v37 = vadd.f32 %v466_v55, %v430_v49  ;;  %v913_v1 = vrot.slane %v792_v41, 1  ;;  %v1280_v20 = vmul.f32 %v2842_v18, %v3818_v51 }
 0x14e   : > { %v2223_v45 = vmul.f32 %v2562_v0, %v3896_v21  ;;  %v670_v44 = vsel %vm605_vm0, %v667_v27, %v669_v29  ;;  %v1157_v9 = vrot.slane %v1036_v60, 1  ;;  %v1525_v24 = vmul.f32 %v2844_v19, %v3913_v63 }
 0x14f   : > { %v4021_v8 = vadd.f32 %v4018_v32, %v1963_v2  ;;  %v743_v6 = vadd.f32 %v670_v44, %v498_v37  ;;  %v914_v22 = vsel %vm605_vm0, %v911_v26, %v913_v1  ;;  %v1402_v51 = vrot.slane %v1280_v20, 2 }
 0x150   : > { %2256 = vst.msk [vmem:[%s3050_s30 + $0xa8] sm:$0xff] %vm2234_vm2, %v2223_v45  ;;  %v1158_v21 = vsel %vm605_vm0, %v1155_v40, %v1157_v9  ;;  %v1646_v33 = vrot.slane %v1525_v24, 2  ;;  %v1769_v27 = vmul.f32 %v2878_v52, %v4003_v43  ;;  %v331_v23 = vmul.f32 %v2827_v11, %v3847_v28 }
 0x151   : > { %v2414_v3 = vmul.f32 -1.442695, %v4021_v8  ;;  %v987_v15 = vadd.f32 %v914_v22, %v743_v6  ;;  %v1403_v61 = vsel %vm1338_vm1, %v1400_v30, %v1402_v51  ;;  %v399_v26 = vmul.f32 %v2829_v12, %v3940_v39 }
 0x152   : > { %v1647_v40 = vsel %vm1338_vm1, %v1644_v25, %v1646_v33  ;;  %v1890_v4 = vrot.slane %v1769_v27, 2  ;;  %v467_v54 = vmul.f32 %v2831_v13, %v4034_v48  ;;  %v548_v38 = vmul.f32 %v2833_v14, %v3847_v28 }
 0x153   : > { %2567 = vpow2.f32 %v2414_v3  ;;  %v1231_v31 = vadd.f32 %v1158_v21, %v987_v15  ;;  %v431_v57 = vadd.f32 %v399_v26, %v331_v23  ;;  %v4045_v30 = vmul.f32 %v2833_v14, %v3868_v59 }
 0x154   : > { %v1891_v62 = vsel %vm1338_vm1, %v1888_v50, %v1890_v4  ;;  %v671_v42 = vrot.slane %v548_v38, 1  ;;  %v793_v25 = vmul.f32 %v2838_v16, %v3940_v39  ;;  %v4052_v36 = vmul.f32 %v2838_v16, %v3963_v5 }
 0x155   : > { %v2564_v56 = vpop.eup %2563  ;;  %v1476_v46 = vadd.f32 %v1403_v61, %v1231_v31  ;;  %v499_v35 = vadd.f32 %v467_v54, %v431_v57  ;;  %v672_v55 = vrot.slane %v4045_v30, 1  ;;  %v1037_v53 = vmul.f32 %v2840_v17, %v4034_v48 }
 0x156   : > { %v2566_v50 = vpop.eup %2565  ;;  %v2129_v34 = vadd.f32 1.0, %v2564_v56  ;;  %v915_v49 = vrot.slane %v793_v25, 1  ;;  %v916_v41 = vrot.slane %v4052_v36, 1  ;;  %v4063_v58 = vmul.f32 %v2840_v17, %v4055_v47 }
 0x157   : > { %v2224_v29 = vmul.f32 %v2566_v50, %v3928_v10  ;;  %v1720_v60 = vadd.f32 %v1647_v40, %v1476_v46  ;;  %v673_v0 = vsel %vm605_vm0, %v671_v42, %v672_v55  ;;  %v1159_v2 = vrot.slane %v1037_v53, 1  ;;  %v4100_v46 = vld [vmem:[%s2820_s28 + $0x178] sm:$0x3] }
 0x158   : > { %2569 = vrcp.f32 %v2129_v34  ;;  %v744_v37 = vadd.f32 %v673_v0, %v499_v35  ;;  %v917_v1 = vsel %vm605_vm0, %v915_v49, %v916_v41  ;;  %v1160_v20 = vrot.slane %v4063_v58, 1 }
 0x159   : > { %2257 = vst.msk [vmem:[%s3050_s30 + $0xb0] sm:$0xff] %vm2234_vm2, %v2224_v29  ;;  %v1964_v45 = vadd.f32 %v1891_v62, %v1720_v60  ;;  %v1281_v44 = vmul.f32 %v2842_v18, %v3847_v28  ;;  %v1282_v9 = vmul.f32 %v2842_v18, %v3868_v59  ;;  %v1526_v10 = vmul.f32 %v2844_v19, %v3940_v39 }
 0x15a   : > { %v988_v24 = vadd.f32 %v917_v1, %v744_v37  ;;  %v1161_v6 = vsel %vm605_vm0, %v1159_v2, %v1160_v20  ;;  %v1527_v22 = vmul.f32 %v2844_v19, %v3963_v5  ;;  %v1770_v51 = vmul.f32 %v2878_v52, %v4034_v48 }
 0x15b   : > { %v4083_v21 = vadd.f32 %v4018_v32, %v1964_v45  ;;  %v1404_v33 = vrot.slane %v1281_v44, 2  ;;  %v1405_v28 = vrot.slane %v1282_v9, 2  ;;  %v1648_v27 = vrot.slane %v1526_v10, 2 }
 0x15c   : > { %v1232_v23 = vadd.f32 %v1161_v6, %v988_v24  ;;  %v1649_v3 = vrot.slane %v1527_v22, 2  ;;  %v1771_v15 = vmul.f32 %v2878_v52, %v4055_v47  ;;  %v1892_v61 = vrot.slane %v1770_v51, 2 }
 0x15d   : > { %v2568_v26 = vpop.eup %2567  ;;  %v2415_v40 = vmul.f32 -1.442695, %v4083_v21  ;;  %v1406_v4 = vsel %vm1338_vm1, %v1404_v33, %v1405_v28  ;;  %v332_v54 = vmul.f32 %v2827_v11, %v3868_v59  ;;  %v400_v38 = vmul.f32 %v2829_v12, %v3963_v5 }
 0x15e   : > { %v2130_v31 = vadd.f32 1.0, %v2568_v26  ;;  %v1477_v57 = vadd.f32 %v1406_v4, %v1232_v23  ;;  %v1650_v30 = vsel %vm1338_vm1, %v1648_v27, %v1649_v3  ;;  %v1893_v62 = vrot.slane %v1771_v15, 2  ;;  %v4127_v23 = vld [vmem:[%s2820_s28 + $0x180] sm:$0xff] }
 0x15f   : > { %2571 = vpow2.f32 %v2415_v40  ;;  %v432_v42 = vadd.f32 %v400_v38, %v332_v54  ;;  %v468_v25 = vmul.f32 %v2831_v13, %v4055_v47  ;;  %v550_v36 = vmul.f32 %v2833_v14, %v3913_v63 }
 0x160   : > { %2573 = vrcp.f32 %v2130_v31  ;;  %v1721_v56 = vadd.f32 %v1650_v30, %v1477_v57  ;;  %v1894_v59 = vsel %vm1338_vm1, %v1892_v61, %v1893_v62  ;;  %v795_v35 = vmul.f32 %v2838_v16, %v4003_v43 }
 0x161   : > { %v500_v53 = vadd.f32 %v468_v25, %v432_v42  ;;  %v674_v50 = vrot.slane %v550_v36, 1  ;;  %v1039_v34 = vmul.f32 %v2840_v17, %v4100_v46  ;;  %v1283_v49 = vmul.f32 %v2842_v18, %v3913_v63  ;;  %v4150_v25 = vld [vmem:[%s2820_s28 + $0x188] sm:$0xff] }
 0x162   : > { %v2570_v58 = vpop.eup %2569  ;;  %v1965_v29 = vadd.f32 %v1894_v59, %v1721_v56  ;;  %v918_v60 = vrot.slane %v795_v35, 1  ;;  %v1528_v0 = vmul.f32 %v2844_v19, %v4003_v43  ;;  %v1772_v2 = vmul.f32 %v2878_v52, %v4100_v46 }
 0x163   : > { %v2225_v37 = vmul.f32 %v2570_v58, %v3987_v7  ;;  %v675_v1 = vsel %vm605_vm0, %v672_v55, %v674_v50  ;;  %v1162_v45 = vrot.slane %v1039_v34, 1  ;;  %v1407_v44 = vrot.slane %v1283_v49, 2 }
 0x164   : > { %v4115_v9 = vadd.f32 %v4018_v32, %v1965_v29  ;;  %v745_v63 = vadd.f32 %v675_v1, %v500_v53  ;;  %v919_v10 = vsel %vm605_vm0, %v916_v41, %v918_v60  ;;  %v1651_v24 = vrot.slane %v1528_v0, 2 }
 0x165   : > { %2258 = vst.msk [vmem:[%s3050_s30 + $0xb8] sm:$0xff] %vm2234_vm2, %v2225_v37  ;;  %v1163_v6 = vsel %vm605_vm0, %v1160_v20, %v1162_v45  ;;  %v1408_v22 = vsel %vm1338_vm1, %v1405_v28, %v1407_v44  ;;  %v1895_v51 = vrot.slane %v1772_v2, 2  ;;  %v333_v7 = vmul.f32 %v2827_v11, %v3940_v39 }
 0x166   : > { %v2416_v55 = vmul.f32 -1.442695, %v4115_v9  ;;  %v989_v33 = vadd.f32 %v919_v10, %v745_v63  ;;  %v1652_v27 = vsel %vm1338_vm1, %v1649_v3, %v1651_v24  ;;  %v401_v41 = vmul.f32 %v2829_v12, %v4034_v48 }
 0x167   : > { %v1896_v15 = vsel %vm1338_vm1, %v1893_v62, %v1895_v51  ;;  %v469_v20 = vmul.f32 %v2831_v13, %v4127_v23  ;;  %v551_v28 = vmul.f32 %v2833_v14, %v3940_v39  ;;  %v4138_v61 = vmul.f32 %v2833_v14, %v3963_v5 }
 0x168   : > { %2575 = vpow2.f32 %v2416_v55  ;;  %v1233_v3 = vadd.f32 %v1163_v6, %v989_v33  ;;  %v433_v26 = vadd.f32 %v401_v41, %v333_v7  ;;  %v796_v40 = vmul.f32 %v2838_v16, %v4034_v48 }
 0x169   : > { %v2572_v4 = vpop.eup %2571  ;;  %v676_v54 = vrot.slane %v551_v28, 1  ;;  %v677_v38 = vrot.slane %v4138_v61, 1  ;;  %v4145_v31 = vmul.f32 %v2838_v16, %v4055_v47  ;;  %v1040_v57 = vmul.f32 %v2840_v17, %v4127_v23 }
 0x16a   : > { %v2574_v30 = vpop.eup %2573  ;;  %v2131_v62 = vadd.f32 1.0, %v2572_v4  ;;  %v1478_v42 = vadd.f32 %v1408_v22, %v1233_v3  ;;  %v501_v36 = vadd.f32 %v469_v20, %v433_v26  ;;  %v920_v56 = vrot.slane %v796_v40, 1 }
 0x16b   : > { %v2226_v59 = vmul.f32 %v2574_v30, %v4021_v8  ;;  %v678_v35 = vsel %vm605_vm0, %v676_v54, %v677_v38  ;;  %v921_v53 = vrot.slane %v4145_v31, 1  ;;  %v1041_v50 = vmul.f32 %v2840_v17, %v4150_v25 }
 0x16c   : > { %2577 = vrcp.f32 %v2131_v62  ;;  %v1722_v34 = vadd.f32 %v1652_v27, %v1478_v42  ;;  %v746_v49 = vadd.f32 %v678_v35, %v501_v36  ;;  %v1164_v58 = vrot.slane %v1040_v57, 1 }
 0x16d   : > { %2259 = vst.msk [vmem:[%s3050_s30 + $0xc0] sm:$0xff] %vm2234_vm2, %v2226_v59  ;;  %v922_v29 = vsel %vm605_vm0, %v920_v56, %v921_v53  ;;  %v1165_v60 = vrot.slane %v1041_v50, 1  ;;  %v1284_v8 = vmul.f32 %v2842_v18, %v3940_v39  ;;  %v1285_v0 = vmul.f32 %v2842_v18, %v3963_v5 }
 0x16e   : > { %v1966_v2 = vadd.f32 %v1896_v15, %v1722_v34  ;;  %v990_v37 = vadd.f32 %v922_v29, %v746_v49  ;;  %v1529_v1 = vmul.f32 %v2844_v19, %v4034_v48  ;;  %v1530_v45 = vmul.f32 %v2844_v19, %v4055_v47 }
 0x16f   : > { %v1166_v44 = vsel %vm605_vm0, %v1164_v58, %v1165_v60  ;;  %v1409_v63 = vrot.slane %v1284_v8, 2  ;;  %v1410_v10 = vrot.slane %v1285_v0, 2  ;;  %v1773_v24 = vmul.f32 %v2878_v52, %v4127_v23 }
 0x170   : > { %v4174_v39 = vadd.f32 %v4018_v32, %v1966_v2  ;;  %v1234_v6 = vadd.f32 %v1166_v44, %v990_v37  ;;  %v1653_v22 = vrot.slane %v1529_v1, 2  ;;  %v1654_v51 = vrot.slane %v1530_v45, 2  ;;  %v295_v45 = vld [vmem:[%s2820_s28 + $0x198] sm:$0xff]  ;;  %v296_v44 = vld [vmem:[%s2820_s28 + $0x1a0] sm:$0xff] }
 0x171   : > { %v1411_v7 = vsel %vm1338_vm1, %v1409_v63, %v1410_v10  ;;  %v1774_v55 = vmul.f32 %v2878_v52, %v4150_v25  ;;  %v1897_v33 = vrot.slane %v1773_v24, 2  ;;  %v334_v27 = vmul.f32 %v2827_v11, %v3963_v5  ;;  %v4190_v5 = vld [vmem:[%s2820_s28 + $0x190] sm:$0x3] }
 0x172   : > { %v2576_v41 = vpop.eup %2575  ;;  %v2417_v15 = vmul.f32 -1.442695, %v4174_v39  ;;  %v1479_v20 = vadd.f32 %v1411_v7, %v1234_v6  ;;  %v1655_v28 = vsel %vm1338_vm1, %v1653_v22, %v1654_v51  ;;  %v402_v3 = vmul.f32 %v2829_v12, %v4055_v47 }
 0x173   : > { %v2132_v26 = vadd.f32 1.0, %v2576_v41  ;;  %v1898_v40 = vrot.slane %v1774_v55, 2  ;;  %v470_v4 = vmul.f32 %v2831_v13, %v4150_v25  ;;  %v553_v54 = vmul.f32 %v2833_v14, %v4003_v43 }
 0x174   : > { %2579 = vpow2.f32 %v2417_v15  ;;  %v1723_v31 = vadd.f32 %v1655_v28, %v1479_v20  ;;  %v434_v57 = vadd.f32 %v402_v3, %v334_v27  ;;  %v798_v30 = vmul.f32 %v2838_v16, %v4100_v46 }
 0x175   : > { %2581 = vrcp.f32 %v2132_v26  ;;  %v1899_v62 = vsel %vm1338_vm1, %v1897_v33, %v1898_v40  ;;  %v679_v42 = vrot.slane %v553_v54, 1  ;;  %v1042_v36 = vmul.f32 %v2840_v17, %v4190_v5 }
 0x176   : > { %v2578_v56 = vpop.eup %2577  ;;  %v1967_v59 = vadd.f32 %v1899_v62, %v1723_v31  ;;  %v502_v35 = vadd.f32 %v470_v4, %v434_v57  ;;  %v923_v50 = vrot.slane %v798_v30, 1  ;;  %v1286_v34 = vmul.f32 %v2842_v18, %v4003_v43 }
 0x177   : > { %v2227_v49 = vmul.f32 %v2578_v56, %v4083_v21  ;;  %v680_v58 = vsel %vm605_vm0, %v677_v38, %v679_v42  ;;  %v1167_v29 = vrot.slane %v1042_v36, 1  ;;  %v1531_v8 = vmul.f32 %v2844_v19, %v4100_v46 }
 0x178   : > { %v4206_v0 = vadd.f32 %v4018_v32, %v1967_v59  ;;  %v747_v2 = vadd.f32 %v680_v58, %v502_v35  ;;  %v924_v37 = vsel %vm605_vm0, %v921_v53, %v923_v50  ;;  %v1412_v1 = vrot.slane %v1286_v34, 2 }
 0x179   : > { %2260 = vst.msk [vmem:[%s3050_s30 + $0xc8] sm:$0xff] %vm2234_vm2, %v2227_v49  ;;  %v1168_v43 = vsel %vm605_vm0, %v1165_v60, %v1167_v29  ;;  %v1656_v21 = vrot.slane %v1531_v8, 2  ;;  %v1775_v61 = vmul.f32 %v2878_v52, %v4190_v5  ;;  %v335_v38 = vmul.f32 %v2827_v11, %v4034_v48 }
 0x17a   : > { %v2418_v63 = vmul.f32 -1.442695, %v4206_v0  ;;  %v991_v24 = vadd.f32 %v924_v37, %v747_v2  ;;  %v1413_v6 = vsel %vm1338_vm1, %v1410_v10, %v1412_v1  ;;  %v403_v53 = vmul.f32 %v2829_v12, %v4127_v23 }
 0x17b   : > { %v1657_v22 = vsel %vm1338_vm1, %v1654_v51, %v1656_v21  ;;  %v1900_v7 = vrot.slane %v1775_v61, 2  ;;  %v471_v60 = vmul.f32 %v2831_v13, %v295_v45  ;;  %v4225_v55 = vmul.f32 %v2831_v13, %v296_v44 }
 0x17c   : > { %2583 = vpow2.f32 %v2418_v63  ;;  %v1235_v33 = vadd.f32 %v1168_v43, %v991_v24  ;;  %v435_v27 = vadd.f32 %v403_v53, %v335_v38  ;;  %v554_v41 = vmul.f32 %v2833_v14, %v4034_v48 }
 0x17d   : > { %v1901_v15 = vsel %vm1338_vm1, %v1898_v40, %v1900_v7  ;;  %v4232_v10 = vmul.f32 %v2833_v14, %v4055_v47  ;;  %v799_v51 = vmul.f32 %v2838_v16, %v4127_v23  ;;  %v4238_v20 = vmul.f32 %v2838_v16, %v4150_v25  ;;  %v297_v7 = vld [vmem:[%s2820_s28 + $0x1a8] sm:$0x3] }
 0x17e   : > { %v2580_v13 = vpop.eup %2579  ;;  %v1480_v28 = vadd.f32 %v1413_v6, %v1235_v33  ;;  %v503_v3 = vadd.f32 %v471_v60, %v435_v27  ;;  %v681_v26 = vrot.slane %v554_v41, 1  ;;  %v1043_v4 = vmul.f32 %v2840_v17, %v295_v45 }
 0x17f   : > { %v2582_v54 = vpop.eup %2581  ;;  %v2133_v40 = vadd.f32 1.0, %v2580_v13  ;;  %v682_v31 = vrot.slane %v4232_v10, 1  ;;  %v925_v57 = vrot.slane %v799_v51, 1  ;;  %v926_v30 = vrot.slane %v4238_v20, 1 }
 0x180   : > { %v2228_v62 = vmul.f32 %v2582_v54, %v4115_v9  ;;  %v1724_v42 = vadd.f32 %v1657_v22, %v1480_v28  ;;  %v1044_v36 = vmul.f32 %v2840_v17, %v296_v44  ;;  %v1169_v56 = vrot.slane %v1043_v4, 1 }
 0x181   : > { %2585 = vrcp.f32 %v2133_v40  ;;  %v683_v59 = vsel %vm605_vm0, %v681_v26, %v682_v31  ;;  %v927_v35 = vsel %vm605_vm0, %v925_v57, %v926_v30  ;;  %v1287_v50 = vmul.f32 %v2842_v18, %v4034_v48 }
 0x182   : > { %2261 = vst.msk [vmem:[%s3050_s30 + $0xd0] sm:$0xff] %vm2234_vm2, %v2228_v62  ;;  %v1968_v34 = vadd.f32 %v1901_v15, %v1724_v42  ;;  %v748_v49 = vadd.f32 %v683_v59, %v503_v3  ;;  %v1170_v58 = vrot.slane %v1044_v36, 1  ;;  %v1288_v9 = vmul.f32 %v2842_v18, %v4055_v47 }
 0x183   : > { %v1414_v29 = vrot.slane %v1287_v50, 2  ;;  %v1532_v8 = vmul.f32 %v2844_v19, %v4127_v23  ;;  %v1533_v2 = vmul.f32 %v2844_v19, %v4150_v25  ;;  %v1776_v37 = vmul.f32 %v2878_v52, %v295_v45 }
 0x184   : > { %v4259_v48 = vadd.f32 %v4018_v32, %v1968_v34  ;;  %v992_v1 = vadd.f32 %v927_v35, %v748_v49  ;;  %v1171_v43 = vsel %vm605_vm0, %v1169_v56, %v1170_v58  ;;  %v1415_v21 = vrot.slane %v1288_v9, 2 }
 0x185   : > { %v1658_v61 = vrot.slane %v1532_v8, 2  ;;  %v1659_v38 = vrot.slane %v1533_v2, 2  ;;  %v1777_v63 = vmul.f32 %v2878_v52, %v296_v44  ;;  %v1902_v24 = vrot.slane %v1776_v37, 2 }
 0x186   : > { %v2584_v6 = vpop.eup %2583  ;;  %v2419_v23 = vmul.f32 -1.442695, %v4259_v48  ;;  %v1236_v53 = vadd.f32 %v1171_v43, %v992_v1  ;;  %v1416_v22 = vsel %vm1338_vm1, %v1414_v29, %v1415_v21  ;;  %v336_v45 = vmul.f32 %v2827_v11, %v4055_v47 }
 0x187   : > { %v2134_v60 = vadd.f32 1.0, %v2584_v6  ;;  %v1660_v33 = vsel %vm1338_vm1, %v1658_v61, %v1659_v38  ;;  %v1903_v27 = vrot.slane %v1777_v63, 2  ;;  %v404_v41 = vmul.f32 %v2829_v12, %v4150_v25 }
 0x188   : > { %2587 = vpow2.f32 %v2419_v23  ;;  %v1481_v44 = vadd.f32 %v1416_v22, %v1236_v53  ;;  %v556_v15 = vmul.f32 %v2833_v14, %v4100_v46  ;;  %v801_v10 = vmul.f32 %v2838_v16, %v4190_v5 }
 0x189   : > { %2589 = vrcp.f32 %v2134_v60  ;;  %v1904_v51 = vsel %vm1338_vm1, %v1902_v24, %v1903_v27  ;;  %v436_v20 = vadd.f32 %v404_v41, %v336_v45  ;;  %v1045_v11 = vmul.f32 %v2840_v17, %v297_v7 }
 0x18a   : > { %v1725_v47 = vadd.f32 %v1660_v33, %v1481_v44  ;;  %v684_v13 = vrot.slane %v556_v15, 1  ;;  %v928_v28 = vrot.slane %v801_v10, 1  ;;  %v1289_v12 = vmul.f32 %v2842_v18, %v4100_v46 }
 0x18b   : > { %v2586_v25 = vpop.eup %2585  ;;  %v504_v3 = vadd.f32 %v4225_v55, %v436_v20  ;;  %v1172_v14 = vrot.slane %v1045_v11, 1  ;;  %v1534_v16 = vmul.f32 %v2844_v19, %v4190_v5  ;;  %v1778_v26 = vmul.f32 %v2878_v52, %v297_v7 }
 0x18c   : > { %v2229_v4 = vmul.f32 %v2586_v25, %v4174_v39  ;;  %v1969_v54 = vadd.f32 %v1904_v51, %v1725_v47  ;;  %v685_v17 = vsel %vm605_vm0, %v682_v31, %v684_v13  ;;  %v929_v40 = vsel %vm605_vm0, %v926_v30, %v928_v28 }
 0x18d   : > { %v749_v57 = vadd.f32 %v685_v17, %v504_v3  ;;  %v1417_v62 = vrot.slane %v1289_v12, 2  ;;  %v1173_v46 = vsel %vm605_vm0, %v1170_v58, %v1172_v14  ;;  %v1661_v55 = vrot.slane %v1534_v16, 2 }
 0x18e   : > { %2262 = vst.msk [vmem:[%s3050_s30 + $0xd8] sm:$0xff] %vm2234_vm2, %v2229_v4  ;;  %v2008_v18 = vadd.f32 %v4018_v32, %v1969_v54  ;;  %v1905_v39 = vrot.slane %v1778_v26, 2 }
 0x18f   : > { %v993_v19 = vadd.f32 %v929_v40, %v749_v57  ;;  %v1418_v52 = vsel %vm1338_vm1, %v1415_v21, %v1417_v62  ;;  %v1662_v31 = vsel %vm1338_vm1, %v1659_v38, %v1661_v55 }
 0x190   : > { %v2420_v5 = vmul.f32 -1.442695, %v2008_v18  ;;  %v1906_v50 = vsel %vm1338_vm1, %v1903_v27, %v1905_v39 }
 0x191   : > { %v1237_v42 = vadd.f32 %v1173_v46, %v993_v19 }
 0x192   : > { %v2588_v36 = vpop.eup %2587  ;;  %2591 = vpow2.f32 %v2420_v5 }
 0x193   : > { %v2590_v30 = vpop.eup %2589  ;;  %v2135_v56 = vadd.f32 1.0, %v2588_v36  ;;  %v1482_v59 = vadd.f32 %v1418_v52, %v1237_v42 }
 0x194   : > { %v2230_v35 = vmul.f32 %v2590_v30, %v4206_v0 }
 0x195   : > { %2593 = vrcp.f32 %v2135_v56  ;;  %v1726_v34 = vadd.f32 %v1662_v31, %v1482_v59 }
 0x196   : > { %2263 = vst.msk [vmem:[%s3050_s30 + $0xe0] sm:$0xff] %vm2234_vm2, %v2230_v35 }
 0x197   : > { %v1970_v49 = vadd.f32 %v1906_v50, %v1726_v34 }
 0x199   : > { %v2009_v58 = vadd.f32 %v4018_v32, %v1970_v49 }
 0x19b   : > { %v2421_v9 = vmul.f32 -1.442695, %v2009_v58 }
 0x19c   : > { %v2592_v29 = vpop.eup %2591 }
 0x19d   : > { %v2136_v8 = vadd.f32 1.0, %v2592_v29  ;;  %2595 = vpow2.f32 %v2421_v9 }
 0x19f   : > { %v2594_v2 = vpop.eup %2593  ;;  %2597 = vrcp.f32 %v2136_v8 }
 0x1a0   : > { %v2231_v37 = vmul.f32 %v2594_v2, %v4259_v48 }
 0x1a2   : > { %2264 = vst.msk [vmem:[%s3050_s30 + $0xe8] sm:$0xff] %vm2234_vm2, %v2231_v37 }
 0x1a7   : > { %v2596_v0 = vpop.eup %2595 }
 0x1a8   : > { %v2137_v1 = vadd.f32 1.0, %v2596_v0 }
 0x1a9   : > { %v2598_v43 = vpop.eup %2597 }
 0x1aa   : > { %v2232_v21 = vmul.f32 %v2598_v43, %v2008_v18  ;;  %2599 = vrcp.f32 %v2137_v1 }
 0x1ac   : > { %2265 = vst.msk [vmem:[%s3050_s30 + $0xf0] sm:$0xff] %vm2234_vm2, %v2232_v21 }
 0x1b4   : > { %v2600_v61 = vpop.eup %2599 }
 0x1b5   : > { %v2233_v32 = vmul.f32 %v2600_v61, %v2009_v58 }
 0x1b7   : > { %2266 = vst.msk [vmem:[%s3050_s30 + $0xf8] sm:$0xff] %vm2234_vm2, %v2233_v32 }
 0x1b8 PF: > { %s15_s14 = sadd.s32 1, %s2689_s14   ;;  %s4325_s12 = smov %s2685_s13 }
 0x1b9   : > { %p12_p6 = scmp.ge.s32.totalorder %s15_s14, 4   ;;  %s4326_s13 = smov %s4328_s16 }
 0x1bb   :  { %14 = sbr.rel (!%p12_p6) target bundleno = 3 (0x3), region = 73 }
 0x1c2   :  { %2294 = vsyncpa [#allocation3], 1 }
 0x1c3   :  { %2296 = vsyncpa [#allocation3 + $0x1], 1 }
 0x1c4   :  { %2297 = vsyncpa [#allocation5], 1 }

// kernel: squeeze.18
= control target key start
LH: loop header
LB: loop body
LE: loop exit
PB: predicated region body
PF: predicated region fallthrough
CT: control target
= control target key end

     0   :  { %vm81_vm0 = vcmask 130048   ;;  %vm161_vm1 = vcmask 1047556   ;;  %s622_s18 = smov 112   ;;  %s623_s11 = smov 96   ;;  %s988_s0 = inlined_call_operand.vmem [shape: f32[2,256,1,8], index: 0, kind: input, shape index: {}]   ;;  %s989_s1 = inlined_call_operand.vmem [shape: f32[2,16,16,8], index: 1, kind: output, shape index: {}]  }
   0x1   :  { %v541_v0 = vld [vmem:[%s988_s0 + $0x6] sm:$0x3]  ;;  %v542_v1 = vld [vmem:[%s988_s0 + $0x4] sm:$0x3]  ;;  %v543_v2 = vld [vmem:[%s988_s0 + $0x2] sm:$0x3] }
   0x2   :  { %68 = vst [vmem:[#allocation0 + $0x18] sm:$0x3] %v541_v0  ;;  %73 = vst [vmem:[#allocation0 + $0x10] sm:$0x3] %v542_v1  ;;  %v78_v3 = vld [vmem:[%s988_s0] sm:$0x3] }
   0x3   :  { %77 = vst [vmem:[#allocation0 + $0x8] sm:$0x3] %v543_v2  ;;  %79 = vst [vmem:[#allocation0] sm:$0x3] %v78_v3  ;;  %v533_v4 = vld [vmem:[%s988_s0 + $0x16] sm:$0x3] }
   0x4   :  { %v534_v5 = vld [vmem:[%s988_s0 + $0x14] sm:$0x3]  ;;  %v535_v6 = vld [vmem:[%s988_s0 + $0x12] sm:$0x3]  ;;  %28 = vst [vmem:[#allocation0 + $0x58] sm:$0x3] %v533_v4 }
   0x5   :  { %33 = vst [vmem:[#allocation0 + $0x50] sm:$0x3] %v534_v5  ;;  %38 = vst [vmem:[#allocation0 + $0x48] sm:$0x3] %v535_v6  ;;  %v536_v7 = vld [vmem:[%s988_s0 + $0x10] sm:$0x3] }
   0x6   :  { %v537_v8 = vld [vmem:[%s988_s0 + $0xe] sm:$0x3]  ;;  %v538_v9 = vld [vmem:[%s988_s0 + $0xc] sm:$0x3]  ;;  %43 = vst [vmem:[#allocation0 + $0x40] sm:$0x3] %v536_v7 }
   0x7   :  { %48 = vst [vmem:[#allocation0 + $0x38] sm:$0x3] %v537_v8  ;;  %53 = vst [vmem:[#allocation0 + $0x30] sm:$0x3] %v538_v9  ;;  %v539_v10 = vld [vmem:[%s988_s0 + $0xa] sm:$0x3] }
   0x8   :  { %v540_v11 = vld [vmem:[%s988_s0 + $0x8] sm:$0x3]  ;;  %v529_v12 = vld [vmem:[%s988_s0 + $0x1e] sm:$0x3]  ;;  %58 = vst [vmem:[#allocation0 + $0x28] sm:$0x3] %v539_v10 }
   0x9   :  { %63 = vst [vmem:[#allocation0 + $0x20] sm:$0x3] %v540_v11  ;;  %8 = vst [vmem:[#allocation0 + $0x78] sm:$0x3] %v529_v12  ;;  %v530_v13 = vld [vmem:[%s988_s0 + $0x1c] sm:$0x3] }
   0xa   :  { %v531_v14 = vld [vmem:[%s988_s0 + $0x1a] sm:$0x3]  ;;  %v532_v15 = vld [vmem:[%s988_s0 + $0x18] sm:$0x3]  ;;  %13 = vst [vmem:[#allocation0 + $0x70] sm:$0x3] %v530_v13 }
   0xb   :  { %18 = vst [vmem:[#allocation0 + $0x68] sm:$0x3] %v531_v14  ;;  %23 = vst [vmem:[#allocation0 + $0x60] sm:$0x3] %v532_v15  ;;  %v84_v16 = vld [vmem:[#allocation0 + $0x8] sm:$0x3]  }
   0xc   :  { %v89_v17 = vld [vmem:[#allocation0 + $0x10] sm:$0x3]   ;;  %v94_v18 = vld [vmem:[#allocation0 + $0x18] sm:$0x3]   ;;  %v80_v19 = vld [vmem:[#allocation0] sm:$0x3]  }
   0xd   :  { %544 = vst.msk [vmem:[%s989_s1 + $0x8] ss:$16 sm:$0x3] %vm81_vm0, %v84_v16   ;;  %545 = vst.msk [vmem:[%s989_s1 + $0x20] ss:$16 sm:$0x3] %vm81_vm0, %v89_v17  }
   0xe   :  { %v158_v20 = vld.sshfl [vmem:[#allocation0] sm:$0xff pattern:$0x99999180]   ;;  %546 = vst.msk [vmem:[%s989_s1 + $0x28] ss:$16 sm:$0x3] %vm81_vm0, %v94_v18  }
   0xf   :  { %82 = vst.msk [vmem:[%s989_s1] ss:$16 sm:$0x3] %vm81_vm0, %v80_v19   ;;  %v160_v21 = vld.sshfl [vmem:[#allocation0 + $0x10] sm:$0xff pattern:$0x91800000]  }
  0x10   :  { %v124_v22 = vld [vmem:[#allocation0 + $0x48] sm:$0x3]   ;;  %v704_v23 = vsel %vm161_vm1, %v160_v21, %v158_v20  ;;  %v119_v24 = vld [vmem:[#allocation0 + $0x40] sm:$0x3]   ;;  %v129_v25 = vld [vmem:[#allocation0 + $0x50] sm:$0x3]  }
  0x11   :  { %552 = vst.msk [vmem:[%s989_s1 + $0x88] ss:$16 sm:$0x3] %vm81_vm0, %v124_v22   ;;  %v134_v26 = vld [vmem:[#allocation0 + $0x58] sm:$0x3]   ;;  %163 = vrot.lane.b32.xlu0 %v704_v23, %s622_s18  ;;  %s624_s12 = smov 80  }
  0x12   :  { %551 = vst.msk [vmem:[%s989_s1 + $0x80] ss:$16 sm:$0x3] %vm81_vm0, %v119_v24   ;;  %553 = vst.msk [vmem:[%s989_s1 + $0xa0] ss:$16 sm:$0x3] %vm81_vm0, %v129_v25  }
  0x13   :  { %v184_v27 = vld.sshfl [vmem:[#allocation0 + $0x40] sm:$0xff pattern:$0x99999180]   ;;  %v186_v28 = vld.sshfl [vmem:[#allocation0 + $0x50] sm:$0xff pattern:$0x91800000]  }
  0x14   :  { %554 = vst.msk [vmem:[%s989_s1 + $0xa8] ss:$16 sm:$0x3] %vm81_vm0, %v134_v26   ;;  %v188_v29 = vsel %vm161_vm1, %v186_v28, %v184_v27  ;;  %v171_v30 = vld.sshfl [vmem:[#allocation0 + $0x20] sm:$0xff pattern:$0x99999180]  }
  0x15   :  { %v173_v31 = vld.sshfl [vmem:[#allocation0 + $0x30] sm:$0xff pattern:$0x91800000]   ;;  %189 = vrot.lane.b32.xlu1 %v188_v29, %s622_s18  ;;  %v197_v33 = vld.sshfl [vmem:[#allocation0 + $0x60] sm:$0xff pattern:$0x99999180]  }
  0x16   :  { %v175_v32 = vsel %vm161_vm1, %v173_v31, %v171_v30  ;;  %v199_v34 = vld.sshfl [vmem:[#allocation0 + $0x70] sm:$0xff pattern:$0x91800000]   ;;  %v139_v36 = vld [vmem:[#allocation0 + $0x60] sm:$0x3]   ;;  %s625_s13 = smov 64  }
  0x17   :  { %v201_v35 = vsel %vm161_vm1, %v199_v34, %v197_v33  ;;  %v144_v37 = vld [vmem:[#allocation0 + $0x68] sm:$0x3]   ;;  %v109_v38 = vld [vmem:[#allocation0 + $0x30] sm:$0x3]   ;;  %176 = vrot.lane.b32.xlu0 %v175_v32, %s622_s18  ;;  %v114_v39 = vld [vmem:[#allocation0 + $0x38] sm:$0x3]  }
  0x18   :  { %555 = vst.msk [vmem:[%s989_s1 + $0xc0] ss:$16 sm:$0x3] %vm81_vm0, %v139_v36   ;;  %556 = vst.msk [vmem:[%s989_s1 + $0xc8] ss:$16 sm:$0x3] %vm81_vm0, %v144_v37  }
  0x19   :  { %549 = vst.msk [vmem:[%s989_s1 + $0x60] ss:$16 sm:$0x3] %vm81_vm0, %v109_v38   ;;  %v99_v40 = vld [vmem:[#allocation0 + $0x20] sm:$0x3]   ;;  %202 = vrot.lane.b32.xlu1 %v201_v35, %s622_s18  ;;  %s626_s14 = smov 48  }
  0x1a   :  { %v104_v41 = vld [vmem:[#allocation0 + $0x28] sm:$0x3]   ;;  %550 = vst.msk [vmem:[%s989_s1 + $0x68] ss:$16 sm:$0x3] %vm81_vm0, %v114_v39   ;;  %s627_s15 = smov 32  }
  0x1b   :  { %547 = vst.msk [vmem:[%s989_s1 + $0x40] ss:$16 sm:$0x3] %vm81_vm0, %v99_v40   ;;  %548 = vst.msk [vmem:[%s989_s1 + $0x48] ss:$16 sm:$0x3] %vm81_vm0, %v104_v41   ;;  %214 = vrot.lane.b32.xlu0 %v704_v23, %s623_s11 }
  0x1c   :  { %v149_v42 = vld [vmem:[#allocation0 + $0x70] sm:$0x3]   ;;  %v154_v43 = vld [vmem:[#allocation0 + $0x78] sm:$0x3]   ;;  %s628_s16 = smov 16  }
  0x1d   :  { %557 = vst.msk [vmem:[%s989_s1 + $0xe0] ss:$16 sm:$0x3] %vm81_vm0, %v149_v42   ;;  %558 = vst.msk [vmem:[%s989_s1 + $0xe8] ss:$16 sm:$0x3] %vm81_vm0, %v154_v43   ;;  %227 = vrot.lane.b32.xlu1 %v175_v32, %s623_s11 }
  0x1f   :  { %240 = vrot.lane.b32.xlu0 %v188_v29, %s623_s11 }
  0x21   :  { %253 = vrot.lane.b32.xlu1 %v201_v35, %s623_s11 }
  0x23   :  { %265 = vrot.lane.b32.xlu0 %v704_v23, %s624_s12 }
  0x25   :  { %278 = vrot.lane.b32.xlu1 %v175_v32, %s624_s12 }
  0x27   :  { %291 = vrot.lane.b32.xlu0 %v188_v29, %s624_s12 }
  0x29   :  { %304 = vrot.lane.b32.xlu1 %v201_v35, %s624_s12 }
  0x2b   :  { %316 = vrot.lane.b32.xlu0 %v704_v23, %s625_s13 }
  0x2d   :  { %329 = vrot.lane.b32.xlu1 %v175_v32, %s625_s13 }
  0x2f   :  { %342 = vrot.lane.b32.xlu0 %v188_v29, %s625_s13 }
  0x31   :  { %355 = vrot.lane.b32.xlu1 %v201_v35, %s625_s13 }
  0x33   :  { %367 = vrot.lane.b32.xlu0 %v704_v23, %s626_s14 }
  0x35   :  { %380 = vrot.lane.b32.xlu1 %v175_v32, %s626_s14 }
  0x37   :  { %393 = vrot.lane.b32.xlu0 %v188_v29, %s626_s14 }
  0x39   :  { %406 = vrot.lane.b32.xlu1 %v201_v35, %s626_s14 }
  0x3b   :  { %418 = vrot.lane.b32.xlu0 %v704_v23, %s627_s15 }
  0x3d   :  { %431 = vrot.lane.b32.xlu1 %v175_v32, %s627_s15 }
  0x3f   :  { %444 = vrot.lane.b32.xlu0 %v188_v29, %s627_s15 }
  0x41   :  { %457 = vrot.lane.b32.xlu1 %v201_v35, %s627_s15 }
  0x43   :  { %469 = vrot.lane.b32.xlu0 %v704_v23, %s628_s16 }
  0x45   :  { %482 = vrot.lane.b32.xlu1 %v175_v32, %s628_s16 }
  0x47   :  { %495 = vrot.lane.b32.xlu0 %v188_v29, %s628_s16 }
  0x49   :  { %508 = vrot.lane.b32.xlu1 %v201_v35, %s628_s16 }
  0x83   :  { %v164_v44 = vpop.permute.xlu0 %163  }
  0x84   :  { %559 = vst.msk [vmem:[%s989_s1 + $0x1] ss:$8 sm:$0xf] %vm81_vm0, %v164_v44   ;;  %560 = vst.msk [vmem:[%s989_s1 + $0x1] ss:$8 sm:$0xf0] %vm81_vm0, %v164_v44  }
  0x87   :  { %v190_v45 = vpop.permute.xlu1 %189  }
  0x88   :  { %563 = vst.msk [vmem:[%s989_s1 + $0x81] ss:$8 sm:$0xf] %vm81_vm0, %v190_v45   ;;  %564 = vst.msk [vmem:[%s989_s1 + $0x81] ss:$8 sm:$0xf0] %vm81_vm0, %v190_v45  }
  0x89   :  { %v177_v46 = vpop.permute.xlu0 %176  }
  0x8a   :  { %561 = vst.msk [vmem:[%s989_s1 + $0x41] ss:$8 sm:$0xf] %vm81_vm0, %v177_v46   ;;  %562 = vst.msk [vmem:[%s989_s1 + $0x41] ss:$8 sm:$0xf0] %vm81_vm0, %v177_v46  }
  0x8b   :  { %v203_v47 = vpop.permute.xlu1 %202  }
  0x8c   :  { %565 = vst.msk [vmem:[%s989_s1 + $0xc1] ss:$8 sm:$0xf] %vm81_vm0, %v203_v47   ;;  %566 = vst.msk [vmem:[%s989_s1 + $0xc1] ss:$8 sm:$0xf0] %vm81_vm0, %v203_v47  }
  0x8d   :  { %v215_v48 = vpop.permute.xlu0 %214  }
  0x8e   :  { %567 = vst.msk [vmem:[%s989_s1 + $0x2] ss:$8 sm:$0xf] %vm81_vm0, %v215_v48   ;;  %568 = vst.msk [vmem:[%s989_s1 + $0x2] ss:$8 sm:$0xf0] %vm81_vm0, %v215_v48  }
  0x8f   :  { %v228_v49 = vpop.permute.xlu1 %227  }
  0x90   :  { %569 = vst.msk [vmem:[%s989_s1 + $0x42] ss:$8 sm:$0xf] %vm81_vm0, %v228_v49   ;;  %570 = vst.msk [vmem:[%s989_s1 + $0x42] ss:$8 sm:$0xf0] %vm81_vm0, %v228_v49  }
  0x91   :  { %v241_v50 = vpop.permute.xlu0 %240  }
  0x92   :  { %571 = vst.msk [vmem:[%s989_s1 + $0x82] ss:$8 sm:$0xf] %vm81_vm0, %v241_v50   ;;  %572 = vst.msk [vmem:[%s989_s1 + $0x82] ss:$8 sm:$0xf0] %vm81_vm0, %v241_v50  }
  0x93   :  { %v254_v51 = vpop.permute.xlu1 %253  }
  0x94   :  { %573 = vst.msk [vmem:[%s989_s1 + $0xc2] ss:$8 sm:$0xf] %vm81_vm0, %v254_v51   ;;  %574 = vst.msk [vmem:[%s989_s1 + $0xc2] ss:$8 sm:$0xf0] %vm81_vm0, %v254_v51  }
  0x95   :  { %v266_v52 = vpop.permute.xlu0 %265  }
  0x96   :  { %575 = vst.msk [vmem:[%s989_s1 + $0x3] ss:$8 sm:$0xf] %vm81_vm0, %v266_v52   ;;  %576 = vst.msk [vmem:[%s989_s1 + $0x3] ss:$8 sm:$0xf0] %vm81_vm0, %v266_v52  }
  0x97   :  { %v279_v53 = vpop.permute.xlu1 %278  }
  0x98   :  { %577 = vst.msk [vmem:[%s989_s1 + $0x43] ss:$8 sm:$0xf] %vm81_vm0, %v279_v53   ;;  %578 = vst.msk [vmem:[%s989_s1 + $0x43] ss:$8 sm:$0xf0] %vm81_vm0, %v279_v53  }
  0x99   :  { %v292_v54 = vpop.permute.xlu0 %291  }
  0x9a   :  { %579 = vst.msk [vmem:[%s989_s1 + $0x83] ss:$8 sm:$0xf] %vm81_vm0, %v292_v54   ;;  %580 = vst.msk [vmem:[%s989_s1 + $0x83] ss:$8 sm:$0xf0] %vm81_vm0, %v292_v54  }
  0x9b   :  { %v305_v55 = vpop.permute.xlu1 %304  }
  0x9c   :  { %581 = vst.msk [vmem:[%s989_s1 + $0xc3] ss:$8 sm:$0xf] %vm81_vm0, %v305_v55   ;;  %582 = vst.msk [vmem:[%s989_s1 + $0xc3] ss:$8 sm:$0xf0] %vm81_vm0, %v305_v55  }
  0x9d   :  { %v317_v56 = vpop.permute.xlu0 %316  }
  0x9e   :  { %583 = vst.msk [vmem:[%s989_s1 + $0x4] ss:$8 sm:$0xf] %vm81_vm0, %v317_v56   ;;  %584 = vst.msk [vmem:[%s989_s1 + $0x4] ss:$8 sm:$0xf0] %vm81_vm0, %v317_v56  }
  0x9f   :  { %v330_v57 = vpop.permute.xlu1 %329  }
  0xa0   :  { %585 = vst.msk [vmem:[%s989_s1 + $0x44] ss:$8 sm:$0xf] %vm81_vm0, %v330_v57   ;;  %586 = vst.msk [vmem:[%s989_s1 + $0x44] ss:$8 sm:$0xf0] %vm81_vm0, %v330_v57  }
  0xa1   :  { %v343_v58 = vpop.permute.xlu0 %342  }
  0xa2   :  { %587 = vst.msk [vmem:[%s989_s1 + $0x84] ss:$8 sm:$0xf] %vm81_vm0, %v343_v58   ;;  %588 = vst.msk [vmem:[%s989_s1 + $0x84] ss:$8 sm:$0xf0] %vm81_vm0, %v343_v58  }
  0xa3   :  { %v356_v59 = vpop.permute.xlu1 %355  }
  0xa4   :  { %589 = vst.msk [vmem:[%s989_s1 + $0xc4] ss:$8 sm:$0xf] %vm81_vm0, %v356_v59   ;;  %590 = vst.msk [vmem:[%s989_s1 + $0xc4] ss:$8 sm:$0xf0] %vm81_vm0, %v356_v59  }
  0xa5   :  { %v368_v60 = vpop.permute.xlu0 %367  }
  0xa6   :  { %591 = vst.msk [vmem:[%s989_s1 + $0x5] ss:$8 sm:$0xf] %vm81_vm0, %v368_v60   ;;  %592 = vst.msk [vmem:[%s989_s1 + $0x5] ss:$8 sm:$0xf0] %vm81_vm0, %v368_v60  }
  0xa7   :  { %v381_v61 = vpop.permute.xlu1 %380  }
  0xa8   :  { %593 = vst.msk [vmem:[%s989_s1 + $0x45] ss:$8 sm:$0xf] %vm81_vm0, %v381_v61   ;;  %594 = vst.msk [vmem:[%s989_s1 + $0x45] ss:$8 sm:$0xf0] %vm81_vm0, %v381_v61  }
  0xa9   :  { %v394_v62 = vpop.permute.xlu0 %393  }
  0xaa   :  { %595 = vst.msk [vmem:[%s989_s1 + $0x85] ss:$8 sm:$0xf] %vm81_vm0, %v394_v62   ;;  %596 = vst.msk [vmem:[%s989_s1 + $0x85] ss:$8 sm:$0xf0] %vm81_vm0, %v394_v62  }
  0xab   :  { %v407_v63 = vpop.permute.xlu1 %406  }
  0xac   :  { %597 = vst.msk [vmem:[%s989_s1 + $0xc5] ss:$8 sm:$0xf] %vm81_vm0, %v407_v63   ;;  %598 = vst.msk [vmem:[%s989_s1 + $0xc5] ss:$8 sm:$0xf0] %vm81_vm0, %v407_v63  }
  0xad   :  { %v419_v0 = vpop.permute.xlu0 %418  }
  0xae   :  { %599 = vst.msk [vmem:[%s989_s1 + $0x6] ss:$8 sm:$0xf] %vm81_vm0, %v419_v0   ;;  %600 = vst.msk [vmem:[%s989_s1 + $0x6] ss:$8 sm:$0xf0] %vm81_vm0, %v419_v0  }
  0xaf   :  { %v432_v1 = vpop.permute.xlu1 %431  }
  0xb0   :  { %601 = vst.msk [vmem:[%s989_s1 + $0x46] ss:$8 sm:$0xf] %vm81_vm0, %v432_v1   ;;  %602 = vst.msk [vmem:[%s989_s1 + $0x46] ss:$8 sm:$0xf0] %vm81_vm0, %v432_v1  }
  0xb1   :  { %v445_v2 = vpop.permute.xlu0 %444  }
  0xb2   :  { %603 = vst.msk [vmem:[%s989_s1 + $0x86] ss:$8 sm:$0xf] %vm81_vm0, %v445_v2   ;;  %604 = vst.msk [vmem:[%s989_s1 + $0x86] ss:$8 sm:$0xf0] %vm81_vm0, %v445_v2  }
  0xb3   :  { %v458_v3 = vpop.permute.xlu1 %457  }
  0xb4   :  { %605 = vst.msk [vmem:[%s989_s1 + $0xc6] ss:$8 sm:$0xf] %vm81_vm0, %v458_v3   ;;  %606 = vst.msk [vmem:[%s989_s1 + $0xc6] ss:$8 sm:$0xf0] %vm81_vm0, %v458_v3  }
  0xb5   :  { %v470_v4 = vpop.permute.xlu0 %469  }
  0xb6   :  { %607 = vst.msk [vmem:[%s989_s1 + $0x7] ss:$8 sm:$0xf] %vm81_vm0, %v470_v4   ;;  %608 = vst.msk [vmem:[%s989_s1 + $0x7] ss:$8 sm:$0xf0] %vm81_vm0, %v470_v4  }
  0xb7   :  { %v483_v5 = vpop.permute.xlu1 %482  }
  0xb8   :  { %609 = vst.msk [vmem:[%s989_s1 + $0x47] ss:$8 sm:$0xf] %vm81_vm0, %v483_v5   ;;  %610 = vst.msk [vmem:[%s989_s1 + $0x47] ss:$8 sm:$0xf0] %vm81_vm0, %v483_v5  }
  0xb9   :  { %v496_v6 = vpop.permute.xlu0 %495  }
  0xba   :  { %611 = vst.msk [vmem:[%s989_s1 + $0x87] ss:$8 sm:$0xf] %vm81_vm0, %v496_v6   ;;  %612 = vst.msk [vmem:[%s989_s1 + $0x87] ss:$8 sm:$0xf0] %vm81_vm0, %v496_v6  }
  0xbb   :  { %v509_v7 = vpop.permute.xlu1 %508  }
  0xbc   :  { %613 = vst.msk [vmem:[%s989_s1 + $0xc7] ss:$8 sm:$0xf] %vm81_vm0, %v509_v7   ;;  %614 = vst.msk [vmem:[%s989_s1 + $0xc7] ss:$8 sm:$0xf0] %vm81_vm0, %v509_v7  }

// kernel: vss_block_no_cbam_forward.7
= control target key start
LH: loop header
LB: loop body
LE: loop exit
PB: predicated region body
PF: predicated region fallthrough
CT: control target
= control target key end

     0   :  { %vm211_vm0 = vcmask 1043456   ;;  %v743_v1 = vmov 0   ;;  %vm114_vm1 = vcmask 64512   ;;  %s1402_s1 = inlined_call_operand.vmem [shape: bf16[8,256], index: 1, kind: input, shape index: {}]   ;;  %s1403_s0 = inlined_call_operand.vmem [shape: f32[512,8], index: 0, kind: input, shape index: {}]   ;;  %s1404_s2 = inlined_call_operand.vmem [shape: f32[512,256], index: 2, kind: output, shape index: {}]  }
   0x1   :  { %v108_v0 = vld [vmem:[%s1402_s1] sm:$0xff]  ;;  %250 = vmatprep.mubr.bf16.mxu0 %v743_v1  ;;  %410 = vmatprep.mubr.bf16.mxu1 %v743_v1  ;;  %v13_v3 = vld [vmem:[%s1403_s0 + $0x8] sm:$0xff]  ;;  %v14_v11 = vld [vmem:[%s1403_s0 + $0x10] sm:$0xff] }
   0x2   :  { %v12_v2 = vld [vmem:[%s1403_s0] sm:$0xff]  ;;  %v704_v4 = vcombine.high %v108_v0, %v108_v0  ;;  %v703_v5 = vcombine.low %v108_v0, %v108_v0  ;;  %v45_v7 = vld [vmem:[%s1403_s0 + $0x108] sm:$0xff]  ;;  %v15_v12 = vld [vmem:[%s1403_s0 + $0x18] sm:$0xff] }
   0x3   :  { %v44_v6 = vld [vmem:[%s1403_s0 + $0x100] sm:$0xff]  ;;  %v76_v9 = vpack.c.bf16 %v13_v3, %v12_v2  ;;  %v46_v13 = vld [vmem:[%s1403_s0 + $0x110] sm:$0xff]  ;;  %v47_v14 = vld [vmem:[%s1403_s0 + $0x118] sm:$0xff]  ;;  %v77_v15 = vpack.c.bf16 %v15_v12, %v14_v11 }
   0x4   :  { %705 = vmatprep.subr.msk.bf16.mxu0 %vm211_vm0, %v704_v4  ;;  %738 = vmatprep.subr.msk.bf16.mxu1 %vm211_vm0, %v704_v4  ;;  %v213_v8 = vsel %vm211_vm0, %v703_v5, 0  ;;  %v92_v10 = vpack.c.bf16 %v45_v7, %v44_v6  ;;  %v93_v16 = vpack.c.bf16 %v47_v14, %v46_v13  ;;  %v16_v17 = vld [vmem:[%s1403_s0 + $0x20] sm:$0xff]  ;;  %v17_v18 = vld [vmem:[%s1403_s0 + $0x28] sm:$0xff]  ;;  %v18_v23 = vld [vmem:[%s1403_s0 + $0x30] sm:$0xff] }
   0x5   :  { %219 = vmatpush1.bf16.msra.mxu0 %v213_v8  ;;  %739 = vmatpush1.bf16.msra.mxu1 %v213_v8  ;;  %v48_v19 = vld [vmem:[%s1403_s0 + $0x120] sm:$0xff]  ;;  %v49_v20 = vld [vmem:[%s1403_s0 + $0x128] sm:$0xff]  ;;  %v78_v21 = vpack.c.bf16 %v17_v18, %v16_v17  ;;  %v19_v24 = vld [vmem:[%s1403_s0 + $0x38] sm:$0xff] }
   0x6   :  { %v94_v22 = vpack.c.bf16 %v49_v20, %v48_v19  ;;  %v50_v25 = vld [vmem:[%s1403_s0 + $0x130] sm:$0xff]  ;;  %v51_v26 = vld [vmem:[%s1403_s0 + $0x138] sm:$0xff]  ;;  %v79_v27 = vpack.c.bf16 %v19_v24, %v18_v23  ;;  %v20_v29 = vld [vmem:[%s1403_s0 + $0x40] sm:$0xff] }
   0x7   :  { %v95_v28 = vpack.c.bf16 %v51_v26, %v50_v25  ;;  %v21_v30 = vld [vmem:[%s1403_s0 + $0x48] sm:$0xff]  ;;  %v52_v31 = vld [vmem:[%s1403_s0 + $0x140] sm:$0xff]  ;;  %v22_v35 = vld [vmem:[%s1403_s0 + $0x50] sm:$0xff] }
   0x8   :  { %706 = vmatmul.mubr.msk.bf16.vlgmr.msra.gmra.mrb[0].mxu0 %vm114_vm1, %v76_v9  ;;  %722 = vmatmul.mubr.msk.bf16.vlgmr.msra.gmra.mrb[0].mxu1 %vm114_vm1, %v92_v10  ;;  %v53_v32 = vld [vmem:[%s1403_s0 + $0x148] sm:$0xff]  ;;  %v80_v33 = vpack.c.bf16 %v21_v30, %v20_v29  ;;  %v23_v36 = vld [vmem:[%s1403_s0 + $0x58] sm:$0xff]  ;;  %v54_v37 = vld [vmem:[%s1403_s0 + $0x150] sm:$0xff] }
   0x9   :  { %260 = vmatprep.mubr.bf16.mxu0 %v743_v1  ;;  %420 = vmatprep.mubr.bf16.mxu1 %v743_v1  ;;  %v96_v34 = vpack.c.bf16 %v53_v32, %v52_v31  ;;  %v55_v38 = vld [vmem:[%s1403_s0 + $0x158] sm:$0xff]  ;;  %v81_v39 = vpack.c.bf16 %v23_v36, %v22_v35  ;;  %v24_v41 = vld [vmem:[%s1403_s0 + $0x60] sm:$0xff]  ;;  %v25_v42 = vld [vmem:[%s1403_s0 + $0x68] sm:$0xff] }
   0xa   :  { %v97_v40 = vpack.c.bf16 %v55_v38, %v54_v37  ;;  %v56_v43 = vld [vmem:[%s1403_s0 + $0x160] sm:$0xff]  ;;  %v57_v44 = vld [vmem:[%s1403_s0 + $0x168] sm:$0xff]  ;;  %v82_v45 = vpack.c.bf16 %v25_v42, %v24_v41  ;;  %v26_v47 = vld [vmem:[%s1403_s0 + $0x70] sm:$0xff] }
   0xb   :  { %v98_v46 = vpack.c.bf16 %v57_v44, %v56_v43  ;;  %v27_v48 = vld [vmem:[%s1403_s0 + $0x78] sm:$0xff]  ;;  %v58_v49 = vld [vmem:[%s1403_s0 + $0x170] sm:$0xff]  ;;  %v28_v53 = vld [vmem:[%s1403_s0 + $0x80] sm:$0xff] }
   0xc   :  { %v59_v50 = vld [vmem:[%s1403_s0 + $0x178] sm:$0xff]  ;;  %v83_v51 = vpack.c.bf16 %v27_v48, %v26_v47  ;;  %v29_v54 = vld [vmem:[%s1403_s0 + $0x88] sm:$0xff]  ;;  %v60_v55 = vld [vmem:[%s1403_s0 + $0x180] sm:$0xff] }
   0xd   :  { %v99_v52 = vpack.c.bf16 %v59_v50, %v58_v49  ;;  %v61_v56 = vld [vmem:[%s1403_s0 + $0x188] sm:$0xff]  ;;  %v84_v57 = vpack.c.bf16 %v29_v54, %v28_v53  ;;  %v30_v59 = vld [vmem:[%s1403_s0 + $0x90] sm:$0xff]  ;;  %v31_v60 = vld [vmem:[%s1403_s0 + $0x98] sm:$0xff] }
   0xe   :  { %v100_v58 = vpack.c.bf16 %v61_v56, %v60_v55  ;;  %v62_v61 = vld [vmem:[%s1403_s0 + $0x190] sm:$0xff]  ;;  %v63_v62 = vld [vmem:[%s1403_s0 + $0x198] sm:$0xff]  ;;  %v85_v63 = vpack.c.bf16 %v31_v60, %v30_v59  ;;  %v32_v2 = vld [vmem:[%s1403_s0 + $0xa0] sm:$0xff] }
   0xf   :  { %v101_v0 = vpack.c.bf16 %v63_v62, %v62_v61  ;;  %v33_v3 = vld [vmem:[%s1403_s0 + $0xa8] sm:$0xff]  ;;  %v64_v4 = vld [vmem:[%s1403_s0 + $0x1a0] sm:$0xff]  ;;  %v34_v8 = vld [vmem:[%s1403_s0 + $0xb0] sm:$0xff] }
  0x10   :  { %707 = vmatmul.mubr.msk.bf16.gmra.mrb[4].mxu0 %vm114_vm1, %v77_v15  ;;  %723 = vmatmul.mubr.msk.bf16.gmra.mrb[4].mxu1 %vm114_vm1, %v93_v16  ;;  %v65_v5 = vld [vmem:[%s1403_s0 + $0x1a8] sm:$0xff]  ;;  %v86_v6 = vpack.c.bf16 %v33_v3, %v32_v2  ;;  %v35_v9 = vld [vmem:[%s1403_s0 + $0xb8] sm:$0xff]  ;;  %v66_v10 = vld [vmem:[%s1403_s0 + $0x1b0] sm:$0xff] }
  0x11   :  { %270 = vmatprep.mubr.bf16.mxu0 %v743_v1  ;;  %430 = vmatprep.mubr.bf16.mxu1 %v743_v1  ;;  %v102_v7 = vpack.c.bf16 %v65_v5, %v64_v4  ;;  %v67_v11 = vld [vmem:[%s1403_s0 + $0x1b8] sm:$0xff]  ;;  %v87_v12 = vpack.c.bf16 %v35_v9, %v34_v8  ;;  %v36_v14 = vld [vmem:[%s1403_s0 + $0xc0] sm:$0xff]  ;;  %v37_v15 = vld [vmem:[%s1403_s0 + $0xc8] sm:$0xff] }
  0x12   :  { %v103_v13 = vpack.c.bf16 %v67_v11, %v66_v10  ;;  %v68_v16 = vld [vmem:[%s1403_s0 + $0x1c0] sm:$0xff]  ;;  %v69_v17 = vld [vmem:[%s1403_s0 + $0x1c8] sm:$0xff]  ;;  %v88_v18 = vpack.c.bf16 %v37_v15, %v36_v14  ;;  %v38_v20 = vld [vmem:[%s1403_s0 + $0xd0] sm:$0xff] }
  0x13   :  { %v104_v19 = vpack.c.bf16 %v69_v17, %v68_v16  ;;  %v71_v23 = vld [vmem:[%s1403_s0 + $0x1d8] sm:$0xff]  ;;  %v40_v26 = vld [vmem:[%s1403_s0 + $0xe0] sm:$0xff]  ;;  %v73_v29 = vld [vmem:[%s1403_s0 + $0x1e8] sm:$0xff] }
  0x14   :  { %v42_v32 = vld [vmem:[%s1403_s0 + $0xf0] sm:$0xff]  ;;  %v75_v35 = vld [vmem:[%s1403_s0 + $0x1f8] sm:$0xff] }
  0x18   :  { %708 = vmatmul.mubr.msk.bf16.gmra.mrb[8].mxu0 %vm114_vm1, %v78_v21  ;;  %724 = vmatmul.mubr.msk.bf16.gmra.mrb[8].mxu1 %vm114_vm1, %v94_v22  ;;  %v39_v21 = vld [vmem:[%s1403_s0 + $0xd8] sm:$0xff]  ;;  %v70_v22 = vld [vmem:[%s1403_s0 + $0x1d0] sm:$0xff] }
  0x19   :  { %280 = vmatprep.mubr.bf16.mxu0 %v743_v1  ;;  %440 = vmatprep.mubr.bf16.mxu1 %v743_v1  ;;  %v89_v24 = vpack.c.bf16 %v39_v21, %v38_v20  ;;  %v105_v25 = vpack.c.bf16 %v71_v23, %v70_v22 }
  0x20   :  { %709 = vmatmul.mubr.msk.bf16.gmra.mrb[12].mxu0 %vm114_vm1, %v79_v27  ;;  %725 = vmatmul.mubr.msk.bf16.gmra.mrb[12].mxu1 %vm114_vm1, %v95_v28  ;;  %v41_v27 = vld [vmem:[%s1403_s0 + $0xe8] sm:$0xff]  ;;  %v72_v28 = vld [vmem:[%s1403_s0 + $0x1e0] sm:$0xff] }
  0x21   :  { %290 = vmatprep.mubr.bf16.mxu0 %v743_v1  ;;  %450 = vmatprep.mubr.bf16.mxu1 %v743_v1  ;;  %v90_v30 = vpack.c.bf16 %v41_v27, %v40_v26  ;;  %v106_v31 = vpack.c.bf16 %v73_v29, %v72_v28 }
  0x28   :  { %710 = vmatmul.mubr.msk.bf16.gmra.mrb[16].mxu0 %vm114_vm1, %v80_v33  ;;  %726 = vmatmul.mubr.msk.bf16.gmra.mrb[16].mxu1 %vm114_vm1, %v96_v34  ;;  %v43_v33 = vld [vmem:[%s1403_s0 + $0xf8] sm:$0xff]  ;;  %v74_v34 = vld [vmem:[%s1403_s0 + $0x1f0] sm:$0xff] }
  0x29   :  { %300 = vmatprep.mubr.bf16.mxu0 %v743_v1  ;;  %460 = vmatprep.mubr.bf16.mxu1 %v743_v1  ;;  %v91_v36 = vpack.c.bf16 %v43_v33, %v42_v32  ;;  %v107_v37 = vpack.c.bf16 %v75_v35, %v74_v34 }
  0x30   :  { %711 = vmatmul.mubr.msk.bf16.gmra.mrb[20].mxu0 %vm114_vm1, %v81_v39  ;;  %727 = vmatmul.mubr.msk.bf16.gmra.mrb[20].mxu1 %vm114_vm1, %v97_v40 }
  0x31   :  { %310 = vmatprep.mubr.bf16.mxu0 %v743_v1  ;;  %470 = vmatprep.mubr.bf16.mxu1 %v743_v1 }
  0x38   :  { %712 = vmatmul.mubr.msk.bf16.gmra.mrb[24].mxu0 %vm114_vm1, %v82_v45  ;;  %728 = vmatmul.mubr.msk.bf16.gmra.mrb[24].mxu1 %vm114_vm1, %v98_v46 }
  0x39   :  { %320 = vmatprep.mubr.bf16.mxu0 %v743_v1  ;;  %480 = vmatprep.mubr.bf16.mxu1 %v743_v1 }
  0x40   :  { %713 = vmatmul.mubr.msk.bf16.gmra.mrb[28].mxu0 %vm114_vm1, %v83_v51  ;;  %729 = vmatmul.mubr.msk.bf16.gmra.mrb[28].mxu1 %vm114_vm1, %v99_v52 }
  0x41   :  { %330 = vmatprep.mubr.bf16.mxu0 %v743_v1  ;;  %490 = vmatprep.mubr.bf16.mxu1 %v743_v1 }
  0x48   :  { %714 = vmatmul.mubr.msk.bf16.gmra.mrb[32].mxu0 %vm114_vm1, %v84_v57  ;;  %730 = vmatmul.mubr.msk.bf16.gmra.mrb[32].mxu1 %vm114_vm1, %v100_v58 }
  0x49   :  { %340 = vmatprep.mubr.bf16.mxu0 %v743_v1  ;;  %500 = vmatprep.mubr.bf16.mxu1 %v743_v1 }
  0x50   :  { %715 = vmatmul.mubr.msk.bf16.gmra.mrb[36].mxu0 %vm114_vm1, %v85_v63  ;;  %731 = vmatmul.mubr.msk.bf16.gmra.mrb[36].mxu1 %vm114_vm1, %v101_v0 }
  0x51   :  { %350 = vmatprep.mubr.bf16.mxu0 %v743_v1  ;;  %510 = vmatprep.mubr.bf16.mxu1 %v743_v1 }
  0x58   :  { %716 = vmatmul.mubr.msk.bf16.gmra.mrb[40].mxu0 %vm114_vm1, %v86_v6  ;;  %732 = vmatmul.mubr.msk.bf16.gmra.mrb[40].mxu1 %vm114_vm1, %v102_v7 }
  0x59   :  { %360 = vmatprep.mubr.bf16.mxu0 %v743_v1  ;;  %520 = vmatprep.mubr.bf16.mxu1 %v743_v1 }
  0x60   :  { %717 = vmatmul.mubr.msk.bf16.gmra.mrb[44].mxu0 %vm114_vm1, %v87_v12  ;;  %733 = vmatmul.mubr.msk.bf16.gmra.mrb[44].mxu1 %vm114_vm1, %v103_v13 }
  0x61   :  { %370 = vmatprep.mubr.bf16.mxu0 %v743_v1  ;;  %530 = vmatprep.mubr.bf16.mxu1 %v743_v1 }
  0x68   :  { %718 = vmatmul.mubr.msk.bf16.gmra.mrb[48].mxu0 %vm114_vm1, %v88_v18  ;;  %734 = vmatmul.mubr.msk.bf16.gmra.mrb[48].mxu1 %vm114_vm1, %v104_v19 }
  0x69   :  { %380 = vmatprep.mubr.bf16.mxu0 %v743_v1  ;;  %540 = vmatprep.mubr.bf16.mxu1 %v743_v1 }
  0x70   :  { %719 = vmatmul.mubr.msk.bf16.gmra.mrb[52].mxu0 %vm114_vm1, %v89_v24  ;;  %735 = vmatmul.mubr.msk.bf16.gmra.mrb[52].mxu1 %vm114_vm1, %v105_v25 }
  0x71   :  { %390 = vmatprep.mubr.bf16.mxu0 %v743_v1  ;;  %550 = vmatprep.mubr.bf16.mxu1 %v743_v1 }
  0x78   :  { %720 = vmatmul.mubr.msk.bf16.gmra.mrb[56].mxu0 %vm114_vm1, %v90_v30  ;;  %736 = vmatmul.mubr.msk.bf16.gmra.mrb[56].mxu1 %vm114_vm1, %v106_v31 }
  0x79   :  { %400 = vmatprep.mubr.bf16.mxu0 %v743_v1  ;;  %560 = vmatprep.mubr.bf16.mxu1 %v743_v1 }
  0x80   :  { %721 = vmatmul.mubr.msk.bf16.gmra.mrb[60].mxu0 %vm114_vm1, %v91_v36  ;;  %737 = vmatmul.mubr.msk.bf16.gmra.mrb[60].mxu1 %vm114_vm1, %v107_v37 }
  0xdb   :  { %v252_v38 = vpop.f32.mrb[0].mxu0  ;;  %v412_v1 = vpop.f32.mrb[0].mxu1 }
  0xdc   :  { %571 = vst [vmem:[%s1404_s2] sm:$0xff] %v252_v38  ;;  %635 = vst [vmem:[%s1404_s2 + $0x200] sm:$0xff] %v412_v1  ;;  %v254_v39 = vpop.f32.mrb[1].mxu0  ;;  %v414_v40 = vpop.f32.mrb[1].mxu1 }
  0xdd   :  { %572 = vst [vmem:[%s1404_s2 + $0x8] sm:$0xff] %v254_v39  ;;  %636 = vst [vmem:[%s1404_s2 + $0x208] sm:$0xff] %v414_v40  ;;  %v256_v41 = vpop.f32.mrb[2].mxu0  ;;  %v416_v42 = vpop.f32.mrb[2].mxu1 }
  0xde   :  { %573 = vst [vmem:[%s1404_s2 + $0x10] sm:$0xff] %v256_v41  ;;  %637 = vst [vmem:[%s1404_s2 + $0x210] sm:$0xff] %v416_v42  ;;  %v258_v43 = vpop.f32.mrb[3].mxu0  ;;  %v418_v44 = vpop.f32.mrb[3].mxu1 }
  0xdf   :  { %574 = vst [vmem:[%s1404_s2 + $0x18] sm:$0xff] %v258_v43  ;;  %638 = vst [vmem:[%s1404_s2 + $0x218] sm:$0xff] %v418_v44 }
  0xe3   :  { %v262_v45 = vpop.f32.mrb[4].mxu0  ;;  %v422_v46 = vpop.f32.mrb[4].mxu1 }
  0xe4   :  { %575 = vst [vmem:[%s1404_s2 + $0x20] sm:$0xff] %v262_v45  ;;  %639 = vst [vmem:[%s1404_s2 + $0x220] sm:$0xff] %v422_v46  ;;  %v264_v47 = vpop.f32.mrb[5].mxu0  ;;  %v424_v48 = vpop.f32.mrb[5].mxu1 }
  0xe5   :  { %576 = vst [vmem:[%s1404_s2 + $0x28] sm:$0xff] %v264_v47  ;;  %640 = vst [vmem:[%s1404_s2 + $0x228] sm:$0xff] %v424_v48  ;;  %v266_v49 = vpop.f32.mrb[6].mxu0  ;;  %v426_v50 = vpop.f32.mrb[6].mxu1 }
  0xe6   :  { %577 = vst [vmem:[%s1404_s2 + $0x30] sm:$0xff] %v266_v49  ;;  %641 = vst [vmem:[%s1404_s2 + $0x230] sm:$0xff] %v426_v50  ;;  %v268_v51 = vpop.f32.mrb[7].mxu0  ;;  %v428_v52 = vpop.f32.mrb[7].mxu1 }
  0xe7   :  { %578 = vst [vmem:[%s1404_s2 + $0x38] sm:$0xff] %v268_v51  ;;  %642 = vst [vmem:[%s1404_s2 + $0x238] sm:$0xff] %v428_v52 }
  0xeb   :  { %v272_v53 = vpop.f32.mrb[8].mxu0  ;;  %v432_v54 = vpop.f32.mrb[8].mxu1 }
  0xec   :  { %579 = vst [vmem:[%s1404_s2 + $0x40] sm:$0xff] %v272_v53  ;;  %643 = vst [vmem:[%s1404_s2 + $0x240] sm:$0xff] %v432_v54  ;;  %v274_v55 = vpop.f32.mrb[9].mxu0  ;;  %v434_v56 = vpop.f32.mrb[9].mxu1 }
  0xed   :  { %580 = vst [vmem:[%s1404_s2 + $0x48] sm:$0xff] %v274_v55  ;;  %644 = vst [vmem:[%s1404_s2 + $0x248] sm:$0xff] %v434_v56  ;;  %v276_v57 = vpop.f32.mrb[10].mxu0  ;;  %v436_v58 = vpop.f32.mrb[10].mxu1 }
  0xee   :  { %581 = vst [vmem:[%s1404_s2 + $0x50] sm:$0xff] %v276_v57  ;;  %645 = vst [vmem:[%s1404_s2 + $0x250] sm:$0xff] %v436_v58  ;;  %v278_v59 = vpop.f32.mrb[11].mxu0  ;;  %v438_v60 = vpop.f32.mrb[11].mxu1 }
  0xef   :  { %582 = vst [vmem:[%s1404_s2 + $0x58] sm:$0xff] %v278_v59  ;;  %646 = vst [vmem:[%s1404_s2 + $0x258] sm:$0xff] %v438_v60 }
  0xf3   :  { %v282_v61 = vpop.f32.mrb[12].mxu0  ;;  %v442_v62 = vpop.f32.mrb[12].mxu1 }
  0xf4   :  { %583 = vst [vmem:[%s1404_s2 + $0x60] sm:$0xff] %v282_v61  ;;  %647 = vst [vmem:[%s1404_s2 + $0x260] sm:$0xff] %v442_v62  ;;  %v284_v63 = vpop.f32.mrb[13].mxu0  ;;  %v444_v0 = vpop.f32.mrb[13].mxu1 }
  0xf5   :  { %584 = vst [vmem:[%s1404_s2 + $0x68] sm:$0xff] %v284_v63  ;;  %648 = vst [vmem:[%s1404_s2 + $0x268] sm:$0xff] %v444_v0  ;;  %v286_v2 = vpop.f32.mrb[14].mxu0  ;;  %v446_v3 = vpop.f32.mrb[14].mxu1 }
  0xf6   :  { %585 = vst [vmem:[%s1404_s2 + $0x70] sm:$0xff] %v286_v2  ;;  %649 = vst [vmem:[%s1404_s2 + $0x270] sm:$0xff] %v446_v3  ;;  %v288_v4 = vpop.f32.mrb[15].mxu0  ;;  %v448_v5 = vpop.f32.mrb[15].mxu1 }
  0xf7   :  { %586 = vst [vmem:[%s1404_s2 + $0x78] sm:$0xff] %v288_v4  ;;  %650 = vst [vmem:[%s1404_s2 + $0x278] sm:$0xff] %v448_v5 }
  0xfb   :  { %v292_v6 = vpop.f32.mrb[16].mxu0  ;;  %v452_v7 = vpop.f32.mrb[16].mxu1 }
  0xfc   :  { %587 = vst [vmem:[%s1404_s2 + $0x80] sm:$0xff] %v292_v6  ;;  %651 = vst [vmem:[%s1404_s2 + $0x280] sm:$0xff] %v452_v7  ;;  %v294_v8 = vpop.f32.mrb[17].mxu0  ;;  %v454_v9 = vpop.f32.mrb[17].mxu1 }
  0xfd   :  { %588 = vst [vmem:[%s1404_s2 + $0x88] sm:$0xff] %v294_v8  ;;  %652 = vst [vmem:[%s1404_s2 + $0x288] sm:$0xff] %v454_v9  ;;  %v296_v10 = vpop.f32.mrb[18].mxu0  ;;  %v456_v11 = vpop.f32.mrb[18].mxu1 }
  0xfe   :  { %589 = vst [vmem:[%s1404_s2 + $0x90] sm:$0xff] %v296_v10  ;;  %653 = vst [vmem:[%s1404_s2 + $0x290] sm:$0xff] %v456_v11  ;;  %v298_v12 = vpop.f32.mrb[19].mxu0  ;;  %v458_v13 = vpop.f32.mrb[19].mxu1 }
  0xff   :  { %590 = vst [vmem:[%s1404_s2 + $0x98] sm:$0xff] %v298_v12  ;;  %654 = vst [vmem:[%s1404_s2 + $0x298] sm:$0xff] %v458_v13 }
 0x103   :  { %v302_v14 = vpop.f32.mrb[20].mxu0  ;;  %v462_v15 = vpop.f32.mrb[20].mxu1 }
 0x104   :  { %591 = vst [vmem:[%s1404_s2 + $0xa0] sm:$0xff] %v302_v14  ;;  %655 = vst [vmem:[%s1404_s2 + $0x2a0] sm:$0xff] %v462_v15  ;;  %v304_v16 = vpop.f32.mrb[21].mxu0  ;;  %v464_v17 = vpop.f32.mrb[21].mxu1 }
 0x105   :  { %592 = vst [vmem:[%s1404_s2 + $0xa8] sm:$0xff] %v304_v16  ;;  %656 = vst [vmem:[%s1404_s2 + $0x2a8] sm:$0xff] %v464_v17  ;;  %v306_v18 = vpop.f32.mrb[22].mxu0  ;;  %v466_v19 = vpop.f32.mrb[22].mxu1 }
 0x106   :  { %593 = vst [vmem:[%s1404_s2 + $0xb0] sm:$0xff] %v306_v18  ;;  %657 = vst [vmem:[%s1404_s2 + $0x2b0] sm:$0xff] %v466_v19  ;;  %v308_v20 = vpop.f32.mrb[23].mxu0  ;;  %v468_v21 = vpop.f32.mrb[23].mxu1 }
 0x107   :  { %594 = vst [vmem:[%s1404_s2 + $0xb8] sm:$0xff] %v308_v20  ;;  %658 = vst [vmem:[%s1404_s2 + $0x2b8] sm:$0xff] %v468_v21 }
 0x10b   :  { %v312_v22 = vpop.f32.mrb[24].mxu0  ;;  %v472_v23 = vpop.f32.mrb[24].mxu1 }
 0x10c   :  { %595 = vst [vmem:[%s1404_s2 + $0xc0] sm:$0xff] %v312_v22  ;;  %659 = vst [vmem:[%s1404_s2 + $0x2c0] sm:$0xff] %v472_v23  ;;  %v314_v24 = vpop.f32.mrb[25].mxu0  ;;  %v474_v25 = vpop.f32.mrb[25].mxu1 }
 0x10d   :  { %596 = vst [vmem:[%s1404_s2 + $0xc8] sm:$0xff] %v314_v24  ;;  %660 = vst [vmem:[%s1404_s2 + $0x2c8] sm:$0xff] %v474_v25  ;;  %v316_v26 = vpop.f32.mrb[26].mxu0  ;;  %v476_v27 = vpop.f32.mrb[26].mxu1 }
 0x10e   :  { %597 = vst [vmem:[%s1404_s2 + $0xd0] sm:$0xff] %v316_v26  ;;  %661 = vst [vmem:[%s1404_s2 + $0x2d0] sm:$0xff] %v476_v27  ;;  %v318_v28 = vpop.f32.mrb[27].mxu0  ;;  %v478_v29 = vpop.f32.mrb[27].mxu1 }
 0x10f   :  { %598 = vst [vmem:[%s1404_s2 + $0xd8] sm:$0xff] %v318_v28  ;;  %662 = vst [vmem:[%s1404_s2 + $0x2d8] sm:$0xff] %v478_v29 }
 0x113   :  { %v322_v30 = vpop.f32.mrb[28].mxu0  ;;  %v482_v31 = vpop.f32.mrb[28].mxu1 }
 0x114   :  { %599 = vst [vmem:[%s1404_s2 + $0xe0] sm:$0xff] %v322_v30  ;;  %663 = vst [vmem:[%s1404_s2 + $0x2e0] sm:$0xff] %v482_v31  ;;  %v324_v32 = vpop.f32.mrb[29].mxu0  ;;  %v484_v33 = vpop.f32.mrb[29].mxu1 }
 0x115   :  { %600 = vst [vmem:[%s1404_s2 + $0xe8] sm:$0xff] %v324_v32  ;;  %664 = vst [vmem:[%s1404_s2 + $0x2e8] sm:$0xff] %v484_v33  ;;  %v326_v34 = vpop.f32.mrb[30].mxu0  ;;  %v486_v35 = vpop.f32.mrb[30].mxu1 }
 0x116   :  { %601 = vst [vmem:[%s1404_s2 + $0xf0] sm:$0xff] %v326_v34  ;;  %665 = vst [vmem:[%s1404_s2 + $0x2f0] sm:$0xff] %v486_v35  ;;  %v328_v36 = vpop.f32.mrb[31].mxu0  ;;  %v488_v37 = vpop.f32.mrb[31].mxu1 }
 0x117   :  { %602 = vst [vmem:[%s1404_s2 + $0xf8] sm:$0xff] %v328_v36  ;;  %666 = vst [vmem:[%s1404_s2 + $0x2f8] sm:$0xff] %v488_v37 }
 0x11b   :  { %v332_v38 = vpop.f32.mrb[32].mxu0  ;;  %v492_v1 = vpop.f32.mrb[32].mxu1 }
 0x11c   :  { %603 = vst [vmem:[%s1404_s2 + $0x100] sm:$0xff] %v332_v38  ;;  %667 = vst [vmem:[%s1404_s2 + $0x300] sm:$0xff] %v492_v1  ;;  %v334_v39 = vpop.f32.mrb[33].mxu0  ;;  %v494_v40 = vpop.f32.mrb[33].mxu1 }
 0x11d   :  { %604 = vst [vmem:[%s1404_s2 + $0x108] sm:$0xff] %v334_v39  ;;  %668 = vst [vmem:[%s1404_s2 + $0x308] sm:$0xff] %v494_v40  ;;  %v336_v41 = vpop.f32.mrb[34].mxu0  ;;  %v496_v42 = vpop.f32.mrb[34].mxu1 }
 0x11e   :  { %605 = vst [vmem:[%s1404_s2 + $0x110] sm:$0xff] %v336_v41  ;;  %669 = vst [vmem:[%s1404_s2 + $0x310] sm:$0xff] %v496_v42  ;;  %v338_v43 = vpop.f32.mrb[35].mxu0  ;;  %v498_v44 = vpop.f32.mrb[35].mxu1 }
 0x11f   :  { %606 = vst [vmem:[%s1404_s2 + $0x118] sm:$0xff] %v338_v43  ;;  %670 = vst [vmem:[%s1404_s2 + $0x318] sm:$0xff] %v498_v44 }
 0x123   :  { %v342_v45 = vpop.f32.mrb[36].mxu0  ;;  %v502_v46 = vpop.f32.mrb[36].mxu1 }
 0x124   :  { %607 = vst [vmem:[%s1404_s2 + $0x120] sm:$0xff] %v342_v45  ;;  %671 = vst [vmem:[%s1404_s2 + $0x320] sm:$0xff] %v502_v46  ;;  %v344_v47 = vpop.f32.mrb[37].mxu0  ;;  %v504_v48 = vpop.f32.mrb[37].mxu1 }
 0x125   :  { %608 = vst [vmem:[%s1404_s2 + $0x128] sm:$0xff] %v344_v47  ;;  %672 = vst [vmem:[%s1404_s2 + $0x328] sm:$0xff] %v504_v48  ;;  %v346_v49 = vpop.f32.mrb[38].mxu0  ;;  %v506_v50 = vpop.f32.mrb[38].mxu1 }
 0x126   :  { %609 = vst [vmem:[%s1404_s2 + $0x130] sm:$0xff] %v346_v49  ;;  %673 = vst [vmem:[%s1404_s2 + $0x330] sm:$0xff] %v506_v50  ;;  %v348_v51 = vpop.f32.mrb[39].mxu0  ;;  %v508_v52 = vpop.f32.mrb[39].mxu1 }
 0x127   :  { %610 = vst [vmem:[%s1404_s2 + $0x138] sm:$0xff] %v348_v51  ;;  %674 = vst [vmem:[%s1404_s2 + $0x338] sm:$0xff] %v508_v52 }
 0x12b   :  { %v352_v53 = vpop.f32.mrb[40].mxu0  ;;  %v512_v54 = vpop.f32.mrb[40].mxu1 }
 0x12c   :  { %611 = vst [vmem:[%s1404_s2 + $0x140] sm:$0xff] %v352_v53  ;;  %675 = vst [vmem:[%s1404_s2 + $0x340] sm:$0xff] %v512_v54  ;;  %v354_v55 = vpop.f32.mrb[41].mxu0  ;;  %v514_v56 = vpop.f32.mrb[41].mxu1 }
 0x12d   :  { %612 = vst [vmem:[%s1404_s2 + $0x148] sm:$0xff] %v354_v55  ;;  %676 = vst [vmem:[%s1404_s2 + $0x348] sm:$0xff] %v514_v56  ;;  %v356_v57 = vpop.f32.mrb[42].mxu0  ;;  %v516_v58 = vpop.f32.mrb[42].mxu1 }
 0x12e   :  { %613 = vst [vmem:[%s1404_s2 + $0x150] sm:$0xff] %v356_v57  ;;  %677 = vst [vmem:[%s1404_s2 + $0x350] sm:$0xff] %v516_v58  ;;  %v358_v59 = vpop.f32.mrb[43].mxu0  ;;  %v518_v60 = vpop.f32.mrb[43].mxu1 }
 0x12f   :  { %614 = vst [vmem:[%s1404_s2 + $0x158] sm:$0xff] %v358_v59  ;;  %678 = vst [vmem:[%s1404_s2 + $0x358] sm:$0xff] %v518_v60 }
 0x133   :  { %v362_v61 = vpop.f32.mrb[44].mxu0  ;;  %v522_v62 = vpop.f32.mrb[44].mxu1 }
 0x134   :  { %615 = vst [vmem:[%s1404_s2 + $0x160] sm:$0xff] %v362_v61  ;;  %679 = vst [vmem:[%s1404_s2 + $0x360] sm:$0xff] %v522_v62  ;;  %v364_v63 = vpop.f32.mrb[45].mxu0  ;;  %v524_v0 = vpop.f32.mrb[45].mxu1 }
 0x135   :  { %616 = vst [vmem:[%s1404_s2 + $0x168] sm:$0xff] %v364_v63  ;;  %680 = vst [vmem:[%s1404_s2 + $0x368] sm:$0xff] %v524_v0  ;;  %v366_v2 = vpop.f32.mrb[46].mxu0  ;;  %v526_v3 = vpop.f32.mrb[46].mxu1 }
 0x136   :  { %617 = vst [vmem:[%s1404_s2 + $0x170] sm:$0xff] %v366_v2  ;;  %681 = vst [vmem:[%s1404_s2 + $0x370] sm:$0xff] %v526_v3  ;;  %v368_v4 = vpop.f32.mrb[47].mxu0  ;;  %v528_v5 = vpop.f32.mrb[47].mxu1 }
 0x137   :  { %618 = vst [vmem:[%s1404_s2 + $0x178] sm:$0xff] %v368_v4  ;;  %682 = vst [vmem:[%s1404_s2 + $0x378] sm:$0xff] %v528_v5 }
 0x13b   :  { %v372_v6 = vpop.f32.mrb[48].mxu0  ;;  %v532_v7 = vpop.f32.mrb[48].mxu1 }
 0x13c   :  { %619 = vst [vmem:[%s1404_s2 + $0x180] sm:$0xff] %v372_v6  ;;  %683 = vst [vmem:[%s1404_s2 + $0x380] sm:$0xff] %v532_v7  ;;  %v374_v8 = vpop.f32.mrb[49].mxu0  ;;  %v534_v9 = vpop.f32.mrb[49].mxu1 }
 0x13d   :  { %620 = vst [vmem:[%s1404_s2 + $0x188] sm:$0xff] %v374_v8  ;;  %684 = vst [vmem:[%s1404_s2 + $0x388] sm:$0xff] %v534_v9  ;;  %v376_v10 = vpop.f32.mrb[50].mxu0  ;;  %v536_v11 = vpop.f32.mrb[50].mxu1 }
 0x13e   :  { %621 = vst [vmem:[%s1404_s2 + $0x190] sm:$0xff] %v376_v10  ;;  %685 = vst [vmem:[%s1404_s2 + $0x390] sm:$0xff] %v536_v11  ;;  %v378_v12 = vpop.f32.mrb[51].mxu0  ;;  %v538_v13 = vpop.f32.mrb[51].mxu1 }
 0x13f   :  { %622 = vst [vmem:[%s1404_s2 + $0x198] sm:$0xff] %v378_v12  ;;  %686 = vst [vmem:[%s1404_s2 + $0x398] sm:$0xff] %v538_v13 }
 0x143   :  { %v382_v14 = vpop.f32.mrb[52].mxu0  ;;  %v542_v15 = vpop.f32.mrb[52].mxu1 }
 0x144   :  { %623 = vst [vmem:[%s1404_s2 + $0x1a0] sm:$0xff] %v382_v14  ;;  %687 = vst [vmem:[%s1404_s2 + $0x3a0] sm:$0xff] %v542_v15  ;;  %v384_v16 = vpop.f32.mrb[53].mxu0  ;;  %v544_v17 = vpop.f32.mrb[53].mxu1 }
 0x145   :  { %624 = vst [vmem:[%s1404_s2 + $0x1a8] sm:$0xff] %v384_v16  ;;  %688 = vst [vmem:[%s1404_s2 + $0x3a8] sm:$0xff] %v544_v17  ;;  %v386_v18 = vpop.f32.mrb[54].mxu0  ;;  %v546_v19 = vpop.f32.mrb[54].mxu1 }
 0x146   :  { %625 = vst [vmem:[%s1404_s2 + $0x1b0] sm:$0xff] %v386_v18  ;;  %689 = vst [vmem:[%s1404_s2 + $0x3b0] sm:$0xff] %v546_v19  ;;  %v388_v20 = vpop.f32.mrb[55].mxu0  ;;  %v548_v21 = vpop.f32.mrb[55].mxu1 }
 0x147   :  { %626 = vst [vmem:[%s1404_s2 + $0x1b8] sm:$0xff] %v388_v20  ;;  %690 = vst [vmem:[%s1404_s2 + $0x3b8] sm:$0xff] %v548_v21 }
 0x14b   :  { %v392_v22 = vpop.f32.mrb[56].mxu0  ;;  %v552_v23 = vpop.f32.mrb[56].mxu1 }
 0x14c   :  { %627 = vst [vmem:[%s1404_s2 + $0x1c0] sm:$0xff] %v392_v22  ;;  %691 = vst [vmem:[%s1404_s2 + $0x3c0] sm:$0xff] %v552_v23  ;;  %v394_v24 = vpop.f32.mrb[57].mxu0  ;;  %v554_v25 = vpop.f32.mrb[57].mxu1 }
 0x14d   :  { %628 = vst [vmem:[%s1404_s2 + $0x1c8] sm:$0xff] %v394_v24  ;;  %692 = vst [vmem:[%s1404_s2 + $0x3c8] sm:$0xff] %v554_v25  ;;  %v396_v26 = vpop.f32.mrb[58].mxu0  ;;  %v556_v27 = vpop.f32.mrb[58].mxu1 }
 0x14e   :  { %629 = vst [vmem:[%s1404_s2 + $0x1d0] sm:$0xff] %v396_v26  ;;  %693 = vst [vmem:[%s1404_s2 + $0x3d0] sm:$0xff] %v556_v27  ;;  %v398_v28 = vpop.f32.mrb[59].mxu0  ;;  %v558_v29 = vpop.f32.mrb[59].mxu1 }
 0x14f   :  { %630 = vst [vmem:[%s1404_s2 + $0x1d8] sm:$0xff] %v398_v28  ;;  %694 = vst [vmem:[%s1404_s2 + $0x3d8] sm:$0xff] %v558_v29 }
 0x153   :  { %v402_v30 = vpop.f32.mrb[60].mxu0  ;;  %v562_v31 = vpop.f32.mrb[60].mxu1 }
 0x154   :  { %631 = vst [vmem:[%s1404_s2 + $0x1e0] sm:$0xff] %v402_v30  ;;  %695 = vst [vmem:[%s1404_s2 + $0x3e0] sm:$0xff] %v562_v31  ;;  %v404_v32 = vpop.f32.mrb[61].mxu0  ;;  %v564_v33 = vpop.f32.mrb[61].mxu1 }
 0x155   :  { %632 = vst [vmem:[%s1404_s2 + $0x1e8] sm:$0xff] %v404_v32  ;;  %696 = vst [vmem:[%s1404_s2 + $0x3e8] sm:$0xff] %v564_v33  ;;  %v406_v34 = vpop.f32.mrb[62].mxu0  ;;  %v566_v35 = vpop.f32.mrb[62].mxu1 }
 0x156   :  { %633 = vst [vmem:[%s1404_s2 + $0x1f0] sm:$0xff] %v406_v34  ;;  %697 = vst [vmem:[%s1404_s2 + $0x3f0] sm:$0xff] %v566_v35  ;;  %v408_v36 = vpop.f32.mrb[63].mxu0  ;;  %v568_v37 = vpop.f32.mrb[63].mxu1 }
 0x157   :  { %634 = vst [vmem:[%s1404_s2 + $0x1f8] sm:$0xff] %v408_v36  ;;  %698 = vst [vmem:[%s1404_s2 + $0x3f8] sm:$0xff] %v568_v37 }

// kernel: squeeze.22
= control target key start
LH: loop header
LB: loop body
LE: loop exit
PB: predicated region body
PF: predicated region fallthrough
CT: control target
= control target key end

     0   :  { %vm161_vm0 = vcmask 130048   ;;  %vm321_vm1 = vcmask 1047556   ;;  %s1250_s2 = smov 112   ;;  %s1251_s18 = smov 96   ;;  %s2027_s0 = inlined_call_operand.vmem [shape: f32[2,256,1,16], index: 0, kind: input, shape index: {}]   ;;  %s2028_s1 = inlined_call_operand.vmem [shape: f32[2,16,16,16], index: 1, kind: output, shape index: {}]  }
   0x1   :  { %v1097_v0 = vld [vmem:[%s2027_s0 + $0x6] sm:$0x3]  ;;  %v1098_v1 = vld [vmem:[%s2027_s0 + $0x4] sm:$0x3]  ;;  %v1099_v2 = vld [vmem:[%s2027_s0 + $0x2] sm:$0x3] }
   0x2   :  { %148 = vst [vmem:[#allocation0 + $0x18] sm:$0x3] %v1097_v0  ;;  %153 = vst [vmem:[#allocation0 + $0x10] sm:$0x3] %v1098_v1  ;;  %v158_v3 = vld [vmem:[%s2027_s0] sm:$0x3] }
   0x3   :  { %157 = vst [vmem:[#allocation0 + $0x8] sm:$0x3] %v1099_v2  ;;  %159 = vst [vmem:[#allocation0] sm:$0x3] %v158_v3  ;;  %v1089_v4 = vld [vmem:[%s2027_s0 + $0x16] sm:$0x3] }
   0x4   :  { %v1090_v5 = vld [vmem:[%s2027_s0 + $0x14] sm:$0x3]  ;;  %v1091_v6 = vld [vmem:[%s2027_s0 + $0x12] sm:$0x3]  ;;  %108 = vst [vmem:[#allocation0 + $0x58] sm:$0x3] %v1089_v4 }
   0x5   :  { %113 = vst [vmem:[#allocation0 + $0x50] sm:$0x3] %v1090_v5  ;;  %118 = vst [vmem:[#allocation0 + $0x48] sm:$0x3] %v1091_v6  ;;  %v1092_v7 = vld [vmem:[%s2027_s0 + $0x10] sm:$0x3] }
   0x6   :  { %v1093_v8 = vld [vmem:[%s2027_s0 + $0xe] sm:$0x3]  ;;  %v1094_v9 = vld [vmem:[%s2027_s0 + $0xc] sm:$0x3]  ;;  %123 = vst [vmem:[#allocation0 + $0x40] sm:$0x3] %v1092_v7 }
   0x7   :  { %128 = vst [vmem:[#allocation0 + $0x38] sm:$0x3] %v1093_v8  ;;  %133 = vst [vmem:[#allocation0 + $0x30] sm:$0x3] %v1094_v9  ;;  %v1095_v10 = vld [vmem:[%s2027_s0 + $0xa] sm:$0x3] }
   0x8   :  { %v1096_v11 = vld [vmem:[%s2027_s0 + $0x8] sm:$0x3]  ;;  %v1085_v12 = vld [vmem:[%s2027_s0 + $0x1e] sm:$0x3]  ;;  %138 = vst [vmem:[#allocation0 + $0x28] sm:$0x3] %v1095_v10 }
   0x9   :  { %143 = vst [vmem:[#allocation0 + $0x20] sm:$0x3] %v1096_v11  ;;  %88 = vst [vmem:[#allocation0 + $0x78] sm:$0x3] %v1085_v12  ;;  %v1086_v13 = vld [vmem:[%s2027_s0 + $0x1c] sm:$0x3] }
   0xa   :  { %v1087_v14 = vld [vmem:[%s2027_s0 + $0x1a] sm:$0x3]  ;;  %v1088_v15 = vld [vmem:[%s2027_s0 + $0x18] sm:$0x3]  ;;  %93 = vst [vmem:[#allocation0 + $0x70] sm:$0x3] %v1086_v13 }
   0xb   :  { %98 = vst [vmem:[#allocation0 + $0x68] sm:$0x3] %v1087_v14  ;;  %103 = vst [vmem:[#allocation0 + $0x60] sm:$0x3] %v1088_v15  ;;  %v1081_v16 = vld [vmem:[%s2027_s0 + $0x26] sm:$0x3] }
   0xc   :  { %v1082_v17 = vld [vmem:[%s2027_s0 + $0x24] sm:$0x3]  ;;  %v1083_v18 = vld [vmem:[%s2027_s0 + $0x22] sm:$0x3]  ;;  %68 = vst [vmem:[#allocation0 + $0x98] sm:$0x3] %v1081_v16 }
   0xd   :  { %73 = vst [vmem:[#allocation0 + $0x90] sm:$0x3] %v1082_v17  ;;  %78 = vst [vmem:[#allocation0 + $0x88] sm:$0x3] %v1083_v18  ;;  %v1084_v19 = vld [vmem:[%s2027_s0 + $0x20] sm:$0x3] }
   0xe   :  { %v1077_v20 = vld [vmem:[%s2027_s0 + $0x2e] sm:$0x3]  ;;  %v1078_v21 = vld [vmem:[%s2027_s0 + $0x2c] sm:$0x3]  ;;  %v164_v22 = vld [vmem:[#allocation0 + $0x8] sm:$0x3]  }
   0xf   :  { %v169_v23 = vld [vmem:[#allocation0 + $0x10] sm:$0x3]   ;;  %v174_v24 = vld [vmem:[#allocation0 + $0x18] sm:$0x3]   ;;  %83 = vst [vmem:[#allocation0 + $0x80] sm:$0x3] %v1084_v19 }
  0x10   :  { %48 = vst [vmem:[#allocation0 + $0xb8] sm:$0x3] %v1077_v20  ;;  %53 = vst [vmem:[#allocation0 + $0xb0] sm:$0x3] %v1078_v21  ;;  %v160_v25 = vld [vmem:[#allocation0] sm:$0x3]  }
  0x11   :  { %1100 = vst.msk [vmem:[%s2028_s1 + $0x8] ss:$16 sm:$0x3] %vm161_vm0, %v164_v22   ;;  %1101 = vst.msk [vmem:[%s2028_s1 + $0x20] ss:$16 sm:$0x3] %vm161_vm0, %v169_v23  }
  0x12   :  { %v318_v26 = vld.sshfl [vmem:[#allocation0] sm:$0xff pattern:$0x99999180]   ;;  %1102 = vst.msk [vmem:[%s2028_s1 + $0x28] ss:$16 sm:$0x3] %vm161_vm0, %v174_v24  }
  0x13   :  { %162 = vst.msk [vmem:[%s2028_s1] ss:$16 sm:$0x3] %vm161_vm0, %v160_v25   ;;  %v320_v27 = vld.sshfl [vmem:[#allocation0 + $0x10] sm:$0xff pattern:$0x91800000]  }
  0x14   :  { %v204_v28 = vld [vmem:[#allocation0 + $0x48] sm:$0x3]   ;;  %v1350_v29 = vsel %vm321_vm1, %v320_v27, %v318_v26  ;;  %v199_v30 = vld [vmem:[#allocation0 + $0x40] sm:$0x3]   ;;  %v209_v31 = vld [vmem:[#allocation0 + $0x50] sm:$0x3]  }
  0x15   :  { %1108 = vst.msk [vmem:[%s2028_s1 + $0x88] ss:$16 sm:$0x3] %vm161_vm0, %v204_v28   ;;  %v214_v32 = vld [vmem:[#allocation0 + $0x58] sm:$0x3]   ;;  %323 = vrot.lane.b32.xlu0 %v1350_v29, %s1250_s2  ;;  %s1252_s19 = smov 80  }
  0x16   :  { %1107 = vst.msk [vmem:[%s2028_s1 + $0x80] ss:$16 sm:$0x3] %vm161_vm0, %v199_v30   ;;  %1109 = vst.msk [vmem:[%s2028_s1 + $0xa0] ss:$16 sm:$0x3] %vm161_vm0, %v209_v31  }
  0x17   :  { %v344_v33 = vld.sshfl [vmem:[#allocation0 + $0x40] sm:$0xff pattern:$0x99999180]   ;;  %v346_v34 = vld.sshfl [vmem:[#allocation0 + $0x50] sm:$0xff pattern:$0x91800000]  }
  0x18   :  { %1110 = vst.msk [vmem:[%s2028_s1 + $0xa8] ss:$16 sm:$0x3] %vm161_vm0, %v214_v32   ;;  %v1371_v35 = vsel %vm321_vm1, %v346_v34, %v344_v33  ;;  %v331_v36 = vld.sshfl [vmem:[#allocation0 + $0x20] sm:$0xff pattern:$0x99999180]  }
  0x19   :  { %v333_v37 = vld.sshfl [vmem:[#allocation0 + $0x30] sm:$0xff pattern:$0x91800000]   ;;  %349 = vrot.lane.b32.xlu1 %v1371_v35, %s1250_s2  ;;  %v357_v39 = vld.sshfl [vmem:[#allocation0 + $0x60] sm:$0xff pattern:$0x99999180]  }
  0x1a   :  { %v1376_v38 = vsel %vm321_vm1, %v333_v37, %v331_v36  ;;  %v359_v40 = vld.sshfl [vmem:[#allocation0 + $0x70] sm:$0xff pattern:$0x91800000]   ;;  %v370_v42 = vld.sshfl [vmem:[#allocation0 + $0x80] sm:$0xff pattern:$0x99999180]  }
  0x1b   :  { %v1379_v41 = vsel %vm321_vm1, %v359_v40, %v357_v39  ;;  %v372_v43 = vld.sshfl [vmem:[#allocation0 + $0x90] sm:$0xff pattern:$0x91800000]   ;;  %336 = vrot.lane.b32.xlu0 %v1376_v38, %s1250_s2  ;;  %v1079_v44 = vld [vmem:[%s2027_s0 + $0x2a] sm:$0x3]  ;;  %s1253_s20 = smov 64  }
  0x1c   :  { %v1080_v45 = vld [vmem:[%s2027_s0 + $0x28] sm:$0x3]  ;;  %v1073_v46 = vld [vmem:[%s2027_s0 + $0x36] sm:$0x3]  ;;  %v1393_v47 = vsel %vm321_vm1, %v372_v43, %v370_v42  ;;  %58 = vst [vmem:[#allocation0 + $0xa8] sm:$0x3] %v1079_v44 }
  0x1d   :  { %63 = vst [vmem:[#allocation0 + $0xa0] sm:$0x3] %v1080_v45  ;;  %28 = vst [vmem:[#allocation0 + $0xd8] sm:$0x3] %v1073_v46  ;;  %v1074_v48 = vld [vmem:[%s2027_s0 + $0x34] sm:$0x3]  ;;  %362 = vrot.lane.b32.xlu1 %v1379_v41, %s1250_s2 }
  0x1e   :  { %33 = vst [vmem:[#allocation0 + $0xd0] sm:$0x3] %v1074_v48  ;;  %v1075_v49 = vld [vmem:[%s2027_s0 + $0x32] sm:$0x3]  ;;  %v1076_v50 = vld [vmem:[%s2027_s0 + $0x30] sm:$0x3] }
  0x1f   :  { %v1069_v51 = vld [vmem:[%s2027_s0 + $0x3e] sm:$0x3]  ;;  %38 = vst [vmem:[#allocation0 + $0xc8] sm:$0x3] %v1075_v49  ;;  %43 = vst [vmem:[#allocation0 + $0xc0] sm:$0x3] %v1076_v50  ;;  %375 = vrot.lane.b32.xlu0 %v1393_v47, %s1250_s2 }
  0x20   :  { %8 = vst [vmem:[#allocation0 + $0xf8] sm:$0x3] %v1069_v51  ;;  %v1070_v52 = vld [vmem:[%s2027_s0 + $0x3c] sm:$0x3]  ;;  %v1071_v53 = vld [vmem:[%s2027_s0 + $0x3a] sm:$0x3] }
  0x21   :  { %v1072_v54 = vld [vmem:[%s2027_s0 + $0x38] sm:$0x3]  ;;  %13 = vst [vmem:[#allocation0 + $0xf0] sm:$0x3] %v1070_v52  ;;  %18 = vst [vmem:[#allocation0 + $0xe8] sm:$0x3] %v1071_v53 }
  0x22   :  { %v385_v55 = vld.sshfl [vmem:[#allocation0 + $0xb0] sm:$0xff pattern:$0x91800000]   ;;  %23 = vst [vmem:[#allocation0 + $0xe0] sm:$0x3] %v1072_v54  ;;  %s1254_s21 = smov 48  }
  0x23   :  { %v189_v56 = vld [vmem:[#allocation0 + $0x30] sm:$0x3]   ;;  %v194_v57 = vld [vmem:[#allocation0 + $0x38] sm:$0x3]   ;;  %v219_v58 = vld [vmem:[#allocation0 + $0x60] sm:$0x3]  }
  0x24   :  { %1105 = vst.msk [vmem:[%s2028_s1 + $0x60] ss:$16 sm:$0x3] %vm161_vm0, %v189_v56   ;;  %1106 = vst.msk [vmem:[%s2028_s1 + $0x68] ss:$16 sm:$0x3] %vm161_vm0, %v194_v57  }
  0x25   :  { %1111 = vst.msk [vmem:[%s2028_s1 + $0xc0] ss:$16 sm:$0x3] %vm161_vm0, %v219_v58   ;;  %v224_v59 = vld [vmem:[#allocation0 + $0x68] sm:$0x3]   ;;  %s1255_s22 = smov 32  }
  0x26   :  { %v229_v60 = vld [vmem:[#allocation0 + $0x70] sm:$0x3]   ;;  %v234_v61 = vld [vmem:[#allocation0 + $0x78] sm:$0x3]   ;;  %v179_v62 = vld [vmem:[#allocation0 + $0x20] sm:$0x3]  }
  0x27   :  { %1112 = vst.msk [vmem:[%s2028_s1 + $0xc8] ss:$16 sm:$0x3] %vm161_vm0, %v224_v59   ;;  %1113 = vst.msk [vmem:[%s2028_s1 + $0xe0] ss:$16 sm:$0x3] %vm161_vm0, %v229_v60  }
  0x28   :  { %1114 = vst.msk [vmem:[%s2028_s1 + $0xe8] ss:$16 sm:$0x3] %vm161_vm0, %v234_v61   ;;  %v184_v63 = vld [vmem:[#allocation0 + $0x28] sm:$0x3]   ;;  %s1256_s23 = smov 16  }
  0x29   :  { %v249_v0 = vld [vmem:[#allocation0 + $0x90] sm:$0x3]   ;;  %1103 = vst.msk [vmem:[%s2028_s1 + $0x40] ss:$16 sm:$0x3] %vm161_vm0, %v179_v62  }
  0x2a   :  { %1104 = vst.msk [vmem:[%s2028_s1 + $0x48] ss:$16 sm:$0x3] %vm161_vm0, %v184_v63   ;;  %1117 = vst.msk [vmem:[%s2028_s1 + $0x120] ss:$16 sm:$0x3] %vm161_vm0, %v249_v0  }
  0x2b   :  { %v254_v1 = vld [vmem:[#allocation0 + $0x98] sm:$0x3]   ;;  %v269_v2 = vld [vmem:[#allocation0 + $0xb0] sm:$0x3]   ;;  %v279_v16 = vld [vmem:[#allocation0 + $0xc0] sm:$0x3]  }
  0x2c   :  { %v274_v3 = vld [vmem:[#allocation0 + $0xb8] sm:$0x3]   ;;  %v383_v4 = vld.sshfl [vmem:[#allocation0 + $0xa0] sm:$0xff pattern:$0x99999180]  }
  0x2d   :  { %v294_v5 = vld [vmem:[#allocation0 + $0xd8] sm:$0x3]   ;;  %1118 = vst.msk [vmem:[%s2028_s1 + $0x128] ss:$16 sm:$0x3] %vm161_vm0, %v254_v1   ;;  %v1469_v6 = vsel %vm321_vm1, %v385_v55, %v383_v4 }
  0x2e   :  { %1121 = vst.msk [vmem:[%s2028_s1 + $0x160] ss:$16 sm:$0x3] %vm161_vm0, %v269_v2   ;;  %1122 = vst.msk [vmem:[%s2028_s1 + $0x168] ss:$16 sm:$0x3] %vm161_vm0, %v274_v3   ;;  %388 = vrot.lane.b32.xlu1 %v1469_v6, %s1250_s2 }
  0x2f   :  { %v398_v7 = vld.sshfl [vmem:[#allocation0 + $0xd0] sm:$0xff pattern:$0x91800000]   ;;  %1126 = vst.msk [vmem:[%s2028_s1 + $0x1a8] ss:$16 sm:$0x3] %vm161_vm0, %v294_v5  }
  0x30   :  { %v289_v8 = vld [vmem:[#allocation0 + $0xd0] sm:$0x3]   ;;  %v396_v9 = vld.sshfl [vmem:[#allocation0 + $0xc0] sm:$0xff pattern:$0x99999180]  }
  0x31   :  { %v314_v10 = vld [vmem:[#allocation0 + $0xf8] sm:$0x3]   ;;  %1125 = vst.msk [vmem:[%s2028_s1 + $0x1a0] ss:$16 sm:$0x3] %vm161_vm0, %v289_v8   ;;  %v1482_v11 = vsel %vm321_vm1, %v398_v7, %v396_v9 }
  0x32   :  { %v409_v12 = vld.sshfl [vmem:[#allocation0 + $0xe0] sm:$0xff pattern:$0x99999180]   ;;  %v411_v13 = vld.sshfl [vmem:[#allocation0 + $0xf0] sm:$0xff pattern:$0x91800000]   ;;  %401 = vrot.lane.b32.xlu0 %v1482_v11, %s1250_s2 }
  0x33   :  { %1130 = vst.msk [vmem:[%s2028_s1 + $0x1e8] ss:$16 sm:$0x3] %vm161_vm0, %v314_v10   ;;  %v1491_v14 = vsel %vm321_vm1, %v411_v13, %v409_v12  ;;  %v309_v15 = vld [vmem:[#allocation0 + $0xf0] sm:$0x3]  }
  0x34   :  { %v284_v17 = vld [vmem:[#allocation0 + $0xc8] sm:$0x3]   ;;  %1129 = vst.msk [vmem:[%s2028_s1 + $0x1e0] ss:$16 sm:$0x3] %vm161_vm0, %v309_v15   ;;  %414 = vrot.lane.b32.xlu1 %v1491_v14, %s1250_s2 }
  0x35   :  { %1123 = vst.msk [vmem:[%s2028_s1 + $0x180] ss:$16 sm:$0x3] %vm161_vm0, %v279_v16   ;;  %1124 = vst.msk [vmem:[%s2028_s1 + $0x188] ss:$16 sm:$0x3] %vm161_vm0, %v284_v17  }
  0x36   :  { %v259_v18 = vld [vmem:[#allocation0 + $0xa0] sm:$0x3]   ;;  %v264_v19 = vld [vmem:[#allocation0 + $0xa8] sm:$0x3]   ;;  %426 = vrot.lane.b32.xlu0 %v1350_v29, %s1251_s18 }
  0x37   :  { %v239_v20 = vld [vmem:[#allocation0 + $0x80] sm:$0x3]   ;;  %1119 = vst.msk [vmem:[%s2028_s1 + $0x140] ss:$16 sm:$0x3] %vm161_vm0, %v259_v18  }
  0x38   :  { %1120 = vst.msk [vmem:[%s2028_s1 + $0x148] ss:$16 sm:$0x3] %vm161_vm0, %v264_v19   ;;  %1115 = vst.msk [vmem:[%s2028_s1 + $0x100] ss:$16 sm:$0x3] %vm161_vm0, %v239_v20   ;;  %439 = vrot.lane.b32.xlu1 %v1376_v38, %s1251_s18 }
  0x39   :  { %v244_v21 = vld [vmem:[#allocation0 + $0x88] sm:$0x3]   ;;  %v299_v22 = vld [vmem:[#allocation0 + $0xe0] sm:$0x3]  }
  0x3a   :  { %v304_v23 = vld [vmem:[#allocation0 + $0xe8] sm:$0x3]   ;;  %1116 = vst.msk [vmem:[%s2028_s1 + $0x108] ss:$16 sm:$0x3] %vm161_vm0, %v244_v21   ;;  %452 = vrot.lane.b32.xlu0 %v1371_v35, %s1251_s18 }
  0x3b   :  { %1127 = vst.msk [vmem:[%s2028_s1 + $0x1c0] ss:$16 sm:$0x3] %vm161_vm0, %v299_v22   ;;  %1128 = vst.msk [vmem:[%s2028_s1 + $0x1c8] ss:$16 sm:$0x3] %vm161_vm0, %v304_v23  }
  0x3c   :  { %465 = vrot.lane.b32.xlu1 %v1379_v41, %s1251_s18 }
  0x3e   :  { %478 = vrot.lane.b32.xlu0 %v1393_v47, %s1251_s18 }
  0x40   :  { %491 = vrot.lane.b32.xlu1 %v1469_v6, %s1251_s18 }
  0x42   :  { %504 = vrot.lane.b32.xlu0 %v1482_v11, %s1251_s18 }
  0x44   :  { %517 = vrot.lane.b32.xlu1 %v1491_v14, %s1251_s18 }
  0x46   :  { %529 = vrot.lane.b32.xlu0 %v1350_v29, %s1252_s19 }
  0x48   :  { %542 = vrot.lane.b32.xlu1 %v1376_v38, %s1252_s19 }
  0x4a   :  { %555 = vrot.lane.b32.xlu0 %v1371_v35, %s1252_s19 }
  0x4c   :  { %568 = vrot.lane.b32.xlu1 %v1379_v41, %s1252_s19 }
  0x4e   :  { %581 = vrot.lane.b32.xlu0 %v1393_v47, %s1252_s19 }
  0x50   :  { %594 = vrot.lane.b32.xlu1 %v1469_v6, %s1252_s19 }
  0x52   :  { %607 = vrot.lane.b32.xlu0 %v1482_v11, %s1252_s19 }
  0x54   :  { %620 = vrot.lane.b32.xlu1 %v1491_v14, %s1252_s19 }
  0x56   :  { %632 = vrot.lane.b32.xlu0 %v1350_v29, %s1253_s20 }
  0x58   :  { %645 = vrot.lane.b32.xlu1 %v1376_v38, %s1253_s20 }
  0x5a   :  { %658 = vrot.lane.b32.xlu0 %v1371_v35, %s1253_s20 }
  0x5c   :  { %671 = vrot.lane.b32.xlu1 %v1379_v41, %s1253_s20 }
  0x5e   :  { %684 = vrot.lane.b32.xlu0 %v1393_v47, %s1253_s20 }
  0x60   :  { %697 = vrot.lane.b32.xlu1 %v1469_v6, %s1253_s20 }
  0x62   :  { %710 = vrot.lane.b32.xlu0 %v1482_v11, %s1253_s20 }
  0x64   :  { %723 = vrot.lane.b32.xlu1 %v1491_v14, %s1253_s20 }
  0x66   :  { %735 = vrot.lane.b32.xlu0 %v1350_v29, %s1254_s21 }
  0x68   :  { %748 = vrot.lane.b32.xlu1 %v1376_v38, %s1254_s21 }
  0x6a   :  { %761 = vrot.lane.b32.xlu0 %v1371_v35, %s1254_s21 }
  0x6c   :  { %774 = vrot.lane.b32.xlu1 %v1379_v41, %s1254_s21 }
  0x6e   :  { %787 = vrot.lane.b32.xlu0 %v1393_v47, %s1254_s21 }
  0x70   :  { %800 = vrot.lane.b32.xlu1 %v1469_v6, %s1254_s21 }
  0x72   :  { %813 = vrot.lane.b32.xlu0 %v1482_v11, %s1254_s21 }
  0x74   :  { %826 = vrot.lane.b32.xlu1 %v1491_v14, %s1254_s21 }
  0x76   :  { %838 = vrot.lane.b32.xlu0 %v1350_v29, %s1255_s22 }
  0x78   :  { %851 = vrot.lane.b32.xlu1 %v1376_v38, %s1255_s22 }
  0x7a   :  { %864 = vrot.lane.b32.xlu0 %v1371_v35, %s1255_s22 }
  0x7c   :  { %877 = vrot.lane.b32.xlu1 %v1379_v41, %s1255_s22 }
  0x7e   :  { %890 = vrot.lane.b32.xlu0 %v1393_v47, %s1255_s22 }
  0x80   :  { %903 = vrot.lane.b32.xlu1 %v1469_v6, %s1255_s22 }
  0x82   :  { %916 = vrot.lane.b32.xlu0 %v1482_v11, %s1255_s22 }
  0x84   :  { %929 = vrot.lane.b32.xlu1 %v1491_v14, %s1255_s22 }
  0x86   :  { %941 = vrot.lane.b32.xlu0 %v1350_v29, %s1256_s23 }
  0x87   :  { %v324_v24 = vpop.permute.xlu0 %323  }
  0x88   :  { %954 = vrot.lane.b32.xlu1 %v1376_v38, %s1256_s23  ;;  %1131 = vst.msk [vmem:[%s2028_s1 + $0x1] ss:$8 sm:$0xf] %vm161_vm0, %v324_v24   ;;  %1132 = vst.msk [vmem:[%s2028_s1 + $0x1] ss:$8 sm:$0xf0] %vm161_vm0, %v324_v24  }
  0x8a   :  { %967 = vrot.lane.b32.xlu0 %v1371_v35, %s1256_s23 }
  0x8b   :  { %v350_v25 = vpop.permute.xlu1 %349  }
  0x8c   :  { %980 = vrot.lane.b32.xlu1 %v1379_v41, %s1256_s23  ;;  %1135 = vst.msk [vmem:[%s2028_s1 + $0x81] ss:$8 sm:$0xf] %vm161_vm0, %v350_v25   ;;  %1136 = vst.msk [vmem:[%s2028_s1 + $0x81] ss:$8 sm:$0xf0] %vm161_vm0, %v350_v25  }
  0x8d   :  { %v337_v26 = vpop.permute.xlu0 %336  }
  0x8e   :  { %993 = vrot.lane.b32.xlu0 %v1393_v47, %s1256_s23  ;;  %1133 = vst.msk [vmem:[%s2028_s1 + $0x41] ss:$8 sm:$0xf] %vm161_vm0, %v337_v26   ;;  %1134 = vst.msk [vmem:[%s2028_s1 + $0x41] ss:$8 sm:$0xf0] %vm161_vm0, %v337_v26  }
  0x8f   :  { %v363_v27 = vpop.permute.xlu1 %362  }
  0x90   :  { %1006 = vrot.lane.b32.xlu1 %v1469_v6, %s1256_s23  ;;  %1137 = vst.msk [vmem:[%s2028_s1 + $0xc1] ss:$8 sm:$0xf] %vm161_vm0, %v363_v27   ;;  %1138 = vst.msk [vmem:[%s2028_s1 + $0xc1] ss:$8 sm:$0xf0] %vm161_vm0, %v363_v27  }
  0x91   :  { %v376_v28 = vpop.permute.xlu0 %375  }
  0x92   :  { %1019 = vrot.lane.b32.xlu0 %v1482_v11, %s1256_s23  ;;  %1139 = vst.msk [vmem:[%s2028_s1 + $0x101] ss:$8 sm:$0xf] %vm161_vm0, %v376_v28   ;;  %1140 = vst.msk [vmem:[%s2028_s1 + $0x101] ss:$8 sm:$0xf0] %vm161_vm0, %v376_v28  }
  0x94   :  { %1032 = vrot.lane.b32.xlu1 %v1491_v14, %s1256_s23 }
  0xa0   :  { %v389_v29 = vpop.permute.xlu1 %388  }
  0xa1   :  { %1141 = vst.msk [vmem:[%s2028_s1 + $0x141] ss:$8 sm:$0xf] %vm161_vm0, %v389_v29   ;;  %1142 = vst.msk [vmem:[%s2028_s1 + $0x141] ss:$8 sm:$0xf0] %vm161_vm0, %v389_v29  }
  0xa4   :  { %v402_v30 = vpop.permute.xlu0 %401  }
  0xa5   :  { %1143 = vst.msk [vmem:[%s2028_s1 + $0x181] ss:$8 sm:$0xf] %vm161_vm0, %v402_v30   ;;  %1144 = vst.msk [vmem:[%s2028_s1 + $0x181] ss:$8 sm:$0xf0] %vm161_vm0, %v402_v30  }
  0xa6   :  { %v415_v31 = vpop.permute.xlu1 %414  }
  0xa7   :  { %1145 = vst.msk [vmem:[%s2028_s1 + $0x1c1] ss:$8 sm:$0xf] %vm161_vm0, %v415_v31   ;;  %1146 = vst.msk [vmem:[%s2028_s1 + $0x1c1] ss:$8 sm:$0xf0] %vm161_vm0, %v415_v31  }
  0xa8   :  { %v427_v32 = vpop.permute.xlu0 %426  }
  0xa9   :  { %1147 = vst.msk [vmem:[%s2028_s1 + $0x2] ss:$8 sm:$0xf] %vm161_vm0, %v427_v32   ;;  %1148 = vst.msk [vmem:[%s2028_s1 + $0x2] ss:$8 sm:$0xf0] %vm161_vm0, %v427_v32  }
  0xaa   :  { %v440_v33 = vpop.permute.xlu1 %439  }
  0xab   :  { %1149 = vst.msk [vmem:[%s2028_s1 + $0x42] ss:$8 sm:$0xf] %vm161_vm0, %v440_v33   ;;  %1150 = vst.msk [vmem:[%s2028_s1 + $0x42] ss:$8 sm:$0xf0] %vm161_vm0, %v440_v33  }
  0xac   :  { %v453_v34 = vpop.permute.xlu0 %452  }
  0xad   :  { %1151 = vst.msk [vmem:[%s2028_s1 + $0x82] ss:$8 sm:$0xf] %vm161_vm0, %v453_v34   ;;  %1152 = vst.msk [vmem:[%s2028_s1 + $0x82] ss:$8 sm:$0xf0] %vm161_vm0, %v453_v34  }
  0xae   :  { %v466_v35 = vpop.permute.xlu1 %465  }
  0xaf   :  { %1153 = vst.msk [vmem:[%s2028_s1 + $0xc2] ss:$8 sm:$0xf] %vm161_vm0, %v466_v35   ;;  %1154 = vst.msk [vmem:[%s2028_s1 + $0xc2] ss:$8 sm:$0xf0] %vm161_vm0, %v466_v35  }
  0xb0   :  { %v479_v36 = vpop.permute.xlu0 %478  }
  0xb1   :  { %1155 = vst.msk [vmem:[%s2028_s1 + $0x102] ss:$8 sm:$0xf] %vm161_vm0, %v479_v36   ;;  %1156 = vst.msk [vmem:[%s2028_s1 + $0x102] ss:$8 sm:$0xf0] %vm161_vm0, %v479_v36  }
  0xb2   :  { %v492_v37 = vpop.permute.xlu1 %491  }
  0xb3   :  { %1157 = vst.msk [vmem:[%s2028_s1 + $0x142] ss:$8 sm:$0xf] %vm161_vm0, %v492_v37   ;;  %1158 = vst.msk [vmem:[%s2028_s1 + $0x142] ss:$8 sm:$0xf0] %vm161_vm0, %v492_v37  }
  0xb4   :  { %v505_v38 = vpop.permute.xlu0 %504  }
  0xb5   :  { %1159 = vst.msk [vmem:[%s2028_s1 + $0x182] ss:$8 sm:$0xf] %vm161_vm0, %v505_v38   ;;  %1160 = vst.msk [vmem:[%s2028_s1 + $0x182] ss:$8 sm:$0xf0] %vm161_vm0, %v505_v38  }
  0xb6   :  { %v518_v39 = vpop.permute.xlu1 %517  }
  0xb7   :  { %1161 = vst.msk [vmem:[%s2028_s1 + $0x1c2] ss:$8 sm:$0xf] %vm161_vm0, %v518_v39   ;;  %1162 = vst.msk [vmem:[%s2028_s1 + $0x1c2] ss:$8 sm:$0xf0] %vm161_vm0, %v518_v39  }
  0xb8   :  { %v530_v40 = vpop.permute.xlu0 %529  }
  0xb9   :  { %1163 = vst.msk [vmem:[%s2028_s1 + $0x3] ss:$8 sm:$0xf] %vm161_vm0, %v530_v40   ;;  %1164 = vst.msk [vmem:[%s2028_s1 + $0x3] ss:$8 sm:$0xf0] %vm161_vm0, %v530_v40  }
  0xba   :  { %v543_v41 = vpop.permute.xlu1 %542  }
  0xbb   :  { %1165 = vst.msk [vmem:[%s2028_s1 + $0x43] ss:$8 sm:$0xf] %vm161_vm0, %v543_v41   ;;  %1166 = vst.msk [vmem:[%s2028_s1 + $0x43] ss:$8 sm:$0xf0] %vm161_vm0, %v543_v41  }
  0xbc   :  { %v556_v42 = vpop.permute.xlu0 %555  }
  0xbd   :  { %1167 = vst.msk [vmem:[%s2028_s1 + $0x83] ss:$8 sm:$0xf] %vm161_vm0, %v556_v42   ;;  %1168 = vst.msk [vmem:[%s2028_s1 + $0x83] ss:$8 sm:$0xf0] %vm161_vm0, %v556_v42  }
  0xbe   :  { %v569_v43 = vpop.permute.xlu1 %568  }
  0xbf   :  { %1169 = vst.msk [vmem:[%s2028_s1 + $0xc3] ss:$8 sm:$0xf] %vm161_vm0, %v569_v43   ;;  %1170 = vst.msk [vmem:[%s2028_s1 + $0xc3] ss:$8 sm:$0xf0] %vm161_vm0, %v569_v43  }
  0xc0   :  { %v582_v44 = vpop.permute.xlu0 %581  }
  0xc1   :  { %1171 = vst.msk [vmem:[%s2028_s1 + $0x103] ss:$8 sm:$0xf] %vm161_vm0, %v582_v44   ;;  %1172 = vst.msk [vmem:[%s2028_s1 + $0x103] ss:$8 sm:$0xf0] %vm161_vm0, %v582_v44  }
  0xc2   :  { %v595_v45 = vpop.permute.xlu1 %594  }
  0xc3   :  { %1173 = vst.msk [vmem:[%s2028_s1 + $0x143] ss:$8 sm:$0xf] %vm161_vm0, %v595_v45   ;;  %1174 = vst.msk [vmem:[%s2028_s1 + $0x143] ss:$8 sm:$0xf0] %vm161_vm0, %v595_v45  }
  0xc4   :  { %v608_v46 = vpop.permute.xlu0 %607  }
  0xc5   :  { %1175 = vst.msk [vmem:[%s2028_s1 + $0x183] ss:$8 sm:$0xf] %vm161_vm0, %v608_v46   ;;  %1176 = vst.msk [vmem:[%s2028_s1 + $0x183] ss:$8 sm:$0xf0] %vm161_vm0, %v608_v46  }
  0xc6   :  { %v621_v47 = vpop.permute.xlu1 %620  }
  0xc7   :  { %1177 = vst.msk [vmem:[%s2028_s1 + $0x1c3] ss:$8 sm:$0xf] %vm161_vm0, %v621_v47   ;;  %1178 = vst.msk [vmem:[%s2028_s1 + $0x1c3] ss:$8 sm:$0xf0] %vm161_vm0, %v621_v47  }
  0xc8   :  { %v633_v48 = vpop.permute.xlu0 %632  }
  0xc9   :  { %1179 = vst.msk [vmem:[%s2028_s1 + $0x4] ss:$8 sm:$0xf] %vm161_vm0, %v633_v48   ;;  %1180 = vst.msk [vmem:[%s2028_s1 + $0x4] ss:$8 sm:$0xf0] %vm161_vm0, %v633_v48  }
  0xca   :  { %v646_v49 = vpop.permute.xlu1 %645  }
  0xcb   :  { %1181 = vst.msk [vmem:[%s2028_s1 + $0x44] ss:$8 sm:$0xf] %vm161_vm0, %v646_v49   ;;  %1182 = vst.msk [vmem:[%s2028_s1 + $0x44] ss:$8 sm:$0xf0] %vm161_vm0, %v646_v49  }
  0xcc   :  { %v659_v50 = vpop.permute.xlu0 %658  }
  0xcd   :  { %1183 = vst.msk [vmem:[%s2028_s1 + $0x84] ss:$8 sm:$0xf] %vm161_vm0, %v659_v50   ;;  %1184 = vst.msk [vmem:[%s2028_s1 + $0x84] ss:$8 sm:$0xf0] %vm161_vm0, %v659_v50  }
  0xce   :  { %v672_v51 = vpop.permute.xlu1 %671  }
  0xcf   :  { %1185 = vst.msk [vmem:[%s2028_s1 + $0xc4] ss:$8 sm:$0xf] %vm161_vm0, %v672_v51   ;;  %1186 = vst.msk [vmem:[%s2028_s1 + $0xc4] ss:$8 sm:$0xf0] %vm161_vm0, %v672_v51  }
  0xd0   :  { %v685_v52 = vpop.permute.xlu0 %684  }
  0xd1   :  { %1187 = vst.msk [vmem:[%s2028_s1 + $0x104] ss:$8 sm:$0xf] %vm161_vm0, %v685_v52   ;;  %1188 = vst.msk [vmem:[%s2028_s1 + $0x104] ss:$8 sm:$0xf0] %vm161_vm0, %v685_v52  }
  0xd2   :  { %v698_v53 = vpop.permute.xlu1 %697  }
  0xd3   :  { %1189 = vst.msk [vmem:[%s2028_s1 + $0x144] ss:$8 sm:$0xf] %vm161_vm0, %v698_v53   ;;  %1190 = vst.msk [vmem:[%s2028_s1 + $0x144] ss:$8 sm:$0xf0] %vm161_vm0, %v698_v53  }
  0xd4   :  { %v711_v54 = vpop.permute.xlu0 %710  }
  0xd5   :  { %1191 = vst.msk [vmem:[%s2028_s1 + $0x184] ss:$8 sm:$0xf] %vm161_vm0, %v711_v54   ;;  %1192 = vst.msk [vmem:[%s2028_s1 + $0x184] ss:$8 sm:$0xf0] %vm161_vm0, %v711_v54  }
  0xd6   :  { %v724_v55 = vpop.permute.xlu1 %723  }
  0xd7   :  { %1193 = vst.msk [vmem:[%s2028_s1 + $0x1c4] ss:$8 sm:$0xf] %vm161_vm0, %v724_v55   ;;  %1194 = vst.msk [vmem:[%s2028_s1 + $0x1c4] ss:$8 sm:$0xf0] %vm161_vm0, %v724_v55  }
  0xd8   :  { %v736_v56 = vpop.permute.xlu0 %735  }
  0xd9   :  { %1195 = vst.msk [vmem:[%s2028_s1 + $0x5] ss:$8 sm:$0xf] %vm161_vm0, %v736_v56   ;;  %1196 = vst.msk [vmem:[%s2028_s1 + $0x5] ss:$8 sm:$0xf0] %vm161_vm0, %v736_v56  }
  0xda   :  { %v749_v57 = vpop.permute.xlu1 %748  }
  0xdb   :  { %1197 = vst.msk [vmem:[%s2028_s1 + $0x45] ss:$8 sm:$0xf] %vm161_vm0, %v749_v57   ;;  %1198 = vst.msk [vmem:[%s2028_s1 + $0x45] ss:$8 sm:$0xf0] %vm161_vm0, %v749_v57  }
  0xdc   :  { %v762_v58 = vpop.permute.xlu0 %761  }
  0xdd   :  { %1199 = vst.msk [vmem:[%s2028_s1 + $0x85] ss:$8 sm:$0xf] %vm161_vm0, %v762_v58   ;;  %1200 = vst.msk [vmem:[%s2028_s1 + $0x85] ss:$8 sm:$0xf0] %vm161_vm0, %v762_v58  }
  0xde   :  { %v775_v59 = vpop.permute.xlu1 %774  }
  0xdf   :  { %1201 = vst.msk [vmem:[%s2028_s1 + $0xc5] ss:$8 sm:$0xf] %vm161_vm0, %v775_v59   ;;  %1202 = vst.msk [vmem:[%s2028_s1 + $0xc5] ss:$8 sm:$0xf0] %vm161_vm0, %v775_v59  }
  0xe0   :  { %v788_v60 = vpop.permute.xlu0 %787  }
  0xe1   :  { %1203 = vst.msk [vmem:[%s2028_s1 + $0x105] ss:$8 sm:$0xf] %vm161_vm0, %v788_v60   ;;  %1204 = vst.msk [vmem:[%s2028_s1 + $0x105] ss:$8 sm:$0xf0] %vm161_vm0, %v788_v60  }
  0xe2   :  { %v801_v61 = vpop.permute.xlu1 %800  }
  0xe3   :  { %1205 = vst.msk [vmem:[%s2028_s1 + $0x145] ss:$8 sm:$0xf] %vm161_vm0, %v801_v61   ;;  %1206 = vst.msk [vmem:[%s2028_s1 + $0x145] ss:$8 sm:$0xf0] %vm161_vm0, %v801_v61  }
  0xe4   :  { %v814_v62 = vpop.permute.xlu0 %813  }
  0xe5   :  { %1207 = vst.msk [vmem:[%s2028_s1 + $0x185] ss:$8 sm:$0xf] %vm161_vm0, %v814_v62   ;;  %1208 = vst.msk [vmem:[%s2028_s1 + $0x185] ss:$8 sm:$0xf0] %vm161_vm0, %v814_v62  }
  0xe6   :  { %v827_v63 = vpop.permute.xlu1 %826  }
  0xe7   :  { %1209 = vst.msk [vmem:[%s2028_s1 + $0x1c5] ss:$8 sm:$0xf] %vm161_vm0, %v827_v63   ;;  %1210 = vst.msk [vmem:[%s2028_s1 + $0x1c5] ss:$8 sm:$0xf0] %vm161_vm0, %v827_v63  }
  0xe8   :  { %v839_v0 = vpop.permute.xlu0 %838  }
  0xe9   :  { %1211 = vst.msk [vmem:[%s2028_s1 + $0x6] ss:$8 sm:$0xf] %vm161_vm0, %v839_v0   ;;  %1212 = vst.msk [vmem:[%s2028_s1 + $0x6] ss:$8 sm:$0xf0] %vm161_vm0, %v839_v0  }
  0xea   :  { %v852_v1 = vpop.permute.xlu1 %851  }
  0xeb   :  { %1213 = vst.msk [vmem:[%s2028_s1 + $0x46] ss:$8 sm:$0xf] %vm161_vm0, %v852_v1   ;;  %1214 = vst.msk [vmem:[%s2028_s1 + $0x46] ss:$8 sm:$0xf0] %vm161_vm0, %v852_v1  }
  0xec   :  { %v865_v2 = vpop.permute.xlu0 %864  }
  0xed   :  { %1215 = vst.msk [vmem:[%s2028_s1 + $0x86] ss:$8 sm:$0xf] %vm161_vm0, %v865_v2   ;;  %1216 = vst.msk [vmem:[%s2028_s1 + $0x86] ss:$8 sm:$0xf0] %vm161_vm0, %v865_v2  }
  0xee   :  { %v878_v3 = vpop.permute.xlu1 %877  }
  0xef   :  { %1217 = vst.msk [vmem:[%s2028_s1 + $0xc6] ss:$8 sm:$0xf] %vm161_vm0, %v878_v3   ;;  %1218 = vst.msk [vmem:[%s2028_s1 + $0xc6] ss:$8 sm:$0xf0] %vm161_vm0, %v878_v3  }
  0xf0   :  { %v891_v4 = vpop.permute.xlu0 %890  }
  0xf1   :  { %1219 = vst.msk [vmem:[%s2028_s1 + $0x106] ss:$8 sm:$0xf] %vm161_vm0, %v891_v4   ;;  %1220 = vst.msk [vmem:[%s2028_s1 + $0x106] ss:$8 sm:$0xf0] %vm161_vm0, %v891_v4  }
  0xf2   :  { %v904_v5 = vpop.permute.xlu1 %903  }
  0xf3   :  { %1221 = vst.msk [vmem:[%s2028_s1 + $0x146] ss:$8 sm:$0xf] %vm161_vm0, %v904_v5   ;;  %1222 = vst.msk [vmem:[%s2028_s1 + $0x146] ss:$8 sm:$0xf0] %vm161_vm0, %v904_v5  }
  0xf4   :  { %v917_v6 = vpop.permute.xlu0 %916  }
  0xf5   :  { %1223 = vst.msk [vmem:[%s2028_s1 + $0x186] ss:$8 sm:$0xf] %vm161_vm0, %v917_v6   ;;  %1224 = vst.msk [vmem:[%s2028_s1 + $0x186] ss:$8 sm:$0xf0] %vm161_vm0, %v917_v6  }
  0xf6   :  { %v930_v7 = vpop.permute.xlu1 %929  }
  0xf7   :  { %1225 = vst.msk [vmem:[%s2028_s1 + $0x1c6] ss:$8 sm:$0xf] %vm161_vm0, %v930_v7   ;;  %1226 = vst.msk [vmem:[%s2028_s1 + $0x1c6] ss:$8 sm:$0xf0] %vm161_vm0, %v930_v7  }
  0xf8   :  { %v942_v8 = vpop.permute.xlu0 %941  }
  0xf9   :  { %1227 = vst.msk [vmem:[%s2028_s1 + $0x7] ss:$8 sm:$0xf] %vm161_vm0, %v942_v8   ;;  %1228 = vst.msk [vmem:[%s2028_s1 + $0x7] ss:$8 sm:$0xf0] %vm161_vm0, %v942_v8  }
  0xfa   :  { %v955_v9 = vpop.permute.xlu1 %954  }
  0xfb   :  { %1229 = vst.msk [vmem:[%s2028_s1 + $0x47] ss:$8 sm:$0xf] %vm161_vm0, %v955_v9   ;;  %1230 = vst.msk [vmem:[%s2028_s1 + $0x47] ss:$8 sm:$0xf0] %vm161_vm0, %v955_v9  }
  0xfc   :  { %v968_v10 = vpop.permute.xlu0 %967  }
  0xfd   :  { %1231 = vst.msk [vmem:[%s2028_s1 + $0x87] ss:$8 sm:$0xf] %vm161_vm0, %v968_v10   ;;  %1232 = vst.msk [vmem:[%s2028_s1 + $0x87] ss:$8 sm:$0xf0] %vm161_vm0, %v968_v10  }
  0xfe   :  { %v981_v11 = vpop.permute.xlu1 %980  }
  0xff   :  { %1233 = vst.msk [vmem:[%s2028_s1 + $0xc7] ss:$8 sm:$0xf] %vm161_vm0, %v981_v11   ;;  %1234 = vst.msk [vmem:[%s2028_s1 + $0xc7] ss:$8 sm:$0xf0] %vm161_vm0, %v981_v11  }
 0x100   :  { %v994_v12 = vpop.permute.xlu0 %993  }
 0x101   :  { %1235 = vst.msk [vmem:[%s2028_s1 + $0x107] ss:$8 sm:$0xf] %vm161_vm0, %v994_v12   ;;  %1236 = vst.msk [vmem:[%s2028_s1 + $0x107] ss:$8 sm:$0xf0] %vm161_vm0, %v994_v12  }
 0x102   :  { %v1007_v13 = vpop.permute.xlu1 %1006  }
 0x103   :  { %1237 = vst.msk [vmem:[%s2028_s1 + $0x147] ss:$8 sm:$0xf] %vm161_vm0, %v1007_v13   ;;  %1238 = vst.msk [vmem:[%s2028_s1 + $0x147] ss:$8 sm:$0xf0] %vm161_vm0, %v1007_v13  }
 0x104   :  { %v1020_v14 = vpop.permute.xlu0 %1019  }
 0x105   :  { %1239 = vst.msk [vmem:[%s2028_s1 + $0x187] ss:$8 sm:$0xf] %vm161_vm0, %v1020_v14   ;;  %1240 = vst.msk [vmem:[%s2028_s1 + $0x187] ss:$8 sm:$0xf0] %vm161_vm0, %v1020_v14  }
 0x106   :  { %v1033_v15 = vpop.permute.xlu1 %1032  }
 0x107   :  { %1241 = vst.msk [vmem:[%s2028_s1 + $0x1c7] ss:$8 sm:$0xf] %vm161_vm0, %v1033_v15   ;;  %1242 = vst.msk [vmem:[%s2028_s1 + $0x1c7] ss:$8 sm:$0xf0] %vm161_vm0, %v1033_v15  }

// kernel: squeeze.30
= control target key start
LH: loop header
LB: loop body
LE: loop exit
PB: predicated region body
PF: predicated region fallthrough
CT: control target
= control target key end

     0   :  { %s385_s10 = smov 112   ;;  %s386_s15 = smov 96   ;;  %vm3_vm0 = vcmask 130048   ;;  %s714_s0 = inlined_call_operand.vmem [shape: f32[1,2,256,8], index: 0, kind: input, shape index: {}]   ;;  %s715_s1 = inlined_call_operand.vmem [shape: f32[2,16,16,8], index: 1, kind: output, shape index: {}]  }
   0x1   :  { %v306_v0 = vld.sshfl [vmem:[%s714_s0 + $0x10] sm:$0xff pattern:$0xb3a29180]   ;;  %v41_v1 = vld.sshfl [vmem:[%s714_s0] sm:$0xff pattern:$0xb3a29180]  }
   0x2   :  { %60 = vrot.lane.b32.xlu1 %v306_v0, %s385_s10  ;;  %42 = vrot.lane.b32.xlu0 %v41_v1, %s385_s10  ;;  %v309_v2 = vld.sshfl [vmem:[%s714_s0 + $0x14] sm:$0xff pattern:$0xb3a29180]   ;;  %v303_v3 = vld.sshfl [vmem:[%s714_s0 + $0x4] sm:$0xff pattern:$0xb3a29180]  }
   0x3   :  { %s387_s16 = smov 80   ;;  %s388_s17 = smov 64   ;;  %v2_v4 = vld [vmem:[%s714_s0] sm:$0xff]   ;;  %v286_v5 = vld [vmem:[%s714_s0 + $0x8] sm:$0xff]   ;;  %v291_v6 = vld [vmem:[%s714_s0 + $0x10] sm:$0xff]  }
   0x4   :  { %s389_s18 = smov 48   ;;  %4 = vst.msk [vmem:[%s715_s1] ss:$16 sm:$0x3] %vm3_vm0, %v2_v4   ;;  %v296_v7 = vld [vmem:[%s714_s0 + $0x18] sm:$0xff]   ;;  %s390_s0 = smov 32  }
   0x5   :  { %5 = vst.msk [vmem:[%s715_s1] ss:$16 sm:$0xc] %vm3_vm0, %v2_v4   ;;  %6 = vst.msk [vmem:[%s715_s1] ss:$16 sm:$0x30] %vm3_vm0, %v2_v4  }
   0x6   :  { %69 = vrot.lane.b32.xlu1 %v309_v2, %s385_s10  ;;  %51 = vrot.lane.b32.xlu0 %v303_v3, %s385_s10  ;;  %7 = vst.msk [vmem:[%s715_s1] ss:$16 sm:$0xc0] %vm3_vm0, %v2_v4   ;;  %287 = vst.msk [vmem:[%s715_s1 + $0x8] ss:$16 sm:$0x3] %vm3_vm0, %v286_v5  }
   0x7   :  { %288 = vst.msk [vmem:[%s715_s1 + $0x8] ss:$16 sm:$0xc] %vm3_vm0, %v286_v5   ;;  %289 = vst.msk [vmem:[%s715_s1 + $0x8] ss:$16 sm:$0x30] %vm3_vm0, %v286_v5  }
   0x8   :  { %290 = vst.msk [vmem:[%s715_s1 + $0x8] ss:$16 sm:$0xc0] %vm3_vm0, %v286_v5   ;;  %292 = vst.msk [vmem:[%s715_s1 + $0x80] ss:$16 sm:$0x3] %vm3_vm0, %v291_v6  }
   0x9   :  { %293 = vst.msk [vmem:[%s715_s1 + $0x80] ss:$16 sm:$0xc] %vm3_vm0, %v291_v6   ;;  %294 = vst.msk [vmem:[%s715_s1 + $0x80] ss:$16 sm:$0x30] %vm3_vm0, %v291_v6  }
   0xa   :  { %86 = vrot.lane.b32.xlu1 %v303_v3, %s386_s15  ;;  %77 = vrot.lane.b32.xlu0 %v41_v1, %s386_s15  ;;  %295 = vst.msk [vmem:[%s715_s1 + $0x80] ss:$16 sm:$0xc0] %vm3_vm0, %v291_v6   ;;  %297 = vst.msk [vmem:[%s715_s1 + $0x88] ss:$16 sm:$0x3] %vm3_vm0, %v296_v7  }
   0xb   :  { %298 = vst.msk [vmem:[%s715_s1 + $0x88] ss:$16 sm:$0xc] %vm3_vm0, %v296_v7   ;;  %299 = vst.msk [vmem:[%s715_s1 + $0x88] ss:$16 sm:$0x30] %vm3_vm0, %v296_v7  }
   0xc   :  { %300 = vst.msk [vmem:[%s715_s1 + $0x88] ss:$16 sm:$0xc0] %vm3_vm0, %v296_v7   ;;  %s391_s30 = smov 16  }
   0xe   :  { %104 = vrot.lane.b32.xlu1 %v309_v2, %s386_s15  ;;  %95 = vrot.lane.b32.xlu0 %v306_v0, %s386_s15 }
  0x12   :  { %121 = vrot.lane.b32.xlu1 %v303_v3, %s387_s16  ;;  %112 = vrot.lane.b32.xlu0 %v41_v1, %s387_s16 }
  0x16   :  { %139 = vrot.lane.b32.xlu1 %v309_v2, %s387_s16  ;;  %130 = vrot.lane.b32.xlu0 %v306_v0, %s387_s16 }
  0x1a   :  { %156 = vrot.lane.b32.xlu1 %v303_v3, %s388_s17  ;;  %147 = vrot.lane.b32.xlu0 %v41_v1, %s388_s17 }
  0x1e   :  { %174 = vrot.lane.b32.xlu1 %v309_v2, %s388_s17  ;;  %165 = vrot.lane.b32.xlu0 %v306_v0, %s388_s17 }
  0x22   :  { %191 = vrot.lane.b32.xlu1 %v303_v3, %s389_s18  ;;  %182 = vrot.lane.b32.xlu0 %v41_v1, %s389_s18 }
  0x26   :  { %209 = vrot.lane.b32.xlu1 %v309_v2, %s389_s18  ;;  %200 = vrot.lane.b32.xlu0 %v306_v0, %s389_s18 }
  0x2a   :  { %226 = vrot.lane.b32.xlu1 %v303_v3, %s390_s0  ;;  %217 = vrot.lane.b32.xlu0 %v41_v1, %s390_s0 }
  0x2e   :  { %244 = vrot.lane.b32.xlu1 %v309_v2, %s390_s0  ;;  %235 = vrot.lane.b32.xlu0 %v306_v0, %s390_s0 }
  0x32   :  { %261 = vrot.lane.b32.xlu1 %v303_v3, %s391_s30  ;;  %252 = vrot.lane.b32.xlu0 %v41_v1, %s391_s30 }
  0x36   :  { %279 = vrot.lane.b32.xlu1 %v309_v2, %s391_s30  ;;  %270 = vrot.lane.b32.xlu0 %v306_v0, %s391_s30 }
  0x74   :  { %v61_v8 = vpop.permute.xlu1 %60   ;;  %v43_v9 = vpop.permute.xlu0 %42  }
  0x75   :  { %307 = vst.msk [vmem:[%s715_s1 + $0x81] ss:$8 sm:$0xf] %vm3_vm0, %v61_v8   ;;  %308 = vst.msk [vmem:[%s715_s1 + $0x81] ss:$8 sm:$0xf0] %vm3_vm0, %v61_v8  }
  0x76   :  { %301 = vst.msk [vmem:[%s715_s1 + $0x1] ss:$8 sm:$0xf] %vm3_vm0, %v43_v9   ;;  %302 = vst.msk [vmem:[%s715_s1 + $0x1] ss:$8 sm:$0xf0] %vm3_vm0, %v43_v9  }
  0x78   :  { %v70_v10 = vpop.permute.xlu1 %69   ;;  %v52_v11 = vpop.permute.xlu0 %51  }
  0x79   :  { %310 = vst.msk [vmem:[%s715_s1 + $0xc1] ss:$8 sm:$0xf] %vm3_vm0, %v70_v10   ;;  %311 = vst.msk [vmem:[%s715_s1 + $0xc1] ss:$8 sm:$0xf0] %vm3_vm0, %v70_v10  }
  0x7a   :  { %304 = vst.msk [vmem:[%s715_s1 + $0x41] ss:$8 sm:$0xf] %vm3_vm0, %v52_v11   ;;  %305 = vst.msk [vmem:[%s715_s1 + $0x41] ss:$8 sm:$0xf0] %vm3_vm0, %v52_v11  }
  0x7c   :  { %v87_v12 = vpop.permute.xlu1 %86   ;;  %v78_v13 = vpop.permute.xlu0 %77  }
  0x7d   :  { %315 = vst.msk [vmem:[%s715_s1 + $0x42] ss:$8 sm:$0xf] %vm3_vm0, %v87_v12   ;;  %316 = vst.msk [vmem:[%s715_s1 + $0x42] ss:$8 sm:$0xf0] %vm3_vm0, %v87_v12  }
  0x7e   :  { %312 = vst.msk [vmem:[%s715_s1 + $0x2] ss:$8 sm:$0xf] %vm3_vm0, %v78_v13   ;;  %313 = vst.msk [vmem:[%s715_s1 + $0x2] ss:$8 sm:$0xf0] %vm3_vm0, %v78_v13  }
  0x80   :  { %v105_v14 = vpop.permute.xlu1 %104   ;;  %v96_v15 = vpop.permute.xlu0 %95  }
  0x81   :  { %321 = vst.msk [vmem:[%s715_s1 + $0xc2] ss:$8 sm:$0xf] %vm3_vm0, %v105_v14   ;;  %322 = vst.msk [vmem:[%s715_s1 + $0xc2] ss:$8 sm:$0xf0] %vm3_vm0, %v105_v14  }
  0x82   :  { %318 = vst.msk [vmem:[%s715_s1 + $0x82] ss:$8 sm:$0xf] %vm3_vm0, %v96_v15   ;;  %319 = vst.msk [vmem:[%s715_s1 + $0x82] ss:$8 sm:$0xf0] %vm3_vm0, %v96_v15  }
  0x84   :  { %v122_v16 = vpop.permute.xlu1 %121   ;;  %v113_v17 = vpop.permute.xlu0 %112  }
  0x85   :  { %326 = vst.msk [vmem:[%s715_s1 + $0x43] ss:$8 sm:$0xf] %vm3_vm0, %v122_v16   ;;  %327 = vst.msk [vmem:[%s715_s1 + $0x43] ss:$8 sm:$0xf0] %vm3_vm0, %v122_v16  }
  0x86   :  { %323 = vst.msk [vmem:[%s715_s1 + $0x3] ss:$8 sm:$0xf] %vm3_vm0, %v113_v17   ;;  %324 = vst.msk [vmem:[%s715_s1 + $0x3] ss:$8 sm:$0xf0] %vm3_vm0, %v113_v17  }
  0x88   :  { %v140_v18 = vpop.permute.xlu1 %139   ;;  %v131_v19 = vpop.permute.xlu0 %130  }
  0x89   :  { %332 = vst.msk [vmem:[%s715_s1 + $0xc3] ss:$8 sm:$0xf] %vm3_vm0, %v140_v18   ;;  %333 = vst.msk [vmem:[%s715_s1 + $0xc3] ss:$8 sm:$0xf0] %vm3_vm0, %v140_v18  }
  0x8a   :  { %329 = vst.msk [vmem:[%s715_s1 + $0x83] ss:$8 sm:$0xf] %vm3_vm0, %v131_v19   ;;  %330 = vst.msk [vmem:[%s715_s1 + $0x83] ss:$8 sm:$0xf0] %vm3_vm0, %v131_v19  }
  0x8c   :  { %v157_v20 = vpop.permute.xlu1 %156   ;;  %v148_v21 = vpop.permute.xlu0 %147  }
  0x8d   :  { %337 = vst.msk [vmem:[%s715_s1 + $0x44] ss:$8 sm:$0xf] %vm3_vm0, %v157_v20   ;;  %338 = vst.msk [vmem:[%s715_s1 + $0x44] ss:$8 sm:$0xf0] %vm3_vm0, %v157_v20  }
  0x8e   :  { %334 = vst.msk [vmem:[%s715_s1 + $0x4] ss:$8 sm:$0xf] %vm3_vm0, %v148_v21   ;;  %335 = vst.msk [vmem:[%s715_s1 + $0x4] ss:$8 sm:$0xf0] %vm3_vm0, %v148_v21  }
  0x90   :  { %v175_v22 = vpop.permute.xlu1 %174   ;;  %v166_v23 = vpop.permute.xlu0 %165  }
  0x91   :  { %343 = vst.msk [vmem:[%s715_s1 + $0xc4] ss:$8 sm:$0xf] %vm3_vm0, %v175_v22   ;;  %344 = vst.msk [vmem:[%s715_s1 + $0xc4] ss:$8 sm:$0xf0] %vm3_vm0, %v175_v22  }
  0x92   :  { %340 = vst.msk [vmem:[%s715_s1 + $0x84] ss:$8 sm:$0xf] %vm3_vm0, %v166_v23   ;;  %341 = vst.msk [vmem:[%s715_s1 + $0x84] ss:$8 sm:$0xf0] %vm3_vm0, %v166_v23  }
  0x94   :  { %v192_v24 = vpop.permute.xlu1 %191   ;;  %v183_v25 = vpop.permute.xlu0 %182  }
  0x95   :  { %348 = vst.msk [vmem:[%s715_s1 + $0x45] ss:$8 sm:$0xf] %vm3_vm0, %v192_v24   ;;  %349 = vst.msk [vmem:[%s715_s1 + $0x45] ss:$8 sm:$0xf0] %vm3_vm0, %v192_v24  }
  0x96   :  { %345 = vst.msk [vmem:[%s715_s1 + $0x5] ss:$8 sm:$0xf] %vm3_vm0, %v183_v25   ;;  %346 = vst.msk [vmem:[%s715_s1 + $0x5] ss:$8 sm:$0xf0] %vm3_vm0, %v183_v25  }
  0x98   :  { %v210_v26 = vpop.permute.xlu1 %209   ;;  %v201_v27 = vpop.permute.xlu0 %200  }
  0x99   :  { %354 = vst.msk [vmem:[%s715_s1 + $0xc5] ss:$8 sm:$0xf] %vm3_vm0, %v210_v26   ;;  %355 = vst.msk [vmem:[%s715_s1 + $0xc5] ss:$8 sm:$0xf0] %vm3_vm0, %v210_v26  }
  0x9a   :  { %351 = vst.msk [vmem:[%s715_s1 + $0x85] ss:$8 sm:$0xf] %vm3_vm0, %v201_v27   ;;  %352 = vst.msk [vmem:[%s715_s1 + $0x85] ss:$8 sm:$0xf0] %vm3_vm0, %v201_v27  }
  0x9c   :  { %v227_v28 = vpop.permute.xlu1 %226   ;;  %v218_v29 = vpop.permute.xlu0 %217  }
  0x9d   :  { %359 = vst.msk [vmem:[%s715_s1 + $0x46] ss:$8 sm:$0xf] %vm3_vm0, %v227_v28   ;;  %360 = vst.msk [vmem:[%s715_s1 + $0x46] ss:$8 sm:$0xf0] %vm3_vm0, %v227_v28  }
  0x9e   :  { %356 = vst.msk [vmem:[%s715_s1 + $0x6] ss:$8 sm:$0xf] %vm3_vm0, %v218_v29   ;;  %357 = vst.msk [vmem:[%s715_s1 + $0x6] ss:$8 sm:$0xf0] %vm3_vm0, %v218_v29  }
  0xa0   :  { %v245_v30 = vpop.permute.xlu1 %244   ;;  %v236_v31 = vpop.permute.xlu0 %235  }
  0xa1   :  { %365 = vst.msk [vmem:[%s715_s1 + $0xc6] ss:$8 sm:$0xf] %vm3_vm0, %v245_v30   ;;  %366 = vst.msk [vmem:[%s715_s1 + $0xc6] ss:$8 sm:$0xf0] %vm3_vm0, %v245_v30  }
  0xa2   :  { %362 = vst.msk [vmem:[%s715_s1 + $0x86] ss:$8 sm:$0xf] %vm3_vm0, %v236_v31   ;;  %363 = vst.msk [vmem:[%s715_s1 + $0x86] ss:$8 sm:$0xf0] %vm3_vm0, %v236_v31  }
  0xa4   :  { %v262_v32 = vpop.permute.xlu1 %261   ;;  %v253_v33 = vpop.permute.xlu0 %252  }
  0xa5   :  { %370 = vst.msk [vmem:[%s715_s1 + $0x47] ss:$8 sm:$0xf] %vm3_vm0, %v262_v32   ;;  %371 = vst.msk [vmem:[%s715_s1 + $0x47] ss:$8 sm:$0xf0] %vm3_vm0, %v262_v32  }
  0xa6   :  { %367 = vst.msk [vmem:[%s715_s1 + $0x7] ss:$8 sm:$0xf] %vm3_vm0, %v253_v33   ;;  %368 = vst.msk [vmem:[%s715_s1 + $0x7] ss:$8 sm:$0xf0] %vm3_vm0, %v253_v33  }
  0xa8   :  { %v280_v34 = vpop.permute.xlu1 %279   ;;  %v271_v35 = vpop.permute.xlu0 %270  }
  0xa9   :  { %376 = vst.msk [vmem:[%s715_s1 + $0xc7] ss:$8 sm:$0xf] %vm3_vm0, %v280_v34   ;;  %377 = vst.msk [vmem:[%s715_s1 + $0xc7] ss:$8 sm:$0xf0] %vm3_vm0, %v280_v34  }
  0xaa   :  { %373 = vst.msk [vmem:[%s715_s1 + $0x87] ss:$8 sm:$0xf] %vm3_vm0, %v271_v35   ;;  %374 = vst.msk [vmem:[%s715_s1 + $0x87] ss:$8 sm:$0xf0] %vm3_vm0, %v271_v35  }

// kernel: vss_block_no_cbam_forward.8
= control target key start
LH: loop header
LB: loop body
LE: loop exit
PB: predicated region body
PF: predicated region fallthrough
CT: control target
= control target key end

     0   :  { %s1874_s27 = smov 0   ;;  %s1876_s28 = smov 0   ;;  %s2164_s0 = inlined_call_operand.vmem [shape: f32[256,64], index: 0, kind: input, shape index: {}]   ;;  %s2165_s1 = inlined_call_operand.vmem [shape: f32[256,64], index: 1, kind: input, shape index: {}]   ;;  %s2166_s2 = inlined_call_operand.vmem [shape: f32[256,16,8], index: 2, kind: input, shape index: {}]   ;;  %s2167_s3 = inlined_call_operand.vmem [shape: f32[256,16,8], index: 3, kind: input, shape index: {}]   ;;  %s2168_s4 = inlined_call_operand.vmem [shape: f32[16,64], index: 4, kind: input, shape index: {}]   ;;  %s2169_s5 = inlined_call_operand.vmem [shape: f32[1,64], index: 5, kind: input, shape index: {}]   ;;  %s2170_s6 = inlined_call_operand.vmem [shape: f32[1,64], index: 6, kind: input, shape index: {}]   ;;  %s2171_s7 = inlined_call_operand.vmem [shape: f32[1,8,64], index: 7, kind: input, shape index: {}]   ;;  %s2172_s8 = inlined_call_operand.vmem [shape: f32[256,64], index: 8, kind: output, shape index: {}]  }
   0x1   :  { %s1878_s29 = smov 0  }
   0x2 LB: > { %s27_s30 = sadd.s32 1, %s1809_s28  ;;  %p1552_p0 = scmp.ge.s32.totalorder %s1813_s29, 1  ;;  %s1813_s29 = sphi %s1878_s29, %s18_s29   ;;  %s1809_s28 = sphi %s1876_s28, %s2176_s28   ;;  %s1805_s27 = sphi %s1874_s27, %s2175_s27  }
   0x3   : > { %p28_p1 = scmp.ge.s32.totalorder %s27_s30, 4  ;;  %p356_p2 = scmp.lt.s32.totalorder %s1813_s29, 5 }
   0x5   : > { %s2178_s30 = smov (%p28_p1, %s27_s30), 0  ;;  %p357_p3 = pnand %p1552_p0, %p356_p2 }
   0x6   : > { %s1553_s9 = sshll.u32 (!%p357_p3), %s1805_s27, 3  ;;  %s1557_s10 = sshll.u32 (!%p357_p3), %s1805_s27, 6 }
   0x7   : > { %360 = sbr.rel (%p357_p3) target bundleno = 302 (0x12e), region = 52  ;;  %p431_p4 = scmp.lt.s32.totalorder (!%p357_p3), %s1553_s9, 31 }
   0x8   : > { %p449_p5 = scmp.lt.s32.totalorder (!%p357_p3), %s1557_s10, 255  ;;  %p1565_p6 = scmp.ne.s32.totalorder (!%p357_p3), %s1805_s27, 0 }
   0xe   : > { %s2180_s9 = smov (!%p431_p4, %s1553_s9), 31  ;;  %s2182_s10 = smov (!%p449_p5, %s1557_s10), 255 }
   0xf   : > { %s1892_s11 = sshll.u32 %s2180_s9, 3  ;;  %s1604_s18 = sshll.u32 %s2182_s10, 4  ;;  %vm489_vm0 = vcmask (!%p1565_p6), 523264   ;;  %v1827_v0 = vmov (!%p1565_p6), 0.0  }
  0x10   : > { %s437_s14 = scalar_lea.vmem %s2164_s0, %s1892_s11  ;;  %s446_s17 = scalar_lea.vmem %s2165_s1, %s1892_s11  ;;  %490 = vst.msk [vmem:[#allocation2] sm:$0xff] (!%p1565_p6), %vm489_vm0, %v1827_v0  ;;  %491 = vst.msk [vmem:[#allocation2 + $0x8] sm:$0xff] (!%p1565_p6), %vm489_vm0, %v1827_v0 }
  0x11   : > { %s483_s21 = scalar_lea.vmem %s2172_s8, %s1892_s11  ;;  %s1909_s24 = scalar_lea.vmem %s2166_s2, %s1604_s18 }
  0x12   : > { %s1914_s9 = scalar_lea.vmem %s2167_s3, %s1604_s18  ;;  %488 = sbr.rel (%p1565_p6) target bundleno = 25 (0x19), region = 56 }
  0x19 PF: > { %v1919_v1 = vld [vmem:[%s2168_s4] sm:$0xff]  ;;  %v1924_v2 = vld [vmem:[%s2168_s4 + $0x8] sm:$0xff]  ;;  %s1945_s23 = smov 0  }
  0x1a   : > { %v1929_v3 = vld [vmem:[%s2169_s5] ss:$0 sm:$0xff]  ;;  %v498_v7 = vld [vmem:[#allocation2 + $0x8] sm:$0xff]  }
  0x1b   : > { %v1934_v4 = vld [vmem:[%s2170_s6] ss:$0 sm:$0xff] }
  0x1c   : > { %v1939_v5 = vld [vmem:[%s2171_s7] sm:$0xff] }
  0x1d   : > { %v497_v6 = vld [vmem:[#allocation2] sm:$0xff]  }
  0x1e LB: >> { %1641 = vmatprep.subr.mxu0 %v1939_v5  ;;  %1667 = vmatprep.subr.mxu1 %v1939_v5  ;;  %s1606_s25 = sshll.u32 %s1825_s23, 7  ;;  %vm694_vm1 = vcmask 64512   ;;  %s2032_s12 = sshll.u32 %s1825_s23, 3  ;;  %v1828_v53 = vmov 1966171168   ;;  %v543_v55 = vlaneseq  ;;  %vm1210_vm4 = vcmask 523264   ;;  %s1825_s23 = sphi %s1945_s23, %s504_s23   ;;  %v1821_v6 = vphi %v497_v6, %v2174_v6   ;;  %v1817_v7 = vphi %v498_v7, %v2173_v7  }
  0x1f   : >> { %1642 = vmatpush3.msra.mxu0 %v1939_v5  ;;  %1668 = vmatpush3.msra.mxu1 %v1939_v5  ;;  %s1962_s26 = scalar_lea.vmem %s1909_s24, %s1606_s25  ;;  %s1965_s10 = scalar_lea.vmem %s1914_s9, %s1606_s25  ;;  %v541_v54 = vunpack.c.l.s4 %v1828_v53  ;;  %vm1325_vm5 = vcmask 1040384   ;;  %vm1327_vm6 = vcmask 1041408   ;;  %vm1329_vm7 = vcmask 1042432  }
  0x20   : >> { %v678_v8 = vld [vmem:[%s1962_s26] sm:$0xff]  ;;  %v679_v9 = vld [vmem:[%s1962_s26 + $0x8] sm:$0xff]  ;;  %v680_v11 = vld [vmem:[%s1962_s26 + $0x10] sm:$0xff]  ;;  %s510_s16 = scalar_lea.vmem %s446_s17, %s2032_s12  ;;  %v544_v59 = vshrl.u32 %v543_v55, 7  ;;  %s508_s19 = scalar_lea.vmem %s437_s14, %s2032_s12  ;;  %vm1331_vm8 = vcmask 1043456   ;;  %vm1333_vm9 = vcmask 1044480  }
  0x21   : >> { %v889_v10 = vld [vmem:[%s1965_s10] sm:$0xff]  ;;  %1643 = vmatprep.mubr.msk.f32.mxu0 %vm694_vm1, %v678_v8  ;;  %v890_v12 = vld [vmem:[%s1965_s10 + $0x8] sm:$0xff]  ;;  %v891_v13 = vld [vmem:[%s1965_s10 + $0x10] sm:$0xff]  ;;  %v542_v58 = vunpack.c.0.s8 %v541_v54  ;;  %vm1335_vm10 = vcmask 1045504   ;;  %vm1337_vm11 = vcmask 1046528   ;;  %s1347_s25 = scalar_lea.vmem %s483_s21, %s2032_s12  ;;  %s504_s23 = sadd.s32 1, %s1825_s23  }
  0x22   : >> { %1669 = vmatprep.mubr.msk.f32.mxu1 %vm694_vm1, %v889_v10  ;;  %1644 = vmatmul.mubr.msk.f32.vlgmr.msra.gmra.mrb[0].mxu0 %vm694_vm1, %v679_v9  ;;  %v681_v14 = vld [vmem:[%s1962_s26 + $0x18] sm:$0xff]  ;;  %v682_v16 = vld [vmem:[%s1962_s26 + $0x20] sm:$0xff]  ;;  %v683_v18 = vld [vmem:[%s1962_s26 + $0x28] sm:$0xff]  ;;  %v2045_v8 = vsub.s32 0, %v544_v59  ;;  %p501_p7 = scmp.ge.s32.totalorder %s504_s23, 8  }
  0x23   : >> { %1670 = vmatmul.mubr.msk.f32.vlgmr.msra.gmra.mrb[0].mxu1 %vm694_vm1, %v890_v12  ;;  %1646 = vmatprep.mubr.msk.f32.mxu0 %vm694_vm1, %v680_v11  ;;  %v892_v15 = vld [vmem:[%s1965_s10 + $0x18] sm:$0xff]  ;;  %v893_v17 = vld [vmem:[%s1965_s10 + $0x20] sm:$0xff]  ;;  %v894_v19 = vld [vmem:[%s1965_s10 + $0x28] sm:$0xff]  ;;  %v2041_v61 = vsub.s32 %v542_v58, %v544_v59 }
  0x24   : >> { %1672 = vmatprep.mubr.msk.f32.mxu1 %vm694_vm1, %v891_v13  ;;  %v684_v20 = vld [vmem:[%s1962_s26 + $0x30] sm:$0xff]  ;;  %v685_v22 = vld [vmem:[%s1962_s26 + $0x38] sm:$0xff]  ;;  %v686_v24 = vld [vmem:[%s1962_s26 + $0x40] sm:$0xff] }
  0x25   : >> { %v895_v21 = vld [vmem:[%s1965_s10 + $0x30] sm:$0xff]  ;;  %v896_v23 = vld [vmem:[%s1965_s10 + $0x38] sm:$0xff]  ;;  %v897_v25 = vld [vmem:[%s1965_s10 + $0x40] sm:$0xff] }
  0x26   : >> { %1647 = vmatmul.mubr.msk.f32.gmra.mrb[2].mxu0 %vm694_vm1, %v681_v14  ;;  %v687_v26 = vld [vmem:[%s1962_s26 + $0x48] sm:$0xff]  ;;  %v688_v28 = vld [vmem:[%s1962_s26 + $0x50] sm:$0xff]  ;;  %v689_v30 = vld [vmem:[%s1962_s26 + $0x58] sm:$0xff] }
  0x27   : >> { %1673 = vmatmul.mubr.msk.f32.gmra.mrb[2].mxu1 %vm694_vm1, %v892_v15  ;;  %1649 = vmatprep.mubr.msk.f32.mxu0 %vm694_vm1, %v682_v16  ;;  %v898_v27 = vld [vmem:[%s1965_s10 + $0x48] sm:$0xff]  ;;  %v899_v29 = vld [vmem:[%s1965_s10 + $0x50] sm:$0xff]  ;;  %v900_v31 = vld [vmem:[%s1965_s10 + $0x58] sm:$0xff] }
  0x28   : >> { %1675 = vmatprep.mubr.msk.f32.mxu1 %vm694_vm1, %v893_v17  ;;  %v690_v32 = vld [vmem:[%s1962_s26 + $0x60] sm:$0xff]  ;;  %v691_v34 = vld [vmem:[%s1962_s26 + $0x68] sm:$0xff]  ;;  %v692_v36 = vld [vmem:[%s1962_s26 + $0x70] sm:$0xff] }
  0x29   : >> { %v901_v33 = vld [vmem:[%s1965_s10 + $0x60] sm:$0xff]  ;;  %v902_v35 = vld [vmem:[%s1965_s10 + $0x68] sm:$0xff]  ;;  %v903_v37 = vld [vmem:[%s1965_s10 + $0x70] sm:$0xff] }
  0x2a   : >> { %1650 = vmatmul.mubr.msk.f32.gmra.mrb[4].mxu0 %vm694_vm1, %v683_v18  ;;  %v693_v38 = vld [vmem:[%s1962_s26 + $0x78] sm:$0xff]  ;;  %v511_v40 = vld [vmem:[%s510_s16] sm:$0xff] }
  0x2b   : >> { %1676 = vmatmul.mubr.msk.f32.gmra.mrb[4].mxu1 %vm694_vm1, %v894_v19  ;;  %1652 = vmatprep.mubr.msk.f32.mxu0 %vm694_vm1, %v684_v20  ;;  %v904_v39 = vld [vmem:[%s1965_s10 + $0x78] sm:$0xff]  ;;  %v518_v41 = vadd.f32 %v1934_v4, %v511_v40  ;;  %v2058_v18 = vld [vmem:[%s508_s19] sm:$0xff] }
  0x2c   : >> { %1678 = vmatprep.mubr.msk.f32.mxu1 %vm694_vm1, %v895_v21 }
  0x2d   : >> { %v522_v42 = vand.u32 2147483647, %v518_v41  ;;  %v519_v56 = vmax.f32 %v518_v41, 0.0  ;;  %vm520_vm3 = vcmp.ne.f32.partialorder %v518_v41, %v518_v41 }
  0x2e   : >> { %1653 = vmatmul.mubr.msk.f32.gmra.mrb[6].mxu0 %vm694_vm1, %v685_v22 }
  0x2f   : >> { %1679 = vmatmul.mubr.msk.f32.gmra.mrb[6].mxu1 %vm694_vm1, %v896_v23  ;;  %1655 = vmatprep.mubr.msk.f32.mxu0 %vm694_vm1, %v686_v24  ;;  %v523_v43 = vsub.f32 0.0, %v522_v42 }
  0x30   : >> { %1681 = vmatprep.mubr.msk.f32.mxu1 %vm694_vm1, %v897_v25 }
  0x31   : >> { %v524_v44 = vmul.f32 1.442695, %v523_v43 }
  0x32   : >> { %1656 = vmatmul.mubr.msk.f32.gmra.mrb[8].mxu0 %vm694_vm1, %v687_v26 }
  0x33   : >> { %1682 = vmatmul.mubr.msk.f32.gmra.mrb[8].mxu1 %vm694_vm1, %v898_v27  ;;  %1658 = vmatprep.mubr.msk.f32.mxu0 %vm694_vm1, %v688_v28  ;;  %1743 = vpow2.f32 %v524_v44 }
  0x34   : >> { %1684 = vmatprep.mubr.msk.f32.mxu1 %vm694_vm1, %v899_v29 }
  0x36   : >> { %1659 = vmatmul.mubr.msk.f32.gmra.mrb[10].mxu0 %vm694_vm1, %v689_v30 }
  0x37   : >> { %1685 = vmatmul.mubr.msk.f32.gmra.mrb[10].mxu1 %vm694_vm1, %v900_v31  ;;  %1661 = vmatprep.mubr.msk.f32.mxu0 %vm694_vm1, %v690_v32 }
  0x38   : >> { %1687 = vmatprep.mubr.msk.f32.mxu1 %vm694_vm1, %v901_v33 }
  0x3a   : >> { %1662 = vmatmul.mubr.msk.f32.gmra.mrb[12].mxu0 %vm694_vm1, %v691_v34 }
  0x3b   : >> { %1688 = vmatmul.mubr.msk.f32.gmra.mrb[12].mxu1 %vm694_vm1, %v902_v35  ;;  %1664 = vmatprep.mubr.msk.f32.mxu0 %vm694_vm1, %v692_v36 }
  0x3c   : >> { %1690 = vmatprep.mubr.msk.f32.mxu1 %vm694_vm1, %v903_v37 }
  0x3d   : >> { %v1744_v45 = vpop.eup %1743 }
  0x3e   : >> { %1665 = vmatmul.mubr.msk.f32.gmra.mrb[14].mxu0 %vm694_vm1, %v693_v38  ;;  %v526_v46 = vadd.f32 1.0, %v1744_v45  ;;  %v529_v47 = vmul.f32 -0.5, %v1744_v45  ;;  %v532_v50 = vand.u32 2147483647, %v1744_v45 }
  0x3f   : >> { %1691 = vmatmul.mubr.msk.f32.gmra.mrb[14].mxu1 %vm694_vm1, %v904_v39 }
  0x40   : >> { %1745 = vlog2.f32 %v526_v46  ;;  %v530_v48 = vadd.f32 1.0, %v529_v47  ;;  %vm533_vm2 = vcmp.lt.f32.partialorder %v532_v50, 0.0004427343 }
  0x42   : >> { %v531_v52 = vmul.f32 %v1744_v45, %v530_v48 }
  0x4a   : >> { %v1746_v49 = vpop.eup %1745 }
  0x4b   : >> { %v528_v51 = vmul.f32 0.6931472, %v1746_v49 }
  0x4d   : >> { %v534_v57 = vsel %vm533_vm2, %v531_v52, %v528_v51 }
  0x4e   : >> { %v535_v60 = vadd.f32 %v534_v57, %v519_v56 }
  0x50   : >> { %v536_v62 = vsel %vm520_vm3, %v518_v41, %v535_v60 }
  0x51   : >> { %v546_v63 = vrot.slane %v536_v62, %v2041_v61  ;;  %v539_v13 = vcombine.high %v536_v62, %v536_v62  ;;  %v537_v25 = vmul.f32 %v536_v62, %v2058_v18 }
  0x53   : >> { %v562_v0 = vrot.slane %v546_v63, %v2041_v61  ;;  %v554_v9 = vcombine.high %v546_v63, %v546_v63  ;;  %v553_v19 = vrot.slane %v539_v13, %v2041_v61  ;;  %v1106_v32 = vrot.slane %v537_v25, %v2041_v61 }
  0x54   : >> { %v1099_v44 = vcombine.high %v537_v25, %v537_v25 }
  0x55   : >> { %v591_v10 = vrot.slane %v562_v0, %v2045_v8  ;;  %v576_v11 = vrot.slane %v554_v9, %v2041_v61  ;;  %v584_v15 = vcombine.high %v562_v0, %v562_v0  ;;  %v555_v23 = vcombine.high %v553_v19, %v553_v19 }
  0x56   : >> { %v569_v26 = vrot.slane %v553_v19, %v2041_v61  ;;  %v1122_v40 = vrot.slane %v1106_v32, %v2041_v61  ;;  %v1114_v41 = vcombine.high %v1106_v32, %v1106_v32  ;;  %v1113_v58 = vrot.slane %v1099_v44, %v2041_v61 }
  0x57   : >> { %v629_v12 = vmul.f32 %v591_v10, %v1924_v2  ;;  %v628_v14 = vmul.f32 %v591_v10, %v1919_v1  ;;  %v595_v16 = vrot.slane %v576_v11, %v2045_v8  ;;  %v586_v21 = vcombine.high %v576_v11, %v576_v11 }
  0x58   : >> { %v599_v22 = vrot.slane %v584_v15, %v2045_v8  ;;  %v583_v30 = vrot.slane %v555_v23, %v2041_v61  ;;  %v607_v35 = vrot.slane %v569_v26, %v2045_v8  ;;  %v585_v38 = vcombine.high %v569_v26, %v569_v26 }
  0x59   : >> { %v646_v17 = vmul.f32 1.442695, %v629_v12  ;;  %v644_v20 = vmul.f32 1.442695, %v628_v14  ;;  %v631_v24 = vmul.f32 %v595_v16, %v1924_v2  ;;  %v630_v27 = vmul.f32 %v595_v16, %v1919_v1 }
  0x5a   : >> { %v633_v28 = vmul.f32 %v599_v22, %v1924_v2  ;;  %v603_v29 = vrot.slane %v586_v21, %v2045_v8  ;;  %v632_v34 = vmul.f32 %v599_v22, %v1919_v1  ;;  %v611_v39 = vrot.slane %v583_v30, %v2045_v8 }
  0x5b   : >> { %1747 = vpow2.f32 %v646_v17  ;;  %v650_v31 = vmul.f32 1.442695, %v631_v24  ;;  %v648_v33 = vmul.f32 1.442695, %v630_v27  ;;  %v637_v45 = vmul.f32 %v607_v35, %v1924_v2 }
  0x5c   : >> { %1749 = vpow2.f32 %v644_v20  ;;  %v654_v36 = vmul.f32 1.442695, %v633_v28  ;;  %v635_v37 = vmul.f32 %v603_v29, %v1924_v2  ;;  %v634_v42 = vmul.f32 %v603_v29, %v1919_v1 }
  0x5d   : >> { %1751 = vpow2.f32 %v650_v31  ;;  %v652_v43 = vmul.f32 1.442695, %v632_v34  ;;  %v636_v48 = vmul.f32 %v607_v35, %v1919_v1  ;;  %v639_v50 = vmul.f32 %v611_v39, %v1924_v2 }
  0x5e   : >> { %1753 = vpow2.f32 %v648_v33  ;;  %v658_v47 = vmul.f32 1.442695, %v635_v37  ;;  %v615_v51 = vrot.slane %v585_v38, %v2045_v8  ;;  %v587_v52 = vcombine.high %v583_v30, %v583_v30 }
  0x5f   : >> { %1755 = vpow2.f32 %v654_v36  ;;  %v1151_v53 = vrot.slane %v1122_v40, %v2045_v8  ;;  %v1136_v54 = vrot.slane %v1114_v41, %v2041_v61  ;;  %v656_v55 = vmul.f32 1.442695, %v634_v42 }
  0x60   : >> { %v638_v56 = vmul.f32 %v611_v39, %v1919_v1  ;;  %v1144_v57 = vcombine.high %v1122_v40, %v1122_v40  ;;  %1757 = vpow2.f32 %v652_v43  ;;  %v662_v59 = vmul.f32 1.442695, %v637_v45 }
  0x61   : >> { %v1146_v63 = vcombine.high %v1136_v54, %v1136_v54  ;;  %v660_v0 = vmul.f32 1.442695, %v636_v48  ;;  %1759 = vpow2.f32 %v658_v47  ;;  %v666_v9 = vmul.f32 1.442695, %v639_v50 }
  0x62   : >> { %v641_v10 = vmul.f32 %v615_v51, %v1924_v2  ;;  %v619_v11 = vrot.slane %v587_v52, %v2045_v8  ;;  %v1155_v14 = vrot.slane %v1136_v54, %v2045_v8  ;;  %1761 = vpow2.f32 %v656_v55 }
  0x63   : >> { %v664_v15 = vmul.f32 1.442695, %v638_v56  ;;  %v2091_v20 = vrot.slane %v1113_v58, %v2041_v61  ;;  %1763 = vpow2.f32 %v662_v59  ;;  %v2094_v22 = vrot.slane %v1146_v63, %v2045_v8 }
  0x64   : >> { %1765 = vpow2.f32 %v660_v0  ;;  %v640_v23 = vmul.f32 %v615_v51, %v1919_v1  ;;  %v670_v26 = vmul.f32 1.442695, %v641_v10  ;;  %v643_v27 = vmul.f32 %v619_v11, %v1924_v2 }
  0x65   : >> { %v1748_v46 = vpop.eup %1747  ;;  %1767 = vpow2.f32 %v666_v9  ;;  %v1115_v32 = vcombine.high %v1113_v58, %v1113_v58  ;;  %v642_v33 = vmul.f32 %v619_v11, %v1919_v1  ;;  %v2101_v39 = vrot.slane %v2091_v20, %v2045_v8 }
  0x66   : >> { %v1750_v49 = vpop.eup %1749  ;;  %v1205_v60 = vmul.f32 %v1817_v7, %v1748_v46  ;;  %1769 = vpow2.f32 %v664_v15  ;;  %v668_v43 = vmul.f32 1.442695, %v640_v23  ;;  %v674_v47 = vmul.f32 1.442695, %v643_v27 }
  0x67   : >> { %v1204_v62 = vmul.f32 %v1821_v6, %v1750_v49  ;;  %v1752_v16 = vpop.eup %1751  ;;  %v1159_v6 = vrot.slane %v1144_v57, %v2045_v8  ;;  %1771 = vpow2.f32 %v670_v26  ;;  %v2106_v52 = vrot.slane %v1115_v32, %v2041_v61 }
  0x68   : >> { %v1754_v24 = vpop.eup %1753  ;;  %1773 = vpow2.f32 %v668_v43 }
  0x69   : >> { %v1756_v28 = vpop.eup %1755  ;;  %1775 = vpow2.f32 %v674_v47 }
  0x6a   : >> { %v1758_v44 = vpop.eup %1757 }
  0x6b   : >> { %v1760_v54 = vpop.eup %1759 }
  0xf5   : >> { %v1645_v12 = vpop.f32.mrb[0].mxu0 }
  0xf6   : >> { %v1671_v13 = vpop.f32.mrb[0].mxu1  ;;  %v1189_v17 = vmul.f32 %v1645_v12, %v1151_v53  ;;  %v809_v7 = vpop.f32.mrb[1].mxu0 }
  0xf7   : >> { %v1019_v19 = vpop.f32.mrb[1].mxu1  ;;  %v1188_v21 = vmul.f32 %v1151_v53, %v809_v7  ;;  %v672_v53 = vmul.f32 1.442695, %v642_v33  ;;  %v1171_v7 = vrot.slane %v2106_v52, %v2045_v8 }
  0xf8   : >> { %v1207_v25 = vadd.f32 %v1205_v60, %v1189_v17 }
  0xf9   : >> { %v1648_v29 = vpop.f32.mrb[2].mxu0  ;;  %v1206_v30 = vadd.f32 %v1204_v62, %v1188_v21  ;;  %v1762_v62 = vpop.eup %1761  ;;  %1777 = vpow2.f32 %v672_v53 }
  0xfa   : >> { %v1674_v31 = vpop.f32.mrb[2].mxu1  ;;  %v1209_v34 = vmul.f32 %v1671_v13, %v1207_v25  ;;  %v1191_v35 = vmul.f32 %v1648_v29, %v1155_v14  ;;  %v819_v36 = vpop.f32.mrb[3].mxu0  ;;  %v1221_v37 = vmul.f32 %v1752_v16, %v1207_v25 }
  0xfb   : >> { %v1029_v38 = vpop.f32.mrb[3].mxu1  ;;  %v1208_v40 = vmul.f32 %v1206_v30, %v1019_v19  ;;  %v1190_v41 = vmul.f32 %v1155_v14, %v819_v36  ;;  %v1220_v42 = vmul.f32 %v1754_v24, %v1206_v30  ;;  %v1764_v10 = vpop.eup %1763 }
  0xfc   : >> { %v1212_v45 = vsel %vm1210_vm4, %v1209_v34, 0.0  ;;  %v1223_v46 = vadd.f32 %v1221_v37, %v1191_v35  ;;  %v1766_v61 = vpop.eup %1765  ;;  %v1145_v35 = vcombine.high %v2091_v20, %v2091_v20 }
  0xfd   : >> { %v1211_v48 = vsel %vm1210_vm4, %v1208_v40, 0.0  ;;  %v1651_v49 = vpop.f32.mrb[4].mxu0  ;;  %v1222_v50 = vadd.f32 %v1220_v42, %v1190_v41  ;;  %v1768_v19 = vpop.eup %1767  ;;  %v1147_v42 = vcombine.high %v2106_v52, %v2106_v52 }
  0xfe   : >> { %v1677_v51 = vpop.f32.mrb[4].mxu1  ;;  %v1213_v55 = vadd.f32 %v1212_v45, %v1211_v48  ;;  %v1225_v56 = vmul.f32 %v1674_v31, %v1223_v46  ;;  %v1193_v57 = vmul.f32 %v1651_v49, %v1159_v6  ;;  %v829_v58 = vpop.f32.mrb[5].mxu0  ;;  %v1236_v59 = vmul.f32 %v1756_v28, %v1223_v46 }
  0xff   : >> { %v1039_v60 = vpop.f32.mrb[5].mxu1  ;;  %v1224_v63 = vmul.f32 %v1222_v50, %v1029_v38  ;;  %v1192_v0 = vmul.f32 %v1159_v6, %v829_v58  ;;  %v1235_v9 = vmul.f32 %v1758_v44, %v1222_v50  ;;  %v1770_v27 = vpop.eup %1769 }
 0x100   : >> { %v1214_v11 = vrot.slane %v1213_v55, 4  ;;  %v1227_v12 = vsel %vm1210_vm4, %v1225_v56, 0.0  ;;  %v1238_v13 = vadd.f32 %v1236_v59, %v1193_v57  ;;  %v1175_v56 = vrot.slane %v1145_v35, %v2045_v8 }
 0x101   : >> { %v1226_v14 = vsel %vm1210_vm4, %v1224_v63, 0.0  ;;  %v1654_v15 = vpop.f32.mrb[6].mxu0  ;;  %v1237_v16 = vadd.f32 %v1235_v9, %v1192_v0 }
 0x102   : >> { %v1680_v17 = vpop.f32.mrb[6].mxu1  ;;  %v1215_v6 = vadd.f32 %v1214_v11, %v1213_v55  ;;  %v1228_v21 = vadd.f32 %v1227_v12, %v1226_v14  ;;  %v1240_v23 = vmul.f32 %v1677_v51, %v1238_v13  ;;  %v1195_v24 = vmul.f32 %v1654_v15, %v2094_v22  ;;  %v839_v25 = vpop.f32.mrb[7].mxu0 }
 0x103   : >> { %v1049_v26 = vpop.f32.mrb[7].mxu1  ;;  %v1239_v28 = vmul.f32 %v1237_v16, %v1039_v60  ;;  %v1194_v29 = vmul.f32 %v2094_v22, %v839_v25  ;;  %v1251_v30 = vmul.f32 %v1760_v54, %v1238_v13  ;;  %v1250_v31 = vmul.f32 %v1762_v62, %v1237_v16  ;;  %v1772_v22 = vpop.eup %1771 }
 0x104   : >> { %v1216_v32 = vrot.slane %v1215_v6, 2  ;;  %v1229_v33 = vrot.slane %v1228_v21, 4  ;;  %v1242_v34 = vsel %vm1210_vm4, %v1240_v23, 0.0  ;;  %v1774_v57 = vpop.eup %1773  ;;  %v1179_v13 = vrot.slane %v1147_v42, %v2045_v8 }
 0x105   : >> { %v1241_v36 = vsel %vm1210_vm4, %v1239_v28, 0.0  ;;  %v1253_v37 = vadd.f32 %v1251_v30, %v1195_v24  ;;  %v1657_v38 = vpop.f32.mrb[8].mxu0  ;;  %v1252_v40 = vadd.f32 %v1250_v31, %v1194_v29  ;;  %v1776_v0 = vpop.eup %1775 }
 0x106   : >> { %v1683_v41 = vpop.f32.mrb[8].mxu1  ;;  %v1217_v43 = vadd.f32 %v1216_v32, %v1215_v6  ;;  %v1230_v44 = vadd.f32 %v1229_v33, %v1228_v21  ;;  %v1243_v45 = vadd.f32 %v1242_v34, %v1241_v36  ;;  %v1197_v46 = vmul.f32 %v1657_v38, %v2101_v39  ;;  %v849_v47 = vpop.f32.mrb[9].mxu0 }
 0x107   : >> { %v1059_v48 = vpop.f32.mrb[9].mxu1  ;;  %v1255_v49 = vmul.f32 %v1680_v17, %v1253_v37  ;;  %v1254_v20 = vmul.f32 %v1252_v40, %v1049_v26  ;;  %v1196_v50 = vmul.f32 %v2101_v39, %v849_v47  ;;  %v1266_v51 = vmul.f32 %v1764_v10, %v1253_v37 }
 0x108   : >> { %v1231_v53 = vrot.slane %v1230_v44, 2  ;;  %v1244_v54 = vrot.slane %v1243_v45, 4  ;;  %v1265_v55 = vmul.f32 %v1766_v61, %v1252_v40  ;;  %v1218_v52 = vrot.slane %v1217_v43, 1  ;;  %v1778_v61 = vpop.eup %1777 }
 0x109   : >> { %v1257_v58 = vsel %vm1210_vm4, %v1255_v49, 0.0  ;;  %v1256_v59 = vsel %vm1210_vm4, %v1254_v20, 0.0  ;;  %v1268_v60 = vadd.f32 %v1266_v51, %v1197_v46  ;;  %v1660_v62 = vpop.f32.mrb[10].mxu0 }
 0x10a   : >> { %v1686_v63 = vpop.f32.mrb[10].mxu1  ;;  %v1232_v9 = vadd.f32 %v1231_v53, %v1230_v44  ;;  %v1245_v11 = vadd.f32 %v1244_v54, %v1243_v45  ;;  %v1258_v39 = vadd.f32 %v1257_v58, %v1256_v59  ;;  %v859_v10 = vpop.f32.mrb[11].mxu0  ;;  %v1199_v15 = vmul.f32 %v1660_v62, %v1171_v7 }
 0x10b   : >> { %v1069_v12 = vpop.f32.mrb[11].mxu1  ;;  %v1270_v14 = vmul.f32 %v1683_v41, %v1268_v60  ;;  %v1267_v16 = vadd.f32 %v1265_v55, %v1196_v50  ;;  %v1198_v17 = vmul.f32 %v1171_v7, %v859_v10  ;;  %v1281_v24 = vmul.f32 %v1768_v19, %v1268_v60 }
 0x10c   : >> { %v1233_v6 = vrot.slane %v1232_v9, 1  ;;  %v1246_v21 = vrot.slane %v1245_v11, 2  ;;  %v1259_v23 = vrot.slane %v1258_v39, 4  ;;  %v1219_v25 = vadd.f32 %v1218_v52, %v1217_v43 }
 0x10d   : >> { %v1272_v26 = vsel %vm1210_vm4, %v1270_v14, 0.0  ;;  %v1269_v28 = vmul.f32 %v1267_v16, %v1059_v48  ;;  %v1663_v29 = vpop.f32.mrb[12].mxu0  ;;  %v1280_v30 = vmul.f32 %v1770_v27, %v1267_v16  ;;  %v1283_v34 = vadd.f32 %v1281_v24, %v1199_v15 }
 0x10e   : >> { %v1689_v31 = vpop.f32.mrb[12].mxu1  ;;  %v1234_v32 = vadd.f32 %v1233_v6, %v1232_v9  ;;  %v1247_v33 = vadd.f32 %v1246_v21, %v1245_v11  ;;  %v1260_v8 = vadd.f32 %v1259_v23, %v1258_v39  ;;  %v869_v35 = vpop.f32.mrb[13].mxu0  ;;  %v1201_v37 = vmul.f32 %v1663_v29, %v1175_v56 }
 0x10f   : >> { %v1079_v36 = vpop.f32.mrb[13].mxu1  ;;  %v1271_v7 = vsel %vm1210_vm4, %v1269_v28, 0.0  ;;  %v1282_v38 = vadd.f32 %v1280_v30, %v1198_v17  ;;  %v1200_v40 = vmul.f32 %v1175_v56, %v869_v35  ;;  %v1285_v44 = vmul.f32 %v1686_v63, %v1283_v34 }
 0x110   : >> { %v1326_v19 = vsel %vm1325_vm5, %v1219_v25, %v1234_v32  ;;  %v1248_v41 = vrot.slane %v1247_v33, 1  ;;  %v1261_v42 = vrot.slane %v1260_v8, 2  ;;  %v1273_v43 = vadd.f32 %v1272_v26, %v1271_v7 }
 0x111   : >> { %v1284_v45 = vmul.f32 %v1282_v38, %v1069_v12  ;;  %v1296_v27 = vmul.f32 %v1772_v22, %v1283_v34  ;;  %v1666_v46 = vpop.f32.mrb[14].mxu0  ;;  %v1295_v47 = vmul.f32 %v1774_v57, %v1282_v38  ;;  %v1287_v55 = vsel %vm1210_vm4, %v1285_v44, 0.0 }
 0x112   : >> { %v1692_v48 = vpop.f32.mrb[14].mxu1  ;;  %v1249_v49 = vadd.f32 %v1248_v41, %v1247_v33  ;;  %v1262_v20 = vadd.f32 %v1261_v42, %v1260_v8  ;;  %v1274_v50 = vrot.slane %v1273_v43, 4  ;;  %v1203_v51 = vmul.f32 %v1666_v46, %v1179_v13  ;;  %v879_v53 = vpop.f32.mrb[15].mxu0 }
 0x113   : >> { %v1089_v54 = vpop.f32.mrb[15].mxu1  ;;  %v1286_v56 = vsel %vm1210_vm4, %v1284_v45, 0.0  ;;  %v1298_v52 = vadd.f32 %v1296_v27, %v1201_v37  ;;  %v1297_v58 = vadd.f32 %v1295_v47, %v1200_v40  ;;  %v1202_v9 = vmul.f32 %v1179_v13, %v879_v53 }
 0x114   : >> { %v1328_v59 = vsel %vm1327_vm6, %v1326_v19, %v1249_v49  ;;  %v1263_v60 = vrot.slane %v1262_v20, 1  ;;  %v1275_v62 = vadd.f32 %v1274_v50, %v1273_v43  ;;  %v1288_v22 = vadd.f32 %v1287_v55, %v1286_v56 }
 0x115   : >> { %v1300_v63 = vmul.f32 %v1689_v31, %v1298_v52  ;;  %v1299_v57 = vmul.f32 %v1297_v58, %v1079_v36  ;;  %v1311_v11 = vmul.f32 %v1776_v0, %v1298_v52  ;;  %v1310_v14 = vmul.f32 %v1778_v61, %v1297_v58 }
 0x116   : >> { %v1264_v39 = vadd.f32 %v1263_v60, %v1262_v20  ;;  %v1276_v10 = vrot.slane %v1275_v62, 2  ;;  %v1289_v12 = vrot.slane %v1288_v22, 4  ;;  %v1345_v46 = vmul.f32 %v1929_v3, %v2058_v18 }
 0x117   : >> { %v1302_v15 = vsel %vm1210_vm4, %v1300_v63, 0.0  ;;  %v1301_v16 = vsel %vm1210_vm4, %v1299_v57, 0.0  ;;  %v1313_v17 = vadd.f32 %v1311_v11, %v1203_v51   ;;  %v1312_v26 = vadd.f32 %v1310_v14, %v1202_v9  }
 0x118   : >> { %v1330_v6 = vsel %vm1329_vm7, %v1328_v59, %v1264_v39  ;;  %v1277_v21 = vadd.f32 %v1276_v10, %v1275_v62  ;;  %v1290_v23 = vadd.f32 %v1289_v12, %v1288_v22  ;;  %v1303_v24 = vadd.f32 %v1302_v15, %v1301_v16 }
 0x119   : >> { %v1315_v25 = vmul.f32 %v1692_v48, %v1313_v17  ;;  %v1314_v30 = vmul.f32 %v1312_v26, %v1089_v54  ;;  %1350 = vst.msk [vmem:[#allocation2] sm:$0xff] (%p501_p7), %vm1210_vm4, %v1312_v26  ;;  %1351 = vst.msk [vmem:[#allocation2 + $0x8] sm:$0xff] (%p501_p7), %vm1210_vm4, %v1313_v17 }
 0x11a   : >> { %v1278_v28 = vrot.slane %v1277_v21, 1  ;;  %v1291_v29 = vrot.slane %v1290_v23, 2  ;;  %v1304_v13 = vrot.slane %v1303_v24, 4 }
 0x11b   : >> { %v1317_v0 = vsel %vm1210_vm4, %v1315_v25, 0.0  ;;  %v1316_v33 = vsel %vm1210_vm4, %v1314_v30, 0.0 }
 0x11c   : >> { %v1279_v61 = vadd.f32 %v1278_v28, %v1277_v21  ;;  %v1292_v31 = vadd.f32 %v1291_v29, %v1290_v23  ;;  %v1305_v32 = vadd.f32 %v1304_v13, %v1303_v24  ;;  %v1318_v36 = vadd.f32 %v1317_v0, %v1316_v33 }
 0x11e   : >> { %v1332_v8 = vsel %vm1331_vm8, %v1330_v6, %v1279_v61  ;;  %v1293_v34 = vrot.slane %v1292_v31, 1  ;;  %v1306_v35 = vrot.slane %v1305_v32, 2  ;;  %v1319_v38 = vrot.slane %v1318_v36, 4 }
 0x11f   : >> { %v2174_v6 = vmov %v1312_v26 }
 0x120   : >> { %v1294_v7 = vadd.f32 %v1293_v34, %v1292_v31  ;;  %v1307_v37 = vadd.f32 %v1306_v35, %v1305_v32  ;;  %v1320_v41 = vadd.f32 %v1319_v38, %v1318_v36 }
 0x122   : >> { %v1334_v40 = vsel %vm1333_vm9, %v1332_v8, %v1294_v7  ;;  %v1308_v19 = vrot.slane %v1307_v37, 1  ;;  %v1321_v43 = vrot.slane %v1320_v41, 2  ;;  %v2173_v7 = vmov %v1313_v17 }
 0x124   : >> { %v1309_v42 = vadd.f32 %v1308_v19, %v1307_v37  ;;  %v1322_v45 = vadd.f32 %v1321_v43, %v1320_v41 }
 0x126   : >> { %v1336_v44 = vsel %vm1335_vm10, %v1334_v40, %v1309_v42  ;;  %v1323_v27 = vrot.slane %v1322_v45, 1 }
 0x127   : > { %503 = sbr.rel (!%p501_p7) target bundleno = 30 (0x1e), region = 119 }
 0x128   : >> { %v1324_v47 = vadd.f32 %v1323_v27, %v1322_v45 }
 0x12a   : >> { %v1338_v48 = vsel %vm1337_vm11, %v1336_v44, %v1324_v47 }
 0x12b   : >> { %v1346_v49 = vadd.f32 %v1345_v46, %v1338_v48 }
 0x12d   : >> { %1348 = vst.msk [vmem:[%s1347_s25] sm:$0xff] %vm1210_vm4, %v1346_v49 }
 0x12e PF: > { %s18_s29 = sadd.s32 1, %s1813_s29   ;;  %s2175_s27 = smov %s1809_s28 }
 0x12f   : > { %p15_p8 = scmp.ge.s32.totalorder %s18_s29, 6   ;;  %s2176_s28 = smov %s2178_s30 }
 0x131   :  { %17 = sbr.rel (!%p15_p8) target bundleno = 2 (0x2), region = 130 }

// kernel: vss_block_no_cbam_forward.9
= control target key start
LH: loop header
LB: loop body
LE: loop exit
PB: predicated region body
PF: predicated region fallthrough
CT: control target
= control target key end

     0   :  { %vm88_vm0 = vcmask 64512   ;;  %vm1833_vm1 = vcmask 1043456   ;;  %vm2190_vm2 = vcmask 31744   ;;  %s5174_s0 = inlined_call_operand.vmem [shape: f32[512,8], index: 0, kind: input, shape index: {}]   ;;  %s5175_s1 = inlined_call_operand.vmem [shape: f32[512,8], index: 1, kind: input, shape index: {}]   ;;  %s5176_s5 = inlined_call_operand.vmem [shape: bf16[8,4], index: 5, kind: input, shape index: {}]   ;;  %s5177_s3 = inlined_call_operand.vmem [shape: f32[1,8], index: 3, kind: input, shape index: {}]   ;;  %s5178_s4 = inlined_call_operand.vmem [shape: f32[1,8], index: 4, kind: input, shape index: {}]   ;;  %s5179_s2 = inlined_call_operand.vmem [shape: f32[512,4], index: 2, kind: input, shape index: {}]   ;;  %s5180_s6 = inlined_call_operand.vmem [shape: f32[512,4], index: 6, kind: output, shape index: {}]  }
   0x1   :  { %v2901_v0 = vld [vmem:[%s5174_s0] sm:$0xff]  ;;  %v2911_v2 = vld [vmem:[%s5174_s0 + $0x8] sm:$0xff]  ;;  %v2929_v8 = vld [vmem:[%s5174_s0 + $0x10] sm:$0xff] }
   0x2   :  { %v2906_v1 = vld [vmem:[%s5174_s0 + $0x100] sm:$0xff]  ;;  %v89_v3 = vsel %vm88_vm0, %v2901_v0, 0.0  ;;  %v2920_v5 = vld [vmem:[%s5174_s0 + $0x108] sm:$0xff]  ;;  %v92_v6 = vsel %vm88_vm0, %v2911_v2, 0.0  ;;  %v2934_v9 = vld [vmem:[%s5174_s0 + $0x18] sm:$0xff]  ;;  %v95_v10 = vsel %vm88_vm0, %v2929_v8, 0.0 }
   0x3   :  { %v185_v4 = vsel %vm88_vm0, %v2906_v1, 0.0  ;;  %90 = vadd.xlane.f32.xlu0 %v89_v3  ;;  %v188_v7 = vsel %vm88_vm0, %v2920_v5, 0.0  ;;  %v98_v11 = vsel %vm88_vm0, %v2934_v9, 0.0  ;;  %v2943_v12 = vld [vmem:[%s5174_s0 + $0x110] sm:$0xff]  ;;  %v2948_v13 = vld [vmem:[%s5174_s0 + $0x118] sm:$0xff]  ;;  %v2957_v16 = vld [vmem:[%s5174_s0 + $0x20] sm:$0xff] }
   0x4   :  { %186 = vadd.xlane.f32.xlu1 %v185_v4  ;;  %v191_v14 = vsel %vm88_vm0, %v2943_v12, 0.0  ;;  %v194_v15 = vsel %vm88_vm0, %v2948_v13, 0.0  ;;  %v2962_v17 = vld [vmem:[%s5174_s0 + $0x28] sm:$0xff]  ;;  %v101_v18 = vsel %vm88_vm0, %v2957_v16, 0.0  ;;  %v2971_v20 = vld [vmem:[%s5174_s0 + $0x120] sm:$0xff]  ;;  %v2985_v24 = vld [vmem:[%s5174_s0 + $0x30] sm:$0xff] }
   0x5   :  { %v104_v19 = vsel %vm88_vm0, %v2962_v17, 0.0  ;;  %v2976_v21 = vld [vmem:[%s5174_s0 + $0x128] sm:$0xff]  ;;  %v197_v22 = vsel %vm88_vm0, %v2971_v20, 0.0  ;;  %v2990_v25 = vld [vmem:[%s5174_s0 + $0x38] sm:$0xff]  ;;  %v107_v26 = vsel %vm88_vm0, %v2985_v24, 0.0  ;;  %v2999_v28 = vld [vmem:[%s5174_s0 + $0x130] sm:$0xff] }
   0x6   :  { %v200_v23 = vsel %vm88_vm0, %v2976_v21, 0.0  ;;  %v110_v27 = vsel %vm88_vm0, %v2990_v25, 0.0  ;;  %v3004_v29 = vld [vmem:[%s5174_s0 + $0x138] sm:$0xff]  ;;  %v203_v30 = vsel %vm88_vm0, %v2999_v28, 0.0  ;;  %v3013_v32 = vld [vmem:[%s5174_s0 + $0x40] sm:$0xff]  ;;  %v3018_v33 = vld [vmem:[%s5174_s0 + $0x48] sm:$0xff] }
   0x7   :  { %93 = vadd.xlane.f32.xlu0 %v92_v6  ;;  %v206_v31 = vsel %vm88_vm0, %v3004_v29, 0.0  ;;  %v113_v34 = vsel %vm88_vm0, %v3013_v32, 0.0  ;;  %v116_v35 = vsel %vm88_vm0, %v3018_v33, 0.0  ;;  %v3027_v36 = vld [vmem:[%s5174_s0 + $0x140] sm:$0xff]  ;;  %v3032_v37 = vld [vmem:[%s5174_s0 + $0x148] sm:$0xff]  ;;  %v3041_v40 = vld [vmem:[%s5174_s0 + $0x50] sm:$0xff] }
   0x8   :  { %189 = vadd.xlane.f32.xlu1 %v188_v7  ;;  %v209_v38 = vsel %vm88_vm0, %v3027_v36, 0.0  ;;  %v212_v39 = vsel %vm88_vm0, %v3032_v37, 0.0  ;;  %v3046_v41 = vld [vmem:[%s5174_s0 + $0x58] sm:$0xff]  ;;  %v119_v42 = vsel %vm88_vm0, %v3041_v40, 0.0  ;;  %v3055_v44 = vld [vmem:[%s5174_s0 + $0x150] sm:$0xff]  ;;  %v3069_v48 = vld [vmem:[%s5174_s0 + $0x60] sm:$0xff] }
   0x9   :  { %v122_v43 = vsel %vm88_vm0, %v3046_v41, 0.0  ;;  %v3060_v45 = vld [vmem:[%s5174_s0 + $0x158] sm:$0xff]  ;;  %v215_v46 = vsel %vm88_vm0, %v3055_v44, 0.0  ;;  %v3074_v49 = vld [vmem:[%s5174_s0 + $0x68] sm:$0xff]  ;;  %v125_v50 = vsel %vm88_vm0, %v3069_v48, 0.0  ;;  %v3083_v52 = vld [vmem:[%s5174_s0 + $0x160] sm:$0xff] }
   0xa   :  { %v218_v47 = vsel %vm88_vm0, %v3060_v45, 0.0  ;;  %v128_v51 = vsel %vm88_vm0, %v3074_v49, 0.0  ;;  %v3088_v53 = vld [vmem:[%s5174_s0 + $0x168] sm:$0xff]  ;;  %v221_v54 = vsel %vm88_vm0, %v3083_v52, 0.0  ;;  %v3097_v56 = vld [vmem:[%s5174_s0 + $0x70] sm:$0xff]  ;;  %v3102_v57 = vld [vmem:[%s5174_s0 + $0x78] sm:$0xff] }
   0xb   :  { %96 = vadd.xlane.f32.xlu0 %v95_v10  ;;  %v224_v55 = vsel %vm88_vm0, %v3088_v53, 0.0  ;;  %v131_v58 = vsel %vm88_vm0, %v3097_v56, 0.0  ;;  %v134_v59 = vsel %vm88_vm0, %v3102_v57, 0.0  ;;  %v3111_v60 = vld [vmem:[%s5174_s0 + $0x170] sm:$0xff]  ;;  %v3116_v61 = vld [vmem:[%s5174_s0 + $0x178] sm:$0xff]  ;;  %v3125_v3 = vld [vmem:[%s5174_s0 + $0x80] sm:$0xff] }
   0xc   :  { %99 = vadd.xlane.f32.xlu1 %v98_v11  ;;  %v227_v62 = vsel %vm88_vm0, %v3111_v60, 0.0  ;;  %v230_v63 = vsel %vm88_vm0, %v3116_v61, 0.0  ;;  %v3130_v4 = vld [vmem:[%s5174_s0 + $0x88] sm:$0xff]  ;;  %v137_v6 = vsel %vm88_vm0, %v3125_v3, 0.0  ;;  %v3139_v10 = vld [vmem:[%s5174_s0 + $0x180] sm:$0xff] }
   0xd   :  { %v140_v7 = vsel %vm88_vm0, %v3130_v4, 0.0  ;;  %v3144_v11 = vld [vmem:[%s5174_s0 + $0x188] sm:$0xff] }
   0xf   :  { %192 = vadd.xlane.f32.xlu0 %v191_v14  ;;  %v233_v14 = vsel %vm88_vm0, %v3139_v10, 0.0 }
  0x10   :  { %195 = vadd.xlane.f32.xlu1 %v194_v15  ;;  %v236_v15 = vsel %vm88_vm0, %v3144_v11, 0.0 }
  0x13   :  { %102 = vadd.xlane.f32.xlu0 %v101_v18  ;;  %v3153_v18 = vld [vmem:[%s5174_s0 + $0x90] sm:$0xff] }
  0x14   :  { %105 = vadd.xlane.f32.xlu1 %v104_v19  ;;  %v3158_v19 = vld [vmem:[%s5174_s0 + $0x98] sm:$0xff] }
  0x17   :  { %198 = vadd.xlane.f32.xlu0 %v197_v22  ;;  %v143_v22 = vsel %vm88_vm0, %v3153_v18, 0.0 }
  0x18   :  { %201 = vadd.xlane.f32.xlu1 %v200_v23  ;;  %v146_v23 = vsel %vm88_vm0, %v3158_v19, 0.0 }
  0x1b   :  { %108 = vadd.xlane.f32.xlu0 %v107_v26  ;;  %v3167_v26 = vld [vmem:[%s5174_s0 + $0x190] sm:$0xff] }
  0x1c   :  { %111 = vadd.xlane.f32.xlu1 %v110_v27  ;;  %v3172_v27 = vld [vmem:[%s5174_s0 + $0x198] sm:$0xff] }
  0x1f   :  { %204 = vadd.xlane.f32.xlu0 %v203_v30  ;;  %v239_v30 = vsel %vm88_vm0, %v3167_v26, 0.0 }
  0x20   :  { %207 = vadd.xlane.f32.xlu1 %v206_v31  ;;  %v242_v31 = vsel %vm88_vm0, %v3172_v27, 0.0 }
  0x23   :  { %114 = vadd.xlane.f32.xlu0 %v113_v34  ;;  %v3181_v34 = vld [vmem:[%s5174_s0 + $0xa0] sm:$0xff] }
  0x24   :  { %117 = vadd.xlane.f32.xlu1 %v116_v35  ;;  %v3186_v35 = vld [vmem:[%s5174_s0 + $0xa8] sm:$0xff] }
  0x27   :  { %210 = vadd.xlane.f32.xlu0 %v209_v38  ;;  %v149_v38 = vsel %vm88_vm0, %v3181_v34, 0.0 }
  0x28   :  { %213 = vadd.xlane.f32.xlu1 %v212_v39  ;;  %v152_v39 = vsel %vm88_vm0, %v3186_v35, 0.0 }
  0x2b   :  { %120 = vadd.xlane.f32.xlu0 %v119_v42  ;;  %v3195_v42 = vld [vmem:[%s5174_s0 + $0x1a0] sm:$0xff] }
  0x2c   :  { %123 = vadd.xlane.f32.xlu1 %v122_v43  ;;  %v3200_v43 = vld [vmem:[%s5174_s0 + $0x1a8] sm:$0xff] }
  0x2f   :  { %216 = vadd.xlane.f32.xlu0 %v215_v46  ;;  %v245_v46 = vsel %vm88_vm0, %v3195_v42, 0.0 }
  0x30   :  { %219 = vadd.xlane.f32.xlu1 %v218_v47  ;;  %v248_v47 = vsel %vm88_vm0, %v3200_v43, 0.0 }
  0x33   :  { %126 = vadd.xlane.f32.xlu0 %v125_v50  ;;  %v3209_v50 = vld [vmem:[%s5174_s0 + $0xb0] sm:$0xff] }
  0x34   :  { %129 = vadd.xlane.f32.xlu1 %v128_v51  ;;  %v3214_v51 = vld [vmem:[%s5174_s0 + $0xb8] sm:$0xff] }
  0x37   :  { %222 = vadd.xlane.f32.xlu0 %v221_v54  ;;  %v155_v54 = vsel %vm88_vm0, %v3209_v50, 0.0 }
  0x38   :  { %225 = vadd.xlane.f32.xlu1 %v224_v55  ;;  %v158_v55 = vsel %vm88_vm0, %v3214_v51, 0.0 }
  0x3b   :  { %132 = vadd.xlane.f32.xlu0 %v131_v58  ;;  %v3223_v58 = vld [vmem:[%s5174_s0 + $0x1b0] sm:$0xff] }
  0x3c   :  { %135 = vadd.xlane.f32.xlu1 %v134_v59  ;;  %v3228_v59 = vld [vmem:[%s5174_s0 + $0x1b8] sm:$0xff] }
  0x3f   :  { %228 = vadd.xlane.f32.xlu0 %v227_v62  ;;  %v251_v62 = vsel %vm88_vm0, %v3223_v58, 0.0 }
  0x40   :  { %231 = vadd.xlane.f32.xlu1 %v230_v63  ;;  %v254_v63 = vsel %vm88_vm0, %v3228_v59, 0.0 }
  0x43   :  { %138 = vadd.xlane.f32.xlu0 %v137_v6  ;;  %v3237_v6 = vld [vmem:[%s5174_s0 + $0xc0] sm:$0xff] }
  0x44   :  { %141 = vadd.xlane.f32.xlu1 %v140_v7  ;;  %v3242_v7 = vld [vmem:[%s5174_s0 + $0xc8] sm:$0xff] }
  0x47   :  { %234 = vadd.xlane.f32.xlu0 %v233_v14  ;;  %v161_v14 = vsel %vm88_vm0, %v3237_v6, 0.0 }
  0x48   :  { %237 = vadd.xlane.f32.xlu1 %v236_v15  ;;  %v164_v15 = vsel %vm88_vm0, %v3242_v7, 0.0 }
  0x4b   :  { %144 = vadd.xlane.f32.xlu0 %v143_v22  ;;  %v3251_v22 = vld [vmem:[%s5174_s0 + $0x1c0] sm:$0xff] }
  0x4c   :  { %147 = vadd.xlane.f32.xlu1 %v146_v23  ;;  %5264 = vst [vmem:[#allocation2_spill] sm:$0xff] %v3251_v22  ;;  %v3256_v23 = vld [vmem:[%s5174_s0 + $0x1c8] sm:$0xff] }
  0x4d   :  { %5265 = vst [vmem:[#allocation3_spill] sm:$0xff] %v3256_v23 }
  0x4f   :  { %240 = vadd.xlane.f32.xlu0 %v239_v30  ;;  %v257_v30 = vsel %vm88_vm0, %v3251_v22, 0.0 }
  0x50   :  { %243 = vadd.xlane.f32.xlu1 %v242_v31  ;;  %v260_v31 = vsel %vm88_vm0, %v3256_v23, 0.0 }
  0x53   :  { %150 = vadd.xlane.f32.xlu0 %v149_v38  ;;  %v3265_v38 = vld [vmem:[%s5174_s0 + $0xd0] sm:$0xff] }
  0x54   :  { %153 = vadd.xlane.f32.xlu1 %v152_v39  ;;  %5266 = vst [vmem:[#allocation4_spill] sm:$0xff] %v3265_v38  ;;  %v3270_v39 = vld [vmem:[%s5174_s0 + $0xd8] sm:$0xff] }
  0x55   :  { %5267 = vst [vmem:[#allocation5_spill] sm:$0xff] %v3270_v39 }
  0x57   :  { %246 = vadd.xlane.f32.xlu0 %v245_v46  ;;  %v167_v46 = vsel %vm88_vm0, %v3265_v38, 0.0 }
  0x58   :  { %249 = vadd.xlane.f32.xlu1 %v248_v47  ;;  %v170_v47 = vsel %vm88_vm0, %v3270_v39, 0.0 }
  0x5b   :  { %156 = vadd.xlane.f32.xlu0 %v155_v54  ;;  %v3279_v54 = vld [vmem:[%s5174_s0 + $0x1d0] sm:$0xff] }
  0x5c   :  { %159 = vadd.xlane.f32.xlu1 %v158_v55  ;;  %5268 = vst [vmem:[#allocation6_spill] sm:$0xff] %v3279_v54  ;;  %v3284_v55 = vld [vmem:[%s5174_s0 + $0x1d8] sm:$0xff] }
  0x5d   :  { %5269 = vst [vmem:[#allocation7_spill] sm:$0xff] %v3284_v55 }
  0x5f   :  { %252 = vadd.xlane.f32.xlu0 %v251_v62  ;;  %v263_v62 = vsel %vm88_vm0, %v3279_v54, 0.0 }
  0x60   :  { %255 = vadd.xlane.f32.xlu1 %v254_v63  ;;  %v266_v63 = vsel %vm88_vm0, %v3284_v55, 0.0 }
  0x63   :  { %162 = vadd.xlane.f32.xlu0 %v161_v14  ;;  %v52_v14 = vld [vmem:[%s5174_s0 + $0xe0] sm:$0xff] }
  0x64   :  { %165 = vadd.xlane.f32.xlu1 %v164_v15  ;;  %v53_v15 = vld [vmem:[%s5174_s0 + $0xe8] sm:$0xff] }
  0x67   :  { %258 = vadd.xlane.f32.xlu0 %v257_v30  ;;  %v173_v30 = vsel %vm88_vm0, %v52_v14, 0.0 }
  0x68   :  { %261 = vadd.xlane.f32.xlu1 %v260_v31  ;;  %v176_v31 = vsel %vm88_vm0, %v53_v15, 0.0 }
  0x6b   :  { %168 = vadd.xlane.f32.xlu0 %v167_v46  ;;  %v84_v46 = vld [vmem:[%s5174_s0 + $0x1e0] sm:$0xff] }
  0x6c   :  { %171 = vadd.xlane.f32.xlu1 %v170_v47  ;;  %v85_v47 = vld [vmem:[%s5174_s0 + $0x1e8] sm:$0xff]  ;;  %v269_v55 = vsel %vm88_vm0, %v84_v46, 0.0 }
  0x6d   :  { %v272_v54 = vsel %vm88_vm0, %v85_v47, 0.0 }
  0x6f   :  { %264 = vadd.xlane.f32.xlu0 %v263_v62  ;;  %v54_v62 = vld [vmem:[%s5174_s0 + $0xf0] sm:$0xff] }
  0x70   :  { %267 = vadd.xlane.f32.xlu1 %v266_v63  ;;  %v55_v63 = vld [vmem:[%s5174_s0 + $0xf8] sm:$0xff]  ;;  %v179_v14 = vsel %vm88_vm0, %v54_v62, 0.0 }
  0x71   :  { %v182_v15 = vsel %vm88_vm0, %v55_v63, 0.0 }
  0x73   :  { %174 = vadd.xlane.f32.xlu0 %v173_v30  ;;  %v86_v30 = vld [vmem:[%s5174_s0 + $0x1f0] sm:$0xff] }
  0x74   :  { %177 = vadd.xlane.f32.xlu1 %v176_v31  ;;  %v87_v31 = vld [vmem:[%s5174_s0 + $0x1f8] sm:$0xff]  ;;  %v275_v46 = vsel %vm88_vm0, %v86_v30, 0.0 }
  0x75   :  { %v278_v47 = vsel %vm88_vm0, %v87_v31, 0.0 }
  0x77   :  { %270 = vadd.xlane.f32.xlu0 %v269_v55 }
  0x78   :  { %273 = vadd.xlane.f32.xlu1 %v272_v54 }
  0x7b   :  { %180 = vadd.xlane.f32.xlu0 %v179_v14 }
  0x7c   :  { %183 = vadd.xlane.f32.xlu1 %v182_v15 }
  0x7f   :  { %276 = vadd.xlane.f32.xlu0 %v275_v46 }
  0x80   :  { %279 = vadd.xlane.f32.xlu1 %v278_v47 }
  0x90   :  { %v91_v54 = vpop.xlane.xlu0 %90 }
  0x91   :  { %v187_v55 = vpop.xlane.xlu1 %186  ;;  %v282_v62 = vmul.f32 0.125, %v91_v54 }
  0x92   :  { %v314_v63 = vmul.f32 0.125, %v187_v55 }
  0x93   :  { %v3323_v39 = vsub.f32 %v2901_v0, %v282_v62 }
  0x94   :  { %v3326_v38 = vsub.f32 %v2906_v1, %v314_v63  ;;  %v94_v23 = vpop.xlane.xlu0 %93 }
  0x95   :  { %5270 = vst [vmem:[#allocation8_spill] sm:$0xff] %v3323_v39  ;;  %v190_v22 = vpop.xlane.xlu1 %189  ;;  %v283_v14 = vmul.f32 0.125, %v94_v23  ;;  %v410_v30 = vmul.f32 %v3323_v39, %v3323_v39 }
  0x96   :  { %5271 = vst [vmem:[#allocation9_spill] sm:$0xff] %v3326_v38  ;;  %v315_v15 = vmul.f32 0.125, %v190_v22  ;;  %v442_v31 = vmul.f32 %v3326_v38, %v3326_v38 }
  0x97   :  { %v3333_v46 = vsub.f32 %v2911_v2, %v283_v14  ;;  %v474_v0 = vsel %vm88_vm0, %v410_v30, 0.0 }
  0x98   :  { %v3336_v47 = vsub.f32 %v2920_v5, %v315_v15  ;;  %475 = vadd.xlane.f32.xlu0 %v474_v0  ;;  %v97_v1 = vpop.xlane.xlu0 %96  ;;  %v570_v23 = vsel %vm88_vm0, %v442_v31, 0.0 }
  0x99   :  { %5272 = vst [vmem:[#allocation10_spill] sm:$0xff] %v3333_v46  ;;  %v100_v54 = vpop.xlane.xlu1 %99  ;;  %v284_v22 = vmul.f32 0.125, %v97_v1  ;;  %v411_v62 = vmul.f32 %v3333_v46, %v3333_v46 }
  0x9a   :  { %5273 = vst [vmem:[#allocation11_spill] sm:$0xff] %v3336_v47  ;;  %v285_v55 = vmul.f32 0.125, %v100_v54  ;;  %v443_v63 = vmul.f32 %v3336_v47, %v3336_v47 }
  0x9b   :  { %v3345_v2 = vsub.f32 %v2929_v8, %v284_v22  ;;  %v477_v14 = vsel %vm88_vm0, %v411_v62, 0.0 }
  0x9c   :  { %v3348_v5 = vsub.f32 %v2934_v9, %v285_v55  ;;  %571 = vadd.xlane.f32.xlu0 %v570_v23  ;;  %478 = vadd.xlane.f32.xlu1 %v477_v14  ;;  %v193_v15 = vpop.xlane.xlu0 %192  ;;  %v573_v31 = vsel %vm88_vm0, %v443_v63, 0.0 }
  0x9d   :  { %5274 = vst [vmem:[#allocation12_spill] sm:$0xff] %v3345_v2  ;;  %v196_v30 = vpop.xlane.xlu1 %195  ;;  %v316_v0 = vmul.f32 0.125, %v193_v15  ;;  %v412_v54 = vmul.f32 %v3345_v2, %v3345_v2 }
  0x9e   :  { %5275 = vst [vmem:[#allocation13_spill] sm:$0xff] %v3348_v5  ;;  %v317_v1 = vmul.f32 0.125, %v196_v30  ;;  %v413_v8 = vmul.f32 %v3348_v5, %v3348_v5 }
  0x9f   :  { %v3357_v22 = vsub.f32 %v2943_v12, %v316_v0  ;;  %v480_v23 = vsel %vm88_vm0, %v412_v54, 0.0 }
  0xa0   :  { %v3360_v9 = vsub.f32 %v2948_v13, %v317_v1  ;;  %574 = vadd.xlane.f32.xlu1 %v573_v31  ;;  %481 = vadd.xlane.f32.xlu0 %v480_v23  ;;  %v103_v55 = vpop.xlane.xlu0 %102  ;;  %v483_v63 = vsel %vm88_vm0, %v413_v8, 0.0 }
  0xa1   :  { %5276 = vst [vmem:[#allocation14_spill] sm:$0xff] %v3357_v22  ;;  %v106_v62 = vpop.xlane.xlu1 %105  ;;  %v286_v14 = vmul.f32 0.125, %v103_v55  ;;  %v444_v30 = vmul.f32 %v3357_v22, %v3357_v22 }
  0xa2   :  { %5277 = vst [vmem:[#allocation15_spill] sm:$0xff] %v3360_v9  ;;  %v287_v15 = vmul.f32 0.125, %v106_v62  ;;  %v445_v12 = vmul.f32 %v3360_v9, %v3360_v9 }
  0xa3   :  { %v3369_v0 = vsub.f32 %v2957_v16, %v286_v14  ;;  %v576_v31 = vsel %vm88_vm0, %v444_v30, 0.0 }
  0xa4   :  { %v3372_v13 = vsub.f32 %v2962_v17, %v287_v15  ;;  %484 = vadd.xlane.f32.xlu1 %v483_v63  ;;  %577 = vadd.xlane.f32.xlu0 %v576_v31  ;;  %v199_v1 = vpop.xlane.xlu0 %198  ;;  %v579_v8 = vsel %vm88_vm0, %v445_v12, 0.0 }
  0xa5   :  { %5278 = vst [vmem:[#allocation16_spill] sm:$0xff] %v3369_v0  ;;  %v202_v54 = vpop.xlane.xlu1 %201  ;;  %v318_v23 = vmul.f32 0.125, %v199_v1  ;;  %v414_v62 = vmul.f32 %v3369_v0, %v3369_v0 }
  0xa6   :  { %5279 = vst [vmem:[#allocation17_spill] sm:$0xff] %v3372_v13  ;;  %v319_v55 = vmul.f32 0.125, %v202_v54  ;;  %v415_v16 = vmul.f32 %v3372_v13, %v3372_v13 }
  0xa7   :  { %v3381_v14 = vsub.f32 %v2971_v20, %v318_v23  ;;  %v486_v63 = vsel %vm88_vm0, %v414_v62, 0.0 }
  0xa8   :  { %v3384_v17 = vsub.f32 %v2976_v21, %v319_v55  ;;  %580 = vadd.xlane.f32.xlu1 %v579_v8  ;;  %487 = vadd.xlane.f32.xlu0 %v486_v63  ;;  %v109_v15 = vpop.xlane.xlu0 %108  ;;  %v489_v12 = vsel %vm88_vm0, %v415_v16, 0.0 }
  0xa9   :  { %5280 = vst [vmem:[#allocation18_spill] sm:$0xff] %v3381_v14  ;;  %v112_v30 = vpop.xlane.xlu1 %111  ;;  %v288_v31 = vmul.f32 0.125, %v109_v15  ;;  %v446_v54 = vmul.f32 %v3381_v14, %v3381_v14 }
  0xaa   :  { %5281 = vst [vmem:[#allocation19_spill] sm:$0xff] %v3384_v17  ;;  %v289_v1 = vmul.f32 0.125, %v112_v30  ;;  %v447_v20 = vmul.f32 %v3384_v17, %v3384_v17 }
  0xab   :  { %v3393_v23 = vsub.f32 %v2985_v24, %v288_v31  ;;  %v582_v8 = vsel %vm88_vm0, %v446_v54, 0.0 }
  0xac   :  { %v3396_v21 = vsub.f32 %v2990_v25, %v289_v1  ;;  %490 = vadd.xlane.f32.xlu1 %v489_v12  ;;  %583 = vadd.xlane.f32.xlu0 %v582_v8  ;;  %v205_v55 = vpop.xlane.xlu0 %204  ;;  %v585_v16 = vsel %vm88_vm0, %v447_v20, 0.0 }
  0xad   :  { %5282 = vst [vmem:[#allocation20_spill] sm:$0xff] %v3393_v23  ;;  %v208_v62 = vpop.xlane.xlu1 %207  ;;  %v320_v63 = vmul.f32 0.125, %v205_v55  ;;  %v416_v30 = vmul.f32 %v3393_v23, %v3393_v23 }
  0xae   :  { %5283 = vst [vmem:[#allocation21_spill] sm:$0xff] %v3396_v21  ;;  %v321_v15 = vmul.f32 0.125, %v208_v62  ;;  %v417_v24 = vmul.f32 %v3396_v21, %v3396_v21 }
  0xaf   :  { %v3405_v31 = vsub.f32 %v2999_v28, %v320_v63  ;;  %v492_v12 = vsel %vm88_vm0, %v416_v30, 0.0 }
  0xb0   :  { %v3408_v25 = vsub.f32 %v3004_v29, %v321_v15  ;;  %586 = vadd.xlane.f32.xlu1 %v585_v16  ;;  %493 = vadd.xlane.f32.xlu0 %v492_v12  ;;  %v115_v1 = vpop.xlane.xlu0 %114  ;;  %v495_v20 = vsel %vm88_vm0, %v417_v24, 0.0  ;;  %v1064_v12 = vld [vmem:[%s5175_s1] sm:$0xff] }
  0xb1   :  { %5284 = vst [vmem:[#allocation22_spill] sm:$0xff] %v3405_v31  ;;  %v118_v54 = vpop.xlane.xlu1 %117  ;;  %v290_v8 = vmul.f32 0.125, %v115_v1  ;;  %v448_v62 = vmul.f32 %v3405_v31, %v3405_v31 }
  0xb2   :  { %5285 = vst [vmem:[#allocation23_spill] sm:$0xff] %v3408_v25  ;;  %v291_v55 = vmul.f32 0.125, %v118_v54  ;;  %v449_v28 = vmul.f32 %v3408_v25, %v3408_v25 }
  0xb3   :  { %v3417_v63 = vsub.f32 %v3013_v32, %v290_v8  ;;  %v588_v16 = vsel %vm88_vm0, %v448_v62, 0.0 }
  0xb4   :  { %v3420_v29 = vsub.f32 %v3018_v33, %v291_v55  ;;  %496 = vadd.xlane.f32.xlu1 %v495_v20  ;;  %589 = vadd.xlane.f32.xlu0 %v588_v16  ;;  %v211_v15 = vpop.xlane.xlu0 %210  ;;  %v591_v24 = vsel %vm88_vm0, %v449_v28, 0.0  ;;  %v1065_v20 = vld [vmem:[%s5175_s1 + $0x8] sm:$0xff]  ;;  %v2261_v28 = vmul.f32 -1.442695, %v1064_v12 }
  0xb5   :  { %5286 = vst [vmem:[#allocation24_spill] sm:$0xff] %v3417_v63  ;;  %v214_v30 = vpop.xlane.xlu1 %213  ;;  %v322_v1 = vmul.f32 0.125, %v211_v15  ;;  %v418_v32 = vmul.f32 %v3417_v63, %v3417_v63 }
  0xb6   :  { %5287 = vst [vmem:[#allocation25_spill] sm:$0xff] %v3420_v29  ;;  %v323_v54 = vmul.f32 0.125, %v214_v30  ;;  %v419_v33 = vmul.f32 %v3420_v29, %v3420_v29  ;;  %v2262_v29 = vmul.f32 -1.442695, %v1065_v20  ;;  %2460 = vpow2.f32 %v2261_v28 }
  0xb7   :  { %v3435_v8 = vsub.f32 %v3027_v36, %v322_v1  ;;  %v498_v62 = vsel %vm88_vm0, %v418_v32, 0.0 }
  0xb8   :  { %v3438_v55 = vsub.f32 %v3032_v37, %v323_v54  ;;  %592 = vadd.xlane.f32.xlu1 %v591_v24  ;;  %499 = vadd.xlane.f32.xlu0 %v498_v62  ;;  %v121_v16 = vpop.xlane.xlu0 %120  ;;  %v501_v30 = vsel %vm88_vm0, %v419_v33, 0.0  ;;  %v1096_v37 = vld [vmem:[%s5175_s1 + $0x100] sm:$0xff]  ;;  %2462 = vpow2.f32 %v2262_v29 }
  0xb9   :  { %5288 = vst [vmem:[#allocation26_spill] sm:$0xff] %v3435_v8  ;;  %v124_v15 = vpop.xlane.xlu1 %123  ;;  %v292_v63 = vmul.f32 0.125, %v121_v16  ;;  %v450_v31 = vmul.f32 %v3435_v8, %v3435_v8  ;;  %v2293_v20 = vmul.f32 -1.442695, %v1096_v37 }
  0xba   :  { %5289 = vst [vmem:[#allocation27_spill] sm:$0xff] %v3438_v55  ;;  %v293_v25 = vmul.f32 0.125, %v124_v15  ;;  %v451_v36 = vmul.f32 %v3438_v55, %v3438_v55 }
  0xbb   :  { %v3450_v24 = vsub.f32 %v3041_v40, %v292_v63  ;;  %v594_v1 = vsel %vm88_vm0, %v450_v31, 0.0  ;;  %v3464_v31 = vld [vmem:[%s5175_s1 + $0x108] sm:$0xff]  ;;  %2464 = vpow2.f32 %v2293_v20 }
  0xbc   :  { %v3453_v12 = vsub.f32 %v3046_v41, %v293_v25  ;;  %502 = vadd.xlane.f32.xlu1 %v501_v30  ;;  %595 = vadd.xlane.f32.xlu0 %v594_v1  ;;  %v217_v54 = vpop.xlane.xlu0 %216  ;;  %v597_v33 = vsel %vm88_vm0, %v451_v36, 0.0  ;;  %v2294_v36 = vmul.f32 -1.442695, %v3464_v31 }
  0xbd   :  { %5290 = vst [vmem:[#allocation28_spill] sm:$0xff] %v3450_v24  ;;  %v220_v32 = vpop.xlane.xlu1 %219  ;;  %v324_v62 = vmul.f32 0.125, %v217_v54  ;;  %v420_v40 = vmul.f32 %v3450_v24, %v3450_v24  ;;  %v3482_v54 = vld [vmem:[%s5175_s1 + $0x10] sm:$0xff] }
  0xbe   :  { %5291 = vst [vmem:[#allocation29_spill] sm:$0xff] %v3453_v12  ;;  %v325_v16 = vmul.f32 0.125, %v220_v32  ;;  %v421_v41 = vmul.f32 %v3453_v12, %v3453_v12  ;;  %2466 = vpow2.f32 %v2294_v36 }
  0xbf   :  { %v3467_v25 = vsub.f32 %v3055_v44, %v324_v62  ;;  %v504_v29 = vsel %vm88_vm0, %v420_v40, 0.0  ;;  %v3494_v62 = vld [vmem:[%s5175_s1 + $0x18] sm:$0xff] }
  0xc0   :  { %v3470_v63 = vsub.f32 %v3060_v45, %v325_v16  ;;  %598 = vadd.xlane.f32.xlu1 %v597_v33  ;;  %505 = vadd.xlane.f32.xlu0 %v504_v29  ;;  %v127_v28 = vpop.xlane.xlu0 %126  ;;  %v507_v30 = vsel %vm88_vm0, %v421_v41, 0.0  ;;  %v2461_v29 = vpop.eup %2460 }
  0xc1   :  { %5292 = vst [vmem:[#allocation30_spill] sm:$0xff] %v3467_v25  ;;  %v130_v15 = vpop.xlane.xlu1 %129  ;;  %v294_v37 = vmul.f32 0.125, %v127_v28  ;;  %v452_v44 = vmul.f32 %v3467_v25, %v3467_v25 }
  0xc2   :  { %5293 = vst [vmem:[#allocation31_spill] sm:$0xff] %v3470_v63  ;;  %v295_v1 = vmul.f32 0.125, %v130_v15  ;;  %v453_v45 = vmul.f32 %v3470_v63, %v3470_v63 }
  0xc3   :  { %v3485_v32 = vsub.f32 %v3069_v48, %v294_v37  ;;  %v600_v20 = vsel %vm88_vm0, %v452_v44, 0.0  ;;  %v2263_v48 = vmul.f32 -1.442695, %v3482_v54 }
  0xc4   :  { %v3488_v33 = vsub.f32 %v3074_v49, %v295_v1  ;;  %508 = vadd.xlane.f32.xlu1 %v507_v30  ;;  %601 = vadd.xlane.f32.xlu0 %v600_v20  ;;  %v223_v16 = vpop.xlane.xlu0 %222  ;;  %v603_v41 = vsel %vm88_vm0, %v453_v45, 0.0  ;;  %v2463_v1 = vpop.eup %2462  ;;  %v2264_v30 = vmul.f32 -1.442695, %v3494_v62  ;;  %v1736_v20 = vld [vmem:[%s5176_s5] sm:$0xf] }
  0xc5   :  { %5294 = vst [vmem:[#allocation32_spill] sm:$0xff] %v3485_v32  ;;  %v226_v40 = vpop.xlane.xlu1 %225  ;;  %v326_v28 = vmul.f32 0.125, %v223_v16  ;;  %v422_v15 = vmul.f32 %v3485_v32, %v3485_v32  ;;  %v1320_v32 = vadd.f32 1.0, %v2461_v29  ;;  %2468 = vpow2.f32 %v2263_v48  ;;  %2458 = vmatprep.subr.msk.bf16.mxu0 %vm1833_vm1, %v1736_v20  ;;  %2459 = vmatprep.subr.msk.bf16.mxu1 %vm1833_vm1, %v1736_v20  ;;  %v3526_v29 = vld [vmem:[%s5175_s1 + $0x118] sm:$0xff]  ;;  %v2465_v48 = vpop.eup %2464 }
  0xc6   :  { %5295 = vst [vmem:[#allocation33_spill] sm:$0xff] %v3488_v33  ;;  %v327_v49 = vmul.f32 0.125, %v226_v40  ;;  %v423_v37 = vmul.f32 %v3488_v33, %v3488_v33  ;;  %2470 = vpow2.f32 %v2264_v30 }
  0xc7   :  { %v3504_v44 = vsub.f32 %v3083_v52, %v326_v28  ;;  %v510_v36 = vsel %vm88_vm0, %v422_v15, 0.0  ;;  %v3517_v52 = vld [vmem:[%s5175_s1 + $0x110] sm:$0xff]  ;;  %v1321_v15 = vadd.f32 1.0, %v2463_v1  ;;  %2472 = vrcp.f32 %v1320_v32 }
  0xc8   :  { %v3507_v45 = vsub.f32 %v3088_v53, %v327_v49  ;;  %604 = vadd.xlane.f32.xlu1 %v603_v41  ;;  %511 = vadd.xlane.f32.xlu0 %v510_v36  ;;  %v133_v16 = vpop.xlane.xlu0 %132  ;;  %v513_v33 = vsel %vm88_vm0, %v423_v37, 0.0  ;;  %v1835_v37 = vsel %vm1833_vm1, %v1736_v20, 0 }
  0xc9   :  { %5296 = vst [vmem:[#allocation34_spill] sm:$0xff] %v3504_v44  ;;  %v136_v40 = vpop.xlane.xlu1 %135  ;;  %v296_v53 = vmul.f32 0.125, %v133_v16  ;;  %v454_v49 = vmul.f32 %v3504_v44, %v3504_v44  ;;  %2391 = vmatpush3.bf16.msra.mxu0 %v1835_v37  ;;  %2457 = vmatpush3.bf16.msra.mxu1 %v1835_v37  ;;  %v3539_v44 = vld [vmem:[%s5175_s1 + $0x20] sm:$0xff]  ;;  %v2467_v37 = vpop.eup %2466  ;;  %2474 = vrcp.f32 %v1321_v15 }
  0xca   :  { %5297 = vst [vmem:[#allocation35_spill] sm:$0xff] %v3507_v45  ;;  %v297_v28 = vmul.f32 0.125, %v136_v40  ;;  %v455_v41 = vmul.f32 %v3507_v45, %v3507_v45  ;;  %v2295_v45 = vmul.f32 -1.442695, %v3517_v52  ;;  %v2265_v32 = vmul.f32 -1.442695, %v3539_v44 }
  0xcb   :  { %v3529_v36 = vsub.f32 %v3097_v56, %v296_v53  ;;  %v606_v40 = vsel %vm88_vm0, %v454_v49, 0.0 }
  0xcc   :  { %v3532_v16 = vsub.f32 %v3102_v57, %v297_v28  ;;  %514 = vadd.xlane.f32.xlu1 %v513_v33  ;;  %607 = vadd.xlane.f32.xlu0 %v606_v40  ;;  %v229_v1 = vpop.xlane.xlu0 %228  ;;  %v609_v56 = vsel %vm88_vm0, %v455_v41, 0.0  ;;  %v2296_v57 = vmul.f32 -1.442695, %v3526_v29  ;;  %v3550_v33 = vld [vmem:[%s5175_s1 + $0x28] sm:$0xff]  ;;  %v1352_v40 = vadd.f32 1.0, %v2465_v48 }
  0xcd   :  { %5298 = vst [vmem:[#allocation36_spill] sm:$0xff] %v3529_v36  ;;  %v232_v30 = vpop.xlane.xlu1 %231  ;;  %v328_v20 = vmul.f32 0.125, %v229_v1  ;;  %v424_v28 = vmul.f32 %v3529_v36, %v3529_v36  ;;  %2476 = vpow2.f32 %v2295_v45  ;;  %v2266_v48 = vmul.f32 -1.442695, %v3550_v33  ;;  %v3569_v45 = vld [vmem:[%s5175_s1 + $0x120] sm:$0xff] }
  0xce   :  { %5299 = vst [vmem:[#allocation37_spill] sm:$0xff] %v3532_v16  ;;  %v329_v53 = vmul.f32 0.125, %v232_v30  ;;  %v425_v49 = vmul.f32 %v3532_v16, %v3532_v16  ;;  %2478 = vpow2.f32 %v2296_v57 }
  0xcf   :  { %v3554_v41 = vsub.f32 %v3111_v60, %v328_v20  ;;  %v516_v30 = vsel %vm88_vm0, %v424_v28, 0.0  ;;  %v1353_v20 = vadd.f32 1.0, %v2467_v37  ;;  %2480 = vrcp.f32 %v1352_v40 }
  0xd0   :  { %v3557_v1 = vsub.f32 %v3116_v61, %v329_v53  ;;  %610 = vadd.xlane.f32.xlu1 %v609_v56  ;;  %517 = vadd.xlane.f32.xlu0 %v516_v30  ;;  %v139_v16 = vpop.xlane.xlu0 %138  ;;  %v519_v63 = vsel %vm88_vm0, %v425_v49, 0.0  ;;  %v2469_v56 = vpop.eup %2468  ;;  %2482 = vpow2.f32 %v2265_v32  ;;  %v2297_v37 = vmul.f32 -1.442695, %v3569_v45 }
  0xd1   :  { %5300 = vst [vmem:[#allocation38_spill] sm:$0xff] %v3554_v41  ;;  %v142_v36 = vpop.xlane.xlu1 %141  ;;  %v298_v15 = vmul.f32 0.125, %v139_v16  ;;  %v456_v60 = vmul.f32 %v3554_v41, %v3554_v41  ;;  %v2471_v53 = vpop.eup %2470  ;;  %2484 = vpow2.f32 %v2266_v48  ;;  %v1322_v32 = vadd.f32 1.0, %v2469_v56 }
  0xd2   :  { %5301 = vst [vmem:[#allocation39_spill] sm:$0xff] %v3557_v1  ;;  %v299_v25 = vmul.f32 0.125, %v142_v36  ;;  %v457_v61 = vmul.f32 %v3557_v1, %v3557_v1  ;;  %2486 = vrcp.f32 %v1353_v20 }
  0xd3   :  { %v3572_v57 = vsub.f32 %v3125_v3, %v298_v15  ;;  %v612_v36 = vsel %vm88_vm0, %v456_v60, 0.0  ;;  %2488 = vpow2.f32 %v2297_v37 }
  0xd4   :  { %v3575_v16 = vsub.f32 %v3130_v4, %v299_v25  ;;  %520 = vadd.xlane.f32.xlu1 %v519_v63  ;;  %613 = vadd.xlane.f32.xlu0 %v612_v36  ;;  %v235_v28 = vpop.xlane.xlu0 %234  ;;  %v615_v30 = vsel %vm88_vm0, %v457_v61, 0.0  ;;  %v3587_v25 = vld [vmem:[%s5175_s1 + $0x128] sm:$0xff]  ;;  %v3589_v63 = vpop.eup %2472  ;;  %v1323_v61 = vadd.f32 1.0, %v2471_v53  ;;  %v3601_v36 = vld [vmem:[%s5175_s1 + $0x30] sm:$0xff]  ;;  %2490 = vrcp.f32 %v1322_v32 }
  0xd5   :  { %5302 = vst [vmem:[#allocation40_spill] sm:$0xff] %v3572_v57  ;;  %v238_v49 = vpop.xlane.xlu1 %237  ;;  %v330_v40 = vmul.f32 0.125, %v235_v28  ;;  %v426_v3 = vmul.f32 %v3572_v57, %v3572_v57  ;;  %v3606_v28 = vld [vmem:[%s5175_s1 + $0x38] sm:$0xff]  ;;  %v3608_v56 = vpop.eup %2474  ;;  %v2298_v20 = vmul.f32 -1.442695, %v3587_v25 }
  0xd6   :  { %5303 = vst [vmem:[#allocation41_spill] sm:$0xff] %v3575_v16  ;;  %v331_v1 = vmul.f32 0.125, %v238_v49  ;;  %v427_v4 = vmul.f32 %v3575_v16, %v3575_v16  ;;  %2492 = vrcp.f32 %v1323_v61 }
  0xd7   :  { %v3592_v48 = vsub.f32 %v3139_v10, %v330_v40  ;;  %v522_v60 = vsel %vm88_vm0, %v426_v3, 0.0  ;;  %v2477_v53 = vpop.eup %2476  ;;  %2494 = vpow2.f32 %v2298_v20 }
  0xd8   :  { %v3595_v15 = vsub.f32 %v3144_v11, %v331_v1  ;;  %616 = vadd.xlane.f32.xlu1 %v615_v30  ;;  %523 = vadd.xlane.f32.xlu0 %v522_v60  ;;  %v145_v10 = vpop.xlane.xlu0 %144  ;;  %v525_v1 = vsel %vm88_vm0, %v427_v4, 0.0  ;;  %v2479_v57 = vpop.eup %2478  ;;  %v2267_v30 = vmul.f32 -1.442695, %v3601_v36  ;;  %v2268_v60 = vmul.f32 -1.442695, %v3606_v28 }
  0xd9   :  { %5304 = vst [vmem:[#allocation42_spill] sm:$0xff] %v3592_v48  ;;  %v148_v11 = vpop.xlane.xlu1 %147  ;;  %v300_v49 = vmul.f32 0.125, %v145_v10  ;;  %v458_v3 = vmul.f32 %v3592_v48, %v3592_v48  ;;  %v1355_v12 = vadd.f32 1.0, %v2479_v57 }
  0xda   :  { %5305 = vst [vmem:[#allocation43_spill] sm:$0xff] %v3595_v15  ;;  %v301_v40 = vmul.f32 0.125, %v148_v11  ;;  %v459_v16 = vmul.f32 %v3595_v15, %v3595_v15  ;;  %v3628_v11 = vld [vmem:[%s5175_s1 + $0x130] sm:$0xff]  ;;  %v3630_v15 = vpop.eup %2480  ;;  %2496 = vpow2.f32 %v2267_v30 }
  0xdb   :  { %v3619_v4 = vsub.f32 %v3153_v18, %v300_v49  ;;  %v618_v10 = vsel %vm88_vm0, %v458_v3, 0.0  ;;  %v1354_v49 = vadd.f32 1.0, %v2477_v53  ;;  %2498 = vpow2.f32 %v2268_v60  ;;  %v3661_v60 = vld [vmem:[%s5175_s1 + $0x40] sm:$0xff] }
  0xdc   :  { %v3622_v37 = vsub.f32 %v3158_v19, %v301_v40  ;;  %526 = vadd.xlane.f32.xlu1 %v525_v1  ;;  %619 = vadd.xlane.f32.xlu0 %v618_v10  ;;  %v241_v32 = vpop.xlane.xlu0 %240  ;;  %v621_v18 = vsel %vm88_vm0, %v459_v16, 0.0  ;;  %v2483_v19 = vpop.eup %2482  ;;  %v3640_v1 = vld [vmem:[%s5175_s1 + $0x138] sm:$0xff]  ;;  %v2299_v16 = vmul.f32 -1.442695, %v3628_v11 }
  0xdd   :  { %5306 = vst [vmem:[#allocation44_spill] sm:$0xff] %v3619_v4  ;;  %v244_v48 = vpop.xlane.xlu1 %243  ;;  %v332_v40 = vmul.f32 0.125, %v241_v32  ;;  %v428_v61 = vmul.f32 %v3619_v4, %v3619_v4  ;;  %v2485_v10 = vpop.eup %2484  ;;  %2500 = vrcp.f32 %v1354_v49  ;;  %v2300_v30 = vmul.f32 -1.442695, %v3640_v1 }
  0xde   :  { %5307 = vst [vmem:[#allocation45_spill] sm:$0xff] %v3622_v37  ;;  %v333_v41 = vmul.f32 0.125, %v244_v48  ;;  %v429_v3 = vmul.f32 %v3622_v37, %v3622_v37  ;;  %v3650_v32 = vpop.eup %2486  ;;  %2502 = vrcp.f32 %v1355_v12  ;;  %v2269_v12 = vmul.f32 -1.442695, %v3661_v60 }
  0xdf   :  { %v3644_v20 = vsub.f32 %v3167_v26, %v332_v40  ;;  %v528_v53 = vsel %vm88_vm0, %v428_v61, 0.0  ;;  %v1324_v40 = vadd.f32 1.0, %v2483_v19  ;;  %v1325_v61 = vadd.f32 1.0, %v2485_v10 }
  0xe0   :  { %v3647_v48 = vsub.f32 %v3172_v27, %v333_v41  ;;  %622 = vadd.xlane.f32.xlu1 %v621_v18  ;;  %529 = vadd.xlane.f32.xlu0 %v528_v53  ;;  %v151_v37 = vpop.xlane.xlu0 %150  ;;  %v531_v57 = vsel %vm88_vm0, %v429_v3, 0.0  ;;  %v2489_v18 = vpop.eup %2488  ;;  %2504 = vpow2.f32 %v2299_v16  ;;  %v3683_v16 = vld [vmem:[%s5175_s1 + $0x48] sm:$0xff] }
  0xe1   :  { %5308 = vst [vmem:[#allocation46_spill] sm:$0xff] %v3644_v20  ;;  %v154_v4 = vpop.xlane.xlu1 %153  ;;  %v302_v24 = vmul.f32 0.125, %v151_v37  ;;  %v460_v27 = vmul.f32 %v3644_v20, %v3644_v20  ;;  %v3670_v3 = vpop.eup %2490  ;;  %2506 = vpow2.f32 %v2300_v30  ;;  %v1356_v30 = vadd.f32 1.0, %v2489_v18 }
  0xe2   :  { %5309 = vst [vmem:[#allocation47_spill] sm:$0xff] %v3647_v48  ;;  %v303_v26 = vmul.f32 0.125, %v154_v4  ;;  %v461_v41 = vmul.f32 %v3647_v48, %v3647_v48  ;;  %v3674_v19 = vpop.eup %2492  ;;  %2508 = vrcp.f32 %v1324_v40  ;;  %v2270_v40 = vmul.f32 -1.442695, %v3683_v16 }
  0xe3   :  { %v3664_v49 = vsub.f32 %v3181_v34, %v302_v24  ;;  %v624_v37 = vsel %vm88_vm0, %v460_v27, 0.0  ;;  %2510 = vrcp.f32 %v1325_v61 }
  0xe4   :  { %v3667_v4 = vsub.f32 %v3186_v35, %v303_v26  ;;  %532 = vadd.xlane.f32.xlu1 %v531_v57  ;;  %625 = vadd.xlane.f32.xlu0 %v624_v37  ;;  %v247_v53 = vpop.xlane.xlu0 %246  ;;  %v627_v20 = vsel %vm88_vm0, %v461_v41, 0.0  ;;  %v2495_v57 = vpop.eup %2494  ;;  %2512 = vpow2.f32 %v2269_v12 }
  0xe5   :  { %5310 = vst [vmem:[#allocation48_spill] sm:$0xff] %v3664_v49  ;;  %v250_v48 = vpop.xlane.xlu1 %249  ;;  %v334_v34 = vmul.f32 0.125, %v247_v53  ;;  %v430_v35 = vmul.f32 %v3664_v49, %v3664_v49  ;;  %v2497_v41 = vpop.eup %2496  ;;  %2514 = vrcp.f32 %v1356_v30 }
  0xe6   :  { %5311 = vst [vmem:[#allocation49_spill] sm:$0xff] %v3667_v4  ;;  %v335_v24 = vmul.f32 0.125, %v250_v48  ;;  %v431_v10 = vmul.f32 %v3667_v4, %v3667_v4  ;;  %v2499_v18 = vpop.eup %2498  ;;  %2516 = vpow2.f32 %v2270_v40 }
  0xe7   :  { %v3686_v26 = vsub.f32 %v3195_v42, %v334_v34  ;;  %v534_v48 = vsel %vm88_vm0, %v430_v35, 0.0  ;;  %v3698_v61 = vpop.eup %2500  ;;  %v1327_v30 = vadd.f32 1.0, %v2499_v18 }
  0xe8   :  { %v3689_v27 = vsub.f32 %v3200_v43, %v335_v24  ;;  %628 = vadd.xlane.f32.xlu1 %v627_v20  ;;  %535 = vadd.xlane.f32.xlu0 %v534_v48  ;;  %v157_v37 = vpop.xlane.xlu0 %156  ;;  %v537_v4 = vsel %vm88_vm0, %v431_v10, 0.0  ;;  %v1357_v20 = vadd.f32 1.0, %v2495_v57  ;;  %v1326_v10 = vadd.f32 1.0, %v2497_v41  ;;  %v3710_v48 = vld [vmem:[%s5175_s1 + $0x140] sm:$0xff]  ;;  %v3717_v57 = vpop.eup %2502 }
  0xe9   :  { %5312 = vst [vmem:[#allocation50_spill] sm:$0xff] %v3686_v26  ;;  %v160_v53 = vpop.xlane.xlu1 %159  ;;  %v304_v49 = vmul.f32 0.125, %v157_v37  ;;  %v462_v43 = vmul.f32 %v3686_v26, %v3686_v26  ;;  %v3715_v37 = vld [vmem:[%s5175_s1 + $0x148] sm:$0xff] }
  0xea   :  { %5313 = vst [vmem:[#allocation51_spill] sm:$0xff] %v3689_v27  ;;  %v305_v42 = vmul.f32 0.125, %v160_v53  ;;  %v463_v34 = vmul.f32 %v3689_v27, %v3689_v27  ;;  %v2505_v41 = vpop.eup %2504  ;;  %2518 = vrcp.f32 %v1357_v20 }
  0xeb   :  { %v3701_v24 = vsub.f32 %v3209_v50, %v304_v49  ;;  %v630_v35 = vsel %vm88_vm0, %v462_v43, 0.0  ;;  %v2507_v26 = vpop.eup %2506  ;;  %2520 = vrcp.f32 %v1326_v10 }
  0xec   :  { %v3704_v12 = vsub.f32 %v3214_v51, %v305_v42  ;;  %538 = vadd.xlane.f32.xlu1 %v537_v4  ;;  %631 = vadd.xlane.f32.xlu0 %v630_v35  ;;  %v253_v50 = vpop.xlane.xlu0 %252  ;;  %v633_v49 = vsel %vm88_vm0, %v463_v34, 0.0  ;;  %v2301_v4 = vmul.f32 -1.442695, %v3710_v48  ;;  %v2302_v35 = vmul.f32 -1.442695, %v3715_v37  ;;  %v3736_v34 = vld [vmem:[%s5175_s1 + $0x50] sm:$0xff] }
  0xed   :  { %5314 = vst [vmem:[#allocation52_spill] sm:$0xff] %v3701_v24  ;;  %v256_v51 = vpop.xlane.xlu1 %255  ;;  %v336_v53 = vmul.f32 0.125, %v253_v50  ;;  %v432_v43 = vmul.f32 %v3701_v24, %v3701_v24  ;;  %v3738_v50 = vpop.eup %2508  ;;  %2522 = vrcp.f32 %v1327_v30  ;;  %v1359_v24 = vadd.f32 1.0, %v2507_v26 }
  0xee   :  { %5315 = vst [vmem:[#allocation53_spill] sm:$0xff] %v3704_v12  ;;  %v337_v42 = vmul.f32 0.125, %v256_v51  ;;  %v433_v27 = vmul.f32 %v3704_v12, %v3704_v12  ;;  %2524 = vpow2.f32 %v2301_v4 }
  0xef   :  { %v3727_v55 = vsub.f32 %v3223_v58, %v336_v53  ;;  %v540_v18 = vsel %vm88_vm0, %v432_v43, 0.0  ;;  %v1358_v53 = vadd.f32 1.0, %v2505_v41  ;;  %2526 = vpow2.f32 %v2302_v35 }
  0xf0   :  { %v3730_v40 = vsub.f32 %v3228_v59, %v337_v42  ;;  %634 = vadd.xlane.f32.xlu1 %v633_v49  ;;  %541 = vadd.xlane.f32.xlu0 %v540_v18  ;;  %v163_v20 = vpop.xlane.xlu0 %162  ;;  %v543_v58 = vsel %vm88_vm0, %v433_v27, 0.0  ;;  %v3741_v59 = vpop.eup %2510  ;;  %v3750_v49 = vld [vmem:[%s5175_s1 + $0x58] sm:$0xff]  ;;  %v2271_v27 = vmul.f32 -1.442695, %v3736_v34 }
  0xf1   :  { %5316 = vst [vmem:[#allocation54_spill] sm:$0xff] %v3727_v55  ;;  %v166_v51 = vpop.xlane.xlu1 %165  ;;  %v306_v42 = vmul.f32 0.125, %v163_v20  ;;  %v464_v10 = vmul.f32 %v3727_v55, %v3727_v55  ;;  %v2513_v18 = vpop.eup %2512  ;;  %2528 = vrcp.f32 %v1358_v53  ;;  %v5320_v53 = vld [vmem:[#allocation2_spill] sm:$0xff] }
  0xf2   :  { %5317 = vst [vmem:[#allocation55_spill] sm:$0xff] %v3730_v40  ;;  %v307_v43 = vmul.f32 0.125, %v166_v51  ;;  %v465_v12 = vmul.f32 %v3730_v40, %v3730_v40  ;;  %v3763_v51 = vld [vmem:[%s5175_s1 + $0x150] sm:$0xff]  ;;  %v3765_v40 = vpop.eup %2514  ;;  %2530 = vrcp.f32 %v1359_v24  ;;  %v1328_v55 = vadd.f32 1.0, %v2513_v18 }
  0xf3   :  { %v3754_v30 = vsub.f32 %v3237_v6, %v306_v42  ;;  %v636_v20 = vsel %vm88_vm0, %v464_v10, 0.0  ;;  %2532 = vpow2.f32 %v2271_v27 }
  0xf4   :  { %v3757_v41 = vsub.f32 %v3242_v7, %v307_v43  ;;  %544 = vadd.xlane.f32.xlu1 %v543_v58  ;;  %637 = vadd.xlane.f32.xlu0 %v636_v20  ;;  %v259_v26 = vpop.xlane.xlu0 %258  ;;  %v639_v6 = vsel %vm88_vm0, %v465_v12, 0.0  ;;  %v2272_v7 = vmul.f32 -1.442695, %v3750_v49  ;;  %v3776_v58 = vld [vmem:[%s5175_s1 + $0x158] sm:$0xff]  ;;  %v2517_v20 = vpop.eup %2516  ;;  %v2303_v12 = vmul.f32 -1.442695, %v3763_v51 }
  0xf5   :  { %5318 = vst [vmem:[#allocation56_spill] sm:$0xff] %v3754_v30  ;;  %v262_v4 = vpop.xlane.xlu1 %261  ;;  %v338_v42 = vmul.f32 0.125, %v259_v26  ;;  %v434_v35 = vmul.f32 %v3754_v30, %v3754_v30  ;;  %v5322_v26 = vld [vmem:[#allocation3_spill] sm:$0xff]  ;;  %v2304_v18 = vmul.f32 -1.442695, %v3776_v58 }
  0xf6   :  { %5319 = vst [vmem:[#allocation57_spill] sm:$0xff] %v3757_v41  ;;  %v339_v43 = vmul.f32 0.125, %v262_v4  ;;  %v435_v10 = vmul.f32 %v3757_v41, %v3757_v41  ;;  %v3786_v41 = vpop.eup %2518  ;;  %2534 = vpow2.f32 %v2272_v7  ;;  %v1329_v7 = vadd.f32 1.0, %v2517_v20 }
  0xf7   :  { %v3780_v8 = vsub.f32 %v5320_v53, %v338_v42  ;;  %v546_v30 = vsel %vm88_vm0, %v434_v35, 0.0  ;;  %v3790_v17 = vpop.eup %2520  ;;  %2536 = vpow2.f32 %v2303_v12  ;;  %v5324_v35 = vld [vmem:[#allocation4_spill] sm:$0xff] }
  0xf8   :  { %v3783_v4 = vsub.f32 %v5322_v26, %v339_v43  ;;  %640 = vadd.xlane.f32.xlu1 %v639_v6  ;;  %547 = vadd.xlane.f32.xlu0 %v546_v30  ;;  %v169_v21 = vpop.xlane.xlu0 %168  ;;  %v549_v24 = vsel %vm88_vm0, %v435_v10, 0.0  ;;  %v3799_v30 = vld [vmem:[%s5175_s1 + $0x60] sm:$0xff]  ;;  %v3801_v6 = vpop.eup %2522  ;;  %2538 = vrcp.f32 %v1328_v55 }
  0xf9   :  { %5321 = vst [vmem:[#allocation2_spill] sm:$0xff] %v3780_v8  ;;  %v172_v23 = vpop.xlane.xlu1 %171  ;;  %v308_v42 = vmul.f32 0.125, %v169_v21  ;;  %v466_v43 = vmul.f32 %v3780_v8, %v3780_v8  ;;  %v5326_v21 = vld [vmem:[#allocation5_spill] sm:$0xff]  ;;  %v2525_v8 = vpop.eup %2524  ;;  %2540 = vpow2.f32 %v2304_v18  ;;  %v5330_v18 = vld [vmem:[#allocation7_spill] sm:$0xff] }
  0xfa   :  { %5323 = vst [vmem:[#allocation3_spill] sm:$0xff] %v3783_v4  ;;  %v309_v53 = vmul.f32 0.125, %v172_v23  ;;  %v467_v27 = vmul.f32 %v3783_v4, %v3783_v4  ;;  %v3813_v4 = vld [vmem:[%s5175_s1 + $0x68] sm:$0xff]  ;;  %2542 = vrcp.f32 %v1329_v7 }
  0xfb   :  { %v3804_v10 = vsub.f32 %v5324_v35, %v308_v42  ;;  %v642_v26 = vsel %vm88_vm0, %v466_v43, 0.0  ;;  %v2273_v42 = vmul.f32 -1.442695, %v3799_v30 }
  0xfc   :  { %v3807_v23 = vsub.f32 %v5326_v21, %v309_v53  ;;  %550 = vadd.xlane.f32.xlu1 %v549_v24  ;;  %643 = vadd.xlane.f32.xlu0 %v642_v26  ;;  %v265_v14 = vpop.xlane.xlu0 %264  ;;  %v645_v12 = vsel %vm88_vm0, %v467_v27, 0.0  ;;  %v2527_v53 = vpop.eup %2526  ;;  %v2274_v24 = vmul.f32 -1.442695, %v3813_v4  ;;  %v5328_v26 = vld [vmem:[#allocation6_spill] sm:$0xff] }
  0xfd   :  { %5325 = vst [vmem:[#allocation4_spill] sm:$0xff] %v3804_v10  ;;  %v268_v20 = vpop.xlane.xlu1 %267  ;;  %v340_v35 = vmul.f32 0.125, %v265_v14  ;;  %v436_v55 = vmul.f32 %v3804_v10, %v3804_v10  ;;  %v3821_v13 = vpop.eup %2528  ;;  %v3834_v10 = vld [vmem:[%s5175_s1 + $0x160] sm:$0xff]  ;;  %2544 = vpow2.f32 %v2273_v42 }
  0xfe   :  { %5327 = vst [vmem:[#allocation5_spill] sm:$0xff] %v3807_v23  ;;  %v341_v21 = vmul.f32 0.125, %v268_v20  ;;  %v437_v43 = vmul.f32 %v3807_v23, %v3807_v23  ;;  %v1360_v20 = vadd.f32 1.0, %v2525_v8  ;;  %v3836_v23 = vpop.eup %2530  ;;  %2546 = vpow2.f32 %v2274_v24 }
  0xff   :  { %v3825_v0 = vsub.f32 %v5328_v26, %v340_v35  ;;  %v552_v14 = vsel %vm88_vm0, %v436_v55, 0.0  ;;  %v1361_v26 = vadd.f32 1.0, %v2527_v53 }
 0x100   :  { %v3828_v27 = vsub.f32 %v5330_v18, %v341_v21  ;;  %646 = vadd.xlane.f32.xlu1 %v645_v12  ;;  %553 = vadd.xlane.f32.xlu0 %v552_v14  ;;  %v175_v7 = vpop.xlane.xlu0 %174  ;;  %v555_v35 = vsel %vm88_vm0, %v437_v43, 0.0  ;;  %v2533_v21 = vpop.eup %2532  ;;  %v2305_v12 = vmul.f32 -1.442695, %v3834_v10  ;;  %v2844_v14 = vld [vmem:[%s5174_s0 + $0xe0] sm:$0xff]  ;;  %2548 = vrcp.f32 %v1360_v20  ;;  %v3865_v20 = vld [vmem:[%s5175_s1 + $0x168] sm:$0xff] }
 0x101   :  { %5329 = vst [vmem:[#allocation6_spill] sm:$0xff] %v3825_v0  ;;  %v178_v9 = vpop.xlane.xlu1 %177  ;;  %v310_v18 = vmul.f32 0.125, %v175_v7  ;;  %v468_v8 = vmul.f32 %v3825_v0, %v3825_v0  ;;  %v2535_v5 = vpop.eup %2534  ;;  %2550 = vrcp.f32 %v1361_v26  ;;  %v1330_v2 = vadd.f32 1.0, %v2533_v21  ;;  %5334 = vst [vmem:[#allocation60_spill] sm:$0xff] %v3865_v20  ;;  %v2846_v26 = vld [vmem:[%s5174_s0 + $0x1e0] sm:$0xff] }
 0x102   :  { %5331 = vst [vmem:[#allocation7_spill] sm:$0xff] %v3828_v27  ;;  %v311_v22 = vmul.f32 0.125, %v178_v9  ;;  %v469_v55 = vmul.f32 %v3828_v27, %v3828_v27  ;;  %v2845_v9 = vld [vmem:[%s5174_s0 + $0xe8] sm:$0xff]  ;;  %v2537_v7 = vpop.eup %2536  ;;  %2552 = vpow2.f32 %v2305_v12 }
 0x103   :  { %v3847_v43 = vsub.f32 %v2844_v14, %v310_v18  ;;  %v648_v53 = vsel %vm88_vm0, %v468_v8, 0.0  ;;  %v3856_v18 = vpop.eup %2538  ;;  %2554 = vrcp.f32 %v1330_v2  ;;  %v2848_v2 = vld [vmem:[%s5174_s0 + $0xf0] sm:$0xff] }
 0x104   :  { %v3852_v42 = vsub.f32 %v2845_v9, %v311_v22  ;;  %556 = vadd.xlane.f32.xlu1 %v555_v35  ;;  %649 = vadd.xlane.f32.xlu0 %v648_v53  ;;  %v271_v24 = vpop.xlane.xlu0 %270  ;;  %v651_v0 = vsel %vm88_vm0, %v469_v55, 0.0  ;;  %v2541_v35 = vpop.eup %2540  ;;  %v1331_v9 = vadd.f32 1.0, %v2535_v5 }
 0x105   :  { %5332 = vst [vmem:[#allocation58_spill] sm:$0xff] %v3847_v43  ;;  %v274_v27 = vpop.xlane.xlu1 %273  ;;  %v342_v14 = vmul.f32 0.125, %v271_v24  ;;  %v438_v22 = vmul.f32 %v3847_v43, %v3847_v43  ;;  %v1362_v24 = vadd.f32 1.0, %v2537_v7 }
 0x106   :  { %5333 = vst [vmem:[#allocation59_spill] sm:$0xff] %v3852_v42  ;;  %v343_v47 = vmul.f32 0.125, %v274_v27  ;;  %v439_v8 = vmul.f32 %v3852_v42, %v3852_v42  ;;  %v2847_v27 = vld [vmem:[%s5174_s0 + $0x1e8] sm:$0xff]  ;;  %v3878_v42 = vpop.eup %2542  ;;  %2556 = vrcp.f32 %v1331_v9  ;;  %v3905_v9 = vld [vmem:[%s5175_s1 + $0x78] sm:$0xff] }
 0x107   :  { %v3870_v21 = vsub.f32 %v2846_v26, %v342_v14  ;;  %v558_v53 = vsel %vm88_vm0, %v438_v22, 0.0  ;;  %v2306_v14 = vmul.f32 -1.442695, %v3865_v20  ;;  %v2545_v7 = vpop.eup %2544  ;;  %2558 = vrcp.f32 %v1362_v24  ;;  %5340 = vst [vmem:[#allocation66_spill] sm:$0xff] %v3905_v9 }
 0x108   :  { %v3875_v55 = vsub.f32 %v2847_v27, %v343_v47  ;;  %652 = vadd.xlane.f32.xlu1 %v651_v0  ;;  %559 = vadd.xlane.f32.xlu0 %v558_v53  ;;  %v181_v5 = vpop.xlane.xlu0 %180  ;;  %v561_v43 = vsel %vm88_vm0, %v439_v8, 0.0  ;;  %v3889_v0 = vld [vmem:[%s5175_s1 + $0x70] sm:$0xff]  ;;  %v1363_v27 = vadd.f32 1.0, %v2541_v35  ;;  %v2849_v53 = vld [vmem:[%s5174_s0 + $0xf8] sm:$0xff]  ;;  %v2547_v35 = vpop.eup %2546 }
 0x109   :  { %5335 = vst [vmem:[#allocation61_spill] sm:$0xff] %v3870_v21  ;;  %v184_v12 = vpop.xlane.xlu1 %183  ;;  %v312_v26 = vmul.f32 0.125, %v181_v5  ;;  %v470_v47 = vmul.f32 %v3870_v21, %v3870_v21  ;;  %5337 = vst [vmem:[#allocation63_spill] sm:$0xff] %v3889_v0  ;;  %v1332_v21 = vadd.f32 1.0, %v2545_v7  ;;  %2560 = vpow2.f32 %v2306_v14  ;;  %v3923_v14 = vld [vmem:[%s5175_s1 + $0x178] sm:$0xff] }
 0x10a   :  { %5336 = vst [vmem:[#allocation62_spill] sm:$0xff] %v3875_v55  ;;  %v313_v38 = vmul.f32 0.125, %v184_v12  ;;  %v471_v22 = vmul.f32 %v3875_v55, %v3875_v55  ;;  %5342 = vst [vmem:[#allocation68_spill] sm:$0xff] %v3923_v14  ;;  %2562 = vrcp.f32 %v1363_v27  ;;  %v2276_v7 = vmul.f32 -1.442695, %v3905_v9  ;;  %v3942_v27 = vld [vmem:[%s5175_s1 + $0x80] sm:$0xff] }
 0x10b   :  { %v3894_v8 = vsub.f32 %v2848_v2, %v312_v26  ;;  %v654_v12 = vsel %vm88_vm0, %v470_v47, 0.0  ;;  %2564 = vrcp.f32 %v1332_v21  ;;  %5345 = vst [vmem:[#allocation71_spill] sm:$0xff] %v3942_v27  ;;  %v2308_v9 = vmul.f32 -1.442695, %v3923_v14 }
 0x10c   :  { %v3899_v5 = vsub.f32 %v2849_v53, %v313_v38  ;;  %562 = vadd.xlane.f32.xlu1 %v561_v43  ;;  %655 = vadd.xlane.f32.xlu0 %v654_v12  ;;  %v277_v55 = vpop.xlane.xlu0 %276  ;;  %v657_v2 = vsel %vm88_vm0, %v471_v22, 0.0  ;;  %v2275_v38 = vmul.f32 -1.442695, %v3889_v0  ;;  %v3909_v53 = vpop.eup %2548  ;;  %v3918_v43 = vld [vmem:[%s5175_s1 + $0x170] sm:$0xff] }
 0x10d   :  { %5338 = vst [vmem:[#allocation64_spill] sm:$0xff] %v3894_v8  ;;  %v280_v26 = vpop.xlane.xlu1 %279  ;;  %v344_v47 = vmul.f32 0.125, %v277_v55  ;;  %v440_v46 = vmul.f32 %v3894_v8, %v3894_v8  ;;  %5341 = vst [vmem:[#allocation67_spill] sm:$0xff] %v3918_v43  ;;  %v3925_v22 = vpop.eup %2550  ;;  %v1333_v55 = vadd.f32 1.0, %v2547_v35  ;;  %v2850_v12 = vld [vmem:[%s5174_s0 + $0x1f0] sm:$0xff] }
 0x10e   :  { %5339 = vst [vmem:[#allocation65_spill] sm:$0xff] %v3899_v5  ;;  %v345_v24 = vmul.f32 0.125, %v280_v26  ;;  %v441_v39 = vmul.f32 %v3899_v5, %v3899_v5  ;;  %v2851_v5 = vld [vmem:[%s5174_s0 + $0x1f8] sm:$0xff]  ;;  %v2553_v35 = vpop.eup %2552 }
 0x10f   :  { %v3931_v26 = vsub.f32 %v2850_v12, %v344_v47  ;;  %v564_v0 = vsel %vm88_vm0, %v440_v46, 0.0  ;;  %2566 = vrcp.f32 %v1333_v55  ;;  %v2307_v12 = vmul.f32 -1.442695, %v3918_v43  ;;  %v3950_v46 = vld [vmem:[%s5175_s1 + $0x88] sm:$0xff] }
 0x110   :  { %v3936_v8 = vsub.f32 %v2851_v5, %v345_v24  ;;  %658 = vadd.xlane.f32.xlu1 %v657_v2  ;;  %565 = vadd.xlane.f32.xlu0 %v564_v0  ;;  %v567_v47 = vsel %vm88_vm0, %v441_v39, 0.0  ;;  %5346 = vst [vmem:[#allocation72_spill] sm:$0xff] %v3950_v46  ;;  %v1364_v2 = vadd.f32 1.0, %v2553_v35  ;;  %2568 = vpow2.f32 %v2275_v38  ;;  %v3959_v39 = vld [vmem:[%s5175_s1 + $0x180] sm:$0xff]  ;;  %v3961_v0 = vpop.eup %2554  ;;  %v3969_v35 = vld [vmem:[%s5175_s1 + $0x188] sm:$0xff] }
 0x111   :  { %5343 = vst [vmem:[#allocation69_spill] sm:$0xff] %v3931_v26  ;;  %v472_v21 = vmul.f32 %v3931_v26, %v3931_v26  ;;  %5347 = vst [vmem:[#allocation73_spill] sm:$0xff] %v3959_v39  ;;  %2570 = vpow2.f32 %v2276_v7  ;;  %v2277_v24 = vmul.f32 -1.442695, %v3942_v27  ;;  %v2278_v26 = vmul.f32 -1.442695, %v3950_v46  ;;  %v3971_v38 = vpop.eup %2556 }
 0x112   :  { %5344 = vst [vmem:[#allocation70_spill] sm:$0xff] %v3936_v8  ;;  %v473_v5 = vmul.f32 %v3936_v8, %v3936_v8  ;;  %2572 = vrcp.f32 %v1364_v2  ;;  %5348 = vst [vmem:[#allocation74_spill] sm:$0xff] %v3969_v35  ;;  %v2309_v8 = vmul.f32 -1.442695, %v3959_v39  ;;  %v3977_v7 = vld [vmem:[%s5175_s1 + $0x90] sm:$0xff]  ;;  %v3985_v46 = vld [vmem:[%s5175_s1 + $0x98] sm:$0xff] }
 0x113   :  { %v660_v55 = vsel %vm88_vm0, %v472_v21, 0.0  ;;  %2574 = vpow2.f32 %v2307_v12  ;;  %5349 = vst [vmem:[#allocation75_spill] sm:$0xff] %v3977_v7  ;;  %v3979_v21 = vpop.eup %2558  ;;  %5350 = vst [vmem:[#allocation76_spill] sm:$0xff] %v3985_v46  ;;  %v2310_v12 = vmul.f32 -1.442695, %v3969_v35 }
 0x114   :  { %568 = vadd.xlane.f32.xlu1 %v567_v47  ;;  %661 = vadd.xlane.f32.xlu0 %v660_v55  ;;  %v663_v2 = vsel %vm88_vm0, %v473_v5, 0.0  ;;  %2576 = vpow2.f32 %v2308_v9  ;;  %v2561_v47 = vpop.eup %2560  ;;  %v3991_v55 = vld [vmem:[%s5175_s1 + $0x190] sm:$0xff]  ;;  %v2279_v27 = vmul.f32 -1.442695, %v3977_v7  ;;  %v2280_v9 = vmul.f32 -1.442695, %v3985_v46 }
 0x115   :  { %2578 = vpow2.f32 %v2277_v24  ;;  %5351 = vst [vmem:[#allocation77_spill] sm:$0xff] %v3991_v55  ;;  %v1365_v39 = vadd.f32 1.0, %v2561_v47  ;;  %v3994_v5 = vpop.eup %2562  ;;  %v4002_v24 = vld [vmem:[%s5175_s1 + $0x198] sm:$0xff]  ;;  %v2311_v35 = vmul.f32 -1.442695, %v3991_v55  ;;  %v2852_v55 = vld [vmem:[%s5175_s1] sm:$0xff] }
 0x116   :  { %2580 = vpow2.f32 %v2278_v26  ;;  %v3997_v14 = vpop.eup %2564 }
 0x117   :  { %2582 = vpow2.f32 %v2309_v8  ;;  %v2312_v8 = vmul.f32 -1.442695, %v4002_v24 }
 0x118   :  { %664 = vadd.xlane.f32.xlu1 %v663_v2  ;;  %2584 = vrcp.f32 %v1365_v39 }
 0x119   :  { %v4005_v47 = vpop.eup %2566  ;;  %2586 = vpow2.f32 %v2310_v12  ;;  %v4014_v12 = vmul.f32 %v2852_v55, %v3589_v63  ;;  %v2854_v63 = vld [vmem:[%s5175_s1 + $0x100] sm:$0xff] }
 0x11a   :  { %v2569_v26 = vpop.eup %2568  ;;  %2588 = vpow2.f32 %v2279_v27  ;;  %v4031_v55 = vmul.f32 %v2854_v63, %v3630_v15  ;;  %v4093_v63 = vld [vmem:[%s5175_s1 + $0x1a8] sm:$0xff] }
 0x11b   :  { %v2571_v7 = vpop.eup %2570  ;;  %v1334_v2 = vadd.f32 1.0, %v2569_v26  ;;  %2590 = vpow2.f32 %v2280_v9  ;;  %5352 = vst [vmem:[#allocation78_spill] sm:$0xff] %v4014_v12  ;;  %v4019_v9 = vld [vmem:[%s5175_s1 + $0xa0] sm:$0xff]  ;;  %v4039_v12 = vmul.f32 %v3670_v3, %v3482_v54  ;;  %v4054_v54 = vmul.f32 %v3717_v57, %v3526_v29  ;;  %5354 = vst [vmem:[#allocation80_spill] sm:$0xff] %v4093_v63 }
 0x11c   :  { %v4008_v46 = vpop.eup %2572  ;;  %v1335_v39 = vadd.f32 1.0, %v2571_v7  ;;  %2592 = vpow2.f32 %v2311_v35  ;;  %v2853_v35 = vld [vmem:[%s5175_s1 + $0x8] sm:$0xff]  ;;  %v4076_v29 = vld [vmem:[%s5175_s1 + $0x1a0] sm:$0xff] }
 0x11d   :  { %v2575_v43 = vpop.eup %2574  ;;  %2594 = vrcp.f32 %v1334_v2  ;;  %v4025_v7 = vmul.f32 %v2853_v35, %v3608_v56 }
 0x11e   :  { %v2577_v20 = vpop.eup %2576  ;;  %2596 = vrcp.f32 %v1335_v39  ;;  %v1366_v27 = vadd.f32 1.0, %v2575_v43  ;;  %v4035_v39 = vmul.f32 %v3650_v32, %v3464_v31  ;;  %v4050_v31 = vmul.f32 %v3698_v61, %v3517_v52  ;;  %v4071_v52 = vld [vmem:[%s5175_s1 + $0xa8] sm:$0xff] }
 0x11f   :  { %v2579_v26 = vpop.eup %2578  ;;  %5353 = vst [vmem:[#allocation79_spill] sm:$0xff] %v4025_v7  ;;  %v1367_v43 = vadd.f32 1.0, %v2577_v20  ;;  %2598 = vpow2.f32 %v2312_v8  ;;  %v4043_v7 = vmul.f32 %v3674_v19, %v3494_v62  ;;  %v2281_v20 = vmul.f32 -1.442695, %v4019_v9 }
 0x120   :  { %v2581_v2 = vpop.eup %2580  ;;  %2600 = vrcp.f32 %v1366_v27  ;;  %v1336_v56 = vadd.f32 1.0, %v2579_v26  ;;  %v4058_v62 = vmul.f32 %v3738_v50, %v3539_v44  ;;  %v4062_v19 = vmul.f32 %v3741_v59, %v3550_v33 }
 0x121   :  { %v2583_v35 = vpop.eup %2582  ;;  %2602 = vrcp.f32 %v1367_v43  ;;  %v1337_v15 = vadd.f32 1.0, %v2581_v2  ;;  %v4066_v27 = vmul.f32 %v3765_v40, %v3569_v45  ;;  %v4080_v33 = vmul.f32 %v3786_v41, %v3587_v25 }
 0x122   :  { %v4046_v8 = vpop.eup %2584  ;;  %2604 = vrcp.f32 %v1336_v56  ;;  %v1368_v32 = vadd.f32 1.0, %v2583_v35  ;;  %v4084_v45 = vmul.f32 %v3790_v17, %v3601_v36  ;;  %v4088_v59 = vmul.f32 %v3801_v6, %v3606_v28  ;;  %v1086_v28 = vld [vmem:[%s5175_s1 + $0xb0] sm:$0xff]  ;;  %v1087_v35 = vld [vmem:[%s5175_s1 + $0xb8] sm:$0xff] }
 0x123   :  { %v2587_v3 = vpop.eup %2586  ;;  %2606 = vrcp.f32 %v1337_v15  ;;  %v2282_v17 = vmul.f32 -1.442695, %v4071_v52  ;;  %v4097_v36 = vmul.f32 -1.442695, %v4076_v29  ;;  %v4106_v2 = vmul.f32 %v3821_v13, %v3628_v11  ;;  %v1118_v15 = vld [vmem:[%s5175_s1 + $0x1b0] sm:$0xff] }
 0x124   :  { %v2589_v44 = vpop.eup %2588  ;;  %v1369_v57 = vadd.f32 1.0, %v2587_v3  ;;  %2608 = vrcp.f32 %v1368_v32  ;;  %v4122_v13 = vmul.f32 %v3856_v18, %v3661_v60  ;;  %v4125_v11 = vmul.f32 -1.442695, %v4093_v63 }
 0x125   :  { %v476_v61 = vpop.xlane.xlu0 %475  ;;  %v2591_v40 = vpop.eup %2590  ;;  %v1338_v26 = vadd.f32 1.0, %v2589_v44  ;;  %2610 = vpow2.f32 %v2281_v20  ;;  %v4118_v44 = vmul.f32 %v3836_v23, %v3640_v1  ;;  %v1088_v1 = vld [vmem:[%s5175_s1 + $0xc0] sm:$0xff]  ;;  %v4135_v18 = vmul.f32 -1.442695, %v1087_v35 }
 0x126   :  { %v666_v50 = vmul.f32 0.125, %v476_v61  ;;  %v2593_v25 = vpop.eup %2592  ;;  %2612 = vrcp.f32 %v1369_v57  ;;  %v1339_v41 = vadd.f32 1.0, %v2591_v40  ;;  %5355 = vst [vmem:[#allocation81_spill] sm:$0xff] %v4122_v13 }
 0x127   :  { %v4102_v6 = vpop.eup %2594  ;;  %2614 = vrcp.f32 %v1338_v26  ;;  %v1370_v56 = vadd.f32 1.0, %v2593_v25  ;;  %v1119_v26 = vld [vmem:[%s5175_s1 + $0x1b8] sm:$0xff]  ;;  %v4137_v25 = vmul.f32 -1.442695, %v1118_v15  ;;  %v4152_v15 = vmul.f32 -1.442695, %v1088_v1 }
 0x128   :  { %v730_v43 = vadd.f32 1e-05, %v666_v50  ;;  %v4114_v20 = vpop.eup %2596  ;;  %2616 = vrcp.f32 %v1339_v41  ;;  %v4127_v50 = vmul.f32 -1.442695, %v1086_v28  ;;  %v4141_v28 = vmul.f32 %v3878_v42, %v3683_v16 }
 0x129   :  { %v479_v32 = vpop.xlane.xlu1 %478  ;;  %v572_v3 = vpop.xlane.xlu0 %571  ;;  %5356 = vst [vmem:[#allocation82_spill] sm:$0xff] %v4137_v25  ;;  %v4150_v35 = vmul.f32 -1.442695, %v1119_v26  ;;  %5357 = vst [vmem:[#allocation83_spill] sm:$0xff] %v4152_v15  ;;  %v4160_v25 = vmul.f32 %v3961_v0, %v3736_v34 }
 0x12a   :  { %v2599_v61 = vpop.eup %2598  ;;  %2618 = vrsqrt.f32 %v730_v43  ;;  %v667_v57 = vmul.f32 0.125, %v479_v32  ;;  %v698_v40 = vmul.f32 0.125, %v572_v3  ;;  %v1089_v3 = vld [vmem:[%s5175_s1 + $0xc8] sm:$0xff] }
 0x12b   :  { %v2601_v60 = vpop.eup %2600  ;;  %v1371_v23 = vadd.f32 1.0, %v2599_v61  ;;  %2620 = vrcp.f32 %v1370_v56  ;;  %v4148_v56 = vmul.f32 %v3909_v53, %v3710_v48  ;;  %v4164_v48 = vmul.f32 %v3971_v38, %v3750_v49 }
 0x12c   :  { %v2603_v41 = vpop.eup %2602  ;;  %v731_v43 = vadd.f32 1e-05, %v667_v57  ;;  %v762_v32 = vadd.f32 1e-05, %v698_v40  ;;  %2622 = vpow2.f32 %v2282_v17  ;;  %v4156_v17 = vmul.f32 %v3925_v22, %v3715_v37 }
 0x12d   :  { %v2605_v63 = vpop.eup %2604  ;;  %v575_v13 = vpop.xlane.xlu1 %574  ;;  %2624 = vrcp.f32 %v1371_v23  ;;  %v4166_v53 = vmul.f32 -1.442695, %v1089_v3  ;;  %v4170_v23 = vmul.f32 %v3979_v21, %v3763_v51  ;;  %v4174_v37 = vmul.f32 %v3994_v5, %v3776_v58  ;;  %v5359_v5 = vld [vmem:[#allocation60_spill] sm:$0xff] }
 0x12e   :  { %v482_v61 = vpop.xlane.xlu0 %481  ;;  %v2607_v57 = vpop.eup %2606  ;;  %2626 = vrsqrt.f32 %v731_v43  ;;  %v699_v16 = vmul.f32 0.125, %v575_v13  ;;  %v4178_v49 = vmul.f32 %v3997_v14, %v3799_v30  ;;  %v4182_v38 = vmul.f32 %v4005_v47, %v3813_v4  ;;  %v4196_v4 = vld [vmem:[%s5177_s3] ss:$0 sm:$0xff]  ;;  %v5360_v14 = vld [vmem:[#allocation63_spill] sm:$0xff] }
 0x12f   :  { %v668_v42 = vmul.f32 0.125, %v482_v61  ;;  %v2609_v40 = vpop.eup %2608  ;;  %2628 = vrsqrt.f32 %v762_v32  ;;  %5358 = vst [vmem:[#allocation84_spill] sm:$0xff] %v4166_v53  ;;  %v4186_v43 = vmul.f32 %v4008_v46, %v3834_v10  ;;  %v4191_v32 = vmul.f32 %v4046_v8, %v5359_v5  ;;  %v5361_v46 = vld [vmem:[#allocation66_spill] sm:$0xff]  ;;  %v5364_v53 = vld [vmem:[#allocation8_spill] sm:$0xff] }
 0x130   :  { %v2611_v26 = vpop.eup %2610  ;;  %v763_v1 = vadd.f32 1e-05, %v699_v16  ;;  %2630 = vpow2.f32 %v4097_v36  ;;  %v4200_v10 = vmul.f32 %v4102_v6, %v5360_v14  ;;  %v4204_v47 = vmul.f32 %v4114_v20, %v5361_v46  ;;  %v5362_v36 = vld [vmem:[#allocation67_spill] sm:$0xff]  ;;  %v5367_v20 = vld [vmem:[#allocation72_spill] sm:$0xff] }
 0x131   :  { %v732_v13 = vadd.f32 1e-05, %v668_v42  ;;  %v2613_v22 = vpop.eup %2612  ;;  %v485_v34 = vpop.xlane.xlu1 %484  ;;  %v4207_v3 = vmul.f32 %v2601_v60, %v5362_v36  ;;  %v5363_v42 = vld [vmem:[#allocation68_spill] sm:$0xff]  ;;  %v5365_v14 = vld [vmem:[#allocation71_spill] sm:$0xff]  ;;  %v4217_v46 = vmul.f32 %v2607_v57, %v5367_v20  ;;  %v5371_v57 = vld [vmem:[#allocation74_spill] sm:$0xff] }
 0x132   :  { %v578_v0 = vpop.xlane.xlu0 %577  ;;  %v2615_v51 = vpop.eup %2614  ;;  %2632 = vrsqrt.f32 %v763_v1  ;;  %v669_v58 = vmul.f32 0.125, %v485_v34  ;;  %v4210_v1 = vmul.f32 %v2603_v41, %v5363_v42  ;;  %v4214_v15 = vmul.f32 %v2605_v63, %v5365_v14  ;;  %v4223_v41 = vld [vmem:[%s5178_s4] ss:$0 sm:$0xff]  ;;  %v5373_v14 = vld [vmem:[#allocation76_spill] sm:$0xff] }
 0x133   :  { %v700_v21 = vmul.f32 0.125, %v578_v0  ;;  %v2617_v30 = vpop.eup %2616  ;;  %2634 = vrsqrt.f32 %v732_v13  ;;  %v1340_v13 = vadd.f32 1.0, %v2611_v26  ;;  %5368 = vst [vmem:[#allocation63_spill] sm:$0xff] %v4217_v46  ;;  %v5369_v26 = vld [vmem:[#allocation73_spill] sm:$0xff] }
 0x134   :  { %v2619_v8 = vpop.eup %2618  ;;  %v733_v61 = vadd.f32 1e-05, %v669_v58  ;;  %5366 = vst [vmem:[#allocation60_spill] sm:$0xff] %v4214_v15  ;;  %2636 = vpow2.f32 %v4125_v11  ;;  %v4226_v36 = vmul.f32 %v2609_v40, %v5369_v26  ;;  %v5372_v11 = vld [vmem:[#allocation75_spill] sm:$0xff]  ;;  %v4236_v20 = vmul.f32 %v2617_v30, %v5373_v14 }
 0x135   :  { %v764_v16 = vadd.f32 1e-05, %v700_v21  ;;  %v2621_v34 = vpop.eup %2620  ;;  %v581_v0 = vpop.xlane.xlu1 %580  ;;  %v858_v6 = vmul.f32 %v2619_v8, %v5364_v53  ;;  %v4230_v8 = vmul.f32 %v2613_v22, %v5371_v57  ;;  %v4233_v42 = vmul.f32 %v2615_v51, %v5372_v11  ;;  %v5376_v57 = vld [vmem:[#allocation9_spill] sm:$0xff] }
 0x136   :  { %v488_v5 = vpop.xlane.xlu0 %487  ;;  %v2623_v60 = vpop.eup %2622  ;;  %2638 = vrsqrt.f32 %v733_v61  ;;  %v701_v58 = vmul.f32 0.125, %v581_v0  ;;  %5370 = vst [vmem:[#allocation66_spill] sm:$0xff] %v4226_v36  ;;  %5374 = vst [vmem:[#allocation67_spill] sm:$0xff] %v4236_v20  ;;  %v5375_v36 = vld [vmem:[#allocation10_spill] sm:$0xff] }
 0x137   :  { %v670_v21 = vmul.f32 0.125, %v488_v5  ;;  %v2625_v53 = vpop.eup %2624  ;;  %2640 = vrsqrt.f32 %v764_v16  ;;  %v929_v63 = vmul.f32 %v4196_v4, %v858_v6  ;;  %v1341_v15 = vadd.f32 1.0, %v2623_v60 }
 0x138   :  { %v2627_v61 = vpop.eup %2626  ;;  %v765_v0 = vadd.f32 1e-05, %v701_v58  ;;  %2642 = vrcp.f32 %v1340_v13  ;;  %v5377_v13 = vld [vmem:[#allocation77_spill] sm:$0xff]  ;;  %v4247_v14 = vmul.f32 %v2625_v53, %v4002_v24 }
 0x139   :  { %v734_v5 = vadd.f32 1e-05, %v670_v21  ;;  %v2629_v46 = vpop.eup %2628  ;;  %v491_v40 = vpop.xlane.xlu1 %490  ;;  %v859_v16 = vmul.f32 %v2627_v61, %v5375_v36  ;;  %v1000_v6 = vadd.f32 %v4223_v41, %v929_v63  ;;  %2644 = vpow2.f32 %v4127_v50 }
 0x13a   :  { %v584_v26 = vpop.xlane.xlu0 %583  ;;  %2646 = vrsqrt.f32 %v765_v0  ;;  %v671_v22 = vmul.f32 0.125, %v491_v40  ;;  %v890_v58 = vmul.f32 %v2629_v46, %v5376_v57  ;;  %v2631_v21 = vpop.eup %2630  ;;  %v4244_v11 = vmul.f32 %v2621_v34, %v5377_v13  ;;  %5379 = vst [vmem:[#allocation8_spill] sm:$0xff] %v4247_v14  ;;  %v5380_v40 = vld [vmem:[#allocation78_spill] sm:$0xff]  ;;  %v5382_v57 = vld [vmem:[#allocation12_spill] sm:$0xff] }
 0x13b   :  { %v702_v51 = vmul.f32 0.125, %v584_v26  ;;  %2648 = vrsqrt.f32 %v734_v5  ;;  %v930_v30 = vmul.f32 %v4196_v4, %v859_v16  ;;  %v1576_v26 = vmul.f32 %v5380_v40, %v1000_v6  ;;  %v5381_v16 = vld [vmem:[#allocation11_spill] sm:$0xff]  ;;  %v5384_v40 = vld [vmem:[#allocation13_spill] sm:$0xff] }
 0x13c   :  { %5378 = vst [vmem:[#allocation68_spill] sm:$0xff] %v4244_v11  ;;  %v2633_v36 = vpop.eup %2632  ;;  %v735_v63 = vadd.f32 1e-05, %v671_v22  ;;  %v961_v50 = vmul.f32 %v4196_v4, %v890_v58  ;;  %2650 = vpow2.f32 %v4135_v18  ;;  %v5383_v58 = vld [vmem:[#allocation79_spill] sm:$0xff] }
 0x13d   :  { %v766_v60 = vadd.f32 1e-05, %v702_v51  ;;  %v2635_v61 = vpop.eup %2634  ;;  %v587_v0 = vpop.xlane.xlu1 %586  ;;  %v1001_v5 = vadd.f32 %v4223_v41, %v930_v30  ;;  %v891_v34 = vmul.f32 %v2633_v36, %v5381_v16  ;;  %2652 = vrcp.f32 %v1341_v15 }
 0x13e   :  { %v494_v46 = vpop.xlane.xlu0 %493  ;;  %v860_v24 = vmul.f32 %v2635_v61, %v5382_v57  ;;  %2654 = vrsqrt.f32 %v735_v63  ;;  %v703_v53 = vmul.f32 0.125, %v587_v0  ;;  %v2637_v51 = vpop.eup %2636  ;;  %v1032_v14 = vadd.f32 %v4223_v41, %v961_v50 }
 0x13f   :  { %v672_v22 = vmul.f32 0.125, %v494_v46  ;;  %2656 = vrsqrt.f32 %v766_v60  ;;  %v1577_v13 = vmul.f32 %v5383_v58, %v1001_v5  ;;  %v962_v18 = vmul.f32 %v4196_v4, %v891_v34  ;;  %v5385_v34 = vld [vmem:[#allocation14_spill] sm:$0xff] }
 0x140   :  { %v2639_v11 = vpop.eup %2638  ;;  %v767_v30 = vadd.f32 1e-05, %v703_v53  ;;  %v931_v6 = vmul.f32 %v4196_v4, %v860_v24  ;;  %v1372_v36 = vadd.f32 1.0, %v2631_v21  ;;  %v1608_v5 = vmul.f32 %v4031_v55, %v1032_v14 }
 0x141   :  { %v736_v20 = vadd.f32 1e-05, %v672_v22  ;;  %v2641_v15 = vpop.eup %2640  ;;  %v861_v61 = vmul.f32 %v2639_v11, %v5384_v40  ;;  %v497_v63 = vpop.xlane.xlu1 %496  ;;  %v1640_v46 = vpack.c.bf16 %v1577_v13, %v1576_v26  ;;  %v1033_v60 = vadd.f32 %v4223_v41, %v962_v18 }
 0x142   :  { %v590_v0 = vpop.xlane.xlu0 %589  ;;  %v2643_v16 = vpop.eup %2642  ;;  %v892_v57 = vmul.f32 %v2641_v15, %v5385_v34  ;;  %2658 = vrsqrt.f32 %v767_v30  ;;  %v673_v50 = vmul.f32 0.125, %v497_v63  ;;  %v1002_v26 = vadd.f32 %v4223_v41, %v931_v6  ;;  %v5386_v30 = vld [vmem:[#allocation15_spill] sm:$0xff]  ;;  %v5387_v6 = vld [vmem:[#allocation16_spill] sm:$0xff] }
 0x143   :  { %v704_v53 = vmul.f32 0.125, %v590_v0  ;;  %v4263_v22 = vpop.eup %2644  ;;  %2660 = vrsqrt.f32 %v736_v20  ;;  %2392 = vmatprep.mubr.msk.bf16.mxu0 %vm88_vm0, %v1640_v46  ;;  %v1609_v21 = vmul.f32 %v4035_v39, %v1033_v60  ;;  %v932_v11 = vmul.f32 %v4196_v4, %v861_v61 }
 0x144   :  { %v2647_v24 = vpop.eup %2646  ;;  %v737_v58 = vadd.f32 1e-05, %v673_v50  ;;  %v963_v14 = vmul.f32 %v4196_v4, %v892_v57  ;;  %v4270_v13 = vadd.f32 1.0, %v2637_v51  ;;  %v1578_v39 = vmul.f32 %v4039_v12, %v1002_v26 }
 0x145   :  { %v768_v55 = vadd.f32 1e-05, %v704_v53  ;;  %v2649_v18 = vpop.eup %2648  ;;  %v893_v15 = vmul.f32 %v2647_v24, %v5386_v30  ;;  %v593_v40 = vpop.xlane.xlu1 %592  ;;  %v1656_v63 = vpack.c.bf16 %v1609_v21, %v1608_v5  ;;  %v1003_v0 = vadd.f32 %v4223_v41, %v932_v11  ;;  %v5388_v24 = vld [vmem:[#allocation17_spill] sm:$0xff] }
 0x146   :  { %v500_v20 = vpop.xlane.xlu0 %499  ;;  %v4275_v61 = vpop.eup %2650  ;;  %v862_v46 = vmul.f32 %v2649_v18, %v5387_v6  ;;  %2662 = vrsqrt.f32 %v737_v58  ;;  %v705_v60 = vmul.f32 0.125, %v593_v40  ;;  %v1034_v50 = vadd.f32 %v4223_v41, %v963_v14 }
 0x147   :  { %v674_v34 = vmul.f32 0.125, %v500_v20  ;;  %v4278_v57 = vpop.eup %2652  ;;  %2664 = vrsqrt.f32 %v768_v55  ;;  %2424 = vmatprep.mubr.msk.bf16.mxu1 %vm88_vm0, %v1656_v63  ;;  %v1579_v51 = vmul.f32 %v4043_v7, %v1003_v0  ;;  %v964_v5 = vmul.f32 %v4196_v4, %v893_v15  ;;  %v5389_v20 = vld [vmem:[#allocation18_spill] sm:$0xff] }
 0x148   :  { %v2655_v53 = vpop.eup %2654  ;;  %v769_v12 = vadd.f32 1e-05, %v705_v60  ;;  %v933_v11 = vmul.f32 %v4196_v4, %v862_v46  ;;  %2666 = vrcp.f32 %v1372_v36  ;;  %v1610_v7 = vmul.f32 %v4050_v31, %v1034_v50 }
 0x149   :  { %v738_v21 = vadd.f32 1e-05, %v674_v34  ;;  %v2657_v26 = vpop.eup %2656  ;;  %v863_v58 = vmul.f32 %v2655_v53, %v5388_v24  ;;  %v503_v18 = vpop.xlane.xlu1 %502  ;;  %v1641_v55 = vpack.c.bf16 %v1579_v51, %v1578_v39  ;;  %v1035_v40 = vadd.f32 %v4223_v41, %v964_v5  ;;  %v5390_v5 = vld [vmem:[#allocation19_spill] sm:$0xff]  ;;  %v5391_v24 = vld [vmem:[#allocation20_spill] sm:$0xff] }
 0x14a   :  { %v596_v30 = vpop.xlane.xlu0 %595  ;;  %v894_v15 = vmul.f32 %v2657_v26, %v5389_v20  ;;  %2668 = vrsqrt.f32 %v769_v12  ;;  %v675_v14 = vmul.f32 0.125, %v503_v18  ;;  %v1004_v6 = vadd.f32 %v4223_v41, %v933_v11 }
 0x14b   :  { %v706_v63 = vmul.f32 0.125, %v596_v30  ;;  %2670 = vrsqrt.f32 %v738_v21  ;;  %2393 = vmatmul.mubr.msk.bf16.vlgmr.msra.gmra.mrb[0].mxu0 %vm88_vm0, %v1641_v55  ;;  %v1611_v36 = vmul.f32 %v4054_v54, %v1035_v40  ;;  %v934_v0 = vmul.f32 %v4196_v4, %v863_v58 }
 0x14c   :  { %v2659_v46 = vpop.eup %2658  ;;  %v739_v39 = vadd.f32 1e-05, %v675_v14  ;;  %v965_v34 = vmul.f32 %v4196_v4, %v894_v15  ;;  %v4295_v31 = vmul.f32 %v2643_v16, %v4019_v9  ;;  %v1580_v26 = vmul.f32 %v4058_v62, %v1004_v6  ;;  %v5392_v15 = vld [vmem:[#allocation21_spill] sm:$0xff] }
 0x14d   :  { %v770_v60 = vadd.f32 1e-05, %v706_v63  ;;  %v2661_v51 = vpop.eup %2660  ;;  %v895_v50 = vmul.f32 %v2659_v46, %v5390_v5  ;;  %v599_v53 = vpop.xlane.xlu1 %598  ;;  %v1657_v21 = vpack.c.bf16 %v1611_v36, %v1610_v7  ;;  %v1005_v54 = vadd.f32 %v4223_v41, %v934_v0 }
 0x14e   :  { %v506_v12 = vpop.xlane.xlu0 %505  ;;  %v864_v11 = vmul.f32 %v2661_v51, %v5391_v24  ;;  %2672 = vrsqrt.f32 %v739_v39  ;;  %v707_v58 = vmul.f32 0.125, %v599_v53  ;;  %v1036_v30 = vadd.f32 %v4223_v41, %v965_v34  ;;  %v5393_v39 = vld [vmem:[#allocation22_spill] sm:$0xff]  ;;  %v5394_v24 = vld [vmem:[#allocation23_spill] sm:$0xff] }
 0x14f   :  { %v676_v18 = vmul.f32 0.125, %v506_v12  ;;  %2674 = vrsqrt.f32 %v770_v60  ;;  %2425 = vmatmul.mubr.msk.bf16.vlgmr.msra.gmra.mrb[0].mxu1 %vm88_vm0, %v1657_v21  ;;  %v1581_v9 = vmul.f32 %v4062_v19, %v1005_v54  ;;  %v966_v16 = vmul.f32 %v4196_v4, %v895_v50 }
 0x150   :  { %v2663_v55 = vpop.eup %2662  ;;  %v771_v40 = vadd.f32 1e-05, %v707_v58  ;;  %v935_v20 = vmul.f32 %v4196_v4, %v864_v11  ;;  %2676 = vrcp.f32 %v4270_v13  ;;  %v1612_v19 = vmul.f32 %v4066_v27, %v1036_v30  ;;  %v5395_v30 = vld [vmem:[#allocation24_spill] sm:$0xff] }
 0x151   :  { %v740_v7 = vadd.f32 1e-05, %v676_v18  ;;  %v2665_v62 = vpop.eup %2664  ;;  %v865_v14 = vmul.f32 %v2663_v55, %v5392_v15  ;;  %v509_v63 = vpop.xlane.xlu1 %508  ;;  %v1642_v0 = vpack.c.bf16 %v1581_v9, %v1580_v26  ;;  %v1037_v6 = vadd.f32 %v4223_v41, %v966_v16 }
 0x152   :  { %v602_v36 = vpop.xlane.xlu0 %601  ;;  %v2667_v46 = vpop.eup %2666  ;;  %v896_v60 = vmul.f32 %v2665_v62, %v5393_v39  ;;  %2678 = vrsqrt.f32 %v771_v40  ;;  %v677_v34 = vmul.f32 0.125, %v509_v63  ;;  %v1006_v50 = vadd.f32 %v4223_v41, %v935_v20 }
 0x153   :  { %v708_v51 = vmul.f32 0.125, %v602_v36  ;;  %2680 = vrsqrt.f32 %v740_v7  ;;  %2396 = vmatprep.mubr.msk.bf16.mxu0 %vm88_vm0, %v1642_v0  ;;  %v1613_v13 = vmul.f32 %v4080_v33, %v1037_v6  ;;  %v936_v5 = vmul.f32 %v4196_v4, %v865_v14  ;;  %v5396_v0 = vld [vmem:[#allocation25_spill] sm:$0xff] }
 0x154   :  { %v2669_v53 = vpop.eup %2668  ;;  %v741_v12 = vadd.f32 1e-05, %v677_v34  ;;  %v967_v27 = vmul.f32 %v4196_v4, %v896_v60  ;;  %v4318_v54 = vmul.f32 %v4278_v57, %v4071_v52  ;;  %v1582_v16 = vmul.f32 %v4084_v45, %v1006_v50 }
 0x155   :  { %v772_v21 = vadd.f32 1e-05, %v708_v51  ;;  %v2671_v26 = vpop.eup %2670  ;;  %v897_v11 = vmul.f32 %v2669_v53, %v5394_v24  ;;  %v605_v58 = vpop.xlane.xlu1 %604  ;;  %v1658_v9 = vpack.c.bf16 %v1613_v13, %v1612_v19  ;;  %v1007_v33 = vadd.f32 %v4223_v41, %v936_v5  ;;  %v5397_v13 = vld [vmem:[#allocation26_spill] sm:$0xff] }
 0x156   :  { %v512_v18 = vpop.xlane.xlu0 %511  ;;  %v866_v55 = vmul.f32 %v2671_v26, %v5395_v30  ;;  %2682 = vrsqrt.f32 %v741_v12  ;;  %v709_v40 = vmul.f32 0.125, %v605_v58  ;;  %v1038_v20 = vadd.f32 %v4223_v41, %v967_v27  ;;  %v5398_v58 = vld [vmem:[#allocation27_spill] sm:$0xff]  ;;  %v5399_v30 = vld [vmem:[#allocation81_spill] sm:$0xff] }
 0x157   :  { %v678_v7 = vmul.f32 0.125, %v512_v18  ;;  %2684 = vrsqrt.f32 %v772_v21  ;;  %2428 = vmatprep.mubr.msk.bf16.mxu1 %vm88_vm0, %v1658_v9  ;;  %v1583_v52 = vmul.f32 %v4088_v59, %v1007_v33  ;;  %v968_v57 = vmul.f32 %v4196_v4, %v897_v11 }
 0x158   :  { %v2673_v62 = vpop.eup %2672  ;;  %v773_v15 = vadd.f32 1e-05, %v709_v40  ;;  %v937_v63 = vmul.f32 %v4196_v4, %v866_v55  ;;  %v4330_v45 = vmul.f32 %v2667_v46, %v4076_v29  ;;  %v1614_v34 = vmul.f32 %v4106_v2, %v1038_v20  ;;  %v5400_v40 = vld [vmem:[#allocation28_spill] sm:$0xff] }
 0x159   :  { %v742_v14 = vadd.f32 1e-05, %v678_v7  ;;  %v2675_v36 = vpop.eup %2674  ;;  %v867_v6 = vmul.f32 %v2673_v62, %v5396_v0  ;;  %v515_v19 = vpop.xlane.xlu1 %514  ;;  %v1643_v60 = vpack.c.bf16 %v1583_v52, %v1582_v16  ;;  %v1039_v59 = vadd.f32 %v4223_v41, %v968_v57  ;;  %v5401_v0 = vld [vmem:[#allocation80_spill] sm:$0xff] }
 0x15a   :  { %v608_v39 = vpop.xlane.xlu0 %607  ;;  %v2677_v51 = vpop.eup %2676  ;;  %v898_v5 = vmul.f32 %v2675_v36, %v5397_v13  ;;  %2686 = vrsqrt.f32 %v773_v15  ;;  %v679_v50 = vmul.f32 0.125, %v515_v19  ;;  %v1008_v12 = vadd.f32 %v4223_v41, %v937_v63 }
 0x15b   :  { %v710_v53 = vmul.f32 0.125, %v608_v39  ;;  %2688 = vrsqrt.f32 %v742_v14  ;;  %2397 = vmatmul.mubr.msk.bf16.gmra.mrb[4].mxu0 %vm88_vm0, %v1643_v60  ;;  %v1615_v29 = vmul.f32 %v4118_v44, %v1039_v59  ;;  %v938_v46 = vmul.f32 %v4196_v4, %v867_v6  ;;  %v5402_v39 = vld [vmem:[#allocation29_spill] sm:$0xff] }
 0x15c   :  { %v2679_v21 = vpop.eup %2678  ;;  %v743_v27 = vadd.f32 1e-05, %v679_v50  ;;  %v969_v2 = vmul.f32 %v4196_v4, %v898_v5  ;;  %v4342_v24 = vadd.f32 1.0, %v4263_v22  ;;  %v1584_v55 = vmul.f32 %v5399_v30, %v1008_v12  ;;  %v5403_v50 = vld [vmem:[#allocation30_spill] sm:$0xff] }
 0x15d   :  { %v774_v26 = vadd.f32 1e-05, %v710_v53  ;;  %v2681_v11 = vpop.eup %2680  ;;  %v899_v18 = vmul.f32 %v2679_v21, %v5398_v58  ;;  %v611_v9 = vpop.xlane.xlu1 %610  ;;  %v1659_v16 = vpack.c.bf16 %v1615_v29, %v1614_v34  ;;  %v1009_v44 = vadd.f32 %v4223_v41, %v938_v46 }
 0x15e   :  { %v518_v33 = vpop.xlane.xlu0 %517  ;;  %v868_v7 = vmul.f32 %v2681_v11, %v5400_v40  ;;  %2690 = vrsqrt.f32 %v743_v27  ;;  %v711_v52 = vmul.f32 0.125, %v611_v9  ;;  %v1040_v62 = vadd.f32 %v4223_v41, %v969_v2 }
 0x15f   :  { %v680_v57 = vmul.f32 0.125, %v518_v33  ;;  %2692 = vrsqrt.f32 %v774_v26  ;;  %2429 = vmatmul.mubr.msk.bf16.gmra.mrb[4].mxu1 %vm88_vm0, %v1659_v16  ;;  %v1585_v22 = vmul.f32 %v4141_v28, %v1009_v44  ;;  %v970_v20 = vmul.f32 %v4196_v4, %v899_v18  ;;  %v5404_v18 = vld [vmem:[#allocation31_spill] sm:$0xff] }
 0x160   :  { %v2683_v15 = vpop.eup %2682  ;;  %v775_v14 = vadd.f32 1e-05, %v711_v52  ;;  %v939_v36 = vmul.f32 %v4196_v4, %v868_v7  ;;  %v4354_v6 = vmul.f32 %v2677_v51, %v5401_v0  ;;  %v1616_v5 = vmul.f32 %v4148_v56, %v1040_v62 }
 0x161   :  { %v744_v63 = vadd.f32 1e-05, %v680_v57  ;;  %v2685_v19 = vpop.eup %2684  ;;  %v869_v60 = vmul.f32 %v2683_v15, %v5402_v39  ;;  %v521_v59 = vpop.xlane.xlu1 %520  ;;  %v1644_v13 = vpack.c.bf16 %v1585_v22, %v1584_v55  ;;  %v1041_v28 = vadd.f32 %v4223_v41, %v970_v20  ;;  %v5405_v55 = vld [vmem:[#allocation32_spill] sm:$0xff] }
 0x162   :  { %v614_v34 = vpop.xlane.xlu0 %613  ;;  %v900_v53 = vmul.f32 %v2685_v19, %v5403_v50  ;;  %2694 = vrsqrt.f32 %v775_v14  ;;  %v681_v29 = vmul.f32 0.125, %v521_v59  ;;  %v1010_v21 = vadd.f32 %v4223_v41, %v939_v36  ;;  %v5407_v36 = vld [vmem:[#allocation33_spill] sm:$0xff] }
 0x163   :  { %v712_v46 = vmul.f32 0.125, %v614_v34  ;;  %2696 = vrsqrt.f32 %v744_v63  ;;  %2400 = vmatprep.mubr.msk.bf16.mxu0 %vm88_vm0, %v1644_v13  ;;  %v1617_v51 = vmul.f32 %v4156_v17, %v1041_v28  ;;  %v940_v12 = vmul.f32 %v4196_v4, %v869_v60  ;;  %v5408_v34 = vld [vmem:[#allocation34_spill] sm:$0xff] }
 0x164   :  { %v2687_v27 = vpop.eup %2686  ;;  %v745_v26 = vadd.f32 1e-05, %v681_v29  ;;  %v971_v11 = vmul.f32 %v4196_v4, %v900_v53  ;;  %v4366_v56 = vadd.f32 1.0, %v4275_v61  ;;  %v1586_v30 = vmul.f32 %v4160_v25, %v1010_v21  ;;  %v5406_v25 = vld [vmem:[#allocation82_spill] sm:$0xff] }
 0x165   :  { %v776_v2 = vadd.f32 1e-05, %v712_v46  ;;  %v2689_v58 = vpop.eup %2688  ;;  %v901_v9 = vmul.f32 %v2687_v27, %v5404_v18  ;;  %v617_v33 = vpop.xlane.xlu1 %616  ;;  %v1660_v44 = vpack.c.bf16 %v1617_v51, %v1616_v5  ;;  %v1011_v17 = vadd.f32 %v4223_v41, %v940_v12  ;;  %v5409_v27 = vld [vmem:[#allocation35_spill] sm:$0xff] }
 0x166   :  { %v524_v16 = vpop.xlane.xlu0 %523  ;;  %v870_v40 = vmul.f32 %v2689_v58, %v5405_v55  ;;  %2698 = vrsqrt.f32 %v745_v26  ;;  %v713_v7 = vmul.f32 0.125, %v617_v33  ;;  %v1042_v22 = vadd.f32 %v4223_v41, %v971_v11 }
 0x167   :  { %v682_v52 = vmul.f32 0.125, %v524_v16  ;;  %2700 = vrsqrt.f32 %v776_v2  ;;  %2432 = vmatprep.mubr.msk.bf16.mxu1 %vm88_vm0, %v1660_v44  ;;  %v1587_v61 = vmul.f32 %v4164_v48, %v1011_v17  ;;  %v972_v57 = vmul.f32 %v4196_v4, %v901_v9  ;;  %v5410_v9 = vld [vmem:[#allocation36_spill] sm:$0xff] }
 0x168   :  { %v2691_v20 = vpop.eup %2690  ;;  %v777_v62 = vadd.f32 1e-05, %v713_v7  ;;  %v941_v14 = vmul.f32 %v4196_v4, %v870_v40  ;;  %2702 = vpow2.f32 %v5406_v25  ;;  %v1618_v48 = vmul.f32 %v4170_v23, %v1042_v22  ;;  %v5412_v25 = vld [vmem:[#allocation38_spill] sm:$0xff] }
 0x169   :  { %v746_v15 = vadd.f32 1e-05, %v682_v52  ;;  %v2693_v63 = vpop.eup %2692  ;;  %v871_v0 = vmul.f32 %v2691_v20, %v5407_v36  ;;  %v527_v19 = vpop.xlane.xlu1 %526  ;;  %v1645_v60 = vpack.c.bf16 %v1587_v61, %v1586_v30  ;;  %v1043_v59 = vadd.f32 %v4223_v41, %v972_v57  ;;  %v5411_v61 = vld [vmem:[#allocation37_spill] sm:$0xff] }
 0x16a   :  { %v620_v39 = vpop.xlane.xlu0 %619  ;;  %v902_v13 = vmul.f32 %v2693_v63, %v5408_v34  ;;  %2704 = vrsqrt.f32 %v777_v62  ;;  %v683_v28 = vmul.f32 0.125, %v527_v19  ;;  %v1012_v29 = vadd.f32 %v4223_v41, %v941_v14 }
 0x16b   :  { %v714_v5 = vmul.f32 0.125, %v620_v39  ;;  %2706 = vrsqrt.f32 %v746_v15  ;;  %2401 = vmatmul.mubr.msk.bf16.gmra.mrb[8].mxu0 %vm88_vm0, %v1645_v60  ;;  %v1619_v50 = vmul.f32 %v4174_v37, %v1043_v59  ;;  %v942_v53 = vmul.f32 %v4196_v4, %v871_v0 }
 0x16c   :  { %v2695_v46 = vpop.eup %2694  ;;  %v747_v51 = vadd.f32 1e-05, %v683_v28  ;;  %v973_v21 = vmul.f32 %v4196_v4, %v902_v13  ;;  %2708 = vrcp.f32 %v4342_v24  ;;  %v1588_v37 = vmul.f32 %v4178_v49, %v1012_v29  ;;  %v5413_v13 = vld [vmem:[#allocation39_spill] sm:$0xff] }
 0x16d   :  { %v778_v12 = vadd.f32 1e-05, %v714_v5  ;;  %v2697_v23 = vpop.eup %2696  ;;  %v903_v26 = vmul.f32 %v2695_v46, %v5409_v27  ;;  %v623_v2 = vpop.xlane.xlu1 %622  ;;  %v1661_v58 = vpack.c.bf16 %v1619_v50, %v1618_v48  ;;  %v1013_v18 = vadd.f32 %v4223_v41, %v942_v53 }
 0x16e   :  { %v530_v11 = vpop.xlane.xlu0 %529  ;;  %v872_v33 = vmul.f32 %v2697_v23, %v5410_v9  ;;  %2710 = vrsqrt.f32 %v747_v51  ;;  %v715_v16 = vmul.f32 0.125, %v623_v2  ;;  %v1044_v30 = vadd.f32 %v4223_v41, %v973_v21  ;;  %v5414_v51 = vld [vmem:[#allocation40_spill] sm:$0xff]  ;;  %v5415_v9 = vld [vmem:[#allocation41_spill] sm:$0xff] }
 0x16f   :  { %v684_v44 = vmul.f32 0.125, %v530_v11  ;;  %2712 = vrsqrt.f32 %v778_v12  ;;  %2433 = vmatmul.mubr.msk.bf16.gmra.mrb[8].mxu1 %vm88_vm0, %v1661_v58  ;;  %v1589_v24 = vmul.f32 %v4182_v38, %v1013_v18  ;;  %v974_v17 = vmul.f32 %v4196_v4, %v903_v26 }
 0x170   :  { %v2699_v55 = vpop.eup %2698  ;;  %v779_v40 = vadd.f32 1e-05, %v715_v16  ;;  %v943_v52 = vmul.f32 %v4196_v4, %v872_v33  ;;  %2714 = vpow2.f32 %v4150_v35  ;;  %v1620_v38 = vmul.f32 %v4186_v43, %v1044_v30 }
 0x171   :  { %v748_v7 = vadd.f32 1e-05, %v684_v44  ;;  %v2701_v49 = vpop.eup %2700  ;;  %v873_v57 = vmul.f32 %v2699_v55, %v5411_v61  ;;  %v533_v22 = vpop.xlane.xlu1 %532  ;;  %v1646_v62 = vpack.c.bf16 %v1589_v24, %v1588_v37  ;;  %v1045_v15 = vadd.f32 %v4223_v41, %v974_v17  ;;  %v5416_v55 = vld [vmem:[#allocation42_spill] sm:$0xff] }
 0x172   :  { %v626_v20 = vpop.xlane.xlu0 %625  ;;  %v2703_v14 = vpop.eup %2702  ;;  %v904_v63 = vmul.f32 %v2701_v49, %v5412_v25  ;;  %2716 = vrsqrt.f32 %v779_v40  ;;  %v685_v36 = vmul.f32 0.125, %v533_v22  ;;  %v1014_v39 = vadd.f32 %v4223_v41, %v943_v52 }
 0x173   :  { %v716_v0 = vmul.f32 0.125, %v626_v20  ;;  %2718 = vrsqrt.f32 %v748_v7  ;;  %2404 = vmatprep.mubr.msk.bf16.mxu0 %vm88_vm0, %v1646_v62  ;;  %v1621_v35 = vmul.f32 %v4191_v32, %v1045_v15  ;;  %v944_v19 = vmul.f32 %v4196_v4, %v873_v57 }
 0x174   :  { %v2705_v60 = vpop.eup %2704  ;;  %v749_v59 = vadd.f32 1e-05, %v685_v36  ;;  %v975_v43 = vmul.f32 %v4196_v4, %v904_v63  ;;  %2720 = vrcp.f32 %v4366_v56  ;;  %v1590_v32 = vmul.f32 %v4200_v10, %v1014_v39  ;;  %v5419_v39 = vld [vmem:[#allocation44_spill] sm:$0xff] }
 0x175   :  { %v780_v48 = vadd.f32 1e-05, %v716_v0  ;;  %v2707_v34 = vpop.eup %2706  ;;  %v905_v28 = vmul.f32 %v2705_v60, %v5413_v13  ;;  %v629_v5 = vpop.xlane.xlu1 %628  ;;  %v1662_v53 = vpack.c.bf16 %v1621_v35, %v1620_v38  ;;  %v1015_v29 = vadd.f32 %v4223_v41, %v944_v19  ;;  %v5417_v38 = vld [vmem:[#allocation43_spill] sm:$0xff]  ;;  %v5418_v35 = vld [vmem:[#allocation60_spill] sm:$0xff] }
 0x176   :  { %v536_v50 = vpop.xlane.xlu0 %535  ;;  %v4411_v46 = vpop.eup %2708  ;;  %v874_v12 = vmul.f32 %v2707_v34, %v5414_v51  ;;  %2722 = vrsqrt.f32 %v749_v59  ;;  %v717_v21 = vmul.f32 0.125, %v629_v5  ;;  %v1046_v26 = vadd.f32 %v4223_v41, %v975_v43  ;;  %v5420_v43 = vld [vmem:[#allocation63_spill] sm:$0xff] }
 0x177   :  { %v686_v23 = vmul.f32 0.125, %v536_v50  ;;  %2724 = vrsqrt.f32 %v780_v48  ;;  %2436 = vmatprep.mubr.msk.bf16.mxu1 %vm88_vm0, %v1662_v53  ;;  %v1591_v56 = vmul.f32 %v4204_v47, %v1015_v29  ;;  %v976_v27 = vmul.f32 %v4196_v4, %v905_v28 }
 0x178   :  { %v2711_v2 = vpop.eup %2710  ;;  %v781_v11 = vadd.f32 1e-05, %v717_v21  ;;  %v945_v10 = vmul.f32 %v4196_v4, %v874_v12  ;;  %v1374_v18 = vadd.f32 1.0, %v2703_v14  ;;  %v1622_v47 = vmul.f32 %v4207_v3, %v1046_v26  ;;  %v5421_v12 = vld [vmem:[#allocation45_spill] sm:$0xff] }
 0x179   :  { %v750_v58 = vadd.f32 1e-05, %v686_v23  ;;  %v2713_v37 = vpop.eup %2712  ;;  %v875_v33 = vmul.f32 %v2711_v2, %v5415_v9  ;;  %v539_v16 = vpop.xlane.xlu1 %538  ;;  %v1647_v24 = vpack.c.bf16 %v1591_v56, %v1590_v32  ;;  %v1047_v17 = vadd.f32 %v4223_v41, %v976_v27  ;;  %v5422_v2 = vld [vmem:[#allocation66_spill] sm:$0xff] }
 0x17a   :  { %v632_v44 = vpop.xlane.xlu0 %631  ;;  %v2715_v30 = vpop.eup %2714  ;;  %v906_v40 = vmul.f32 %v2713_v37, %v5416_v55  ;;  %2726 = vrsqrt.f32 %v781_v11  ;;  %v687_v7 = vmul.f32 0.125, %v539_v16  ;;  %v1016_v57 = vadd.f32 %v4223_v41, %v945_v10  ;;  %v5424_v55 = vld [vmem:[#allocation47_spill] sm:$0xff] }
 0x17b   :  { %v718_v52 = vmul.f32 0.125, %v632_v44  ;;  %2728 = vrsqrt.f32 %v750_v58  ;;  %2405 = vmatmul.mubr.msk.bf16.gmra.mrb[12].mxu0 %vm88_vm0, %v1647_v24  ;;  %v1623_v49 = vmul.f32 %v4210_v1, %v1047_v17  ;;  %v946_v61 = vmul.f32 %v4196_v4, %v875_v33  ;;  %v5423_v58 = vld [vmem:[#allocation46_spill] sm:$0xff] }
 0x17c   :  { %v2717_v22 = vpop.eup %2716  ;;  %v751_v20 = vadd.f32 1e-05, %v687_v7  ;;  %v977_v3 = vmul.f32 %v4196_v4, %v906_v40  ;;  %2730 = vrcp.f32 %v1374_v18  ;;  %v1592_v1 = vmul.f32 %v5418_v35, %v1016_v57  ;;  %v2855_v35 = vld [vmem:[%s5175_s1 + $0xb0] sm:$0xff] }
 0x17d   :  { %v782_v62 = vadd.f32 1e-05, %v718_v52  ;;  %v2719_v15 = vpop.eup %2718  ;;  %v907_v14 = vmul.f32 %v2717_v22, %v5417_v38  ;;  %v635_v25 = vpop.xlane.xlu1 %634  ;;  %v1663_v36 = vpack.c.bf16 %v1623_v49, %v1622_v47  ;;  %v1017_v0 = vadd.f32 %v4223_v41, %v946_v61  ;;  %v5425_v22 = vld [vmem:[#allocation48_spill] sm:$0xff] }
 0x17e   :  { %v542_v63 = vpop.xlane.xlu0 %541  ;;  %v4431_v19 = vpop.eup %2720  ;;  %v876_v60 = vmul.f32 %v2719_v15, %v5419_v39  ;;  %2732 = vrsqrt.f32 %v751_v20  ;;  %v719_v59 = vmul.f32 0.125, %v635_v25  ;;  %v1048_v28 = vadd.f32 %v4223_v41, %v977_v3  ;;  %v5426_v15 = vld [vmem:[#allocation67_spill] sm:$0xff] }
 0x17f   :  { %v688_v48 = vmul.f32 0.125, %v542_v63  ;;  %2734 = vrsqrt.f32 %v782_v62  ;;  %2437 = vmatmul.mubr.msk.bf16.gmra.mrb[12].mxu1 %vm88_vm0, %v1663_v36  ;;  %v1593_v34 = vmul.f32 %v5420_v43, %v1017_v0  ;;  %v978_v13 = vmul.f32 %v4196_v4, %v907_v14 }
 0x180   :  { %v2723_v5 = vpop.eup %2722  ;;  %v783_v50 = vadd.f32 1e-05, %v719_v59  ;;  %v947_v29 = vmul.f32 %v4196_v4, %v876_v60  ;;  %v1375_v32 = vadd.f32 1.0, %v2715_v30  ;;  %v1624_v11 = vmul.f32 %v5422_v2, %v1048_v28  ;;  %v5427_v60 = vld [vmem:[#allocation49_spill] sm:$0xff]  ;;  %v5428_v28 = vld [vmem:[#allocation83_spill] sm:$0xff] }
 0x181   :  { %v752_v53 = vadd.f32 1e-05, %v688_v48  ;;  %v2725_v51 = vpop.eup %2724  ;;  %v877_v21 = vmul.f32 %v2723_v5, %v5421_v12  ;;  %v545_v23 = vpop.xlane.xlu1 %544  ;;  %v1648_v27 = vpack.c.bf16 %v1593_v34, %v1592_v1  ;;  %v1049_v26 = vadd.f32 %v4223_v41, %v978_v13  ;;  %v5429_v5 = vld [vmem:[#allocation50_spill] sm:$0xff]  ;;  %v2856_v2 = vld [vmem:[%s5175_s1 + $0xb8] sm:$0xff] }
 0x182   :  { %v638_v56 = vpop.xlane.xlu0 %637  ;;  %v908_v10 = vmul.f32 %v2725_v51, %v5423_v58  ;;  %2736 = vrsqrt.f32 %v783_v50  ;;  %v689_v18 = vmul.f32 0.125, %v545_v23  ;;  %v1018_v16 = vadd.f32 %v4223_v41, %v947_v29  ;;  %v5431_v51 = vld [vmem:[#allocation8_spill] sm:$0xff] }
 0x183   :  { %v720_v37 = vmul.f32 0.125, %v638_v56  ;;  %2738 = vrsqrt.f32 %v752_v53  ;;  %2408 = vmatprep.mubr.msk.bf16.mxu0 %vm88_vm0, %v1648_v27  ;;  %v1625_v9 = vmul.f32 %v4230_v8, %v1049_v26  ;;  %v948_v33 = vmul.f32 %v4196_v4, %v877_v21 }
 0x184   :  { %v2727_v44 = vpop.eup %2726  ;;  %v753_v24 = vadd.f32 1e-05, %v689_v18  ;;  %v979_v47 = vmul.f32 %v4196_v4, %v908_v10  ;;  %2740 = vrcp.f32 %v1375_v32  ;;  %v1594_v8 = vmul.f32 %v4233_v42, %v1018_v16  ;;  %v5430_v32 = vld [vmem:[#allocation68_spill] sm:$0xff]  ;;  %v5432_v10 = vld [vmem:[#allocation51_spill] sm:$0xff] }
 0x185   :  { %v784_v17 = vadd.f32 1e-05, %v720_v37  ;;  %v2729_v30 = vpop.eup %2728  ;;  %v909_v40 = vmul.f32 %v2727_v44, %v5424_v55  ;;  %v641_v7 = vpop.xlane.xlu1 %640  ;;  %v1664_v49 = vpack.c.bf16 %v1625_v9, %v1624_v11  ;;  %v1019_v61 = vadd.f32 %v4223_v41, %v948_v33 }
 0x186   :  { %v548_v52 = vpop.xlane.xlu0 %547  ;;  %v2731_v57 = vpop.eup %2730  ;;  %v878_v20 = vmul.f32 %v2729_v30, %v5425_v22  ;;  %2742 = vrsqrt.f32 %v753_v24  ;;  %v721_v62 = vmul.f32 0.125, %v641_v7  ;;  %v1050_v25 = vadd.f32 %v4223_v41, %v979_v47  ;;  %v2857_v22 = vld [vmem:[%s5175_s1 + $0x1b0] sm:$0xff] }
 0x187   :  { %v690_v3 = vmul.f32 0.125, %v548_v52  ;;  %2744 = vrsqrt.f32 %v784_v17  ;;  %2440 = vmatprep.mubr.msk.bf16.mxu1 %vm88_vm0, %v1664_v49  ;;  %v1595_v38 = vmul.f32 %v5426_v15, %v1019_v61  ;;  %v980_v14 = vmul.f32 %v4196_v4, %v909_v40  ;;  %v5433_v17 = vld [vmem:[#allocation52_spill] sm:$0xff] }
 0x188   :  { %v2733_v63 = vpop.eup %2732  ;;  %v785_v36 = vadd.f32 1e-05, %v721_v62  ;;  %v949_v42 = vmul.f32 %v4196_v4, %v878_v20  ;;  %v4461_v1 = vmul.f32 %v2855_v35, %v4411_v46  ;;  %2746 = vpow2.f32 %v5428_v28  ;;  %v5434_v62 = vld [vmem:[#allocation84_spill] sm:$0xff] }
 0x189   :  { %v754_v0 = vadd.f32 1e-05, %v690_v3  ;;  %v2735_v39 = vpop.eup %2734  ;;  %v879_v59 = vmul.f32 %v2733_v63, %v5427_v60  ;;  %v551_v48 = vpop.xlane.xlu1 %550  ;;  %v1649_v34 = vpack.c.bf16 %v1595_v38, %v1594_v8  ;;  %v1051_v13 = vadd.f32 %v4223_v41, %v980_v14  ;;  %v5435_v3 = vld [vmem:[#allocation53_spill] sm:$0xff]  ;;  %v5436_v63 = vld [vmem:[#allocation54_spill] sm:$0xff] }
 0x18a   :  { %v644_v43 = vpop.xlane.xlu0 %643  ;;  %v910_v50 = vmul.f32 %v2735_v39, %v5429_v5  ;;  %2748 = vrsqrt.f32 %v785_v36  ;;  %v691_v53 = vmul.f32 0.125, %v551_v48  ;;  %v1626_v46 = vmul.f32 %v5430_v32, %v1050_v25  ;;  %v4501_v60 = vld [vmem:[%s5177_s3] ss:$0 sm:$0xff] }
 0x18b   :  { %v722_v29 = vmul.f32 0.125, %v644_v43  ;;  %2409 = vmatmul.mubr.msk.bf16.gmra.mrb[16].mxu0 %vm88_vm0, %v1649_v34  ;;  %v1627_v12 = vmul.f32 %v5431_v51, %v1051_v13  ;;  %v950_v21 = vmul.f32 %v4196_v4, %v879_v59  ;;  %v1020_v23 = vadd.f32 %v4223_v41, %v949_v42 }
 0x18c   :  { %v2737_v56 = vpop.eup %2736  ;;  %2750 = vrsqrt.f32 %v754_v0  ;;  %v755_v27 = vadd.f32 1e-05, %v691_v53  ;;  %v981_v26 = vmul.f32 %v4196_v4, %v910_v50  ;;  %v4477_v11 = vmul.f32 %v2856_v2, %v4431_v19 }
 0x18d   :  { %v2739_v58 = vpop.eup %2738  ;;  %v911_v18 = vmul.f32 %v2737_v56, %v5432_v10  ;;  %v786_v37 = vadd.f32 1e-05, %v722_v29  ;;  %v647_v9 = vpop.xlane.xlu1 %646  ;;  %v1665_v16 = vpack.c.bf16 %v1627_v12, %v1626_v46  ;;  %v1021_v44 = vadd.f32 %v4223_v41, %v950_v21  ;;  %v4519_v56 = vld [vmem:[%s5175_s1 + $0x1c0] sm:$0xff] }
 0x18e   :  { %v554_v33 = vpop.xlane.xlu0 %553  ;;  %v2741_v24 = vpop.eup %2740  ;;  %v880_v47 = vmul.f32 %v2739_v58, %v5433_v17  ;;  %v723_v30 = vmul.f32 0.125, %v647_v9  ;;  %v1596_v40 = vmul.f32 %v4295_v31, %v1020_v23  ;;  %2752 = vrsqrt.f32 %v755_v27 }
 0x18f   :  { %v692_v55 = vmul.f32 0.125, %v554_v33  ;;  %2441 = vmatmul.mubr.msk.bf16.gmra.mrb[16].mxu1 %vm88_vm0, %v1665_v16  ;;  %v1597_v19 = vmul.f32 %v4318_v54, %v1021_v44  ;;  %v982_v7 = vmul.f32 %v4196_v4, %v911_v18  ;;  %v1052_v52 = vadd.f32 %v4223_v41, %v981_v26 }
 0x190   :  { %v2743_v49 = vpop.eup %2742  ;;  %v787_v61 = vadd.f32 1e-05, %v723_v30  ;;  %v951_v8 = vmul.f32 %v4196_v4, %v880_v47  ;;  %v1566_v20 = vmul.f32 %v2857_v22, %v2731_v57  ;;  %2754 = vpow2.f32 %v5434_v62 }
 0x191   :  { %v2745_v31 = vpop.eup %2744  ;;  %v881_v15 = vmul.f32 %v2743_v49, %v5435_v3  ;;  %2756 = vrsqrt.f32 %v786_v37  ;;  %v557_v54 = vpop.xlane.xlu1 %556  ;;  %v1650_v14 = vpack.c.bf16 %v1597_v19, %v1596_v40  ;;  %v1053_v25 = vadd.f32 %v4223_v41, %v982_v7  ;;  %v4539_v49 = vld [vmem:[%s5175_s1 + $0xd0] sm:$0xff] }
 0x192   :  { %v650_v38 = vpop.xlane.xlu0 %649  ;;  %v912_v36 = vmul.f32 %v2745_v31, %v5436_v63  ;;  %v756_v0 = vadd.f32 1e-05, %v692_v55  ;;  %v693_v4 = vmul.f32 0.125, %v557_v54  ;;  %v2747_v35 = vpop.eup %2746  ;;  %v1628_v57 = vmul.f32 %v4330_v45, %v1052_v52  ;;  %v2859_v45 = vld [vmem:[%s5175_s1 + $0x1b8] sm:$0xff]  ;;  %v4556_v63 = vld [vmem:[%s5175_s1 + $0x1d0] sm:$0xff] }
 0x193   :  { %v724_v42 = vmul.f32 0.125, %v650_v38  ;;  %2412 = vmatprep.mubr.msk.bf16.mxu0 %vm88_vm0, %v1650_v14  ;;  %v1629_v39 = vmul.f32 %v4354_v6, %v1053_v25  ;;  %v952_v59 = vmul.f32 %v4501_v60, %v881_v15  ;;  %v1022_v48 = vadd.f32 %v4223_v41, %v951_v8  ;;  %v5437_v6 = vld [vmem:[#allocation55_spill] sm:$0xff]  ;;  %v4513_v41 = vld [vmem:[%s5178_s4] ss:$0 sm:$0xff]  ;;  %v4547_v15 = vld [vmem:[%s5175_s1 + $0xd8] sm:$0xff] }
 0x194   :  { %v2749_v43 = vpop.eup %2748  ;;  %2758 = vrsqrt.f32 %v787_v61  ;;  %v757_v34 = vadd.f32 1e-05, %v693_v4  ;;  %v983_v13 = vmul.f32 %v4501_v60, %v912_v36  ;;  %v1567_v28 = vmul.f32 %v2859_v45, %v2741_v24  ;;  %v5438_v36 = vld [vmem:[#allocation56_spill] sm:$0xff]  ;;  %v5439_v4 = vld [vmem:[#allocation57_spill] sm:$0xff] }
 0x195   :  { %v913_v5 = vmul.f32 %v2749_v43, %v5437_v6  ;;  %v788_v50 = vadd.f32 1e-05, %v724_v42  ;;  %v653_v53 = vpop.xlane.xlu1 %652  ;;  %v1666_v32 = vpack.c.bf16 %v1629_v39, %v1628_v57  ;;  %v1023_v46 = vadd.f32 %v4513_v41, %v952_v59 }
 0x196   :  { %v560_v29 = vpop.xlane.xlu0 %559  ;;  %v2751_v51 = vpop.eup %2750  ;;  %2760 = vrsqrt.f32 %v756_v0  ;;  %v725_v12 = vmul.f32 0.125, %v653_v53  ;;  %v1344_v23 = vadd.f32 1.0, %v2747_v35  ;;  %v1598_v27 = vmul.f32 %v4461_v1, %v1022_v48 }
 0x197   :  { %v694_v21 = vmul.f32 0.125, %v560_v29  ;;  %2444 = vmatprep.mubr.msk.bf16.mxu1 %vm88_vm0, %v1666_v32  ;;  %v1599_v26 = vmul.f32 %v4477_v11, %v1023_v46  ;;  %v984_v2 = vmul.f32 %v4501_v60, %v913_v5  ;;  %v1054_v58 = vadd.f32 %v4513_v41, %v983_v13  ;;  %v4531_v11 = vld [vmem:[%s5175_s1 + $0x1c8] sm:$0xff] }
 0x198   :  { %2762 = vrsqrt.f32 %v757_v34  ;;  %v789_v10 = vadd.f32 1e-05, %v725_v12  ;;  %v2753_v37 = vpop.eup %2752  ;;  %v2317_v24 = vmul.f32 -1.442695, %v4519_v56  ;;  %v2318_v62 = vmul.f32 -1.442695, %v4531_v11 }
 0x199   :  { %v758_v18 = vadd.f32 1e-05, %v694_v21  ;;  %2764 = vrsqrt.f32 %v788_v50  ;;  %v563_v9 = vpop.xlane.xlu1 %562  ;;  %v1651_v16 = vpack.c.bf16 %v1599_v26, %v1598_v27  ;;  %v1055_v44 = vadd.f32 %v4513_v41, %v984_v2  ;;  %v4566_v34 = vld [vmem:[%s5175_s1 + $0x1d8] sm:$0xff]  ;;  %v4574_v50 = vld [vmem:[%s5175_s1 + $0xe0] sm:$0xff]  ;;  %v4584_v12 = vld [vmem:[%s5175_s1 + $0xe8] sm:$0xff] }
 0x19a   :  { %v656_v33 = vpop.xlane.xlu0 %655  ;;  %v2755_v17 = vpop.eup %2754  ;;  %v695_v1 = vmul.f32 0.125, %v563_v9  ;;  %2766 = vrcp.f32 %v1344_v23  ;;  %v1630_v55 = vmul.f32 %v1566_v20, %v1054_v58  ;;  %v2287_v54 = vmul.f32 -1.442695, %v4539_v49 }
 0x19b   :  { %v726_v47 = vmul.f32 0.125, %v656_v33  ;;  %v4533_v30 = vpop.eup %2756  ;;  %2768 = vrsqrt.f32 %v789_v10  ;;  %2413 = vmatmul.mubr.msk.bf16.gmra.mrb[20].mxu0 %vm88_vm0, %v1651_v16  ;;  %v1631_v40 = vmul.f32 %v1567_v28, %v1055_v44  ;;  %v1345_v52 = vadd.f32 1.0, %v2755_v17  ;;  %v2861_v44 = vld [vmem:[%s5175_s1 + $0xc0] sm:$0xff]  ;;  %v4607_v17 = vld [vmem:[%s5175_s1 + $0x1e8] sm:$0xff] }
 0x19c   :  { %2770 = vrsqrt.f32 %v758_v18  ;;  %v759_v19 = vadd.f32 1e-05, %v695_v1  ;;  %v882_v0 = vmul.f32 %v2751_v51, %v5438_v36  ;;  %v883_v42 = vmul.f32 %v2753_v37, %v5439_v4  ;;  %v4595_v37 = vld [vmem:[%s5175_s1 + $0x1e0] sm:$0xff]  ;;  %v5441_v4 = vld [vmem:[#allocation3_spill] sm:$0xff] }
 0x19d   :  { %v790_v7 = vadd.f32 1e-05, %v726_v47  ;;  %v659_v61 = vpop.xlane.xlu1 %658  ;;  %v1667_v22 = vpack.c.bf16 %v1631_v40, %v1630_v55  ;;  %2772 = vpow2.f32 %v2317_v24  ;;  %v2288_v39 = vmul.f32 -1.442695, %v4547_v15  ;;  %v2862_v55 = vld [vmem:[%s5175_s1 + $0xc8] sm:$0xff] }
 0x19e   :  { %v566_v8 = vpop.xlane.xlu0 %565  ;;  %v4542_v31 = vpop.eup %2758  ;;  %2774 = vrsqrt.f32 %v759_v19  ;;  %v727_v20 = vmul.f32 0.125, %v659_v61  ;;  %v2319_v45 = vmul.f32 -1.442695, %v4556_v63  ;;  %v953_v29 = vmul.f32 %v4501_v60, %v882_v0 }
 0x19f   :  { %v696_v3 = vmul.f32 0.125, %v566_v8  ;;  %2776 = vrsqrt.f32 %v790_v7  ;;  %2445 = vmatmul.mubr.msk.bf16.gmra.mrb[20].mxu1 %vm88_vm0, %v1667_v22  ;;  %v954_v32 = vmul.f32 %v4501_v60, %v883_v42  ;;  %v2320_v51 = vmul.f32 -1.442695, %v4566_v34  ;;  %v4616_v7 = vld [vmem:[%s5175_s1 + $0xf0] sm:$0xff] }
 0x1a0   :  { %v4551_v38 = vpop.eup %2760  ;;  %v791_v14 = vadd.f32 1e-05, %v727_v20  ;;  %2778 = vrcp.f32 %v1345_v52  ;;  %v2289_v26 = vmul.f32 -1.442695, %v4574_v50  ;;  %v2290_v18 = vmul.f32 -1.442695, %v4584_v12 }
 0x1a1   :  { %v760_v25 = vadd.f32 1e-05, %v696_v3  ;;  %v569_v35 = vpop.xlane.xlu1 %568  ;;  %2780 = vpow2.f32 %v2318_v62  ;;  %v1024_v33 = vadd.f32 %v4513_v41, %v953_v29  ;;  %v1025_v16 = vadd.f32 %v4513_v41, %v954_v32  ;;  %v4626_v3 = vld [vmem:[%s5175_s1 + $0xf8] sm:$0xff] }
 0x1a2   :  { %v662_v57 = vpop.xlane.xlu0 %661  ;;  %v4561_v59 = vpop.eup %2762  ;;  %2782 = vrsqrt.f32 %v791_v14  ;;  %v697_v48 = vmul.f32 0.125, %v569_v35  ;;  %v2321_v19 = vmul.f32 -1.442695, %v4595_v37  ;;  %v2322_v8 = vmul.f32 -1.442695, %v4607_v17  ;;  %v5440_v14 = vld [vmem:[#allocation2_spill] sm:$0xff] }
 0x1a3   :  { %v728_v43 = vmul.f32 0.125, %v662_v57  ;;  %v4568_v13 = vpop.eup %2764  ;;  %2784 = vrsqrt.f32 %v760_v25  ;;  %v914_v25 = vmul.f32 %v4533_v30, %v5440_v14  ;;  %v2291_v36 = vmul.f32 -1.442695, %v4616_v7  ;;  %v4639_v30 = vld [vmem:[%s5175_s1 + $0x1f0] sm:$0xff]  ;;  %v5443_v29 = vld [vmem:[#allocation5_spill] sm:$0xff]  ;;  %v5446_v14 = vld [vmem:[#allocation58_spill] sm:$0xff] }
 0x1a4   :  { %v2767_v28 = vpop.eup %2766  ;;  %v761_v6 = vadd.f32 1e-05, %v697_v48  ;;  %2786 = vpow2.f32 %v2287_v54  ;;  %v915_v42 = vmul.f32 %v4542_v31, %v5441_v4  ;;  %v4649_v31 = vld [vmem:[%s5175_s1 + $0x1f8] sm:$0xff]  ;;  %v885_v32 = vmul.f32 %v4561_v59, %v5443_v29 }
 0x1a5   :  { %v792_v5 = vadd.f32 1e-05, %v728_v43  ;;  %v4576_v53 = vpop.eup %2768  ;;  %v665_v46 = vpop.xlane.xlu1 %664  ;;  %2788 = vpow2.f32 %v2288_v39  ;;  %v1536_v24 = vmul.f32 %v2861_v44, %v2767_v28  ;;  %v2292_v43 = vmul.f32 -1.442695, %v4626_v3  ;;  %v5442_v28 = vld [vmem:[#allocation4_spill] sm:$0xff] }
 0x1a6   :  { %v4586_v21 = vpop.eup %2770  ;;  %2790 = vrsqrt.f32 %v761_v6  ;;  %v729_v23 = vmul.f32 0.125, %v665_v46  ;;  %v884_v6 = vmul.f32 %v4551_v38, %v5442_v28  ;;  %v985_v46 = vmul.f32 %v4501_v60, %v914_v25 }
 0x1a7   :  { %v2773_v27 = vpop.eup %2772  ;;  %2792 = vrsqrt.f32 %v792_v5  ;;  %v1600_v62 = vmul.f32 %v1536_v24, %v1024_v33  ;;  %v2323_v38 = vmul.f32 -1.442695, %v4639_v30  ;;  %v2324_v33 = vmul.f32 -1.442695, %v4649_v31  ;;  %v5445_v24 = vld [vmem:[#allocation7_spill] sm:$0xff] }
 0x1a8   :  { %v4589_v2 = vpop.eup %2774  ;;  %v793_v58 = vadd.f32 1e-05, %v729_v23  ;;  %v1376_v10 = vadd.f32 1.0, %v2773_v27  ;;  %2794 = vpow2.f32 %v2319_v45  ;;  %v986_v23 = vmul.f32 %v4501_v60, %v915_v42 }
 0x1a9   :  { %v4597_v9 = vpop.eup %2776  ;;  %2796 = vpow2.f32 %v2320_v51 }
 0x1aa   :  { %v2779_v1 = vpop.eup %2778  ;;  %2798 = vrsqrt.f32 %v793_v58  ;;  %v5444_v58 = vld [vmem:[#allocation6_spill] sm:$0xff] }
 0x1ab   :  { %v2781_v47 = vpop.eup %2780  ;;  %v1537_v40 = vmul.f32 %v2862_v55, %v2779_v1  ;;  %2800 = vrcp.f32 %v1376_v10  ;;  %v916_v10 = vmul.f32 %v4568_v13, %v5444_v58  ;;  %v917_v1 = vmul.f32 %v4576_v53, %v5445_v24  ;;  %v5450_v24 = vld [vmem:[#allocation64_spill] sm:$0xff] }
 0x1ac   :  { %v4618_v52 = vpop.eup %2782  ;;  %v1377_v61 = vadd.f32 1.0, %v2781_v47  ;;  %2802 = vpow2.f32 %v2289_v26  ;;  %v1056_v47 = vadd.f32 %v4513_v41, %v985_v46  ;;  %v956_v55 = vmul.f32 %v4501_v60, %v885_v32 }
 0x1ad   :  { %v4621_v22 = vpop.eup %2784  ;;  %v1601_v20 = vmul.f32 %v1537_v40, %v1025_v16  ;;  %2804 = vpow2.f32 %v2290_v18  ;;  %v955_v16 = vmul.f32 %v4501_v60, %v884_v6  ;;  %v1057_v13 = vadd.f32 %v4513_v41, %v986_v23 }
 0x1ae   :  { %v2787_v54 = vpop.eup %2786  ;;  %2806 = vrcp.f32 %v1377_v61  ;;  %v886_v53 = vmul.f32 %v4586_v21, %v5446_v14  ;;  %v1027_v4 = vadd.f32 %v4513_v41, %v956_v55 }
 0x1af   :  { %v2789_v0 = vpop.eup %2788  ;;  %v1652_v35 = vpack.c.bf16 %v1601_v20, %v1600_v62  ;;  %v1346_v57 = vadd.f32 1.0, %v2787_v54  ;;  %2808 = vpow2.f32 %v2321_v19  ;;  %v987_v62 = vmul.f32 %v4501_v60, %v916_v10 }
 0x1b0   :  { %v4633_v39 = vpop.eup %2790  ;;  %v1347_v48 = vadd.f32 1.0, %v2789_v0  ;;  %2810 = vpow2.f32 %v2322_v8 }
 0x1b1   :  { %v4641_v45 = vpop.eup %2792  ;;  %2416 = vmatprep.mubr.msk.bf16.mxu0 %vm88_vm0, %v1652_v35  ;;  %2812 = vrcp.f32 %v1346_v57  ;;  %v5447_v57 = vld [vmem:[#allocation59_spill] sm:$0xff] }
 0x1b2   :  { %v2795_v5 = vpop.eup %2794  ;;  %2814 = vrcp.f32 %v1347_v48  ;;  %v887_v48 = vmul.f32 %v4589_v2, %v5447_v57 }
 0x1b3   :  { %v2797_v51 = vpop.eup %2796  ;;  %v1378_v27 = vadd.f32 1.0, %v2795_v5  ;;  %2816 = vpow2.f32 %v2291_v36  ;;  %v1026_v36 = vadd.f32 %v4513_v41, %v955_v16  ;;  %v1058_v5 = vadd.f32 %v4513_v41, %v987_v62 }
 0x1b4   :  { %v4656_v26 = vpop.eup %2798  ;;  %v1379_v18 = vadd.f32 1.0, %v2797_v51  ;;  %2818 = vpow2.f32 %v2292_v43  ;;  %v957_v51 = vmul.f32 %v4501_v60, %v886_v53 }
 0x1b5   :  { %v2801_v59 = vpop.eup %2800  ;;  %2820 = vrcp.f32 %v1378_v27  ;;  %v5448_v27 = vld [vmem:[#allocation61_spill] sm:$0xff] }
 0x1b6   :  { %v2803_v44 = vpop.eup %2802  ;;  %2822 = vrcp.f32 %v1379_v18  ;;  %v1568_v19 = vmul.f32 %v2801_v59, %v4519_v56  ;;  %v988_v56 = vmul.f32 %v4501_v60, %v917_v1  ;;  %v918_v2 = vmul.f32 %v4597_v9, %v5448_v27 }
 0x1b7   :  { %v2805_v40 = vpop.eup %2804  ;;  %v1348_v61 = vadd.f32 1.0, %v2803_v44  ;;  %2824 = vpow2.f32 %v2323_v38  ;;  %v5449_v38 = vld [vmem:[#allocation62_spill] sm:$0xff]  ;;  %v888_v1 = vmul.f32 %v4621_v22, %v5450_v24 }
 0x1b8   :  { %v2807_v8 = vpop.eup %2806  ;;  %v1349_v20 = vadd.f32 1.0, %v2805_v40  ;;  %2826 = vpow2.f32 %v2324_v33  ;;  %v1632_v43 = vmul.f32 %v1568_v19, %v1056_v47  ;;  %v919_v58 = vmul.f32 %v4618_v52, %v5449_v38  ;;  %v5451_v19 = vld [vmem:[#allocation65_spill] sm:$0xff] }
 0x1b9   :  { %v2809_v54 = vpop.eup %2808  ;;  %v1569_v25 = vmul.f32 %v2807_v8, %v4531_v11  ;;  %2828 = vrcp.f32 %v1348_v61  ;;  %v1059_v10 = vadd.f32 %v4513_v41, %v988_v56  ;;  %v1028_v40 = vadd.f32 %v4513_v41, %v957_v51 }
 0x1ba   :  { %v2811_v0 = vpop.eup %2810  ;;  %2830 = vrcp.f32 %v1349_v20  ;;  %v1380_v42 = vadd.f32 1.0, %v2809_v54  ;;  %v889_v61 = vmul.f32 %v4633_v39, %v5451_v19  ;;  %v989_v8 = vmul.f32 %v4501_v60, %v918_v2  ;;  %v5452_v39 = vld [vmem:[#allocation69_spill] sm:$0xff]  ;;  %v1704_v19 = vld [vmem:[%s5179_s2 + $0x100] sm:$0xff] }
 0x1bb   :  { %v2813_v35 = vpop.eup %2812  ;;  %v1633_v28 = vmul.f32 %v1569_v25, %v1057_v13  ;;  %v1381_v6 = vadd.f32 1.0, %v2811_v0  ;;  %v990_v62 = vmul.f32 %v4501_v60, %v919_v58  ;;  %v920_v0 = vmul.f32 %v4641_v45, %v5452_v39  ;;  %v1676_v39 = vld [vmem:[%s5179_s2 + $0x20] sm:$0xff] }
 0x1bc   :  { %v2815_v21 = vpop.eup %2814  ;;  %v1538_v11 = vmul.f32 %v2813_v35, %v4539_v49  ;;  %2832 = vrcp.f32 %v1380_v42  ;;  %v5453_v35 = vld [vmem:[#allocation70_spill] sm:$0xff] }
 0x1bd   :  { %v2817_v29 = vpop.eup %2816  ;;  %v1668_v32 = vpack.c.bf16 %v1633_v28, %v1632_v43  ;;  %v1539_v46 = vmul.f32 %v2815_v21, %v4547_v15  ;;  %2834 = vrcp.f32 %v1381_v6  ;;  %v958_v15 = vmul.f32 %v4501_v60, %v887_v48 }
 0x1be   :  { %v2819_v23 = vpop.eup %2818  ;;  %v1350_v49 = vadd.f32 1.0, %v2817_v29  ;;  %v1602_v33 = vmul.f32 %v1538_v11, %v1026_v36  ;;  %v959_v36 = vmul.f32 %v4501_v60, %v888_v1  ;;  %v921_v57 = vmul.f32 %v4656_v26, %v5453_v35  ;;  %v1677_v35 = vld [vmem:[%s5179_s2 + $0x28] sm:$0xff] }
 0x1bf   :  { %v2821_v18 = vpop.eup %2820  ;;  %2448 = vmatprep.mubr.msk.bf16.mxu1 %vm88_vm0, %v1668_v32  ;;  %v1603_v59 = vmul.f32 %v1539_v46, %v1027_v4  ;;  %v1351_v16 = vadd.f32 1.0, %v2819_v23  ;;  %v1029_v14 = vadd.f32 %v4513_v41, %v958_v15  ;;  %v1060_v48 = vadd.f32 %v4513_v41, %v989_v8 }
 0x1c0   :  { %v2823_v44 = vpop.eup %2822  ;;  %v1570_v9 = vmul.f32 %v2821_v18, %v4556_v63  ;;  %2836 = vrcp.f32 %v1350_v49  ;;  %v1061_v43 = vadd.f32 %v4513_v41, %v990_v62  ;;  %v991_v26 = vmul.f32 %v4501_v60, %v920_v0  ;;  %v1707_v62 = vld [vmem:[%s5179_s2 + $0x118] sm:$0xff] }
 0x1c1   :  { %v2825_v47 = vpop.eup %2824  ;;  %v1653_v52 = vpack.c.bf16 %v1603_v59, %v1602_v33  ;;  %v1571_v55 = vmul.f32 %v2823_v44, %v4566_v34  ;;  %2838 = vrcp.f32 %v1351_v16  ;;  %v992_v23 = vmul.f32 %v4501_v60, %v921_v57  ;;  %v1674_v44 = vld [vmem:[%s5179_s2 + $0x10] sm:$0xff] }
 0x1c2   :  { %v2827_v13 = vpop.eup %2826  ;;  %v1382_v20 = vadd.f32 1.0, %v2825_v47  ;;  %v1634_v63 = vmul.f32 %v1570_v9, %v1058_v5  ;;  %v1030_v5 = vadd.f32 %v4513_v41, %v959_v36  ;;  %v1062_v49 = vadd.f32 %v4513_v41, %v991_v26  ;;  %v1673_v9 = vld [vmem:[%s5179_s2 + $0x8] sm:$0xff]  ;;  %v1678_v36 = vld [vmem:[%s5179_s2 + $0x30] sm:$0xff] }
 0x1c3   :  { %v2829_v22 = vpop.eup %2828  ;;  %2417 = vmatmul.mubr.msk.bf16.gmra.mrb[24].mxu0 %vm88_vm0, %v1653_v52  ;;  %v1635_v54 = vmul.f32 %v1571_v55, %v1059_v10  ;;  %v1383_v34 = vadd.f32 1.0, %v2827_v13  ;;  %v1063_v18 = vadd.f32 %v4513_v41, %v992_v23  ;;  %v1706_v55 = vld [vmem:[%s5179_s2 + $0x110] sm:$0xff]  ;;  %v1709_v26 = vld [vmem:[%s5179_s2 + $0x128] sm:$0xff] }
 0x1c4   :  { %v2831_v53 = vpop.eup %2830  ;;  %v1540_v25 = vmul.f32 %v2829_v22, %v4574_v50  ;;  %2840 = vrcp.f32 %v1382_v20  ;;  %v960_v50 = vmul.f32 %v4501_v60, %v889_v61 }
 0x1c5   :  { %v1669_v4 = vpack.c.bf16 %v1635_v54, %v1634_v63  ;;  %v1541_v56 = vmul.f32 %v2831_v53, %v4584_v12  ;;  %2842 = vrcp.f32 %v1383_v34  ;;  %v1705_v63 = vld [vmem:[%s5179_s2 + $0x108] sm:$0xff] }
 0x1c6   :  { %v2833_v42 = vpop.eup %2832  ;;  %v1604_v6 = vmul.f32 %v1540_v25, %v1028_v40  ;;  %v1031_v51 = vadd.f32 %v4513_v41, %v960_v50  ;;  %v1672_v41 = vld [vmem:[%s5179_s2] sm:$0xff] }
 0x1c7   :  { %v2835_v28 = vpop.eup %2834  ;;  %2449 = vmatmul.mubr.msk.bf16.gmra.mrb[24].mxu1 %vm88_vm0, %v1669_v4  ;;  %v1605_v21 = vmul.f32 %v1541_v56, %v1029_v14  ;;  %v1572_v45 = vmul.f32 %v2833_v42, %v4595_v37  ;;  %v1679_v4 = vld [vmem:[%s5179_s2 + $0x38] sm:$0xff] }
 0x1c8   :  { %v1573_v12 = vmul.f32 %v2835_v28, %v4607_v17 }
 0x1c9   :  { %v1654_v11 = vpack.c.bf16 %v1605_v21, %v1604_v6  ;;  %v1636_v32 = vmul.f32 %v1572_v45, %v1060_v48  ;;  %v1708_v6 = vld [vmem:[%s5179_s2 + $0x120] sm:$0xff] }
 0x1ca   :  { %v2837_v29 = vpop.eup %2836  ;;  %v1637_v46 = vmul.f32 %v1573_v12, %v1061_v43  ;;  %v1710_v43 = vld [vmem:[%s5179_s2 + $0x130] sm:$0xff]  ;;  %v1711_v12 = vld [vmem:[%s5179_s2 + $0x138] sm:$0xff] }
 0x1cb   :  { %v2839_v27 = vpop.eup %2838  ;;  %2420 = vmatprep.mubr.msk.bf16.mxu0 %vm88_vm0, %v1654_v11  ;;  %v1542_v2 = vmul.f32 %v2837_v29, %v4616_v7 }
 0x1cc   :  { %v1670_v37 = vpack.c.bf16 %v1637_v46, %v1636_v32  ;;  %v1543_v17 = vmul.f32 %v2839_v27, %v4626_v3  ;;  %v1682_v27 = vld [vmem:[%s5179_s2 + $0x50] sm:$0xff] }
 0x1cd   :  { %v1606_v58 = vmul.f32 %v1542_v2, %v1030_v5  ;;  %v1680_v2 = vld [vmem:[%s5179_s2 + $0x40] sm:$0xff] }
 0x1ce   :  { %v2841_v38 = vpop.eup %2840  ;;  %2452 = vmatprep.mubr.msk.bf16.mxu1 %vm88_vm0, %v1670_v37  ;;  %v1607_v10 = vmul.f32 %v1543_v17, %v1031_v51  ;;  %v1683_v17 = vld [vmem:[%s5179_s2 + $0x58] sm:$0xff] }
 0x1cf   :  { %v2843_v33 = vpop.eup %2842  ;;  %v1574_v60 = vmul.f32 %v2841_v38, %v4639_v30  ;;  %v1675_v30 = vld [vmem:[%s5179_s2 + $0x18] sm:$0xff] }
 0x1d0   :  { %v1655_v59 = vpack.c.bf16 %v1607_v10, %v1606_v58  ;;  %v1575_v15 = vmul.f32 %v2843_v33, %v4649_v31  ;;  %v1681_v10 = vld [vmem:[%s5179_s2 + $0x48] sm:$0xff]  ;;  %v1714_v33 = vld [vmem:[%s5179_s2 + $0x150] sm:$0xff] }
 0x1d1   :  { %v1638_v7 = vmul.f32 %v1574_v60, %v1062_v49 }
 0x1d2   :  { %2421 = vmatmul.mubr.msk.bf16.gmra.mrb[28].mxu0 %vm88_vm0, %v1655_v59  ;;  %v1639_v16 = vmul.f32 %v1575_v15, %v1063_v18  ;;  %v1712_v15 = vld [vmem:[%s5179_s2 + $0x140] sm:$0xff] }
 0x1d4   :  { %v1671_v3 = vpack.c.bf16 %v1639_v16, %v1638_v7 }
 0x1d6   :  { %2453 = vmatmul.mubr.msk.bf16.gmra.mrb[28].mxu1 %vm88_vm0, %v1671_v3  ;;  %v1715_v3 = vld [vmem:[%s5179_s2 + $0x158] sm:$0xff] }
 0x21e   :  { %v2394_v24 = vpop.f32.mrb[0].mxu0 }
 0x21f   :  { %v2128_v31 = vadd.f32 %v2394_v24, %v1674_v44  ;;  %v1871_v1 = vpop.f32.mrb[1].mxu0  ;;  %v1713_v24 = vld [vmem:[%s5179_s2 + $0x148] sm:$0xff] }
 0x220   :  { %v2126_v47 = vadd.f32 %v1871_v1, %v1672_v41  ;;  %v2395_v52 = vpop.f32.mrb[2].mxu0 }
 0x221   :  { %2193 = vst.msk [vmem:[%s5180_s6 + $0x10] sm:$0xff] %vm2190_vm2, %v2128_v31  ;;  %v2129_v40 = vadd.f32 %v2395_v52, %v1675_v30  ;;  %v1874_v13 = vpop.f32.mrb[3].mxu0  ;;  %v1686_v52 = vld [vmem:[%s5179_s2 + $0x70] sm:$0xff] }
 0x222   :  { %2191 = vst.msk [vmem:[%s5180_s6] sm:$0xff] %vm2190_vm2, %v2126_v47  ;;  %v2127_v61 = vadd.f32 %v1874_v13, %v1673_v9  ;;  %v2426_v8 = vpop.f32.mrb[0].mxu1  ;;  %v1687_v13 = vld [vmem:[%s5179_s2 + $0x78] sm:$0xff] }
 0x223   :  { %2194 = vst.msk [vmem:[%s5180_s6 + $0x18] sm:$0xff] %vm2190_vm2, %v2129_v40  ;;  %v2160_v20 = vadd.f32 %v2426_v8, %v1706_v55  ;;  %v1999_v22 = vpop.f32.mrb[1].mxu1  ;;  %v1684_v55 = vld [vmem:[%s5179_s2 + $0x60] sm:$0xff]  ;;  %v1685_v8 = vld [vmem:[%s5179_s2 + $0x68] sm:$0xff] }
 0x224   :  { %2192 = vst.msk [vmem:[%s5180_s6 + $0x8] sm:$0xff] %vm2190_vm2, %v2127_v61  ;;  %v2158_v54 = vadd.f32 %v1999_v22, %v1704_v19  ;;  %v2427_v14 = vpop.f32.mrb[2].mxu1  ;;  %v1718_v22 = vld [vmem:[%s5179_s2 + $0x170] sm:$0xff] }
 0x225   :  { %2225 = vst.msk [vmem:[%s5180_s6 + $0x110] sm:$0xff] %vm2190_vm2, %v2160_v20  ;;  %v2161_v34 = vadd.f32 %v2427_v14, %v1707_v62  ;;  %v2002_v53 = vpop.f32.mrb[3].mxu1  ;;  %v1716_v14 = vld [vmem:[%s5179_s2 + $0x160] sm:$0xff] }
 0x226   :  { %2223 = vst.msk [vmem:[%s5180_s6 + $0x100] sm:$0xff] %vm2190_vm2, %v2158_v54  ;;  %v2159_v25 = vadd.f32 %v2002_v53, %v1705_v63 }
 0x227   :  { %2226 = vst.msk [vmem:[%s5180_s6 + $0x118] sm:$0xff] %vm2190_vm2, %v2161_v34 }
 0x228   :  { %2224 = vst.msk [vmem:[%s5180_s6 + $0x108] sm:$0xff] %vm2190_vm2, %v2159_v25  ;;  %v1719_v25 = vld [vmem:[%s5179_s2 + $0x178] sm:$0xff] }
 0x22e   :  { %v2398_v0 = vpop.f32.mrb[4].mxu0 }
 0x22f   :  { %v2132_v56 = vadd.f32 %v2398_v0, %v1678_v36  ;;  %v1887_v42 = vpop.f32.mrb[5].mxu0  ;;  %v1717_v0 = vld [vmem:[%s5179_s2 + $0x168] sm:$0xff] }
 0x230   :  { %v2130_v57 = vadd.f32 %v1887_v42, %v1676_v39  ;;  %v2399_v48 = vpop.f32.mrb[6].mxu0 }
 0x231   :  { %2197 = vst.msk [vmem:[%s5180_s6 + $0x30] sm:$0xff] %vm2190_vm2, %v2132_v56  ;;  %v2133_v50 = vadd.f32 %v2399_v48, %v1679_v4  ;;  %v1890_v28 = vpop.f32.mrb[7].mxu0  ;;  %v1690_v48 = vld [vmem:[%s5179_s2 + $0x90] sm:$0xff] }
 0x232   :  { %2195 = vst.msk [vmem:[%s5180_s6 + $0x20] sm:$0xff] %vm2190_vm2, %v2130_v57  ;;  %v2131_v21 = vadd.f32 %v1890_v28, %v1677_v35  ;;  %v2430_v45 = vpop.f32.mrb[4].mxu1  ;;  %v1691_v28 = vld [vmem:[%s5179_s2 + $0x98] sm:$0xff] }
 0x233   :  { %2198 = vst.msk [vmem:[%s5180_s6 + $0x38] sm:$0xff] %vm2190_vm2, %v2133_v50  ;;  %v2164_v11 = vadd.f32 %v2430_v45, %v1710_v43  ;;  %v2015_v5 = vpop.f32.mrb[5].mxu1  ;;  %v1688_v43 = vld [vmem:[%s5179_s2 + $0x80] sm:$0xff]  ;;  %v1689_v45 = vld [vmem:[%s5179_s2 + $0x88] sm:$0xff] }
 0x234   :  { %2196 = vst.msk [vmem:[%s5180_s6 + $0x28] sm:$0xff] %vm2190_vm2, %v2131_v21  ;;  %v2162_v29 = vadd.f32 %v2015_v5, %v1708_v6  ;;  %v2431_v32 = vpop.f32.mrb[6].mxu1  ;;  %v1722_v5 = vld [vmem:[%s5179_s2 + $0x190] sm:$0xff] }
 0x235   :  { %2229 = vst.msk [vmem:[%s5180_s6 + $0x130] sm:$0xff] %vm2190_vm2, %v2164_v11  ;;  %v2165_v46 = vadd.f32 %v2431_v32, %v1711_v12  ;;  %v2018_v51 = vpop.f32.mrb[7].mxu1  ;;  %v1720_v32 = vld [vmem:[%s5179_s2 + $0x180] sm:$0xff] }
 0x236   :  { %2227 = vst.msk [vmem:[%s5180_s6 + $0x120] sm:$0xff] %vm2190_vm2, %v2162_v29  ;;  %v2163_v23 = vadd.f32 %v2018_v51, %v1709_v26 }
 0x237   :  { %2230 = vst.msk [vmem:[%s5180_s6 + $0x138] sm:$0xff] %vm2190_vm2, %v2165_v46 }
 0x238   :  { %2228 = vst.msk [vmem:[%s5180_s6 + $0x128] sm:$0xff] %vm2190_vm2, %v2163_v23  ;;  %v1723_v23 = vld [vmem:[%s5179_s2 + $0x198] sm:$0xff] }
 0x23e   :  { %v2402_v37 = vpop.f32.mrb[8].mxu0 }
 0x23f   :  { %v2136_v38 = vadd.f32 %v2402_v37, %v1682_v27  ;;  %v1903_v58 = vpop.f32.mrb[9].mxu0  ;;  %v1721_v37 = vld [vmem:[%s5179_s2 + $0x188] sm:$0xff] }
 0x240   :  { %v2134_v49 = vadd.f32 %v1903_v58, %v1680_v2  ;;  %v2403_v18 = vpop.f32.mrb[10].mxu0 }
 0x241   :  { %2201 = vst.msk [vmem:[%s5180_s6 + $0x50] sm:$0xff] %vm2190_vm2, %v2136_v38  ;;  %v2137_v60 = vadd.f32 %v2403_v18, %v1683_v17  ;;  %v1906_v59 = vpop.f32.mrb[11].mxu0  ;;  %v1694_v18 = vld [vmem:[%s5179_s2 + $0xb0] sm:$0xff] }
 0x242   :  { %2199 = vst.msk [vmem:[%s5180_s6 + $0x40] sm:$0xff] %vm2190_vm2, %v2134_v49  ;;  %v2135_v7 = vadd.f32 %v1906_v59, %v1681_v10  ;;  %v2434_v16 = vpop.f32.mrb[8].mxu1  ;;  %v1695_v59 = vld [vmem:[%s5179_s2 + $0xb8] sm:$0xff] }
 0x243   :  { %2202 = vst.msk [vmem:[%s5180_s6 + $0x58] sm:$0xff] %vm2190_vm2, %v2137_v60  ;;  %v2168_v44 = vadd.f32 %v2434_v16, %v1714_v33  ;;  %v2031_v41 = vpop.f32.mrb[9].mxu1  ;;  %v1692_v33 = vld [vmem:[%s5179_s2 + $0xa0] sm:$0xff]  ;;  %v1693_v16 = vld [vmem:[%s5179_s2 + $0xa8] sm:$0xff] }
 0x244   :  { %2200 = vst.msk [vmem:[%s5180_s6 + $0x48] sm:$0xff] %vm2190_vm2, %v2135_v7  ;;  %v2166_v30 = vadd.f32 %v2031_v41, %v1712_v15  ;;  %v2435_v31 = vpop.f32.mrb[10].mxu1  ;;  %v1726_v41 = vld [vmem:[%s5179_s2 + $0x1b0] sm:$0xff] }
 0x245   :  { %2233 = vst.msk [vmem:[%s5180_s6 + $0x150] sm:$0xff] %vm2190_vm2, %v2168_v44  ;;  %v2169_v1 = vadd.f32 %v2435_v31, %v1715_v3  ;;  %v2034_v9 = vpop.f32.mrb[11].mxu1  ;;  %v1724_v31 = vld [vmem:[%s5179_s2 + $0x1a0] sm:$0xff] }
 0x246   :  { %2231 = vst.msk [vmem:[%s5180_s6 + $0x140] sm:$0xff] %vm2190_vm2, %v2166_v30  ;;  %v2167_v47 = vadd.f32 %v2034_v9, %v1713_v24 }
 0x247   :  { %2234 = vst.msk [vmem:[%s5180_s6 + $0x158] sm:$0xff] %vm2190_vm2, %v2169_v1 }
 0x248   :  { %2232 = vst.msk [vmem:[%s5180_s6 + $0x148] sm:$0xff] %vm2190_vm2, %v2167_v47  ;;  %v1727_v47 = vld [vmem:[%s5179_s2 + $0x1b8] sm:$0xff] }
 0x24e   :  { %v2406_v40 = vpop.f32.mrb[12].mxu0 }
 0x24f   :  { %v2140_v19 = vadd.f32 %v2406_v40, %v1686_v52  ;;  %v1919_v61 = vpop.f32.mrb[13].mxu0  ;;  %v1725_v40 = vld [vmem:[%s5179_s2 + $0x1a8] sm:$0xff] }
 0x250   :  { %v2138_v62 = vadd.f32 %v1919_v61, %v1684_v55  ;;  %v2407_v20 = vpop.f32.mrb[14].mxu0 }
 0x251   :  { %2205 = vst.msk [vmem:[%s5180_s6 + $0x70] sm:$0xff] %vm2190_vm2, %v2140_v19  ;;  %v2141_v63 = vadd.f32 %v2407_v20, %v1687_v13  ;;  %v1922_v54 = vpop.f32.mrb[15].mxu0  ;;  %v1698_v20 = vld [vmem:[%s5179_s2 + $0xd0] sm:$0xff] }
 0x252   :  { %2203 = vst.msk [vmem:[%s5180_s6 + $0x60] sm:$0xff] %vm2190_vm2, %v2138_v62  ;;  %v2139_v34 = vadd.f32 %v1922_v54, %v1685_v8  ;;  %v2438_v53 = vpop.f32.mrb[12].mxu1  ;;  %v1699_v54 = vld [vmem:[%s5179_s2 + $0xd8] sm:$0xff] }
 0x253   :  { %2206 = vst.msk [vmem:[%s5180_s6 + $0x78] sm:$0xff] %vm2190_vm2, %v2141_v63  ;;  %v2172_v36 = vadd.f32 %v2438_v53, %v1718_v22  ;;  %v2047_v39 = vpop.f32.mrb[13].mxu1  ;;  %v1696_v22 = vld [vmem:[%s5179_s2 + $0xc0] sm:$0xff]  ;;  %v1697_v53 = vld [vmem:[%s5179_s2 + $0xc8] sm:$0xff] }
 0x254   :  { %2204 = vst.msk [vmem:[%s5180_s6 + $0x68] sm:$0xff] %vm2190_vm2, %v2139_v34  ;;  %v2170_v4 = vadd.f32 %v2047_v39, %v1716_v14  ;;  %v2439_v56 = vpop.f32.mrb[14].mxu1  ;;  %v1730_v39 = vld [vmem:[%s5179_s2 + $0x1d0] sm:$0xff] }
 0x255   :  { %2237 = vst.msk [vmem:[%s5180_s6 + $0x170] sm:$0xff] %vm2190_vm2, %v2172_v36  ;;  %v2173_v42 = vadd.f32 %v2439_v56, %v1719_v25  ;;  %v2050_v35 = vpop.f32.mrb[15].mxu1  ;;  %v1728_v56 = vld [vmem:[%s5179_s2 + $0x1c0] sm:$0xff] }
 0x256   :  { %2235 = vst.msk [vmem:[%s5180_s6 + $0x160] sm:$0xff] %vm2190_vm2, %v2170_v4  ;;  %v2171_v57 = vadd.f32 %v2050_v35, %v1717_v0 }
 0x257   :  { %2238 = vst.msk [vmem:[%s5180_s6 + $0x178] sm:$0xff] %vm2190_vm2, %v2173_v42 }
 0x258   :  { %2236 = vst.msk [vmem:[%s5180_s6 + $0x168] sm:$0xff] %vm2190_vm2, %v2171_v57  ;;  %v1731_v57 = vld [vmem:[%s5179_s2 + $0x1d8] sm:$0xff] }
 0x25e   :  { %v2410_v50 = vpop.f32.mrb[16].mxu0 }
 0x25f   :  { %v2144_v6 = vadd.f32 %v2410_v50, %v1690_v48  ;;  %v1935_v21 = vpop.f32.mrb[17].mxu0  ;;  %v1729_v50 = vld [vmem:[%s5179_s2 + $0x1c8] sm:$0xff] }
 0x260   :  { %v2142_v12 = vadd.f32 %v1935_v21, %v1688_v43  ;;  %v2411_v11 = vpop.f32.mrb[18].mxu0 }
 0x261   :  { %2209 = vst.msk [vmem:[%s5180_s6 + $0x90] sm:$0xff] %vm2190_vm2, %v2144_v6  ;;  %v2145_v26 = vadd.f32 %v2411_v11, %v1691_v28  ;;  %v1938_v29 = vpop.f32.mrb[19].mxu0  ;;  %v1702_v11 = vld [vmem:[%s5179_s2 + $0xf0] sm:$0xff] }
 0x262   :  { %2207 = vst.msk [vmem:[%s5180_s6 + $0x80] sm:$0xff] %vm2190_vm2, %v2142_v12  ;;  %v2143_v46 = vadd.f32 %v1938_v29, %v1689_v45  ;;  %v2442_v51 = vpop.f32.mrb[16].mxu1  ;;  %v1703_v29 = vld [vmem:[%s5179_s2 + $0xf8] sm:$0xff] }
 0x263   :  { %2210 = vst.msk [vmem:[%s5180_s6 + $0x98] sm:$0xff] %vm2190_vm2, %v2145_v26  ;;  %v2176_v27 = vadd.f32 %v2442_v51, %v1722_v5  ;;  %v2063_v2 = vpop.f32.mrb[17].mxu1  ;;  %v1700_v5 = vld [vmem:[%s5179_s2 + $0xe0] sm:$0xff]  ;;  %v1701_v51 = vld [vmem:[%s5179_s2 + $0xe8] sm:$0xff] }
 0x264   :  { %2208 = vst.msk [vmem:[%s5180_s6 + $0x88] sm:$0xff] %vm2190_vm2, %v2143_v46  ;;  %v2174_v17 = vadd.f32 %v2063_v2, %v1720_v32  ;;  %v2443_v38 = vpop.f32.mrb[18].mxu1  ;;  %v1734_v2 = vld [vmem:[%s5179_s2 + $0x1f0] sm:$0xff] }
 0x265   :  { %2241 = vst.msk [vmem:[%s5180_s6 + $0x190] sm:$0xff] %vm2190_vm2, %v2176_v27  ;;  %v2177_v58 = vadd.f32 %v2443_v38, %v1723_v23  ;;  %v2066_v10 = vpop.f32.mrb[19].mxu1  ;;  %v1732_v38 = vld [vmem:[%s5179_s2 + $0x1e0] sm:$0xff] }
 0x266   :  { %2239 = vst.msk [vmem:[%s5180_s6 + $0x180] sm:$0xff] %vm2190_vm2, %v2174_v17  ;;  %v2175_v49 = vadd.f32 %v2066_v10, %v1721_v37 }
 0x267   :  { %2242 = vst.msk [vmem:[%s5180_s6 + $0x198] sm:$0xff] %vm2190_vm2, %v2177_v58 }
 0x268   :  { %2240 = vst.msk [vmem:[%s5180_s6 + $0x188] sm:$0xff] %vm2190_vm2, %v2175_v49  ;;  %v1735_v49 = vld [vmem:[%s5179_s2 + $0x1f8] sm:$0xff] }
 0x26e   :  { %v2414_v60 = vpop.f32.mrb[20].mxu0 }
 0x26f   :  { %v2148_v15 = vadd.f32 %v2414_v60, %v1694_v18  ;;  %v1951_v7 = vpop.f32.mrb[21].mxu0  ;;  %v1733_v60 = vld [vmem:[%s5179_s2 + $0x1e8] sm:$0xff] }
 0x270   :  { %v2146_v3 = vadd.f32 %v1951_v7, %v1692_v33  ;;  %v2415_v44 = vpop.f32.mrb[22].mxu0 }
 0x271   :  { %2213 = vst.msk [vmem:[%s5180_s6 + $0xb0] sm:$0xff] %vm2190_vm2, %v2148_v15  ;;  %v2149_v24 = vadd.f32 %v2415_v44, %v1695_v59  ;;  %v1954_v30 = vpop.f32.mrb[23].mxu0 }
 0x272   :  { %2211 = vst.msk [vmem:[%s5180_s6 + $0xa0] sm:$0xff] %vm2190_vm2, %v2146_v3  ;;  %v2147_v1 = vadd.f32 %v1954_v30, %v1693_v16  ;;  %v2446_v9 = vpop.f32.mrb[20].mxu1 }
 0x273   :  { %2214 = vst.msk [vmem:[%s5180_s6 + $0xb8] sm:$0xff] %vm2190_vm2, %v2149_v24  ;;  %v2180_v52 = vadd.f32 %v2446_v9, %v1726_v41  ;;  %v2079_v55 = vpop.f32.mrb[21].mxu1 }
 0x274   :  { %2212 = vst.msk [vmem:[%s5180_s6 + $0xa8] sm:$0xff] %vm2190_vm2, %v2147_v1  ;;  %v2178_v13 = vadd.f32 %v2079_v55, %v1724_v31  ;;  %v2447_v19 = vpop.f32.mrb[22].mxu1 }
 0x275   :  { %2245 = vst.msk [vmem:[%s5180_s6 + $0x1b0] sm:$0xff] %vm2190_vm2, %v2180_v52  ;;  %v2181_v61 = vadd.f32 %v2447_v19, %v1727_v47  ;;  %v2082_v8 = vpop.f32.mrb[23].mxu1 }
 0x276   :  { %2243 = vst.msk [vmem:[%s5180_s6 + $0x1a0] sm:$0xff] %vm2190_vm2, %v2178_v13  ;;  %v2179_v62 = vadd.f32 %v2082_v8, %v1725_v40 }
 0x277   :  { %2246 = vst.msk [vmem:[%s5180_s6 + $0x1b8] sm:$0xff] %vm2190_vm2, %v2181_v61 }
 0x278   :  { %2244 = vst.msk [vmem:[%s5180_s6 + $0x1a8] sm:$0xff] %vm2190_vm2, %v2179_v62 }
 0x296   :  { %v2418_v63 = vpop.f32.mrb[24].mxu0 }
 0x297   :  { %v2152_v14 = vadd.f32 %v2418_v63, %v1698_v20  ;;  %v1967_v34 = vpop.f32.mrb[25].mxu0 }
 0x298   :  { %v2150_v25 = vadd.f32 %v1967_v34, %v1696_v22  ;;  %v2419_v36 = vpop.f32.mrb[26].mxu0 }
 0x299   :  { %2217 = vst.msk [vmem:[%s5180_s6 + $0xd0] sm:$0xff] %vm2190_vm2, %v2152_v14  ;;  %v2153_v0 = vadd.f32 %v2419_v36, %v1699_v54  ;;  %v1970_v4 = vpop.f32.mrb[27].mxu0 }
 0x29a   :  { %2215 = vst.msk [vmem:[%s5180_s6 + $0xc0] sm:$0xff] %vm2190_vm2, %v2150_v25  ;;  %v2151_v42 = vadd.f32 %v1970_v4, %v1697_v53  ;;  %v2450_v35 = vpop.f32.mrb[24].mxu1 }
 0x29b   :  { %2218 = vst.msk [vmem:[%s5180_s6 + $0xd8] sm:$0xff] %vm2190_vm2, %v2153_v0  ;;  %v2184_v48 = vadd.f32 %v2450_v35, %v1730_v39  ;;  %v2095_v43 = vpop.f32.mrb[25].mxu1 }
 0x29c   :  { %2216 = vst.msk [vmem:[%s5180_s6 + $0xc8] sm:$0xff] %vm2190_vm2, %v2151_v42  ;;  %v2182_v28 = vadd.f32 %v2095_v43, %v1728_v56  ;;  %v2451_v6 = vpop.f32.mrb[26].mxu1 }
 0x29d   :  { %2249 = vst.msk [vmem:[%s5180_s6 + $0x1d0] sm:$0xff] %vm2190_vm2, %v2184_v48  ;;  %v2185_v21 = vadd.f32 %v2451_v6, %v1731_v57  ;;  %v2098_v45 = vpop.f32.mrb[27].mxu1 }
 0x29e   :  { %2247 = vst.msk [vmem:[%s5180_s6 + $0x1c0] sm:$0xff] %vm2190_vm2, %v2182_v28  ;;  %v2183_v12 = vadd.f32 %v2098_v45, %v1729_v50 }
 0x29f   :  { %2250 = vst.msk [vmem:[%s5180_s6 + $0x1d8] sm:$0xff] %vm2190_vm2, %v2185_v21 }
 0x2a0   :  { %2248 = vst.msk [vmem:[%s5180_s6 + $0x1c8] sm:$0xff] %vm2190_vm2, %v2183_v12 }
 0x2a5   :  { %v2422_v26 = vpop.f32.mrb[28].mxu0 }
 0x2a6   :  { %v2156_v32 = vadd.f32 %v2422_v26, %v1702_v11  ;;  %v1983_v46 = vpop.f32.mrb[29].mxu0 }
 0x2a7   :  { %v2154_v23 = vadd.f32 %v1983_v46, %v1700_v5  ;;  %v2423_v27 = vpop.f32.mrb[30].mxu0 }
 0x2a8   :  { %2221 = vst.msk [vmem:[%s5180_s6 + $0xf0] sm:$0xff] %vm2190_vm2, %v2156_v32  ;;  %v2157_v37 = vadd.f32 %v2423_v27, %v1703_v29  ;;  %v1986_v17 = vpop.f32.mrb[31].mxu0 }
 0x2a9   :  { %2219 = vst.msk [vmem:[%s5180_s6 + $0xe0] sm:$0xff] %vm2190_vm2, %v2154_v23  ;;  %v2155_v58 = vadd.f32 %v1986_v17, %v1701_v51  ;;  %v2454_v10 = vpop.f32.mrb[28].mxu1 }
 0x2aa   :  { %2222 = vst.msk [vmem:[%s5180_s6 + $0xf8] sm:$0xff] %vm2190_vm2, %v2157_v37  ;;  %v2188_v18 = vadd.f32 %v2454_v10, %v1734_v2  ;;  %v2111_v33 = vpop.f32.mrb[29].mxu1 }
 0x2ab   :  { %2220 = vst.msk [vmem:[%s5180_s6 + $0xe8] sm:$0xff] %vm2190_vm2, %v2155_v58  ;;  %v2186_v59 = vadd.f32 %v2111_v33, %v1732_v38  ;;  %v2455_v15 = vpop.f32.mrb[30].mxu1 }
 0x2ac   :  { %2253 = vst.msk [vmem:[%s5180_s6 + $0x1f0] sm:$0xff] %vm2190_vm2, %v2188_v18  ;;  %v2189_v7 = vadd.f32 %v2455_v15, %v1735_v49  ;;  %v2114_v16 = vpop.f32.mrb[31].mxu1 }
 0x2ad   :  { %2251 = vst.msk [vmem:[%s5180_s6 + $0x1e0] sm:$0xff] %vm2190_vm2, %v2186_v59  ;;  %v2187_v3 = vadd.f32 %v2114_v16, %v1733_v60 }
 0x2ae   :  { %2254 = vst.msk [vmem:[%s5180_s6 + $0x1f8] sm:$0xff] %vm2190_vm2, %v2189_v7 }
 0x2af   :  { %2252 = vst.msk [vmem:[%s5180_s6 + $0x1e8] sm:$0xff] %vm2190_vm2, %v2187_v3 }

</bundles_post_ra>
